<compile_context>
chip_gen: v5e
topology: v5e:2x2
jax: 0.10.0
libtpu: 0.0.40
codegen_flags: <defaults>
</compile_context>

<pallas_src>
import jax
import jax.numpy as jnp
from jax.experimental import pallas as pl
from jax.experimental.pallas import tpu as pltpu

# ---------------- config (consistent with the module's __init__) -------------
NUM_HEADS = 2
DIM_NODE = 32
DIM_EDGE = 16
DIM_ATTEN = 32
D_N = DIM_NODE // NUM_HEADS     # 16
D_E = DIM_EDGE // NUM_HEADS     # 8
D_O = DIM_ATTEN // NUM_HEADS    # 16

H1 = DIM_NODE + DIM_EDGE                       # 48  nn_edge hidden width
S2_IN = H1 + DIM_NODE + DIM_EDGE               # 96  fused stage-2 input width
S1_OUT = S2_IN + DIM_ATTEN                     # 128 fused stage-1 output width
S2_OUT = DIM_EDGE + (D_N + D_E) * NUM_HEADS    # 64  fused stage-2 output width
CAT_IN = 2 * DIM_NODE + DIM_EDGE               # 80  pre-concatenated edge input
XG = DIM_ATTEN + DIM_EDGE                      # 48  merged edge-kernel output width

TE = 1024   # edge-row tile (edge kernel)
TN = 256    # node-row tile (node kernel)
TEC = 512   # edge-chunk rows per node-kernel step (TEC | TE)


# ---------------- edge kernel --------------------------------------------------
def _edge_kernel(cat_ref, w1f_ref, b1f_ref, w2f_ref, b2f_ref, w3f_ref, b3f_ref,
                 sh_ref, out_ref):
    f32 = jnp.float32
    cat = cat_ref[...]                                                          # [TE, 80]

    # fused stage 1: [nn_edge layer1 | proj_query | proj_edge | proj_value] -> 128 lanes
    z = jnp.dot(cat, w1f_ref[...], preferred_element_type=f32) + b1f_ref[...]   # [TE, 128]
    val = z[:, S2_IN:S1_OUT]                                                    # [TE, 32]

    # fused stage 2: [nn_edge layer2 | attention-MLP layer1]
    z96 = z[:, :S2_IN]                                                          # [TE, 96]
    lane = jax.lax.broadcasted_iota(jnp.int32, (TE, S2_IN), 1)
    s2_in = jnp.where(lane < H1, jnp.maximum(z96, 0.0), z96)   # ReLU only on nn_edge hidden
    s2 = jnp.dot(s2_in, w2f_ref[...], preferred_element_type=f32) + b2f_ref[...]  # [TE, 64]
    gcn = s2[:, :DIM_EDGE]                                                      # [TE, 16]

    # attention-MLP layer2 (per-head Conv1d in flattened c*H+h layout)
    z1 = jnp.maximum(s2[:, DIM_EDGE:], 0.0)                                     # [TE, 48]
    logits = jnp.dot(z1, w3f_ref[...], preferred_element_type=f32) + b3f_ref[...]  # [TE, 32]

    # per-head softmax over the D_O channels of each head
    m = jnp.max(logits, axis=1, keepdims=True)
    ex = jnp.exp(logits - m)
    denom = jnp.dot(ex, sh_ref[...], preferred_element_type=f32)    # per-head sums
    r = pl.reciprocal(denom, approx=True)
    r = r * (2.0 - denom * r)             # one Newton step -> ~f32 exact, no vdiv
    xx = ex * r * val                                                           # [TE, 32]

    # single merged, wider output stream: [xx | gcn]
    out_ref[...] = jnp.concatenate([xx, gcn], axis=1).astype(out_ref.dtype)


# ---------------- node kernel (sorted-segment scatter-max + prop MLP) ----------
def _node_kernel(first_ref, last_ref, x_ref, exx_ref, idxc_ref, lm_ref,
                 wp1_ref, bp1_ref, wp2_ref, bp2_ref, out_ref, acc_ref):
    f32 = jnp.float32
    t = pl.program_id(0)
    c = pl.program_id(1)

    @pl.when(c == 0)
    def _init():
        acc_ref[...] = jnp.full(acc_ref.shape, -jnp.inf, acc_ref.dtype)

    n_active = last_ref[t] - first_ref[t] + 1    # chunks this tile actually owns

    @pl.when(c < n_active)
    def _scatter():
        xx = exx_ref[:, 0:DIM_ATTEN]                                 # [TEC, 32]
        idxc = idxc_ref[...]                                         # [TEC, 1] i32 (sorted)

        # bidirectional segmented running max along rows (edges sorted by target node);
        # masks come from the idx column rolled with the *same* shift, so correctness
        # does not depend on the roll sign convention, and chunk wrap-around is safe
        # because max is idempotent within a segment.
        seg = xx
        k = 1
        while k < TEC:
            for sh in (k, TEC - k):                                  # both directions
                ri = pltpu.roll(idxc, sh, axis=0)
                rv = pltpu.roll(seg, sh, axis=0)
                seg = jnp.where(ri == idxc, jnp.maximum(seg, rv), seg)
            k *= 2
        # now every row of a (chunk-local) segment holds that segment's max.

        # one-hot selector [TN, TEC]: node n picks its single marked segment row
        lm = lm_ref[0:1, :]                                          # [1, TEC] i32
        node_ids = t * TN + jax.lax.broadcasted_iota(jnp.int32, (TN, 1), 0)   # [TN, 1]
        sel = (lm == node_ids).astype(f32)                           # [TN, TEC]

        # [TN,TEC] @ [TEC,64] -> per-node segment max (cols 0:32) + edge count (32:64)
        segp = jnp.concatenate([seg, jnp.ones_like(seg)], axis=1)    # [TEC, 64]
        part = jnp.dot(sel, segp, preferred_element_type=f32,
                       precision=jax.lax.Precision.HIGHEST)          # [TN, 64]
        has = part[:, DIM_ATTEN:DIM_ATTEN + 1] > 0.5
        partial = jnp.where(has, part[:, 0:DIM_ATTEN], -jnp.inf)
        acc_ref[...] = jnp.maximum(acc_ref[...], partial)

    @pl.when(c == pl.num_programs(1) - 1)
    def _finalize():
        acc = acc_ref[...]                                           # [TN, 32]
        agg = jnp.where(acc > -jnp.inf, acc, 0.0)                    # no-edge nodes -> 0
        cat = jnp.concatenate([x_ref[...], agg], axis=1)             # [TN, 64]
        h = jnp.maximum(jnp.dot(cat, wp1_ref[...], preferred_element_type=f32)
                        + bp1_ref[...], 0.0)
        out_ref[...] = (jnp.dot(h, wp2_ref[...], preferred_element_type=f32)
                        + bp2_ref[...]).astype(out_ref.dtype)


# ---------------- wrapper -------------------------------------------------------
def graph_edge_atten_forward(x, edge_feature, edge_index, p, max_chunks_per_tile=None):
    N, E = x.shape[0], edge_feature.shape[0]
    src = edge_index[0].astype(jnp.int32)
    dst = edge_index[1].astype(jnp.int32)

    # sort edges by aggregation target so each node tile's edges are contiguous
    perm = jnp.argsort(src)
    inv_perm = jnp.zeros_like(perm).at[perm].set(jnp.arange(E, dtype=perm.dtype))
    src_s, dst_s, ef_s = src[perm], dst[perm], edge_feature[perm]

    E_pad = ((E + TE - 1) // TE) * TE          # TE is a multiple of TEC
    N_pad = ((N + TN - 1) // TN) * TN
    n_tiles = N_pad // TN
    n_chunks = E_pad // TEC

    # single pre-concatenated edge-kernel input [E_pad, 80]
    cat80 = jnp.concatenate([x[src_s], ef_s, x[dst_s]], axis=1)
    cat80 = jnp.pad(cat80, ((0, E_pad - E), (0, 0)))
    x_p = jnp.pad(x, ((0, N_pad - N), (0, 0)))

    # sorted target ids; sentinel N_pad keeps sortedness and never matches a node id
    src_pad = jnp.pad(src_s, (0, E_pad - E), constant_values=N_pad)
    e_idx = jnp.arange(E_pad, dtype=jnp.int32)
    nxt = jnp.concatenate([src_pad[1:], jnp.full((1,), -2, jnp.int32)])
    is_last = jnp.logical_or(src_pad != nxt, (e_idx % TEC) == TEC - 1)
    lastmark = jnp.where(is_last, src_pad, -1)     # node id at its chunk-local segment end
    lm_row = jnp.broadcast_to(lastmark.reshape(n_chunks, 1, TEC),
                              (n_chunks, 8, TEC)).reshape(n_chunks * 8, TEC)
    idx_col = src_pad.reshape(E_pad, 1)

    # ---- edge kernel -----------------------------------------------------------
    ew = [p['W1f'], p['b1f'], p['W2f'], p['b2f'], p['W3f'], p['b3f'], p['Sh']]
    full_e = lambda a: pl.BlockSpec(a.shape, lambda i: (0, 0))
    exx = pl.pallas_call(
        _edge_kernel,
        out_shape=jax.ShapeDtypeStruct((E_pad, XG), jnp.float32),
        grid=(E_pad // TE,),
        in_specs=[pl.BlockSpec((TE, CAT_IN), lambda i: (i, 0))] + [full_e(w) for w in ew],
        out_specs=pl.BlockSpec((TE, XG), lambda i: (i, 0)),
        compiler_params=pltpu.CompilerParams(dimension_semantics=("parallel",)),
    )(cat80, *ew)

    # ---- per-node-tile chunk ranges (device scalars, no host sync) --------------
    tile_lo = jnp.arange(n_tiles, dtype=jnp.int32) * TN
    starts = jnp.searchsorted(src_s, tile_lo).astype(jnp.int32)
    ends = jnp.searchsorted(src_s, tile_lo + TN).astype(jnp.int32)
    first_chunk = jnp.clip(starts // TEC, 0, n_chunks - 1).astype(jnp.int32)
    last_chunk = jnp.clip(jnp.maximum(ends - 1, starts) // TEC, 0, n_chunks - 1).astype(jnp.int32)

    # static c-axis bound (default: worst case). Steps past a tile's own span are
    # clamped to its last chunk (no re-DMA) and skipped with pl.when in the kernel.
    maxc = n_chunks if max_chunks_per_tile is None else min(int(max_chunks_per_tile), n_chunks)

    chunk_map = lambda t, c, fc, lc: (jnp.minimum(fc[t] + c, lc[t]), 0)
    full_n = lambda a: pl.BlockSpec(a.shape, lambda t, c, fc, lc: (0, 0))
    nw = [p['Wp1'], p['bp1'], p['Wp2'], p['bp2']]
    out_p = pl.pallas_call(
        _node_kernel,
        out_shape=jax.ShapeDtypeStruct((N_pad, DIM_NODE), jnp.float32),
        grid_spec=pltpu.PrefetchScalarGridSpec(
            num_scalar_prefetch=2,
            grid=(n_tiles, maxc),
            in_specs=[pl.BlockSpec((TN, DIM_NODE), lambda t, c, fc, lc: (t, 0)),
                      pl.BlockSpec((TEC, XG), chunk_map),
                      pl.BlockSpec((TEC, 1), chunk_map),
                      pl.BlockSpec((8, TEC), chunk_map)]
                     + [full_n(w) for w in nw],
            out_specs=pl.BlockSpec((TN, DIM_NODE), lambda t, c, fc, lc: (t, 0)),
            scratch_shapes=[pltpu.VMEM((TN, DIM_ATTEN), jnp.float32)]),
        compiler_params=pltpu.CompilerParams(
            dimension_semantics=("parallel", "arbitrary")),
    )(first_chunk, last_chunk, x_p, exx, idx_col, lm_row, *nw)

    gcn_edge = exx[:E, DIM_ATTEN:XG][inv_perm]     # back to original edge order
    return out_p[:N], gcn_edge


# ---------------- deterministic parameter init ----------------------------------
def init_params(key):
    def lin(k, fan_in, fan_out):
        k1, k2 = jax.random.split(k)
        W = jax.random.normal(k1, (fan_in, fan_out), jnp.float32) / jnp.sqrt(float(fan_in))
        b = 0.01 * jax.random.normal(k2, (1, fan_out), jnp.float32)
        return W, b

    ks = jax.random.split(key, 9)
    p = {}
    p['W1e'], p['b1e'] = lin(ks[0], 2 * DIM_NODE + DIM_EDGE, DIM_NODE + DIM_EDGE)
    p['W2e'], p['b2e'] = lin(ks[1], DIM_NODE + DIM_EDGE, DIM_EDGE)
    p['Wq'], p['bq'] = lin(ks[2], DIM_NODE, DIM_NODE)
    p['We'], p['be'] = lin(ks[3], DIM_EDGE, DIM_EDGE)
    p['Wv'], p['bv'] = lin(ks[4], DIM_NODE, DIM_ATTEN)
    p['Wa1'], p['ba1'] = lin(ks[5], D_N + D_E, D_N + D_E)
    p['Wa2'], p['ba2'] = lin(ks[6], D_N + D_E, D_O)
    p['Wp1'], p['bp1'] = lin(ks[7], DIM_NODE + DIM_ATTEN, DIM_NODE + DIM_ATTEN)
    p['Wp2'], p['bp2'] = lin(ks[8], DIM_NODE + DIM_ATTEN, DIM_NODE)

    # head-block-expanded attention-MLP weights: W[c*H+h, o*H+h'] = Wa[c,o] * (h==h')
    eyeH = jnp.eye(NUM_HEADS, dtype=jnp.float32)
    Wa1x = jnp.einsum('co,hk->chok', p['Wa1'], eyeH).reshape(
        (D_N + D_E) * NUM_HEADS, (D_N + D_E) * NUM_HEADS)
    ba1x = jnp.repeat(p['ba1'], NUM_HEADS, axis=1)
    Wa2x = jnp.einsum('co,hk->chok', p['Wa2'], eyeH).reshape(
        (D_N + D_E) * NUM_HEADS, D_O * NUM_HEADS)
    ba2x = jnp.repeat(p['ba2'], NUM_HEADS, axis=1)
    # head-selection matrix for per-head softmax denominators
    lane = jnp.arange(DIM_ATTEN)
    p['Sh'] = (lane[:, None] % NUM_HEADS == lane[None, :] % NUM_HEADS).astype(jnp.float32)

    # fused stage-1 weight [80, 128]: [nn_edge L1 | proj_q | proj_e | proj_v]
    W1f = jnp.zeros((2 * DIM_NODE + DIM_EDGE, S1_OUT), jnp.float32)
    W1f = W1f.at[:, 0:H1].set(p['W1e'])
    W1f = W1f.at[0:DIM_NODE, H1:H1 + DIM_NODE].set(p['Wq'])
    W1f = W1f.at[DIM_NODE:DIM_NODE + DIM_EDGE, H1 + DIM_NODE:S2_IN].set(p['We'])
    W1f = W1f.at[DIM_NODE + DIM_EDGE:, S2_IN:S1_OUT].set(p['Wv'])
    p['W1f'] = W1f
    p['b1f'] = jnp.concatenate([p['b1e'], p['bq'], p['be'], p['bv']], axis=1)

    # fused stage-2 weight [96, 64]: [nn_edge L2 | attention-MLP L1]
    W2f = jnp.zeros((S2_IN, S2_OUT), jnp.float32)
    W2f = W2f.at[0:H1, 0:DIM_EDGE].set(p['W2e'])
    W2f = W2f.at[H1:S2_IN, DIM_EDGE:S2_OUT].set(Wa1x)
    p['W2f'] = W2f
    p['b2f'] = jnp.concatenate([p['b2e'], ba1x], axis=1)

    p['W3f'], p['b3f'] = Wa2x, ba2x
    return p


# ---------------- pure-JAX reference (for validation) ----------------------------
def ref_forward(x, edge_feature, edge_index, p):
    N, E = x.shape[0], edge_feature.shape[0]
    src, dst = edge_index[0], edge_index[1]
    x_i, x_j = x[src], x[dst]
    cat = jnp.concatenate([x_i, edge_feature, x_j], axis=1)
    h = jax.nn.relu(cat @ p['W1e'] + p['b1e'])
    gcn_edge = h @ p['W2e'] + p['b2e']
    val = x_j @ p['Wv'] + p['bv']
    qp = (x_i @ p['Wq'] + p['bq']).reshape(E, D_N, NUM_HEADS)
    ep = (edge_feature @ p['We'] + p['be']).reshape(E, D_E, NUM_HEADS)
    c3 = jnp.concatenate([qp, ep], axis=1)
    z = jax.nn.relu(jnp.einsum('ech,co->eoh', c3, p['Wa1'])
                    + p['ba1'].reshape(-1)[None, :, None])
    logit = jnp.einsum('ech,co->eoh', z, p['Wa2']) + p['ba2'].reshape(-1)[None, :, None]
    prob = jax.nn.softmax(logit, axis=1)
    xx_e = prob.reshape(E, DIM_ATTEN) * val
    agg = jnp.full((N, DIM_ATTEN), -jnp.inf, jnp.float32).at[src].max(xx_e)
    agg = jnp.where(jnp.isneginf(agg), 0.0, agg)
    out = jax.nn.relu(jnp.concatenate([x, agg], axis=1) @ p['Wp1'] + p['bp1']) @ p['Wp2'] + p['bp2']
    return out, gcn_edge


# ---------------- main ------------------------------------------------------------
if __name__ == "__main__":
    key = jax.random.PRNGKey(0)
    kx, ke, ki, kp = jax.random.split(key, 4)
    N, E = 200, 600
    x = jax.random.normal(kx, (N, DIM_NODE), jnp.float32)
    edge_feature = jax.random.normal(ke, (E, DIM_EDGE), jnp.float32)
    edge_index = jax.random.randint(ki, (2, E), 0, N, dtype=jnp.int32)
    params = init_params(kp)

    out, gcn_edge = graph_edge_atten_forward(x, edge_feature, edge_index, params)
    jax.block_until_ready((out, gcn_edge))

    ref_out, ref_edge = ref_forward(x, edge_feature, edge_index, params)
    assert out.shape == (N, DIM_NODE) and gcn_edge.shape == (E, DIM_EDGE)
    err_o = float(jnp.max(jnp.abs(out - ref_out)))
    err_e = float(jnp.max(jnp.abs(gcn_edge - ref_edge)))
    assert jnp.allclose(out, ref_out, atol=2e-3, rtol=2e-3), err_o
    assert jnp.allclose(gcn_edge, ref_edge, atol=2e-3, rtol=2e-3), err_e
    print("KERNEL_OK")
</pallas_src>

<mosaic_0001>
module attributes {stable_mosaic.version = 11 : i64} {
  func.func @_edge_kernel(%arg0: i32, %arg1: memref<1024x80xf32, #tpu.memory_space<vmem>>, %arg2: memref<80x128xf32, #tpu.memory_space<vmem>>, %arg3: memref<1x128xf32, #tpu.memory_space<vmem>>, %arg4: memref<96x64xf32, #tpu.memory_space<vmem>>, %arg5: memref<1x64xf32, #tpu.memory_space<vmem>>, %arg6: memref<48x32xf32, #tpu.memory_space<vmem>>, %arg7: memref<1x32xf32, #tpu.memory_space<vmem>>, %arg8: memref<32x32xf32, #tpu.memory_space<vmem>>, %arg9: memref<1024x48xf32, #tpu.memory_space<vmem>>) attributes {dimension_semantics = [#tpu.dimension_semantics<parallel>], iteration_bounds = array<i64: 1>, scalar_prefetch = 0 : i64, scratch_operands = 0 : i64, tpu.core_type = #tpu.core_type<tc>, window_params = [{transform_indices = @transform_0, window_bounds = array<i64: 1024, 80>}, {pipeline_mode = #tpu.pipeline_mode<synchronous>, transform_indices = @transform_1, window_bounds = array<i64: 80, 128>}, {pipeline_mode = #tpu.pipeline_mode<synchronous>, transform_indices = @transform_2, window_bounds = array<i64: 1, 128>}, {pipeline_mode = #tpu.pipeline_mode<synchronous>, transform_indices = @transform_3, window_bounds = array<i64: 96, 64>}, {pipeline_mode = #tpu.pipeline_mode<synchronous>, transform_indices = @transform_4, window_bounds = array<i64: 1, 64>}, {pipeline_mode = #tpu.pipeline_mode<synchronous>, transform_indices = @transform_5, window_bounds = array<i64: 48, 32>}, {pipeline_mode = #tpu.pipeline_mode<synchronous>, transform_indices = @transform_6, window_bounds = array<i64: 1, 32>}, {pipeline_mode = #tpu.pipeline_mode<synchronous>, transform_indices = @transform_7, window_bounds = array<i64: 32, 32>}, {transform_indices = @transform_8, window_bounds = array<i64: 1024, 48>}]} {
    %c0 = arith.constant 0 : index
    %c0_0 = arith.constant 0 : index
    %0 = vector.load %arg1[%c0, %c0_0] : memref<1024x80xf32, #tpu.memory_space<vmem>>, vector<1024x80xf32>
    %c0_1 = arith.constant 0 : index
    %c0_2 = arith.constant 0 : index
    %1 = vector.load %arg2[%c0_1, %c0_2] : memref<80x128xf32, #tpu.memory_space<vmem>>, vector<80x128xf32>
    %cst = arith.constant dense<0.000000e+00> : vector<1024x128xf32>
    %2 = tpu.matmul %0, %1, %cst {dimension_numbers = #tpu.dot_dimension_numbers<[1], [0], [0], [1], [0, 0, 1, 1], [], []>} : vector<1024x80xf32>, vector<80x128xf32>, vector<1024x128xf32> -> vector<1024x128xf32>
    %c0_3 = arith.constant 0 : index
    %c0_4 = arith.constant 0 : index
    %3 = vector.load %arg3[%c0_3, %c0_4] : memref<1x128xf32, #tpu.memory_space<vmem>>, vector<1x128xf32>
    %4 = vector.broadcast %3 : vector<1x128xf32> to vector<1024x128xf32>
    %5 = arith.addf %2, %4 : vector<1024x128xf32>
    %6 = vector.extract_strided_slice %5 {offsets = [0, 96], sizes = [1024, 32], strides = [1, 1]} : vector<1024x128xf32> to vector<1024x32xf32>
    %7 = vector.extract_strided_slice %5 {offsets = [0, 0], sizes = [1024, 96], strides = [1, 1]} : vector<1024x128xf32> to vector<1024x96xf32>
    %8 = tpu.iota {dimensions = array<i32: 1>} : vector<1024x96xi32>
    %c48_i32 = arith.constant 48 : i32
    %9 = vector.broadcast %c48_i32 : i32 to vector<1024x96xi32>
    %10 = arith.cmpi slt, %8, %9 : vector<1024x96xi32>
    %cst_5 = arith.constant 0.000000e+00 : f32
    %11 = vector.broadcast %cst_5 : f32 to vector<1024x96xf32>
    %12 = arith.maximumf %7, %11 : vector<1024x96xf32>
    %13 = arith.select %10, %12, %7 : vector<1024x96xi1>, vector<1024x96xf32>
    %c0_6 = arith.constant 0 : index
    %c0_7 = arith.constant 0 : index
    %14 = vector.load %arg4[%c0_6, %c0_7] : memref<96x64xf32, #tpu.memory_space<vmem>>, vector<96x64xf32>
    %cst_8 = arith.constant dense<0.000000e+00> : vector<1024x64xf32>
    %15 = tpu.matmul %13, %14, %cst_8 {dimension_numbers = #tpu.dot_dimension_numbers<[1], [0], [0], [1], [0, 0, 1, 1], [], []>} : vector<1024x96xf32>, vector<96x64xf32>, vector<1024x64xf32> -> vector<1024x64xf32>
    %c0_9 = arith.constant 0 : index
    %c0_10 = arith.constant 0 : index
    %16 = vector.load %arg5[%c0_9, %c0_10] : memref<1x64xf32, #tpu.memory_space<vmem>>, vector<1x64xf32>
    %17 = vector.broadcast %16 : vector<1x64xf32> to vector<1024x64xf32>
    %18 = arith.addf %15, %17 : vector<1024x64xf32>
    %19 = vector.extract_strided_slice %18 {offsets = [0, 0], sizes = [1024, 16], strides = [1, 1]} : vector<1024x64xf32> to vector<1024x16xf32>
    %20 = vector.extract_strided_slice %18 {offsets = [0, 16], sizes = [1024, 48], strides = [1, 1]} : vector<1024x64xf32> to vector<1024x48xf32>
    %cst_11 = arith.constant 0.000000e+00 : f32
    %21 = vector.broadcast %cst_11 : f32 to vector<1024x48xf32>
    %22 = arith.maximumf %20, %21 : vector<1024x48xf32>
    %c0_12 = arith.constant 0 : index
    %c0_13 = arith.constant 0 : index
    %23 = vector.load %arg6[%c0_12, %c0_13] : memref<48x32xf32, #tpu.memory_space<vmem>>, vector<48x32xf32>
    %cst_14 = arith.constant dense<0.000000e+00> : vector<1024x32xf32>
    %24 = tpu.matmul %22, %23, %cst_14 {dimension_numbers = #tpu.dot_dimension_numbers<[1], [0], [0], [1], [0, 0, 1, 1], [], []>} : vector<1024x48xf32>, vector<48x32xf32>, vector<1024x32xf32> -> vector<1024x32xf32>
    %c0_15 = arith.constant 0 : index
    %c0_16 = arith.constant 0 : index
    %25 = vector.load %arg7[%c0_15, %c0_16] : memref<1x32xf32, #tpu.memory_space<vmem>>, vector<1x32xf32>
    %26 = vector.broadcast %25 : vector<1x32xf32> to vector<1024x32xf32>
    %27 = arith.addf %24, %26 : vector<1024x32xf32>
    %cst_17 = arith.constant dense<0xFF800000> : vector<1024xf32>
    %28 = vector.multi_reduction <maximumf>, %27, %cst_17 [1] : vector<1024x32xf32> to vector<1024xf32>
    %29 = vector.shape_cast %28 : vector<1024xf32> to vector<1024x1xf32>
    %30 = vector.broadcast %29 : vector<1024x1xf32> to vector<1024x32xf32>
    %31 = arith.subf %27, %30 : vector<1024x32xf32>
    %32 = math.exp %31 : vector<1024x32xf32>
    %c0_18 = arith.constant 0 : index
    %c0_19 = arith.constant 0 : index
    %33 = vector.load %arg8[%c0_18, %c0_19] : memref<32x32xf32, #tpu.memory_space<vmem>>, vector<32x32xf32>
    %cst_20 = arith.constant dense<0.000000e+00> : vector<1024x32xf32>
    %34 = tpu.matmul %32, %33, %cst_20 {dimension_numbers = #tpu.dot_dimension_numbers<[1], [0], [0], [1], [0, 0, 1, 1], [], []>} : vector<1024x32xf32>, vector<32x32xf32>, vector<1024x32xf32> -> vector<1024x32xf32>
    %35 = tpu.reciprocal %34 {approx = true} : vector<1024x32xf32> -> vector<1024x32xf32>
    %36 = arith.mulf %34, %35 : vector<1024x32xf32>
    %cst_21 = arith.constant 2.000000e+00 : f32
    %37 = vector.broadcast %cst_21 : f32 to vector<1024x32xf32>
    %38 = arith.subf %37, %36 : vector<1024x32xf32>
    %39 = arith.mulf %35, %38 : vector<1024x32xf32>
    %40 = arith.mulf %32, %39 : vector<1024x32xf32>
    %41 = arith.mulf %40, %6 : vector<1024x32xf32>
    %42 = tpu.concatenate %41, %19 in 1 : vector<1024x32xf32>, vector<1024x16xf32> -> vector<1024x48xf32>
    %c0_22 = arith.constant 0 : index
    %c0_23 = arith.constant 0 : index
    %43 = vector.load %arg9[%c0_22, %c0_23] : memref<1024x48xf32, #tpu.memory_space<vmem>>, vector<1024x48xf32>
    tpu.vector_store %arg9[%c0_22, %c0_23], %42 {strides = array<i32>} : memref<1024x48xf32, #tpu.memory_space<vmem>>, vector<1024x48xf32>,
    return
  }
  func.func @transform_0(%arg0: i32) -> (i32, i32) {
    %c0_i32 = arith.constant 0 : i32
    %c0_i32_0 = arith.constant 0 : i32
    return %arg0, %c0_i32 : i32, i32
  }
  func.func @transform_1(%arg0: i32) -> (i32, i32) {
    %c0_i32 = arith.constant 0 : i32
    %c0_i32_0 = arith.constant 0 : i32
    %c0_i32_1 = arith.constant 0 : i32
    return %c0_i32, %c0_i32_0 : i32, i32
  }
  func.func @transform_2(%arg0: i32) -> (i32, i32) {
    %c0_i32 = arith.constant 0 : i32
    %c0_i32_0 = arith.constant 0 : i32
    %c0_i32_1 = arith.constant 0 : i32
    return %c0_i32, %c0_i32_0 : i32, i32
  }
  func.func @transform_3(%arg0: i32) -> (i32, i32) {
    %c0_i32 = arith.constant 0 : i32
    %c0_i32_0 = arith.constant 0 : i32
    %c0_i32_1 = arith.constant 0 : i32
    return %c0_i32, %c0_i32_0 : i32, i32
  }
  func.func @transform_4(%arg0: i32) -> (i32, i32) {
    %c0_i32 = arith.constant 0 : i32
    %c0_i32_0 = arith.constant 0 : i32
    %c0_i32_1 = arith.constant 0 : i32
    return %c0_i32, %c0_i32_0 : i32, i32
  }
  func.func @transform_5(%arg0: i32) -> (i32, i32) {
    %c0_i32 = arith.constant 0 : i32
    %c0_i32_0 = arith.constant 0 : i32
    %c0_i32_1 = arith.constant 0 : i32
    return %c0_i32, %c0_i32_0 : i32, i32
  }
  func.func @transform_6(%arg0: i32) -> (i32, i32) {
    %c0_i32 = arith.constant 0 : i32
    %c0_i32_0 = arith.constant 0 : i32
    %c0_i32_1 = arith.constant 0 : i32
    return %c0_i32, %c0_i32_0 : i32, i32
  }
  func.func @transform_7(%arg0: i32) -> (i32, i32) {
    %c0_i32 = arith.constant 0 : i32
    %c0_i32_0 = arith.constant 0 : i32
    %c0_i32_1 = arith.constant 0 : i32
    return %c0_i32, %c0_i32_0 : i32, i32
  }
  func.func @transform_8(%arg0: i32) -> (i32, i32) {
    %c0_i32 = arith.constant 0 : i32
    %c0_i32_0 = arith.constant 0 : i32
    return %arg0, %c0_i32 : i32, i32
  }
}

</mosaic_0001>

<bundles_post_ra>
// kernel: tpu_custom_call.1
= control target key start
LH: loop header
LB: loop body
LE: loop exit
PB: predicated region body
PF: predicated region fallthrough
CT: control target
= control target key end

     0   :  { %vm171_vm0 = vcmask 654336   ;;  %v957_v38 = vlaneseq  ;;  %s7854_s15 = smov 32   ;;  %vm1232_vm2 = vcmask 785408   ;;  %s7855_s29 = smov 112   ;;  %vm2540_vm3 = vcmask 392192   ;;  %s13674_s1 = inlined_call_operand.vmem [shape: f32[80,128], index: 1, kind: input, shape index: {}]   ;;  %s13675_s2 = inlined_call_operand.vmem [shape: f32[1,128], index: 2, kind: input, shape index: {}]   ;;  %s13676_s0 = inlined_call_operand.vmem [shape: f32[1024,80], index: 0, kind: input, shape index: {}]   ;;  %s13677_s3 = inlined_call_operand.vmem [shape: f32[96,64], index: 3, kind: input, shape index: {}]   ;;  %s13678_s4 = inlined_call_operand.vmem [shape: f32[1,64], index: 4, kind: input, shape index: {}]   ;;  %s13679_s5 = inlined_call_operand.vmem [shape: f32[48,32], index: 5, kind: input, shape index: {}]   ;;  %s13680_s6 = inlined_call_operand.vmem [shape: f32[1,32], index: 6, kind: input, shape index: {}]   ;;  %s13681_s7 = inlined_call_operand.vmem [shape: f32[32,32], index: 7, kind: input, shape index: {}]   ;;  %s13682_s8 = inlined_call_operand.vmem [shape: f32[1024,48], index: 8, kind: output, shape index: {}]  }
   0x1   :  { %v166_v0 = vld [vmem:[%s13674_s1 + $0x48] sm:$0xff]  ;;  %v165_v1 = vld [vmem:[%s13674_s1 + $0x40] sm:$0xff]  ;;  %v164_v2 = vld [vmem:[%s13674_s1 + $0x38] sm:$0xff]  ;;  %vm3198_vm4 = vcmask 261120  }
   0x2   :  { %562 = vmatpush.msra.mxu0 %v166_v0  ;;  %v163_v3 = vld [vmem:[%s13674_s1 + $0x30] sm:$0xff]  ;;  %v162_v4 = vld [vmem:[%s13674_s1 + $0x28] sm:$0xff]  ;;  %v161_v5 = vld [vmem:[%s13674_s1 + $0x20] sm:$0xff]  ;;  %v8036_v40 = vand.u32 127, %v957_v38 }
   0x3   :  { %v160_v6 = vld [vmem:[%s13674_s1 + $0x18] sm:$0xff]  ;;  %v159_v7 = vld [vmem:[%s13674_s1 + $0x10] sm:$0xff]  ;;  %v158_v8 = vld [vmem:[%s13674_s1 + $0x8] sm:$0xff] }
   0x4   :  { %563 = vmatpush.msra.mxu0 %v165_v1  ;;  %v157_v9 = vld [vmem:[%s13674_s1] sm:$0xff]  ;;  %v30_v11 = vld [vmem:[%s13676_s0 + $0x8] sm:$0xff]  ;;  %v31_v12 = vld [vmem:[%s13676_s0 + $0x10] sm:$0xff]  ;;  %vm959_vm1 = vcmp.lt.s32.totalorder %v8036_v40, 48 }
   0x5   :  { %v29_v10 = vld [vmem:[%s13676_s0] sm:$0xff]  ;;  %v32_v13 = vld [vmem:[%s13676_s0 + $0x18] sm:$0xff]  ;;  %v34_v15 = vld [vmem:[%s13676_s0 + $0x28] sm:$0xff] }
   0x6   :  { %564 = vmatpush.msra.mxu0 %v164_v2  ;;  %v33_v14 = vld [vmem:[%s13676_s0 + $0x20] sm:$0xff]  ;;  %v35_v16 = vld [vmem:[%s13676_s0 + $0x30] sm:$0xff]  ;;  %v36_v17 = vld [vmem:[%s13676_s0 + $0x38] sm:$0xff] }
   0x7   :  { %v37_v18 = vld [vmem:[%s13676_s0 + $0x40] sm:$0xff]  ;;  %v38_v19 = vld [vmem:[%s13676_s0 + $0x48] sm:$0xff]  ;;  %v1227_v20 = vld [vmem:[%s13677_s3 + $0x58] sm:$0xff] }
   0x8   :  { %565 = vmatpush.msra.mxu0 %v163_v3  ;;  %v1226_v21 = vld [vmem:[%s13677_s3 + $0x50] sm:$0xff]  ;;  %1621 = vmatpush.msra.mxu1 %v1227_v20  ;;  %v1225_v23 = vld [vmem:[%s13677_s3 + $0x48] sm:$0xff]  ;;  %v1224_v24 = vld [vmem:[%s13677_s3 + $0x40] sm:$0xff] }
   0x9   :  { %v39_v22 = vld [vmem:[%s13676_s0 + $0x50] sm:$0xff]  ;;  %v1223_v25 = vld [vmem:[%s13677_s3 + $0x38] sm:$0xff]  ;;  %v1221_v28 = vld [vmem:[%s13677_s3 + $0x28] sm:$0xff] }
   0xa   :  { %566 = vmatpush.msra.mxu0 %v162_v4  ;;  %1622 = vmatpush.msra.mxu1 %v1226_v21  ;;  %v1222_v26 = vld [vmem:[%s13677_s3 + $0x30] sm:$0xff]  ;;  %v40_v27 = vld [vmem:[%s13676_s0 + $0x58] sm:$0xff]  ;;  %v1220_v29 = vld [vmem:[%s13677_s3 + $0x20] sm:$0xff] }
   0xb   :  { %v1219_v30 = vld [vmem:[%s13677_s3 + $0x18] sm:$0xff]  ;;  %v41_v31 = vld [vmem:[%s13676_s0 + $0x60] sm:$0xff]  ;;  %v1218_v32 = vld [vmem:[%s13677_s3 + $0x10] sm:$0xff] }
   0xc   :  { %567 = vmatpush.msra.mxu0 %v161_v5  ;;  %1623 = vmatpush.msra.mxu1 %v1225_v23  ;;  %v1217_v33 = vld [vmem:[%s13677_s3 + $0x8] sm:$0xff]  ;;  %v1216_v34 = vld [vmem:[%s13677_s3] sm:$0xff]  ;;  %v43_v36 = vld [vmem:[%s13676_s0 + $0x70] sm:$0xff] }
   0xd   :  { %v42_v35 = vld [vmem:[%s13676_s0 + $0x68] sm:$0xff]  ;;  %v44_v37 = vld [vmem:[%s13676_s0 + $0x78] sm:$0xff]  ;;  %v8034_v39 = vld [vmem:[%s13675_s2] ss:$0 sm:$0xff] }
   0xe   :  { %568 = vmatpush.msra.mxu0 %v160_v6  ;;  %1624 = vmatpush.msra.mxu1 %v1224_v24  ;;  %v45_v42 = vld [vmem:[%s13676_s0 + $0x80] sm:$0xff]  ;;  %v46_v47 = vld [vmem:[%s13676_s0 + $0x88] sm:$0xff]  ;;  %v47_v52 = vld [vmem:[%s13676_s0 + $0x90] sm:$0xff] }
   0xf   :  { %v48_v57 = vld [vmem:[%s13676_s0 + $0x98] sm:$0xff]  ;;  %v49_v62 = vld [vmem:[%s13676_s0 + $0xa0] sm:$0xff]  ;;  %v50_v3 = vld [vmem:[%s13676_s0 + $0xa8] sm:$0xff] }
  0x10   :  { %569 = vmatpush.msra.mxu0 %v159_v7  ;;  %1625 = vmatpush.msra.mxu1 %v1223_v25  ;;  %v54_v23 = vld [vmem:[%s13676_s0 + $0xc8] sm:$0xff]  ;;  %v57_v38 = vld [vmem:[%s13676_s0 + $0xe0] sm:$0xff] }
  0x12   :  { %570 = vmatpush.msra.mxu0 %v158_v8  ;;  %1626 = vmatpush.msra.mxu1 %v1222_v26  ;;  %v51_v8 = vld [vmem:[%s13676_s0 + $0xb0] sm:$0xff] }
  0x14   :  { %571 = vmatpush.msra.mxu0 %v157_v9  ;;  %1627 = vmatpush.msra.mxu1 %v1221_v28  ;;  %v55_v28 = vld [vmem:[%s13676_s0 + $0xd0] sm:$0xff] }
  0x15   :  { %6808 = vmatmul.msk.f32.vlgmr.msra.gmra.mxu0 %vm171_vm0, %v29_v10 }
  0x16   :  { %1628 = vmatpush.msra.mxu1 %v1220_v29 }
  0x18   :  { %1629 = vmatpush.msra.mxu1 %v1219_v30 }
  0x1a   :  { %1630 = vmatpush.msra.mxu1 %v1218_v32 }
  0x1c   :  { %1631 = vmatpush.msra.mxu1 %v1217_v33  ;;  %v56_v33 = vld [vmem:[%s13676_s0 + $0xd8] sm:$0xff] }
  0x1d   :  { %6809 = vmatmul.msk.f32.gmra.mxu0 %vm171_vm0, %v30_v11 }
  0x1e   :  { %1632 = vmatpush.msra.mxu1 %v1216_v34 }
  0x25   :  { %6810 = vmatmul.msk.f32.gmra.mxu0 %vm171_vm0, %v31_v12 }
  0x2d   :  { %6811 = vmatmul.msk.f32.gmra.mxu0 %vm171_vm0, %v32_v13  ;;  %v52_v13 = vld [vmem:[%s13676_s0 + $0xb8] sm:$0xff] }
  0x35   :  { %6812 = vmatmul.msk.f32.gmra.mxu0 %vm171_vm0, %v33_v14 }
  0x3d   :  { %6813 = vmatmul.msk.f32.gmra.mxu0 %vm171_vm0, %v34_v15 }
  0x45   :  { %6814 = vmatmul.msk.f32.gmra.mxu0 %vm171_vm0, %v35_v16 }
  0x4d   :  { %6815 = vmatmul.msk.f32.gmra.mxu0 %vm171_vm0, %v36_v17 }
  0x55   :  { %6816 = vmatmul.msk.f32.gmra.mxu0 %vm171_vm0, %v37_v18  ;;  %v53_v18 = vld [vmem:[%s13676_s0 + $0xc0] sm:$0xff] }
  0x5d   :  { %6817 = vmatmul.msk.f32.gmra.mxu0 %vm171_vm0, %v38_v19 }
  0x65   :  { %6818 = vmatmul.msk.f32.gmra.mxu0 %vm171_vm0, %v39_v22 }
  0x6d   :  { %6819 = vmatmul.msk.f32.gmra.mxu0 %vm171_vm0, %v40_v27 }
  0x75   :  { %6820 = vmatmul.msk.f32.gmra.mxu0 %vm171_vm0, %v41_v31 }
  0x7d   :  { %6821 = vmatmul.msk.f32.gmra.mxu0 %vm171_vm0, %v42_v35 }
  0x85   :  { %6822 = vmatmul.msk.f32.gmra.mxu0 %vm171_vm0, %v43_v36 }
  0x8d   :  { %6823 = vmatmul.msk.f32.gmra.mxu0 %vm171_vm0, %v44_v37 }
  0x92   :  { %v573_v41 = vpop.f32.mrf.mxu0 }
  0x93   :  { %v574_v43 = vadd.f32 %v8034_v39, %v573_v41 }
  0x95   :  { %6824 = vmatmul.msk.f32.gmra.mxu0 %vm171_vm0, %v45_v42  ;;  %5524 = vrot.lane.b32.xlu2 %v574_v43, %s7854_s15  ;;  %v960_v44 = vmax.f32 %v574_v43, 0.0 }
  0x97   :  { %v1088_v45 = vsel %vm959_vm1, %v960_v44, %v574_v43 }
  0x98   :  { %6936 = vmatmul.msk.f32.vlgmr.msra.gmra.mxu1 %vm1232_vm2, %v1088_v45  ;;  %v58_v45 = vld [vmem:[%s13676_s0 + $0xe8] sm:$0xff] }
  0x9a   :  { %v576_v46 = vpop.f32.mrf.mxu0 }
  0x9b   :  { %v577_v48 = vadd.f32 %v8034_v39, %v576_v46 }
  0x9d   :  { %6825 = vmatmul.msk.f32.gmra.mxu0 %vm171_vm0, %v46_v47  ;;  %5526 = vrot.lane.b32.xlu1 %v577_v48, %s7854_s15  ;;  %v961_v49 = vmax.f32 %v577_v48, 0.0 }
  0x9f   :  { %v1089_v50 = vsel %vm959_vm1, %v961_v49, %v577_v48 }
  0xa0   :  { %6937 = vmatmul.msk.f32.gmra.mxu1 %vm1232_vm2, %v1089_v50  ;;  %v59_v50 = vld [vmem:[%s13676_s0 + $0xf0] sm:$0xff] }
  0xa2   :  { %v579_v51 = vpop.f32.mrf.mxu0 }
  0xa3   :  { %v580_v53 = vadd.f32 %v8034_v39, %v579_v51 }
  0xa5   :  { %6826 = vmatmul.msk.f32.gmra.mxu0 %vm171_vm0, %v47_v52  ;;  %5528 = vrot.lane.b32.xlu0 %v580_v53, %s7854_s15  ;;  %v962_v54 = vmax.f32 %v580_v53, 0.0 }
  0xa7   :  { %v1090_v55 = vsel %vm959_vm1, %v962_v54, %v580_v53 }
  0xa8   :  { %6938 = vmatmul.msk.f32.gmra.mxu1 %vm1232_vm2, %v1090_v55  ;;  %v60_v55 = vld [vmem:[%s13676_s0 + $0xf8] sm:$0xff] }
  0xaa   :  { %v582_v56 = vpop.f32.mrf.mxu0 }
  0xab   :  { %v583_v58 = vadd.f32 %v8034_v39, %v582_v56 }
  0xad   :  { %6827 = vmatmul.msk.f32.gmra.mxu0 %vm171_vm0, %v48_v57  ;;  %5530 = vrot.lane.b32.xlu2 %v583_v58, %s7854_s15  ;;  %v963_v59 = vmax.f32 %v583_v58, 0.0 }
  0xaf   :  { %v1091_v60 = vsel %vm959_vm1, %v963_v59, %v583_v58 }
  0xb0   :  { %6939 = vmatmul.msk.f32.gmra.mxu1 %vm1232_vm2, %v1091_v60  ;;  %v61_v60 = vld [vmem:[%s13676_s0 + $0x100] sm:$0xff] }
  0xb2   :  { %v585_v61 = vpop.f32.mrf.mxu0 }
  0xb3   :  { %v586_v63 = vadd.f32 %v8034_v39, %v585_v61  ;;  %v8189_v61 = vld [vmem:[%s13678_s4] ss:$0 sm:$0xff] }
  0xb5   :  { %6828 = vmatmul.msk.f32.gmra.mxu0 %vm171_vm0, %v49_v62  ;;  %5532 = vrot.lane.b32.xlu0 %v586_v63, %s7854_s15  ;;  %v964_v0 = vmax.f32 %v586_v63, 0.0 }
  0xb7   :  { %v1092_v1 = vsel %vm959_vm1, %v964_v0, %v586_v63 }
  0xb8   :  { %6940 = vmatmul.msk.f32.gmra.mxu1 %vm1232_vm2, %v1092_v1 }
  0xba   :  { %v588_v2 = vpop.f32.mrf.mxu0 }
  0xbb   :  { %v589_v4 = vadd.f32 %v8034_v39, %v588_v2 }
  0xbd   :  { %6829 = vmatmul.msk.f32.gmra.mxu0 %vm171_vm0, %v50_v3  ;;  %5534 = vrot.lane.b32.xlu1 %v589_v4, %s7854_s15  ;;  %v965_v5 = vmax.f32 %v589_v4, 0.0 }
  0xbf   :  { %v1093_v6 = vsel %vm959_vm1, %v965_v5, %v589_v4  ;;  %v62_v4 = vld [vmem:[%s13676_s0 + $0x108] sm:$0xff] }
  0xc0   :  { %6941 = vmatmul.msk.f32.gmra.mxu1 %vm1232_vm2, %v1093_v6 }
  0xc2   :  { %v591_v7 = vpop.f32.mrf.mxu0 }
  0xc3   :  { %v592_v9 = vadd.f32 %v8034_v39, %v591_v7 }
  0xc5   :  { %6830 = vmatmul.msk.f32.gmra.mxu0 %vm171_vm0, %v51_v8  ;;  %5536 = vrot.lane.b32.xlu2 %v592_v9, %s7854_s15  ;;  %v966_v10 = vmax.f32 %v592_v9, 0.0 }
  0xc7   :  { %v1094_v11 = vsel %vm959_vm1, %v966_v10, %v592_v9 }
  0xc8   :  { %6942 = vmatmul.msk.f32.gmra.mxu1 %vm1232_vm2, %v1094_v11 }
  0xca   :  { %v594_v12 = vpop.f32.mrf.mxu0 }
  0xcb   :  { %v595_v14 = vadd.f32 %v8034_v39, %v594_v12  ;;  %v63_v12 = vld [vmem:[%s13676_s0 + $0x110] sm:$0xff] }
  0xcd   :  { %6831 = vmatmul.msk.f32.gmra.mxu0 %vm171_vm0, %v52_v13  ;;  %5538 = vrot.lane.b32.xlu0 %v595_v14, %s7854_s15  ;;  %v967_v15 = vmax.f32 %v595_v14, 0.0 }
  0xcf   :  { %v1095_v16 = vsel %vm959_vm1, %v967_v15, %v595_v14 }
  0xd0   :  { %6943 = vmatmul.msk.f32.gmra.mxu1 %vm1232_vm2, %v1095_v16 }
  0xd2   :  { %v597_v17 = vpop.f32.mrf.mxu0 }
  0xd3   :  { %v598_v19 = vadd.f32 %v8034_v39, %v597_v17 }
  0xd5   :  { %6832 = vmatmul.msk.f32.gmra.mxu0 %vm171_vm0, %v53_v18  ;;  %5540 = vrot.lane.b32.xlu1 %v598_v19, %s7854_s15  ;;  %v968_v20 = vmax.f32 %v598_v19, 0.0 }
  0xd7   :  { %v1096_v21 = vsel %vm959_vm1, %v968_v20, %v598_v19 }
  0xd8   :  { %6944 = vmatmul.msk.f32.gmra.mxu1 %vm1232_vm2, %v1096_v21  ;;  %v64_v21 = vld [vmem:[%s13676_s0 + $0x118] sm:$0xff] }
  0xda   :  { %v600_v22 = vpop.f32.mrf.mxu0 }
  0xdb   :  { %v601_v24 = vadd.f32 %v8034_v39, %v600_v22 }
  0xdd   :  { %6833 = vmatmul.msk.f32.gmra.mxu0 %vm171_vm0, %v54_v23  ;;  %5542 = vrot.lane.b32.xlu2 %v601_v24, %s7854_s15  ;;  %v969_v25 = vmax.f32 %v601_v24, 0.0 }
  0xdf   :  { %v1097_v26 = vsel %vm959_vm1, %v969_v25, %v601_v24 }
  0xe0   :  { %6945 = vmatmul.msk.f32.gmra.mxu1 %vm1232_vm2, %v1097_v26 }
  0xe2   :  { %v603_v27 = vpop.f32.mrf.mxu0 }
  0xe3   :  { %v604_v29 = vadd.f32 %v8034_v39, %v603_v27 }
  0xe5   :  { %6834 = vmatmul.msk.f32.gmra.mxu0 %vm171_vm0, %v55_v28  ;;  %5544 = vrot.lane.b32.xlu0 %v604_v29, %s7854_s15  ;;  %v970_v30 = vmax.f32 %v604_v29, 0.0  ;;  %v65_v28 = vld [vmem:[%s13676_s0 + $0x120] sm:$0xff] }
  0xe7   :  { %v1098_v31 = vsel %vm959_vm1, %v970_v30, %v604_v29 }
  0xe8   :  { %6946 = vmatmul.msk.f32.gmra.mxu1 %vm1232_vm2, %v1098_v31 }
  0xea   :  { %v606_v32 = vpop.f32.mrf.mxu0 }
  0xeb   :  { %v607_v34 = vadd.f32 %v8034_v39, %v606_v32 }
  0xed   :  { %6835 = vmatmul.msk.f32.gmra.mxu0 %vm171_vm0, %v56_v33  ;;  %5546 = vrot.lane.b32.xlu1 %v607_v34, %s7854_s15  ;;  %v971_v35 = vmax.f32 %v607_v34, 0.0 }
  0xef   :  { %v1099_v36 = vsel %vm959_vm1, %v971_v35, %v607_v34 }
  0xf0   :  { %6947 = vmatmul.msk.f32.gmra.mxu1 %vm1232_vm2, %v1099_v36  ;;  %v66_v36 = vld [vmem:[%s13676_s0 + $0x128] sm:$0xff] }
  0xf2   :  { %v609_v37 = vpop.f32.mrf.mxu0 }
  0xf3   :  { %v610_v41 = vadd.f32 %v8034_v39, %v609_v37 }
  0xf5   :  { %6836 = vmatmul.msk.f32.gmra.mxu0 %vm171_vm0, %v57_v38  ;;  %5548 = vrot.lane.b32.xlu2 %v610_v41, %s7854_s15  ;;  %v972_v42 = vmax.f32 %v610_v41, 0.0 }
  0xf7   :  { %v1100_v43 = vsel %vm959_vm1, %v972_v42, %v610_v41 }
  0xf8   :  { %6948 = vmatmul.msk.f32.gmra.mxu1 %vm1232_vm2, %v1100_v43 }
  0xfa   :  { %v612_v44 = vpop.f32.mrf.mxu0 }
  0xfb   :  { %v613_v46 = vadd.f32 %v8034_v39, %v612_v44 }
  0xfd   :  { %6837 = vmatmul.msk.f32.gmra.mxu0 %vm171_vm0, %v58_v45  ;;  %5550 = vrot.lane.b32.xlu0 %v613_v46, %s7854_s15  ;;  %v973_v47 = vmax.f32 %v613_v46, 0.0 }
  0xff   :  { %v1101_v48 = vsel %vm959_vm1, %v973_v47, %v613_v46  ;;  %v67_v46 = vld [vmem:[%s13676_s0 + $0x130] sm:$0xff] }
 0x100   :  { %6949 = vmatmul.msk.f32.gmra.mxu1 %vm1232_vm2, %v1101_v48 }
 0x102   :  { %v615_v49 = vpop.f32.mrf.mxu0 }
 0x103   :  { %v616_v51 = vadd.f32 %v8034_v39, %v615_v49 }
 0x105   :  { %6838 = vmatmul.msk.f32.gmra.mxu0 %vm171_vm0, %v59_v50  ;;  %5552 = vrot.lane.b32.xlu1 %v616_v51, %s7854_s15  ;;  %v974_v52 = vmax.f32 %v616_v51, 0.0 }
 0x107   :  { %v1102_v53 = vsel %vm959_vm1, %v974_v52, %v616_v51 }
 0x108   :  { %6950 = vmatmul.msk.f32.gmra.mxu1 %vm1232_vm2, %v1102_v53  ;;  %v68_v53 = vld [vmem:[%s13676_s0 + $0x138] sm:$0xff] }
 0x10a   :  { %v618_v54 = vpop.f32.mrf.mxu0 }
 0x10b   :  { %v619_v56 = vadd.f32 %v8034_v39, %v618_v54 }
 0x10d   :  { %6839 = vmatmul.msk.f32.gmra.mxu0 %vm171_vm0, %v60_v55  ;;  %5554 = vrot.lane.b32.xlu2 %v619_v56, %s7854_s15  ;;  %v975_v57 = vmax.f32 %v619_v56, 0.0 }
 0x10f   :  { %v1103_v58 = vsel %vm959_vm1, %v975_v57, %v619_v56 }
 0x110   :  { %6951 = vmatmul.msk.f32.gmra.mxu1 %vm1232_vm2, %v1103_v58  ;;  %v8275_v58 = vpop.permute.xlu2 %5524 }
 0x112   :  { %v621_v59 = vpop.f32.mrf.mxu0 }
 0x113   :  { %v622_v62 = vadd.f32 %v8034_v39, %v621_v59 }
 0x115   :  { %6840 = vmatmul.msk.f32.gmra.mxu0 %vm171_vm0, %v61_v60  ;;  %5556 = vrot.lane.b32.xlu0 %v622_v62, %s7854_s15  ;;  %v1634_v63 = vpop.f32.mrf.mxu1  ;;  %v976_v0 = vmax.f32 %v622_v62, 0.0 }
 0x116   :  { %v1635_v1 = vadd.f32 %v8189_v61, %v1634_v63  ;;  %v69_v63 = vld [vmem:[%s13676_s0 + $0x140] sm:$0xff] }
 0x117   :  { %v1104_v2 = vsel %vm959_vm1, %v976_v0, %v622_v62 }
 0x118   :  { %6952 = vmatmul.msk.f32.gmra.mxu1 %vm1232_vm2, %v1104_v2  ;;  %6164 = vrot.lane.b32.xlu1 %v1635_v1, %s7854_s15  ;;  %v2018_v5 = vmax.f32 %v1635_v1, 0.0 }
 0x11a   :  { %v624_v3 = vpop.f32.mrf.mxu0 }
 0x11b   :  { %v625_v6 = vadd.f32 %v8034_v39, %v624_v3 }
 0x11d   :  { %v1637_v7 = vpop.f32.mrf.mxu1  ;;  %2284 = vrot.lane.b32.xlu0 %v2018_v5, %s7855_s29  ;;  %6841 = vmatmul.msk.f32.gmra.mxu0 %vm171_vm0, %v62_v4  ;;  %v977_v8 = vmax.f32 %v625_v6, 0.0  ;;  %v8290_v5 = vpop.permute.xlu2 %5530 }
 0x11e   :  { %v1638_v9 = vadd.f32 %v8189_v61, %v1637_v7 }
 0x11f   :  { %v1105_v10 = vsel %vm959_vm1, %v977_v8, %v625_v6 }
 0x120   :  { %6953 = vmatmul.msk.f32.gmra.mxu1 %vm1232_vm2, %v1105_v10  ;;  %6166 = vrot.lane.b32.xlu2 %v1638_v9, %s7854_s15  ;;  %v2019_v13 = vmax.f32 %v1638_v9, 0.0  ;;  %v70_v9 = vld [vmem:[%s13676_s0 + $0x148] sm:$0xff] }
 0x121   :  { %5558 = vrot.lane.b32.xlu1 %v625_v6, %s7854_s15 }
 0x122   :  { %v627_v11 = vpop.f32.mrf.mxu0 }
 0x123   :  { %v628_v14 = vadd.f32 %v8034_v39, %v627_v11 }
 0x125   :  { %v1640_v15 = vpop.f32.mrf.mxu1  ;;  %2286 = vrot.lane.b32.xlu0 %v2019_v13, %s7855_s29  ;;  %6842 = vmatmul.msk.f32.gmra.mxu0 %vm171_vm0, %v63_v12  ;;  %v978_v16 = vmax.f32 %v628_v14, 0.0  ;;  %v8303_v13 = vpop.permute.xlu0 %5528 }
 0x126   :  { %v1641_v17 = vadd.f32 %v8189_v61, %v1640_v15 }
 0x127   :  { %v1106_v18 = vsel %vm959_vm1, %v978_v16, %v628_v14 }
 0x128   :  { %v2020_v19 = vmax.f32 %v1641_v17, 0.0  ;;  %6954 = vmatmul.msk.f32.gmra.mxu1 %vm1232_vm2, %v1106_v18  ;;  %5560 = vrot.lane.b32.xlu2 %v628_v14, %s7854_s15  ;;  %v8305_v14 = vpop.permute.xlu2 %5536 }
 0x12a   :  { %v630_v20 = vpop.f32.mrf.mxu0  ;;  %2288 = vrot.lane.b32.xlu1 %v2020_v19, %s7855_s29  ;;  %v71_v19 = vld [vmem:[%s13676_s0 + $0x150] sm:$0xff] }
 0x12b   :  { %v631_v22 = vadd.f32 %v8034_v39, %v630_v20 }
 0x12d   :  { %v1643_v23 = vpop.f32.mrf.mxu1  ;;  %6168 = vrot.lane.b32.xlu0 %v1641_v17, %s7854_s15  ;;  %6843 = vmatmul.msk.f32.gmra.mxu0 %vm171_vm0, %v64_v21  ;;  %v979_v24 = vmax.f32 %v631_v22, 0.0  ;;  %v8313_v17 = vpop.permute.xlu1 %5526 }
 0x12e   :  { %v1644_v26 = vadd.f32 %v8189_v61, %v1643_v23  ;;  %v2151_v23 = vld [vmem:[%s13679_s5 + $0x28] sm:$0xff] }
 0x12f   :  { %v1107_v25 = vsel %vm959_vm1, %v979_v24, %v631_v22  ;;  %2807 = vmatpush.msra.mxu2 %v2151_v23 }
 0x130   :  { %6955 = vmatmul.msk.f32.gmra.mxu1 %vm1232_vm2, %v1107_v25  ;;  %v2021_v34 = vmax.f32 %v1644_v26, 0.0  ;;  %v8324_v25 = vpop.permute.xlu0 %5532 }
 0x132   :  { %v633_v27 = vpop.f32.mrf.mxu0  ;;  %6170 = vrot.lane.b32.xlu1 %v1644_v26, %s7854_s15 }
 0x133   :  { %v634_v29 = vadd.f32 %v8034_v39, %v633_v27 }
 0x135   :  { %v1646_v30 = vpop.f32.mrf.mxu1  ;;  %5562 = vrot.lane.b32.xlu0 %v631_v22, %s7854_s15  ;;  %6844 = vmatmul.msk.f32.gmra.mxu0 %vm171_vm0, %v65_v28  ;;  %v980_v31 = vmax.f32 %v634_v29, 0.0 }
 0x136   :  { %v1647_v32 = vadd.f32 %v8189_v61, %v1646_v30  ;;  %v2149_v30 = vld [vmem:[%s13679_s5 + $0x18] sm:$0xff] }
 0x137   :  { %v1108_v33 = vsel %vm959_vm1, %v980_v31, %v634_v29  ;;  %v8326_v26 = vpop.permute.xlu2 %5542  ;;  %v8339_v31 = vpop.permute.xlu1 %5534 }
 0x138   :  { %6956 = vmatmul.msk.f32.gmra.mxu1 %vm1232_vm2, %v1108_v33  ;;  %6172 = vrot.lane.b32.xlu2 %v1647_v32, %s7854_s15  ;;  %v2022_v42 = vmax.f32 %v1647_v32, 0.0  ;;  %v72_v33 = vld [vmem:[%s13676_s0 + $0x158] sm:$0xff] }
 0x13a   :  { %v636_v35 = vpop.f32.mrf.mxu0  ;;  %2290 = vrot.lane.b32.xlu1 %v2021_v34, %s7855_s29 }
 0x13b   :  { %v637_v37 = vadd.f32 %v8034_v39, %v636_v35  ;;  %v2148_v35 = vld [vmem:[%s13679_s5 + $0x10] sm:$0xff] }
 0x13d   :  { %v1649_v38 = vpop.f32.mrf.mxu1  ;;  %6845 = vmatmul.msk.f32.gmra.mxu0 %vm171_vm0, %v66_v36  ;;  %v981_v41 = vmax.f32 %v637_v37, 0.0 }
 0x13e   :  { %v1650_v43 = vadd.f32 %v8189_v61, %v1649_v38 }
 0x13f   :  { %v1109_v44 = vsel %vm959_vm1, %v981_v41, %v637_v37  ;;  %v2147_v41 = vld [vmem:[%s13679_s5 + $0x8] sm:$0xff] }
 0x140   :  { %6957 = vmatmul.msk.f32.gmra.mxu1 %vm1232_vm2, %v1109_v44  ;;  %2292 = vrot.lane.b32.xlu2 %v2022_v42, %s7855_s29  ;;  %v2023_v57 = vmax.f32 %v1650_v43, 0.0 }
 0x141   :  { %6174 = vrot.lane.b32.xlu0 %v1650_v43, %s7854_s15  ;;  %v8355_v43 = vpop.permute.xlu0 %5538 }
 0x142   :  { %v639_v45 = vpop.f32.mrf.mxu0  ;;  %5564 = vrot.lane.b32.xlu1 %v634_v29, %s7854_s15  ;;  %v2150_v29 = vld [vmem:[%s13679_s5 + $0x20] sm:$0xff] }
 0x143   :  { %v640_v47 = vadd.f32 %v8034_v39, %v639_v45  ;;  %2808 = vmatpush.msra.mxu2 %v2150_v29 }
 0x145   :  { %v1652_v48 = vpop.f32.mrf.mxu1  ;;  %6846 = vmatmul.msk.f32.gmra.mxu0 %vm171_vm0, %v67_v46  ;;  %v982_v49 = vmax.f32 %v640_v47, 0.0  ;;  %2809 = vmatpush.msra.mxu2 %v2149_v30  ;;  %v2146_v46 = vld [vmem:[%s13679_s5] sm:$0xff] }
 0x146   :  { %v1653_v51 = vadd.f32 %v8189_v61, %v1652_v48 }
 0x147   :  { %v1110_v50 = vsel %vm959_vm1, %v982_v49, %v640_v47  ;;  %2810 = vmatpush.msra.mxu2 %v2148_v35  ;;  %v8367_v48 = vpop.permute.xlu1 %5540 }
 0x148   :  { %6958 = vmatmul.msk.f32.gmra.mxu1 %vm1232_vm2, %v1110_v50  ;;  %5566 = vrot.lane.b32.xlu2 %v637_v37, %s7854_s15  ;;  %v2024_v59 = vmax.f32 %v1653_v51, 0.0  ;;  %v73_v50 = vld [vmem:[%s13676_s0 + $0x160] sm:$0xff] }
 0x149   :  { %5568 = vrot.lane.b32.xlu0 %v640_v47, %s7854_s15  ;;  %2811 = vmatpush.msra.mxu2 %v2147_v41 }
 0x14a   :  { %v642_v52 = vpop.f32.mrf.mxu0  ;;  %6176 = vrot.lane.b32.xlu1 %v1653_v51, %s7854_s15 }
 0x14b   :  { %v643_v54 = vadd.f32 %v8034_v39, %v642_v52  ;;  %2812 = vmatpush.msra.mxu2 %v2146_v46 }
 0x14d   :  { %v1655_v55 = vpop.f32.mrf.mxu1  ;;  %6847 = vmatmul.msk.f32.gmra.mxu0 %vm171_vm0, %v68_v53  ;;  %v983_v56 = vmax.f32 %v643_v54, 0.0 }
 0x14e   :  { %v1656_v1 = vadd.f32 %v8189_v61, %v1655_v55 }
 0x14f   :  { %v1111_v60 = vsel %vm959_vm1, %v983_v56, %v643_v54  ;;  %v8357_v44 = vpop.permute.xlu2 %5548 }
 0x150   :  { %6959 = vmatmul.msk.f32.gmra.mxu1 %vm1232_vm2, %v1111_v60  ;;  %2294 = vrot.lane.b32.xlu2 %v2023_v57, %s7855_s29  ;;  %v2025_v7 = vmax.f32 %v1656_v1, 0.0  ;;  %13828 = vst [vmem:[#allocation2_spill] sm:$0xff] %v8357_v44 }
 0x151   :  { %2296 = vrot.lane.b32.xlu0 %v2024_v59, %s7855_s29 }
 0x152   :  { %v645_v62 = vpop.f32.mrf.mxu0  ;;  %5570 = vrot.lane.b32.xlu1 %v643_v54, %s7854_s15 }
 0x153   :  { %v646_v0 = vadd.f32 %v8034_v39, %v645_v62  ;;  %v74_v62 = vld [vmem:[%s13676_s0 + $0x168] sm:$0xff] }
 0x155   :  { %v984_v2 = vmax.f32 %v646_v0, 0.0  ;;  %v1658_v3 = vpop.f32.mrf.mxu1  ;;  %6848 = vmatmul.msk.f32.gmra.mxu0 %vm171_vm0, %v69_v63 }
 0x156   :  { %v1659_v4 = vadd.f32 %v8189_v61, %v1658_v3 }
 0x157   :  { %v1112_v6 = vsel %vm959_vm1, %v984_v2, %v646_v0  ;;  %v8375_v54 = vpop.permute.xlu0 %5544 }
 0x158   :  { %6960 = vmatmul.msk.f32.gmra.mxu1 %vm1232_vm2, %v1112_v6  ;;  %6178 = vrot.lane.b32.xlu2 %v1656_v1, %s7854_s15  ;;  %v2026_v24 = vmax.f32 %v1659_v4, 0.0 }
 0x159   :  { %6180 = vrot.lane.b32.xlu0 %v1659_v4, %s7854_s15 }
 0x15a   :  { %v648_v8 = vpop.f32.mrf.mxu0  ;;  %2298 = vrot.lane.b32.xlu1 %v2025_v7, %s7855_s29 }
 0x15b   :  { %v649_v10 = vadd.f32 %v8034_v39, %v648_v8 }
 0x15d   :  { %v985_v11 = vmax.f32 %v649_v10, 0.0  ;;  %v1661_v12 = vpop.f32.mrf.mxu1  ;;  %6849 = vmatmul.msk.f32.gmra.mxu0 %vm171_vm0, %v70_v9 }
 0x15e   :  { %v1662_v16 = vadd.f32 %v8189_v61, %v1661_v12 }
 0x15f   :  { %v1113_v15 = vsel %vm959_vm1, %v985_v11, %v649_v10  ;;  %v8385_v59 = vpop.permute.xlu1 %5546 }
 0x160   :  { %6961 = vmatmul.msk.f32.gmra.mxu1 %vm1232_vm2, %v1113_v15  ;;  %5572 = vrot.lane.b32.xlu2 %v646_v0, %s7854_s15  ;;  %v2027_v27 = vmax.f32 %v1662_v16, 0.0  ;;  %13830 = vst [vmem:[#allocation4_spill] sm:$0xff] %v8385_v59 }
 0x161   :  { %5574 = vrot.lane.b32.xlu0 %v649_v10, %s7854_s15  ;;  %v75_v10 = vld [vmem:[%s13676_s0 + $0x170] sm:$0xff] }
 0x162   :  { %v651_v18 = vpop.f32.mrf.mxu0  ;;  %6182 = vrot.lane.b32.xlu1 %v1662_v16, %s7854_s15 }
 0x163   :  { %v652_v20 = vadd.f32 %v8034_v39, %v651_v18 }
 0x165   :  { %v986_v21 = vmax.f32 %v652_v20, 0.0  ;;  %v1664_v22 = vpop.f32.mrf.mxu1  ;;  %6850 = vmatmul.msk.f32.gmra.mxu0 %vm171_vm0, %v71_v19 }
 0x166   :  { %v1665_v36 = vadd.f32 %v8189_v61, %v1664_v22 }
 0x167   :  { %v1114_v28 = vsel %vm959_vm1, %v986_v21, %v652_v20  ;;  %v8377_v55 = vpop.permute.xlu2 %5554 }
 0x168   :  { %6962 = vmatmul.msk.f32.gmra.mxu1 %vm1232_vm2, %v1114_v28  ;;  %2300 = vrot.lane.b32.xlu2 %v2026_v24, %s7855_s29  ;;  %v2028_v47 = vmax.f32 %v1665_v36, 0.0  ;;  %13829 = vst [vmem:[#allocation3_spill] sm:$0xff] %v8377_v55 }
 0x169   :  { %2302 = vrot.lane.b32.xlu0 %v2027_v27, %s7855_s29  ;;  %v76_v27 = vld [vmem:[%s13676_s0 + $0x178] sm:$0xff] }
 0x16a   :  { %v654_v32 = vpop.f32.mrf.mxu0  ;;  %5576 = vrot.lane.b32.xlu1 %v652_v20, %s7854_s15 }
 0x16b   :  { %v655_v34 = vadd.f32 %v8034_v39, %v654_v32 }
 0x16d   :  { %v987_v37 = vmax.f32 %v655_v34, 0.0  ;;  %v1667_v38 = vpop.f32.mrf.mxu1  ;;  %6851 = vmatmul.msk.f32.gmra.mxu0 %vm171_vm0, %v72_v33 }
 0x16e   :  { %v1668_v42 = vadd.f32 %v8189_v61, %v1667_v38 }
 0x16f   :  { %v1115_v45 = vsel %vm959_vm1, %v987_v37, %v655_v34  ;;  %v8393_v3 = vpop.permute.xlu0 %5550  ;;  %v77_v37 = vld [vmem:[%s13676_s0 + $0x180] sm:$0xff] }
 0x170   :  { %6963 = vmatmul.msk.f32.gmra.mxu1 %vm1232_vm2, %v1115_v45  ;;  %6184 = vrot.lane.b32.xlu2 %v1665_v36, %s7854_s15  ;;  %v2029_v2 = vmax.f32 %v1668_v42, 0.0  ;;  %13831 = vst [vmem:[#allocation5_spill] sm:$0xff] %v8393_v3 }
 0x171   :  { %6186 = vrot.lane.b32.xlu0 %v1668_v42, %s7854_s15 }
 0x172   :  { %v657_v49 = vpop.f32.mrf.mxu0  ;;  %2304 = vrot.lane.b32.xlu1 %v2028_v47, %s7855_s29 }
 0x173   :  { %v658_v51 = vadd.f32 %v8034_v39, %v657_v49 }
 0x175   :  { %v988_v52 = vmax.f32 %v658_v51, 0.0  ;;  %v1670_v53 = vpop.f32.mrf.mxu1  ;;  %6852 = vmatmul.msk.f32.gmra.mxu0 %vm171_vm0, %v73_v50 }
 0x176   :  { %v1671_v57 = vadd.f32 %v8189_v61, %v1670_v53  ;;  %v78_v53 = vld [vmem:[%s13676_s0 + $0x188] sm:$0xff] }
 0x177   :  { %v1116_v56 = vsel %vm959_vm1, %v988_v52, %v658_v51  ;;  %v8402_v8 = vpop.permute.xlu1 %5552 }
 0x178   :  { %6964 = vmatmul.msk.f32.gmra.mxu1 %vm1232_vm2, %v1116_v56  ;;  %5578 = vrot.lane.b32.xlu2 %v655_v34, %s7854_s15  ;;  %v2030_v4 = vmax.f32 %v1671_v57, 0.0  ;;  %13832 = vst [vmem:[#allocation6_spill] sm:$0xff] %v8402_v8 }
 0x179   :  { %5580 = vrot.lane.b32.xlu0 %v658_v51, %s7854_s15 }
 0x17a   :  { %v660_v60 = vpop.f32.mrf.mxu0  ;;  %6188 = vrot.lane.b32.xlu1 %v1671_v57, %s7854_s15  ;;  %v8395_v6 = vpop.permute.xlu2 %6166 }
 0x17b   :  { %v661_v63 = vadd.f32 %v8034_v39, %v660_v60 }
 0x17d   :  { %v989_v0 = vmax.f32 %v661_v63, 0.0  ;;  %v1673_v1 = vpop.f32.mrf.mxu1  ;;  %6853 = vmatmul.msk.f32.gmra.mxu0 %vm171_vm0, %v74_v62 }
 0x17e   :  { %v1674_v12 = vadd.f32 %v8189_v61, %v1673_v1 }
 0x17f   :  { %v1117_v7 = vsel %vm959_vm1, %v989_v0, %v661_v63 }
 0x180   :  { %6965 = vmatmul.msk.f32.gmra.mxu1 %vm1232_vm2, %v1117_v7  ;;  %2306 = vrot.lane.b32.xlu2 %v2029_v2, %s7855_s29  ;;  %v2031_v21 = vmax.f32 %v1674_v12, 0.0 }
 0x181   :  { %2308 = vrot.lane.b32.xlu0 %v2030_v4, %s7855_s29 }
 0x182   :  { %v663_v9 = vpop.f32.mrf.mxu0  ;;  %5582 = vrot.lane.b32.xlu1 %v661_v63, %s7854_s15  ;;  %v8418_v22 = vpop.permute.xlu2 %5560 }
 0x183   :  { %v664_v11 = vadd.f32 %v8034_v39, %v663_v9  ;;  %13834 = vst [vmem:[#allocation8_spill] sm:$0xff] %v8418_v22 }
 0x185   :  { %v990_v15 = vmax.f32 %v664_v11, 0.0  ;;  %v1676_v16 = vpop.f32.mrf.mxu1  ;;  %6854 = vmatmul.msk.f32.gmra.mxu0 %vm171_vm0, %v75_v10 }
 0x186   :  { %v1677_v18 = vadd.f32 %v8189_v61, %v1676_v16 }
 0x187   :  { %v8412_v19 = vpop.permute.xlu0 %5556  ;;  %v1118_v20 = vsel %vm959_vm1, %v990_v15, %v664_v11 }
 0x188   :  { %13833 = vst [vmem:[#allocation7_spill] sm:$0xff] %v8412_v19  ;;  %6966 = vmatmul.msk.f32.gmra.mxu1 %vm1232_vm2, %v1118_v20  ;;  %6190 = vrot.lane.b32.xlu2 %v1674_v12, %s7854_s15  ;;  %v2032_v46 = vmax.f32 %v1677_v18, 0.0 }
 0x189   :  { %6192 = vrot.lane.b32.xlu0 %v1677_v18, %s7854_s15 }
 0x18a   :  { %v666_v23 = vpop.f32.mrf.mxu0  ;;  %2310 = vrot.lane.b32.xlu1 %v2031_v21, %s7855_s29  ;;  %v8422_v24 = vpop.permute.xlu1 %6164 }
 0x18b   :  { %v667_v28 = vadd.f32 %v8034_v39, %v666_v23 }
 0x18d   :  { %v991_v29 = vmax.f32 %v667_v28, 0.0  ;;  %v1679_v30 = vpop.f32.mrf.mxu1  ;;  %6855 = vmatmul.msk.f32.gmra.mxu0 %vm171_vm0, %v76_v27 }
 0x18e   :  { %v1680_v34 = vadd.f32 %v8189_v61, %v1679_v30 }
 0x18f   :  { %v2285_v32 = vpop.permute.xlu0 %2284  ;;  %v1119_v33 = vsel %vm959_vm1, %v991_v29, %v667_v28 }
 0x190   :  { %6967 = vmatmul.msk.f32.gmra.mxu1 %vm1232_vm2, %v1119_v33  ;;  %5584 = vrot.lane.b32.xlu2 %v664_v11, %s7854_s15  ;;  %v2033_v47 = vmax.f32 %v1680_v34, 0.0 }
 0x191   :  { %5586 = vrot.lane.b32.xlu0 %v667_v28, %s7854_s15  ;;  %7064 = vmatmul.msk.f32.vlgmr.msra.gmra.mxu2 %vm2540_vm3, %v2285_v32 }
 0x192   :  { %v669_v35 = vpop.f32.mrf.mxu0  ;;  %v8436_v36 = vpop.permute.xlu2 %6172  ;;  %6194 = vrot.lane.b32.xlu1 %v1680_v34, %s7854_s15 }
 0x193   :  { %v670_v38 = vadd.f32 %v8034_v39, %v669_v35  ;;  %v8443_v41 = vpop.permute.xlu1 %5558 }
 0x194   :  { %13835 = vst [vmem:[#allocation9_spill] sm:$0xff] %v8443_v41 }
 0x195   :  { %v992_v42 = vmax.f32 %v670_v38, 0.0  ;;  %v1682_v45 = vpop.f32.mrf.mxu1  ;;  %6856 = vmatmul.msk.f32.gmra.mxu0 %vm171_vm0, %v77_v37 }
 0x196   :  { %v1683_v57 = vadd.f32 %v8189_v61, %v1682_v45 }
 0x197   :  { %v2287_v49 = vpop.permute.xlu0 %2286  ;;  %v1120_v50 = vsel %vm959_vm1, %v992_v42, %v670_v38 }
 0x198   :  { %6968 = vmatmul.msk.f32.gmra.mxu1 %vm1232_vm2, %v1120_v50  ;;  %2312 = vrot.lane.b32.xlu2 %v2032_v46, %s7855_s29  ;;  %v2034_v2 = vmax.f32 %v1683_v57, 0.0 }
 0x199   :  { %2314 = vrot.lane.b32.xlu0 %v2033_v47, %s7855_s29  ;;  %7065 = vmatmul.msk.f32.gmra.mxu2 %vm2540_vm3, %v2287_v49 }
 0x19a   :  { %v2293_v51 = vpop.permute.xlu2 %2292  ;;  %5588 = vrot.lane.b32.xlu1 %v670_v38, %s7854_s15  ;;  %v672_v52 = vpop.f32.mrf.mxu0 }
 0x19b   :  { %v673_v56 = vadd.f32 %v8034_v39, %v672_v52 }
 0x19c   :  { %v2289_v60 = vpop.permute.xlu1 %2288 }
 0x19d   :  { %v993_v62 = vmax.f32 %v673_v56, 0.0  ;;  %v1685_v63 = vpop.f32.mrf.mxu1  ;;  %6857 = vmatmul.msk.f32.gmra.mxu0 %vm171_vm0, %v78_v53 }
 0x19e   :  { %v1686_v0 = vadd.f32 %v8189_v61, %v1685_v63 }
 0x19f   :  { %v1121_v1 = vsel %vm959_vm1, %v993_v62, %v673_v56  ;;  %v8464_v4 = vpop.permute.xlu0 %6168 }
 0x1a0   :  { %6196 = vrot.lane.b32.xlu2 %v1683_v57, %s7854_s15  ;;  %6969 = vmatmul.msk.f32.gmra.mxu1 %vm1232_vm2, %v1121_v1  ;;  %v2035_v32 = vmax.f32 %v1686_v0, 0.0 }
 0x1a1   :  { %6198 = vrot.lane.b32.xlu0 %v1686_v0, %s7854_s15  ;;  %7066 = vmatmul.msk.f32.gmra.mxu2 %vm2540_vm3, %v2289_v60 }
 0x1a2   :  { %v8468_v7 = vpop.permute.xlu2 %5566  ;;  %2316 = vrot.lane.b32.xlu1 %v2034_v2, %s7855_s29  ;;  %v675_v9 = vpop.f32.mrf.mxu0 }
 0x1a3   :  { %13836 = vst [vmem:[#allocation10_spill] sm:$0xff] %v8468_v7  ;;  %v676_v10 = vadd.f32 %v8034_v39, %v675_v9 }
 0x1a4   :  { %v8472_v11 = vpop.permute.xlu1 %6170 }
 0x1a5   :  { %v994_v12 = vmax.f32 %v676_v10, 0.0  ;;  %v1688_v15 = vpop.f32.mrf.mxu1 }
 0x1a6   :  { %v1689_v18 = vadd.f32 %v8189_v61, %v1688_v15 }
 0x1a7   :  { %v1122_v16 = vsel %vm959_vm1, %v994_v12, %v676_v10  ;;  %v8481_v23 = vpop.permute.xlu0 %5562 }
 0x1a8   :  { %5590 = vrot.lane.b32.xlu2 %v673_v56, %s7854_s15  ;;  %6970 = vmatmul.msk.f32.gmra.mxu1 %vm1232_vm2, %v1122_v16  ;;  %13837 = vst [vmem:[#allocation11_spill] sm:$0xff] %v8481_v23  ;;  %v2036_v33 = vmax.f32 %v1689_v18, 0.0  ;;  %v79_v16 = vld [vmem:[%s13676_s0 + $0x190] sm:$0xff] }
 0x1a9   :  { %5592 = vrot.lane.b32.xlu0 %v676_v10, %s7854_s15  ;;  %6858 = vmatmul.msk.f32.gmra.mxu0 %vm171_vm0, %v79_v16 }
 0x1aa   :  { %v2295_v20 = vpop.permute.xlu2 %2294  ;;  %6200 = vrot.lane.b32.xlu1 %v1689_v18, %s7854_s15  ;;  %v678_v21 = vpop.f32.mrf.mxu0 }
 0x1ab   :  { %v679_v27 = vadd.f32 %v8034_v39, %v678_v21 }
 0x1ac   :  { %v2291_v28 = vpop.permute.xlu1 %2290 }
 0x1ad   :  { %v995_v29 = vmax.f32 %v679_v27, 0.0  ;;  %v1691_v30 = vpop.f32.mrf.mxu1  ;;  %7067 = vmatmul.msk.f32.gmra.mxu2 %vm2540_vm3, %v2291_v28 }
 0x1ae   :  { %v1692_v45 = vadd.f32 %v8189_v61, %v1691_v30 }
 0x1af   :  { %v1123_v34 = vsel %vm959_vm1, %v995_v29, %v679_v27 }
 0x1b0   :  { %2318 = vrot.lane.b32.xlu2 %v2035_v32, %s7855_s29  ;;  %6971 = vmatmul.msk.f32.gmra.mxu1 %vm1232_vm2, %v1123_v34  ;;  %v2037_v53 = vmax.f32 %v1692_v45, 0.0 }
 0x1b1   :  { %2320 = vrot.lane.b32.xlu0 %v2036_v33, %s7855_s29 }
 0x1b2   :  { %v8490_v35 = vpop.permute.xlu2 %6178  ;;  %5594 = vrot.lane.b32.xlu1 %v679_v27, %s7854_s15  ;;  %v681_v37 = vpop.f32.mrf.mxu0 }
 0x1b3   :  { %v8493_v38 = vpop.permute.xlu0 %6174  ;;  %v682_v42 = vadd.f32 %v8034_v39, %v681_v37 }
 0x1b4   :  { %v8497_v46 = vpop.permute.xlu1 %5564 }
 0x1b5   :  { %13838 = vst [vmem:[#allocation12_spill] sm:$0xff] %v8497_v46  ;;  %v996_v47 = vmax.f32 %v682_v42, 0.0  ;;  %v1694_v49 = vpop.f32.mrf.mxu1  ;;  %7068 = vmatmul.msk.f32.gmra.mxu2 %vm2540_vm3, %v2293_v51 }
 0x1b6   :  { %v1695_v50 = vadd.f32 %v8189_v61, %v1694_v49 }
 0x1b7   :  { %v1124_v52 = vsel %vm959_vm1, %v996_v47, %v682_v42 }
 0x1b8   :  { %6202 = vrot.lane.b32.xlu2 %v1692_v45, %s7854_s15  ;;  %6972 = vmatmul.msk.f32.gmra.mxu1 %vm1232_vm2, %v1124_v52  ;;  %v2038_v27 = vmax.f32 %v1695_v50, 0.0 }
 0x1b9   :  { %6204 = vrot.lane.b32.xlu0 %v1695_v50, %s7854_s15 }
 0x1ba   :  { %v8506_v56 = vpop.permute.xlu2 %5572  ;;  %2322 = vrot.lane.b32.xlu1 %v2037_v53, %s7855_s29  ;;  %v684_v57 = vpop.f32.mrf.mxu0  ;;  %v80_v53 = vld [vmem:[%s13676_s0 + $0x198] sm:$0xff] }
 0x1bb   :  { %13839 = vst [vmem:[#allocation13_spill] sm:$0xff] %v8506_v56  ;;  %v8509_v60 = vpop.permute.xlu0 %5568  ;;  %v685_v51 = vadd.f32 %v8034_v39, %v684_v57  ;;  %6859 = vmatmul.msk.f32.gmra.mxu0 %vm171_vm0, %v80_v53 }
 0x1bc   :  { %13840 = vst [vmem:[#allocation14_spill] sm:$0xff] %v8509_v60  ;;  %v8512_v62 = vpop.permute.xlu1 %6176 }
 0x1bd   :  { %v997_v63 = vmax.f32 %v685_v51, 0.0  ;;  %v1697_v0 = vpop.f32.mrf.mxu1  ;;  %7069 = vmatmul.msk.f32.gmra.mxu2 %vm2540_vm3, %v2295_v20 }
 0x1be   :  { %v1698_v2 = vadd.f32 %v8189_v61, %v1697_v0 }
 0x1bf   :  { %v1125_v1 = vsel %vm959_vm1, %v997_v63, %v685_v51 }
 0x1c0   :  { %5596 = vrot.lane.b32.xlu2 %v682_v42, %s7854_s15  ;;  %6973 = vmatmul.msk.f32.gmra.mxu1 %vm1232_vm2, %v1125_v1  ;;  %v2039_v28 = vmax.f32 %v1698_v2, 0.0 }
 0x1c1   :  { %5598 = vrot.lane.b32.xlu0 %v685_v51, %s7854_s15 }
 0x1c2   :  { %v2301_v9 = vpop.permute.xlu2 %2300  ;;  %6206 = vrot.lane.b32.xlu1 %v1698_v2, %s7854_s15  ;;  %v687_v10 = vpop.f32.mrf.mxu0 }
 0x1c3   :  { %v2297_v12 = vpop.permute.xlu0 %2296  ;;  %v688_v15 = vadd.f32 %v8034_v39, %v687_v10 }
 0x1c4   :  { %v8526_v18 = vpop.permute.xlu1 %5570 }
 0x1c5   :  { %13841 = vst [vmem:[#allocation15_spill] sm:$0xff] %v8526_v18  ;;  %v998_v20 = vmax.f32 %v688_v15, 0.0  ;;  %v1700_v21 = vpop.f32.mrf.mxu1  ;;  %7070 = vmatmul.msk.f32.gmra.mxu2 %vm2540_vm3, %v2297_v12 }
 0x1c6   :  { %v1701_v37 = vadd.f32 %v8189_v61, %v1700_v21  ;;  %v8576_v21 = vld [vmem:[%s13675_s2] ss:$0 sm:$0xff] }
 0x1c7   :  { %v1126_v29 = vsel %vm959_vm1, %v998_v20, %v688_v15 }
 0x1c8   :  { %2324 = vrot.lane.b32.xlu2 %v2038_v27, %s7855_s29  ;;  %6974 = vmatmul.msk.f32.gmra.mxu1 %vm1232_vm2, %v1126_v29  ;;  %v2040_v52 = vmax.f32 %v1701_v37, 0.0 }
 0x1c9   :  { %2326 = vrot.lane.b32.xlu0 %v2039_v28, %s7855_s29 }
 0x1ca   :  { %v8535_v30 = vpop.permute.xlu2 %6184  ;;  %5600 = vrot.lane.b32.xlu1 %v688_v15, %s7854_s15  ;;  %v690_v32 = vpop.f32.mrf.mxu0 }
 0x1cb   :  { %v8538_v33 = vpop.permute.xlu0 %6180  ;;  %v691_v34 = vadd.f32 %v8034_v39, %v690_v32 }
 0x1cc   :  { %v2299_v42 = vpop.permute.xlu1 %2298 }
 0x1cd   :  { %v999_v45 = vmax.f32 %v691_v34, 0.0  ;;  %v1703_v47 = vpop.f32.mrf.mxu1  ;;  %7071 = vmatmul.msk.f32.gmra.mxu2 %vm2540_vm3, %v2299_v42 }
 0x1ce   :  { %v1704_v49 = vadd.f32 %v8189_v61, %v1703_v47 }
 0x1cf   :  { %v1127_v50 = vsel %vm959_vm1, %v999_v45, %v691_v34  ;;  %v82_v45 = vld [vmem:[%s13676_s0 + $0x1a8] sm:$0xff] }
 0x1d0   :  { %6208 = vrot.lane.b32.xlu2 %v1701_v37, %s7854_s15  ;;  %6975 = vmatmul.msk.f32.gmra.mxu1 %vm1232_vm2, %v1127_v50 }
 0x1d1   :  { %6210 = vrot.lane.b32.xlu0 %v1704_v49, %s7854_s15 }
 0x1d2   :  { %v8552_v57 = vpop.permute.xlu2 %5578  ;;  %2328 = vrot.lane.b32.xlu1 %v2040_v52, %s7855_s29  ;;  %v693_v51 = vpop.f32.mrf.mxu0 }
 0x1d3   :  { %13842 = vst [vmem:[#allocation16_spill] sm:$0xff] %v8552_v57  ;;  %v8556_v63 = vpop.permute.xlu0 %5574  ;;  %v694_v0 = vadd.f32 %v8034_v39, %v693_v51  ;;  %v81_v39 = vld [vmem:[%s13676_s0 + $0x1a0] sm:$0xff] }
 0x1d4   :  { %13843 = vst [vmem:[#allocation17_spill] sm:$0xff] %v8556_v63  ;;  %v8559_v1 = vpop.permute.xlu1 %6182  ;;  %6860 = vmatmul.msk.f32.gmra.mxu0 %vm171_vm0, %v81_v39  ;;  %v83_v39 = vld [vmem:[%s13676_s0 + $0x1b0] sm:$0xff] }
 0x1d5   :  { %v1000_v2 = vmax.f32 %v694_v0, 0.0  ;;  %v1706_v10 = vpop.f32.mrf.mxu1  ;;  %7072 = vmatmul.msk.f32.gmra.mxu2 %vm2540_vm3, %v2301_v9 }
 0x1d6   :  { %v1707_v15 = vadd.f32 %v8189_v61, %v1706_v10 }
 0x1d7   :  { %v1128_v12 = vsel %vm959_vm1, %v1000_v2, %v694_v0 }
 0x1d8   :  { %5602 = vrot.lane.b32.xlu2 %v691_v34, %s7854_s15  ;;  %6976 = vmatmul.msk.f32.gmra.mxu1 %vm1232_vm2, %v1128_v12  ;;  %v2041_v34 = vmax.f32 %v1704_v49, 0.0  ;;  %v2042_v37 = vmax.f32 %v1707_v15, 0.0 }
 0x1d9   :  { %5604 = vrot.lane.b32.xlu0 %v694_v0, %s7854_s15 }
 0x1da   :  { %v2307_v16 = vpop.permute.xlu2 %2306  ;;  %6212 = vrot.lane.b32.xlu1 %v1707_v15, %s7854_s15  ;;  %v696_v20 = vpop.f32.mrf.mxu0 }
 0x1db   :  { %v2303_v9 = vpop.permute.xlu0 %2302  ;;  %v697_v27 = vadd.f32 %v8576_v21, %v696_v20 }
 0x1dc   :  { %v8579_v28 = vpop.permute.xlu1 %5576  ;;  %6861 = vmatmul.msk.f32.gmra.mxu0 %vm171_vm0, %v82_v45 }
 0x1dd   :  { %13844 = vst [vmem:[#allocation18_spill] sm:$0xff] %v8579_v28  ;;  %v1001_v29 = vmax.f32 %v697_v27, 0.0  ;;  %v1709_v32 = vpop.f32.mrf.mxu1  ;;  %7073 = vmatmul.msk.f32.gmra.mxu2 %vm2540_vm3, %v2303_v9 }
 0x1de   :  { %v1710_v53 = vadd.f32 %v8189_v61, %v1709_v32 }
 0x1df   :  { %v1129_v42 = vsel %vm959_vm1, %v1001_v29, %v697_v27 }
 0x1e0   :  { %2330 = vrot.lane.b32.xlu2 %v2041_v34, %s7855_s29  ;;  %6977 = vmatmul.msk.f32.gmra.mxu1 %vm1232_vm2, %v1129_v42  ;;  %v2043_v15 = vmax.f32 %v1710_v53, 0.0 }
 0x1e1   :  { %2332 = vrot.lane.b32.xlu0 %v2042_v37, %s7855_s29 }
 0x1e2   :  { %v8590_v47 = vpop.permute.xlu2 %6190  ;;  %5606 = vrot.lane.b32.xlu1 %v697_v27, %s7854_s15  ;;  %v699_v50 = vpop.f32.mrf.mxu0 }
 0x1e3   :  { %13845 = vst [vmem:[#allocation19_spill] sm:$0xff] %v8590_v47  ;;  %v8594_v49 = vpop.permute.xlu0 %6186  ;;  %v700_v52 = vadd.f32 %v8576_v21, %v699_v50 }
 0x1e4   :  { %13846 = vst [vmem:[#allocation20_spill] sm:$0xff] %v8594_v49  ;;  %v2305_v51 = vpop.permute.xlu1 %2304  ;;  %6862 = vmatmul.msk.f32.gmra.mxu0 %vm171_vm0, %v83_v39 }
 0x1e5   :  { %v1002_v0 = vmax.f32 %v700_v52, 0.0  ;;  %v1712_v2 = vpop.f32.mrf.mxu1  ;;  %7074 = vmatmul.msk.f32.gmra.mxu2 %vm2540_vm3, %v2305_v51 }
 0x1e6   :  { %v1713_v10 = vadd.f32 %v8189_v61, %v1712_v2 }
 0x1e7   :  { %v1130_v12 = vsel %vm959_vm1, %v1002_v0, %v700_v52 }
 0x1e8   :  { %6214 = vrot.lane.b32.xlu2 %v1710_v53, %s7854_s15  ;;  %6978 = vmatmul.msk.f32.gmra.mxu1 %vm1232_vm2, %v1130_v12 }
 0x1e9   :  { %6216 = vrot.lane.b32.xlu0 %v1713_v10, %s7854_s15 }
 0x1ea   :  { %v8608_v20 = vpop.permute.xlu2 %5584  ;;  %2334 = vrot.lane.b32.xlu1 %v2043_v15, %s7855_s29  ;;  %v702_v9 = vpop.f32.mrf.mxu0  ;;  %v2044_v15 = vmax.f32 %v1713_v10, 0.0 }
 0x1eb   :  { %13847 = vst [vmem:[#allocation21_spill] sm:$0xff] %v8608_v20  ;;  %v8612_v27 = vpop.permute.xlu0 %5580  ;;  %v703_v29 = vadd.f32 %v8576_v21, %v702_v9 }
 0x1ec   :  { %13848 = vst [vmem:[#allocation22_spill] sm:$0xff] %v8612_v27  ;;  %v8615_v32 = vpop.permute.xlu1 %6188 }
 0x1ed   :  { %13849 = vst [vmem:[#allocation23_spill] sm:$0xff] %v8615_v32  ;;  %v1003_v34 = vmax.f32 %v703_v29, 0.0  ;;  %v1715_v37 = vpop.f32.mrf.mxu1  ;;  %7075 = vmatmul.msk.f32.gmra.mxu2 %vm2540_vm3, %v2307_v16 }
 0x1ee   :  { %v1716_v45 = vadd.f32 %v8189_v61, %v1715_v37 }
 0x1ef   :  { %v1131_v42 = vsel %vm959_vm1, %v1003_v34, %v703_v29 }
 0x1f0   :  { %5608 = vrot.lane.b32.xlu2 %v700_v52, %s7854_s15  ;;  %6979 = vmatmul.msk.f32.gmra.mxu1 %vm1232_vm2, %v1131_v42  ;;  %v2045_v39 = vmax.f32 %v1716_v45, 0.0 }
 0x1f1   :  { %5610 = vrot.lane.b32.xlu0 %v703_v29, %s7854_s15 }
 0x1f2   :  { %v2313_v50 = vpop.permute.xlu2 %2312  ;;  %6218 = vrot.lane.b32.xlu1 %v1716_v45, %s7854_s15  ;;  %v705_v53 = vpop.f32.mrf.mxu0 }
 0x1f3   :  { %v2309_v51 = vpop.permute.xlu0 %2308  ;;  %v706_v0 = vadd.f32 %v8576_v21, %v705_v53 }
 0x1f4   :  { %v8626_v2 = vpop.permute.xlu1 %5582 }
 0x1f5   :  { %13850 = vst [vmem:[#allocation24_spill] sm:$0xff] %v8626_v2  ;;  %v1004_v16 = vmax.f32 %v706_v0, 0.0  ;;  %v1718_v12 = vpop.f32.mrf.mxu1  ;;  %7076 = vmatmul.msk.f32.gmra.mxu2 %vm2540_vm3, %v2309_v51 }
 0x1f6   :  { %v1719_v10 = vadd.f32 %v8189_v61, %v1718_v12 }
 0x1f7   :  { %v1132_v52 = vsel %vm959_vm1, %v1004_v16, %v706_v0 }
 0x1f8   :  { %2336 = vrot.lane.b32.xlu2 %v2044_v15, %s7855_s29  ;;  %6980 = vmatmul.msk.f32.gmra.mxu1 %vm1232_vm2, %v1132_v52  ;;  %v2046_v15 = vmax.f32 %v1719_v10, 0.0 }
 0x1f9   :  { %2338 = vrot.lane.b32.xlu0 %v2045_v39, %s7855_s29 }
 0x1fa   :  { %v8634_v9 = vpop.permute.xlu2 %6196  ;;  %5612 = vrot.lane.b32.xlu1 %v706_v0, %s7854_s15  ;;  %v708_v29 = vpop.f32.mrf.mxu0 }
 0x1fb   :  { %13851 = vst [vmem:[#allocation25_spill] sm:$0xff] %v8634_v9  ;;  %v8637_v34 = vpop.permute.xlu0 %6192  ;;  %v709_v37 = vadd.f32 %v8576_v21, %v708_v29 }
 0x1fc   :  { %13852 = vst [vmem:[#allocation26_spill] sm:$0xff] %v8637_v34  ;;  %v2311_v42 = vpop.permute.xlu1 %2310 }
 0x1fd   :  { %v1005_v45 = vmax.f32 %v709_v37, 0.0  ;;  %v1721_v53 = vpop.f32.mrf.mxu1  ;;  %7077 = vmatmul.msk.f32.gmra.mxu2 %vm2540_vm3, %v2311_v42 }
 0x1fe   :  { %v1722_v51 = vadd.f32 %v8189_v61, %v1721_v53 }
 0x1ff   :  { %v1133_v16 = vsel %vm959_vm1, %v1005_v45, %v709_v37 }
 0x200   :  { %6220 = vrot.lane.b32.xlu2 %v1719_v10, %s7854_s15  ;;  %6981 = vmatmul.msk.f32.gmra.mxu1 %vm1232_vm2, %v1133_v16 }
 0x201   :  { %6222 = vrot.lane.b32.xlu0 %v1722_v51, %s7854_s15 }
 0x202   :  { %v8648_v0 = vpop.permute.xlu2 %5590  ;;  %2340 = vrot.lane.b32.xlu1 %v2046_v15, %s7855_s29  ;;  %v711_v12 = vpop.f32.mrf.mxu0 }
 0x203   :  { %13853 = vst [vmem:[#allocation27_spill] sm:$0xff] %v8648_v0  ;;  %v8651_v39 = vpop.permute.xlu0 %5586  ;;  %v712_v52 = vadd.f32 %v8576_v21, %v711_v12 }
 0x204   :  { %13854 = vst [vmem:[#allocation28_spill] sm:$0xff] %v8651_v39  ;;  %v8654_v29 = vpop.permute.xlu1 %6194 }
 0x205   :  { %13855 = vst [vmem:[#allocation29_spill] sm:$0xff] %v8654_v29  ;;  %v1006_v42 = vmax.f32 %v712_v52, 0.0  ;;  %v1724_v45 = vpop.f32.mrf.mxu1  ;;  %7078 = vmatmul.msk.f32.gmra.mxu2 %vm2540_vm3, %v2313_v50 }
 0x206   :  { %v1725_v53 = vadd.f32 %v8189_v61, %v1724_v45 }
 0x207   :  { %v1134_v10 = vsel %vm959_vm1, %v1006_v42, %v712_v52  ;;  %v2047_v42 = vmax.f32 %v1722_v51, 0.0 }
 0x208   :  { %5614 = vrot.lane.b32.xlu2 %v709_v37, %s7854_s15  ;;  %6982 = vmatmul.msk.f32.gmra.mxu1 %vm1232_vm2, %v1134_v10  ;;  %v2048_v45 = vmax.f32 %v1725_v53, 0.0 }
 0x209   :  { %5616 = vrot.lane.b32.xlu0 %v712_v52, %s7854_s15 }
 0x20a   :  { %v2319_v16 = vpop.permute.xlu2 %2318  ;;  %6224 = vrot.lane.b32.xlu1 %v1725_v53, %s7854_s15  ;;  %v714_v15 = vpop.f32.mrf.mxu0 }
 0x20b   :  { %v2315_v12 = vpop.permute.xlu0 %2314  ;;  %v715_v0 = vadd.f32 %v8576_v21, %v714_v15 }
 0x20c   :  { %v8665_v39 = vpop.permute.xlu1 %5588 }
 0x20d   :  { %13856 = vst [vmem:[#allocation30_spill] sm:$0xff] %v8665_v39  ;;  %v1007_v50 = vmax.f32 %v715_v0, 0.0  ;;  %v1727_v20 = vpop.f32.mrf.mxu1  ;;  %7079 = vmatmul.msk.f32.gmra.mxu2 %vm2540_vm3, %v2315_v12 }
 0x20e   :  { %v1728_v12 = vadd.f32 %v8189_v61, %v1727_v20 }
 0x20f   :  { %v1135_v37 = vsel %vm959_vm1, %v1007_v50, %v715_v0 }
 0x210   :  { %2342 = vrot.lane.b32.xlu2 %v2047_v42, %s7855_s29  ;;  %6983 = vmatmul.msk.f32.gmra.mxu1 %vm1232_vm2, %v1135_v37  ;;  %v2049_v42 = vmax.f32 %v1728_v12, 0.0 }
 0x211   :  { %2344 = vrot.lane.b32.xlu0 %v2048_v45, %s7855_s29 }
 0x212   :  { %v8673_v52 = vpop.permute.xlu2 %6202  ;;  %5618 = vrot.lane.b32.xlu1 %v715_v0, %s7854_s15  ;;  %v717_v10 = vpop.f32.mrf.mxu0 }
 0x213   :  { %13857 = vst [vmem:[#allocation31_spill] sm:$0xff] %v8673_v52  ;;  %v8676_v15 = vpop.permute.xlu0 %6198  ;;  %v718_v20 = vadd.f32 %v8576_v21, %v717_v10  ;;  %v8702_v10 = vld [vmem:[%s13678_s4] ss:$0 sm:$0xff] }
 0x214   :  { %13858 = vst [vmem:[#allocation32_spill] sm:$0xff] %v8676_v15  ;;  %v2317_v51 = vpop.permute.xlu1 %2316 }
 0x215   :  { %v1730_v53 = vpop.f32.mrf.mxu1  ;;  %7080 = vmatmul.msk.f32.gmra.mxu2 %vm2540_vm3, %v2317_v51 }
 0x216   :  { %v1731_v50 = vadd.f32 %v8189_v61, %v1730_v53 }
 0x218   :  { %6226 = vrot.lane.b32.xlu2 %v1728_v12, %s7854_s15  ;;  %v84_v12 = vld [vmem:[%s13676_s0 + $0x1b8] sm:$0xff] }
 0x219   :  { %6228 = vrot.lane.b32.xlu0 %v1731_v50, %s7854_s15  ;;  %6863 = vmatmul.msk.f32.gmra.mxu0 %vm171_vm0, %v84_v12  ;;  %v85_v12 = vld [vmem:[%s13676_s0 + $0x1c0] sm:$0xff] }
 0x21a   :  { %v8683_v45 = vpop.permute.xlu2 %5596  ;;  %2346 = vrot.lane.b32.xlu1 %v2049_v42, %s7855_s29  ;;  %v720_v0 = vpop.f32.mrf.mxu0 }
 0x21b   :  { %13859 = vst [vmem:[#allocation33_spill] sm:$0xff] %v8683_v45  ;;  %v8686_v37 = vpop.permute.xlu0 %5592  ;;  %v721_v51 = vadd.f32 %v8576_v21, %v720_v0  ;;  %v2050_v45 = vmax.f32 %v1731_v50, 0.0  ;;  %v1008_v50 = vmax.f32 %v718_v20, 0.0 }
 0x21c   :  { %13860 = vst [vmem:[#allocation34_spill] sm:$0xff] %v8686_v37  ;;  %v8689_v39 = vpop.permute.xlu1 %6200 }
 0x21d   :  { %13861 = vst [vmem:[#allocation35_spill] sm:$0xff] %v8689_v39  ;;  %7081 = vmatmul.msk.f32.gmra.mxu2 %vm2540_vm3, %v2319_v16  ;;  %v1733_v61 = vpop.f32.mrf.mxu1  ;;  %v1009_v57 = vmax.f32 %v721_v51, 0.0 }
 0x21e   :  { %v8705_v42 = vadd.f32 %v8702_v10, %v1733_v61 }
 0x220   :  { %5620 = vrot.lane.b32.xlu2 %v718_v20, %s7854_s15  ;;  %v2051_v37 = vmax.f32 %v8705_v42, 0.0 }
 0x221   :  { %5622 = vrot.lane.b32.xlu0 %v721_v51, %s7854_s15  ;;  %6864 = vmatmul.msk.f32.gmra.mxu0 %vm171_vm0, %v85_v12  ;;  %v1136_v12 = vsel %vm959_vm1, %v1008_v50, %v718_v20 }
 0x222   :  { %v2325_v53 = vpop.permute.xlu2 %2324  ;;  %6984 = vmatmul.msk.f32.gmra.mxu1 %vm1232_vm2, %v1136_v12 }
 0x223   :  { %v2321_v16 = vpop.permute.xlu0 %2320 }
 0x224   :  { %v8707_v0 = vpop.permute.xlu1 %5594 }
 0x225   :  { %13862 = vst [vmem:[#allocation36_spill] sm:$0xff] %v8707_v0  ;;  %7082 = vmatmul.msk.f32.gmra.mxu2 %vm2540_vm3, %v2321_v16 }
 0x226   :  { %v723_v12 = vpop.f32.mrf.mxu0 }
 0x228   :  { %2348 = vrot.lane.b32.xlu2 %v2050_v45, %s7855_s29  ;;  %v86_v45 = vld [vmem:[%s13676_s0 + $0x1c8] sm:$0xff] }
 0x229   :  { %2350 = vrot.lane.b32.xlu0 %v2051_v37, %s7855_s29  ;;  %6865 = vmatmul.msk.f32.gmra.mxu0 %vm171_vm0, %v86_v45 }
 0x22a   :  { %v8716_v2 = vpop.permute.xlu2 %6208 }
 0x22b   :  { %13863 = vst [vmem:[#allocation37_spill] sm:$0xff] %v8716_v2  ;;  %v8719_v61 = vpop.permute.xlu0 %6204 }
 0x22c   :  { %13864 = vst [vmem:[#allocation38_spill] sm:$0xff] %v8719_v61  ;;  %v2323_v0 = vpop.permute.xlu1 %2322 }
 0x22d   :  { %7083 = vmatmul.msk.f32.gmra.mxu2 %vm2540_vm3, %v2323_v0  ;;  %v2814_v0 = vpop.f32.mrf.mxu2 }
 0x232   :  { %v8725_v16 = vpop.permute.xlu2 %5602 }
 0x233   :  { %13865 = vst [vmem:[#allocation39_spill] sm:$0xff] %v8725_v16  ;;  %v8728_v37 = vpop.permute.xlu0 %5598  ;;  %v8739_v16 = vld [vmem:[%s13680_s6] ss:$0 sm:$0xff] }
 0x234   :  { %13866 = vst [vmem:[#allocation40_spill] sm:$0xff] %v8728_v37  ;;  %v8730_v27 = vpop.permute.xlu1 %6206  ;;  %v8748_v20 = vadd.f32 %v8739_v16, %v2814_v0  ;;  %v724_v37 = vadd.f32 %v8576_v21, %v723_v12 }
 0x235   :  { %13867 = vst [vmem:[#allocation41_spill] sm:$0xff] %v8730_v27  ;;  %7084 = vmatmul.msk.f32.gmra.mxu2 %vm2540_vm3, %v2325_v53  ;;  %v1137_v53 = vsel %vm959_vm1, %v1009_v57, %v721_v51  ;;  %v2817_v50 = vpop.f32.mrf.mxu2 }
 0x236   :  { %6985 = vmatmul.msk.f32.gmra.mxu1 %vm1232_vm2, %v1137_v53  ;;  %v1010_v57 = vmax.f32 %v724_v37, 0.0  ;;  %v8764_v12 = vadd.f32 %v8739_v16, %v2817_v50 }
 0x238   :  { %v1138_v51 = vsel %vm959_vm1, %v1010_v57, %v724_v37 }
 0x23a   :  { %v2331_v28 = vpop.permute.xlu2 %2330 }
 0x23b   :  { %v2327_v45 = vpop.permute.xlu0 %2326 }
 0x23c   :  { %v8741_v63 = vpop.permute.xlu1 %5600 }
 0x23d   :  { %13868 = vst [vmem:[#allocation42_spill] sm:$0xff] %v8741_v63  ;;  %7085 = vmatmul.msk.f32.gmra.mxu2 %vm2540_vm3, %v2327_v45  ;;  %v3199_v63 = vsel %vm3198_vm4, %v8748_v20, -inf  ;;  %v2820_v0 = vpop.f32.mrf.mxu2 }
 0x23e   :  { %6986 = vmatmul.msk.f32.gmra.mxu1 %vm1232_vm2, %v1138_v51 }
 0x242   :  { %v8755_v18 = vpop.permute.xlu2 %6214 }
 0x243   :  { %v8751_v56 = vpop.permute.xlu0 %6210  ;;  %13870 = vst [vmem:[#allocation44_spill] sm:$0xff] %v8755_v18 }
 0x244   :  { %13869 = vst [vmem:[#allocation43_spill] sm:$0xff] %v8751_v56  ;;  %v2329_v45 = vpop.permute.xlu1 %2328  ;;  %3200 = vmax.xlane.f32.xlu1 %v3199_v63  ;;  %v8770_v63 = vadd.f32 %v8739_v16, %v2820_v0 }
 0x245   :  { %7086 = vmatmul.msk.f32.gmra.mxu2 %vm2540_vm3, %v2329_v45  ;;  %v3202_v45 = vsel %vm3198_vm4, %v8764_v12, -inf }
 0x246   :  { %v3205_v57 = vsel %vm3198_vm4, %v8770_v63, -inf }
 0x24a   :  { %v8772_v18 = vpop.permute.xlu2 %5608 }
 0x24b   :  { %v8761_v53 = vpop.permute.xlu0 %5604  ;;  %13873 = vst [vmem:[#allocation47_spill] sm:$0xff] %v8772_v18 }
 0x24c   :  { %13871 = vst [vmem:[#allocation45_spill] sm:$0xff] %v8761_v53  ;;  %v8766_v56 = vpop.permute.xlu1 %6212  ;;  %v1736_v53 = vpop.f32.mrf.mxu1 }
 0x24d   :  { %13872 = vst [vmem:[#allocation46_spill] sm:$0xff] %v8766_v56  ;;  %7087 = vmatmul.msk.f32.gmra.mxu2 %vm2540_vm3, %v2331_v28 }
 0x251   :  { %3203 = vmax.xlane.f32.xlu2 %v3202_v45  ;;  %v8786_v45 = vpop.f32.mrf.mxu2 }
 0x252   :  { %v2337_v28 = vpop.permute.xlu2 %2336 }
 0x253   :  { %3206 = vmax.xlane.f32.xlu0 %v3205_v57  ;;  %v2333_v51 = vpop.permute.xlu0 %2332 }
 0x254   :  { %v8778_v50 = vpop.permute.xlu1 %5606  ;;  %v1739_v18 = vpop.f32.mrf.mxu1 }
 0x255   :  { %13874 = vst [vmem:[#allocation48_spill] sm:$0xff] %v8778_v50  ;;  %7088 = vmatmul.msk.f32.gmra.mxu2 %vm2540_vm3, %v2333_v51  ;;  %v726_v51 = vpop.f32.mrf.mxu0  ;;  %v1740_v60 = vadd.f32 %v8702_v10, %v1739_v18 }
 0x25a   :  { %v8788_v2 = vpop.permute.xlu2 %6220 }
 0x25b   :  { %v8781_v56 = vpop.permute.xlu0 %6216  ;;  %13876 = vst [vmem:[#allocation50_spill] sm:$0xff] %v8788_v2 }
 0x25c   :  { %13875 = vst [vmem:[#allocation49_spill] sm:$0xff] %v8781_v56  ;;  %v2335_v0 = vpop.permute.xlu1 %2334  ;;  %v2826_v56 = vpop.f32.mrf.mxu2 }
 0x25d   :  { %6230 = vrot.lane.b32.xlu1 %v8705_v42, %s7854_s15  ;;  %7089 = vmatmul.msk.f32.gmra.mxu2 %vm2540_vm3, %v2335_v0  ;;  %v1737_v42 = vadd.f32 %v8702_v10, %v1736_v53  ;;  %v729_v53 = vpop.f32.mrf.mxu0  ;;  %v8859_v23 = vadd.f32 %v8739_v16, %v2826_v56 }
 0x25f   :  { %v2052_v0 = vmax.f32 %v1737_v42, 0.0 }
 0x263   :  { %v8790_v57 = vpop.permute.xlu0 %5610 }
 0x264   :  { %13877 = vst [vmem:[#allocation51_spill] sm:$0xff] %v8790_v57  ;;  %v8792_v50 = vpop.permute.xlu1 %6218  ;;  %v87_v57 = vld [vmem:[%s13676_s0 + $0x1d0] sm:$0xff] }
 0x265   :  { %13878 = vst [vmem:[#allocation52_spill] sm:$0xff] %v8792_v50  ;;  %5624 = vrot.lane.b32.xlu1 %v724_v37, %s7854_s15  ;;  %7090 = vmatmul.msk.f32.gmra.mxu2 %vm2540_vm3, %v2337_v28  ;;  %v8803_v50 = vpop.permute.xlu2 %5614  ;;  %v8811_v37 = vadd.f32 %v8576_v21, %v726_v51  ;;  %v1742_v28 = vpop.f32.mrf.mxu1  ;;  %v2053_v51 = vmax.f32 %v1740_v60, 0.0 }
 0x266   :  { %13879 = vst [vmem:[#allocation53_spill] sm:$0xff] %v8803_v50  ;;  %6866 = vmatmul.msk.f32.gmra.mxu0 %vm171_vm0, %v87_v57  ;;  %v88_v50 = vld [vmem:[%s13676_s0 + $0x1d8] sm:$0xff]  ;;  %v8821_v57 = vpop.f32.mrf.mxu2  ;;  %v1743_v22 = vadd.f32 %v8702_v10, %v1742_v28  ;;  %v91_v28 = vld [vmem:[%s13676_s0 + $0x1f0] sm:$0xff] }
 0x267   :  { %6234 = vrot.lane.b32.xlu0 %v1740_v60, %s7854_s15 }
 0x269   :  { %6232 = vrot.lane.b32.xlu2 %v1737_v42, %s7854_s15 }
 0x26b   :  { %v2339_v2 = vpop.permute.xlu0 %2338 }
 0x26c   :  { %v8805_v18 = vpop.permute.xlu1 %5612 }
 0x26d   :  { %13880 = vst [vmem:[#allocation54_spill] sm:$0xff] %v8805_v18  ;;  %2352 = vrot.lane.b32.xlu1 %v2052_v0, %s7855_s29  ;;  %7091 = vmatmul.msk.f32.gmra.mxu2 %vm2540_vm3, %v2339_v2  ;;  %v2343_v2 = vpop.permute.xlu2 %2342  ;;  %v732_v0 = vpop.f32.mrf.mxu0 }
 0x26e   :  { %6867 = vmatmul.msk.f32.gmra.mxu0 %vm171_vm0, %v88_v50  ;;  %v1745_v7 = vpop.f32.mrf.mxu1  ;;  %v8837_v60 = vpop.f32.mrf.mxu2 }
 0x26f   :  { %v8835_v50 = vadd.f32 %v8702_v10, %v1745_v7 }
 0x271   :  { %5626 = vrot.lane.b32.xlu2 %v8811_v37, %s7854_s15 }
 0x273   :  { %v8815_v42 = vpop.permute.xlu0 %6222 }
 0x274   :  { %13881 = vst [vmem:[#allocation55_spill] sm:$0xff] %v8815_v42  ;;  %v2341_v18 = vpop.permute.xlu1 %2340  ;;  %v89_v42 = vld [vmem:[%s13676_s0 + $0x1e0] sm:$0xff] }
 0x275   :  { %7092 = vmatmul.msk.f32.gmra.mxu2 %vm2540_vm3, %v2341_v18  ;;  %v8839_v18 = vpop.permute.xlu2 %6226 }
 0x276   :  { %6868 = vmatmul.msk.f32.gmra.mxu0 %vm171_vm0, %v89_v42  ;;  %13884 = vst [vmem:[#allocation58_spill] sm:$0xff] %v8839_v18 }
 0x279   :  { %2354 = vrot.lane.b32.xlu2 %v2053_v51, %s7855_s29  ;;  %v735_v51 = vpop.f32.mrf.mxu0 }
 0x27a   :  { %v8847_v42 = vadd.f32 %v8576_v21, %v735_v51  ;;  %v3211_v51 = vsel %vm3198_vm4, %v8859_v23, -inf }
 0x27b   :  { %v8825_v27 = vpop.permute.xlu0 %5616 }
 0x27c   :  { %13882 = vst [vmem:[#allocation56_spill] sm:$0xff] %v8825_v27  ;;  %v8830_v61 = vpop.permute.xlu1 %6224 }
 0x27d   :  { %13883 = vst [vmem:[#allocation57_spill] sm:$0xff] %v8830_v61  ;;  %7093 = vmatmul.msk.f32.gmra.mxu2 %vm2540_vm3, %v2343_v2  ;;  %v1748_v2 = vpop.f32.mrf.mxu1  ;;  %v2835_v61 = vpop.f32.mrf.mxu2 }
 0x27e   :  { %v8851_v7 = vpop.permute.xlu2 %5620  ;;  %v8854_v18 = vadd.f32 %v8702_v10, %v1748_v2  ;;  %v8868_v2 = vadd.f32 %v8739_v16, %v8786_v45  ;;  %v3969_v45 = vld [vmem:[%s13681_s7 + $0x10] sm:$0xff] }
 0x27f   :  { %13886 = vst [vmem:[#allocation60_spill] sm:$0xff] %v8851_v7 }
 0x281   :  { %6238 = vrot.lane.b32.xlu2 %v8835_v50, %s7854_s15 }
 0x283   :  { %v2345_v27 = vpop.permute.xlu0 %2344 }
 0x284   :  { %v8843_v46 = vpop.permute.xlu1 %5618 }
 0x285   :  { %13885 = vst [vmem:[#allocation59_spill] sm:$0xff] %v8843_v46  ;;  %7094 = vmatmul.msk.f32.gmra.mxu2 %vm2540_vm3, %v2345_v27  ;;  %v2056_v27 = vmax.f32 %v8854_v18, 0.0  ;;  %v8870_v7 = vpop.f32.mrf.mxu2 }
 0x286   :  { %v2349_v56 = vpop.permute.xlu2 %2348 }
 0x289   :  { %5632 = vrot.lane.b32.xlu2 %v8847_v42, %s7854_s15 }
 0x28b   :  { %v8856_v52 = vpop.permute.xlu0 %6228 }
 0x28c   :  { %13887 = vst [vmem:[#allocation61_spill] sm:$0xff] %v8856_v52  ;;  %v2347_v46 = vpop.permute.xlu1 %2346 }
 0x28d   :  { %7095 = vmatmul.msk.f32.gmra.mxu2 %vm2540_vm3, %v2347_v46  ;;  %v3208_v46 = vsel %vm3198_vm4, %v8868_v2, -inf }
 0x291   :  { %3212 = vmax.xlane.f32.xlu0 %v3211_v51  ;;  %2360 = vrot.lane.b32.xlu2 %v2056_v27, %s7855_s29  ;;  %v3970_v27 = vld [vmem:[%s13681_s7 + $0x18] sm:$0xff]  ;;  %v8883_v51 = vpop.f32.mrf.mxu2 }
 0x292   :  { %4367 = vmatpush.msra.mxu3 %v3970_v27  ;;  %v2054_v27 = vmax.f32 %v1743_v22, 0.0 }
 0x293   :  { %v8872_v52 = vpop.permute.xlu0 %5622 }
 0x294   :  { %13888 = vst [vmem:[#allocation62_spill] sm:$0xff] %v8872_v52  ;;  %4368 = vmatpush.msra.mxu3 %v3969_v45  ;;  %v3967_v52 = vld [vmem:[%s13681_s7] sm:$0xff]  ;;  %v90_v45 = vld [vmem:[%s13676_s0 + $0x1e8] sm:$0xff] }
 0x295   :  { %7096 = vmatmul.msk.f32.gmra.mxu2 %vm2540_vm3, %v2349_v56  ;;  %v3968_v56 = vld [vmem:[%s13681_s7 + $0x8] sm:$0xff]  ;;  %6869 = vmatmul.msk.f32.gmra.mxu0 %vm171_vm0, %v90_v45 }
 0x296   :  { %4369 = vmatpush.msra.mxu3 %v3968_v56  ;;  %v8910_v56 = vadd.f32 %v8576_v21, %v732_v0 }
 0x297   :  { %3209 = vmax.xlane.f32.xlu1 %v3208_v46  ;;  %v730_v46 = vadd.f32 %v8576_v21, %v729_v53 }
 0x298   :  { %4370 = vmatpush.msra.mxu3 %v3967_v52 }
 0x299   :  { %v1012_v52 = vmax.f32 %v730_v46, 0.0 }
 0x29b   :  { %v2351_v39 = vpop.permute.xlu0 %2350  ;;  %v1140_v45 = vsel %vm959_vm1, %v1012_v52, %v730_v46  ;;  %v1751_v52 = vpop.f32.mrf.mxu1 }
 0x29d   :  { %7097 = vmatmul.msk.f32.gmra.mxu2 %vm2540_vm3, %v2351_v39  ;;  %v1011_v39 = vmax.f32 %v8811_v37, 0.0  ;;  %6870 = vmatmul.msk.f32.gmra.mxu0 %vm171_vm0, %v91_v28 }
 0x29f   :  { %v1139_v53 = vsel %vm959_vm1, %v1011_v39, %v8811_v37  ;;  %v8916_v37 = vadd.f32 %v8739_v16, %v2835_v61 }
 0x2a0   :  { %6987 = vmatmul.msk.f32.gmra.mxu1 %vm1232_vm2, %v1139_v53 }
 0x2a1   :  { %v3220_v0 = vsel %vm3198_vm4, %v8916_v37, -inf }
 0x2a5   :  { %5628 = vrot.lane.b32.xlu0 %v730_v46, %s7854_s15  ;;  %v92_v46 = vld [vmem:[%s13676_s0 + $0x1f8] sm:$0xff] }
 0x2a6   :  { %6871 = vmatmul.msk.f32.gmra.mxu0 %vm171_vm0, %v92_v46  ;;  %v8945_v46 = vpop.f32.mrf.mxu1 }
 0x2a8   :  { %6988 = vmatmul.msk.f32.gmra.mxu1 %vm1232_vm2, %v1140_v45  ;;  %v93_v45 = vld [vmem:[%s13676_s0 + $0x200] sm:$0xff] }
 0x2ad   :  { %2356 = vrot.lane.b32.xlu0 %v2054_v27, %s7855_s29  ;;  %v738_v27 = vpop.f32.mrf.mxu0 }
 0x2ae   :  { %6872 = vmatmul.msk.f32.gmra.mxu0 %vm171_vm0, %v93_v45  ;;  %v94_v45 = vld [vmem:[%s13676_s0 + $0x208] sm:$0xff] }
 0x2b0   :  { %6236 = vrot.lane.b32.xlu1 %v1743_v22, %s7854_s15  ;;  %v1013_v22 = vmax.f32 %v8910_v56, 0.0 }
 0x2b2   :  { %v1141_v61 = vsel %vm959_vm1, %v1013_v22, %v8910_v56 }
 0x2b3   :  { %6989 = vmatmul.msk.f32.gmra.mxu1 %vm1232_vm2, %v1141_v61 }
 0x2b5   :  { %v741_v28 = vpop.f32.mrf.mxu0 }
 0x2b6   :  { %6873 = vmatmul.msk.f32.gmra.mxu0 %vm171_vm0, %v94_v45 }
 0x2b7   :  { %v3201_v39 = vpop.xlane.xlu1 %3200 }
 0x2b8   :  { %v3583_v53 = vsub.f32 %v8748_v20, %v3201_v39  ;;  %v1014_v20 = vmax.f32 %v8847_v42, 0.0 }
 0x2ba   :  { %v3711_v15 = vmul.f32 1.442695, %v3583_v53  ;;  %3221 = vmax.xlane.f32.xlu2 %v3220_v0  ;;  %v1142_v22 = vsel %vm959_vm1, %v1014_v20, %v8847_v42 }
 0x2bb   :  { %6990 = vmatmul.msk.f32.gmra.mxu1 %vm1232_vm2, %v1142_v22 }
 0x2bc   :  { %7325 = vpow2.f32 %v3711_v15 }
 0x2bd   :  { %v744_v9 = vpop.f32.mrf.mxu0 }
 0x2be   :  { %v8953_v42 = vadd.f32 %v8576_v21, %v744_v9  ;;  %v95_v9 = vld [vmem:[%s13676_s0 + $0x210] sm:$0xff] }
 0x2bf   :  { %6874 = vmatmul.msk.f32.gmra.mxu0 %vm171_vm0, %v95_v9  ;;  %v739_v9 = vadd.f32 %v8576_v21, %v738_v27 }
 0x2c2   :  { %v8935_v39 = vpop.eup %7325 }
 0x2c3   :  { %7192 = vmatmul.msk.f32.vlgmr.msra.gmra.mxu3 %vm3198_vm4, %v8935_v39 }
 0x2c4   :  { %v3204_v15 = vpop.xlane.xlu2 %3203 }
 0x2c5   :  { %v3584_v53 = vsub.f32 %v8764_v12, %v3204_v15  ;;  %v1757_v15 = vpop.f32.mrf.mxu1 }
 0x2c6   :  { %v3207_v0 = vpop.xlane.xlu0 %3206  ;;  %v8973_v22 = vadd.f32 %v8702_v10, %v1757_v15  ;;  %v8994_v15 = vpop.f32.mrf.mxu2 }
 0x2c7   :  { %v3713_v61 = vmul.f32 1.442695, %v3584_v53  ;;  %v3585_v41 = vsub.f32 %v8770_v63, %v3207_v0  ;;  %v8963_v63 = vadd.f32 %v8739_v16, %v8837_v60 }
 0x2c8   :  { %13891 = vst [vmem:[#allocation65_spill] sm:$0xff] %v8973_v22 }
 0x2c9   :  { %7327 = vpow2.f32 %v3713_v61  ;;  %v3715_v19 = vmul.f32 1.442695, %v3585_v41  ;;  %v3217_v60 = vsel %vm3198_vm4, %v8963_v63, -inf  ;;  %v2059_v61 = vmax.f32 %v8973_v22, 0.0 }
 0x2cb   :  { %7329 = vpow2.f32 %v3715_v19  ;;  %v8978_v19 = vadd.f32 %v8739_v16, %v8821_v57 }
 0x2cc   :  { %v8967_v41 = vpop.permute.xlu2 %6232 }
 0x2cd   :  { %13890 = vst [vmem:[#allocation64_spill] sm:$0xff] %v8967_v41  ;;  %v3214_v45 = vsel %vm3198_vm4, %v8978_v19, -inf  ;;  %v1015_v41 = vmax.f32 %v739_v9, 0.0 }
 0x2cf   :  { %v8955_v12 = vpop.eup %7327  ;;  %v8957_v20 = vpop.permute.xlu1 %6230  ;;  %v1143_v22 = vsel %vm959_vm1, %v1015_v41, %v739_v9  ;;  %v2055_v41 = vmax.f32 %v8835_v50, 0.0  ;;  %v96_v50 = vld [vmem:[%s13676_s0 + $0x218] sm:$0xff] }
 0x2d0   :  { %13889 = vst [vmem:[#allocation63_spill] sm:$0xff] %v8957_v20  ;;  %7193 = vmatmul.msk.f32.gmra.mxu3 %vm3198_vm4, %v8955_v12  ;;  %6991 = vmatmul.msk.f32.gmra.mxu1 %vm1232_vm2, %v1143_v22  ;;  %v9002_v20 = vpop.f32.mrf.mxu2 }
 0x2d1   :  { %v8982_v53 = vpop.eup %7329  ;;  %6875 = vmatmul.msk.f32.gmra.mxu0 %vm171_vm0, %v96_v50 }
 0x2d2   :  { %5638 = vrot.lane.b32.xlu2 %v8953_v42, %s7854_s15 }
 0x2d4   :  { %v8992_v57 = vpop.permute.xlu2 %5626 }
 0x2d5   :  { %13893 = vst [vmem:[#allocation67_spill] sm:$0xff] %v8992_v57  ;;  %v97_v57 = vld [vmem:[%s13676_s0 + $0x220] sm:$0xff] }
 0x2d7   :  { %3218 = vmax.xlane.f32.xlu0 %v3217_v60  ;;  %v8984_v0 = vpop.permute.xlu1 %5624 }
 0x2d8   :  { %13892 = vst [vmem:[#allocation66_spill] sm:$0xff] %v8984_v0  ;;  %7194 = vmatmul.msk.f32.gmra.mxu3 %vm3198_vm4, %v8982_v53  ;;  %v742_v0 = vadd.f32 %v8576_v21, %v741_v28  ;;  %v1752_v28 = vadd.f32 %v8702_v10, %v1751_v52  ;;  %v9028_v52 = vpop.f32.mrf.mxu1 }
 0x2d9   :  { %6876 = vmatmul.msk.f32.gmra.mxu0 %vm171_vm0, %v97_v57  ;;  %v98_v57 = vld [vmem:[%s13676_s0 + $0x228] sm:$0xff] }
 0x2da   :  { %3215 = vmax.xlane.f32.xlu1 %v3214_v45  ;;  %2366 = vrot.lane.b32.xlu2 %v2059_v61, %s7855_s29  ;;  %v1016_v61 = vmax.f32 %v742_v0, 0.0  ;;  %v2057_v22 = vmax.f32 %v1752_v28, 0.0 }
 0x2dc   :  { %v2355_v45 = vpop.permute.xlu2 %2354  ;;  %v1144_v27 = vsel %vm959_vm1, %v1016_v61, %v742_v0 }
 0x2dd   :  { %6992 = vmatmul.msk.f32.gmra.mxu1 %vm1232_vm2, %v1144_v27 }
 0x2df   :  { %v2353_v60 = vpop.permute.xlu1 %2352 }
 0x2e0   :  { %7098 = vmatmul.msk.f32.gmra.mxu2 %vm2540_vm3, %v2353_v60  ;;  %v2850_v60 = vpop.f32.mrf.mxu2 }
 0x2e1   :  { %6877 = vmatmul.msk.f32.gmra.mxu0 %vm171_vm0, %v98_v57 }
 0x2e8   :  { %7099 = vmatmul.msk.f32.gmra.mxu2 %vm2540_vm3, %v2355_v45  ;;  %v747_v45 = vpop.f32.mrf.mxu0 }
 0x2eb   :  { %6240 = vrot.lane.b32.xlu0 %v8854_v18, %s7854_s15  ;;  %v9018_v18 = vadd.f32 %v8739_v16, %v2850_v60  ;;  %v9036_v60 = vadd.f32 %v8702_v10, %v8945_v46 }
 0x2ed   :  { %13895 = vst [vmem:[#allocation69_spill] sm:$0xff] %v9036_v60  ;;  %v2058_v46 = vmax.f32 %v9036_v60, 0.0 }
 0x2f0   :  { %v750_v27 = vpop.f32.mrf.mxu0 }
 0x2f3   :  { %5634 = vrot.lane.b32.xlu0 %v739_v9, %s7854_s15  ;;  %5630 = vrot.lane.b32.xlu1 %v8910_v56, %s7854_s15  ;;  %v3235_v9 = vsel %vm3198_vm4, %v9018_v18, -inf  ;;  %v9023_v56 = vpop.permute.xlu0 %6234 }
 0x2f4   :  { %13894 = vst [vmem:[#allocation68_spill] sm:$0xff] %v9023_v56 }
 0x2fb   :  { %2362 = vrot.lane.b32.xlu0 %v2057_v22, %s7855_s29  ;;  %2358 = vrot.lane.b32.xlu1 %v2055_v41, %s7855_s29  ;;  %v1017_v41 = vmax.f32 %v8953_v42, 0.0 }
 0x303   :  { %6242 = vrot.lane.b32.xlu1 %v1752_v28, %s7854_s15  ;;  %3236 = vmax.xlane.f32.xlu2 %v3235_v9 }
 0x304   :  { %v3213_v28 = vpop.xlane.xlu0 %3212 }
 0x305   :  { %v3587_v50 = vsub.f32 %v8859_v23, %v3213_v28 }
 0x30a   :  { %v3210_v61 = vpop.xlane.xlu1 %3209 }
 0x30b   :  { %v3586_v22 = vsub.f32 %v8868_v2, %v3210_v61  ;;  %5636 = vrot.lane.b32.xlu1 %v742_v0, %s7854_s15  ;;  %v1145_v2 = vsel %vm959_vm1, %v1017_v41, %v8953_v42  ;;  %v9046_v0 = vpop.f32.mrf.mxu1  ;;  %v3719_v61 = vmul.f32 1.442695, %v3587_v50 }
 0x30c   :  { %6993 = vmatmul.msk.f32.gmra.mxu1 %vm1232_vm2, %v1145_v2 }
 0x30d   :  { %v3717_v9 = vmul.f32 1.442695, %v3586_v22  ;;  %v753_v22 = vpop.f32.mrf.mxu0 }
 0x30e   :  { %v9062_v41 = vadd.f32 %v8576_v21, %v753_v22  ;;  %v100_v22 = vld [vmem:[%s13676_s0 + $0x238] sm:$0xff] }
 0x30f   :  { %7331 = vpow2.f32 %v3717_v9  ;;  %v99_v9 = vld [vmem:[%s13676_s0 + $0x230] sm:$0xff] }
 0x310   :  { %7333 = vpow2.f32 %v3719_v61  ;;  %6878 = vmatmul.msk.f32.gmra.mxu0 %vm171_vm0, %v99_v9  ;;  %v9079_v61 = vadd.f32 %v8739_v16, %v8870_v7  ;;  %v9092_v7 = vadd.f32 %v8739_v16, %v8883_v51  ;;  %v748_v9 = vadd.f32 %v8576_v21, %v747_v45 }
 0x313   :  { %2364 = vrot.lane.b32.xlu1 %v2058_v46, %s7855_s29  ;;  %v1766_v28 = vpop.f32.mrf.mxu1 }
 0x314   :  { %v9072_v2 = vadd.f32 %v8702_v10, %v1766_v28  ;;  %v3223_v28 = vsel %vm3198_vm4, %v9079_v61, -inf }
 0x315   :  { %v9054_v23 = vpop.eup %7331 }
 0x316   :  { %7195 = vmatmul.msk.f32.gmra.mxu3 %vm3198_vm4, %v9054_v23  ;;  %v9069_v50 = vpop.eup %7333  ;;  %13897 = vst [vmem:[#allocation71_spill] sm:$0xff] %v9072_v2  ;;  %v2062_v57 = vmax.f32 %v9072_v2, 0.0  ;;  %v9112_v2 = vpop.permute.xlu2 %6238 }
 0x317   :  { %v9059_v42 = vpop.permute.xlu0 %5628  ;;  %13898 = vst [vmem:[#allocation72_spill] sm:$0xff] %v9112_v2 }
 0x318   :  { %13896 = vst [vmem:[#allocation70_spill] sm:$0xff] %v9059_v42  ;;  %6879 = vmatmul.msk.f32.gmra.mxu0 %vm171_vm0, %v100_v22  ;;  %v101_v42 = vld [vmem:[%s13676_s0 + $0x240] sm:$0xff] }
 0x31b   :  { %5644 = vrot.lane.b32.xlu2 %v9062_v41, %s7854_s15 }
 0x31e   :  { %7196 = vmatmul.msk.f32.gmra.mxu3 %vm3198_vm4, %v9069_v50 }
 0x31f   :  { %v2357_v46 = vpop.permute.xlu0 %2356 }
 0x320   :  { %7100 = vmatmul.msk.f32.gmra.mxu2 %vm2540_vm3, %v2357_v46  ;;  %v1018_v46 = vmax.f32 %v748_v9, 0.0  ;;  %6880 = vmatmul.msk.f32.gmra.mxu0 %vm171_vm0, %v101_v42  ;;  %v9114_v42 = vpop.f32.mrf.mxu0 }
 0x322   :  { %v1146_v22 = vsel %vm959_vm1, %v1018_v46, %v748_v9  ;;  %v9121_v46 = vadd.f32 %v8702_v10, %v9028_v52 }
 0x323   :  { %2372 = vrot.lane.b32.xlu2 %v2062_v57, %s7855_s29  ;;  %v3226_v57 = vsel %vm3198_vm4, %v9092_v7, -inf  ;;  %6994 = vmatmul.msk.f32.gmra.mxu1 %vm1232_vm2, %v1146_v22  ;;  %v9123_v22 = vpop.f32.mrf.mxu1 }
 0x324   :  { %13899 = vst [vmem:[#allocation73_spill] sm:$0xff] %v9121_v46  ;;  %v2060_v56 = vmax.f32 %v9121_v46, 0.0 }
 0x325   :  { %3224 = vmax.xlane.f32.xlu0 %v3223_v28  ;;  %v751_v28 = vadd.f32 %v8576_v21, %v750_v27 }
 0x327   :  { %v1019_v51 = vmax.f32 %v751_v28, 0.0 }
 0x328   :  { %v9129_v60 = vpop.f32.mrf.mxu0 }
 0x329   :  { %v1147_v45 = vsel %vm959_vm1, %v1019_v51, %v751_v28  ;;  %v9125_v51 = vpop.permute.xlu2 %5632 }
 0x32a   :  { %13900 = vst [vmem:[#allocation74_spill] sm:$0xff] %v9125_v51 }
 0x32b   :  { %6995 = vmatmul.msk.f32.gmra.mxu1 %vm1232_vm2, %v1147_v45  ;;  %v9127_v45 = vpop.permute.xlu1 %6236  ;;  %v9138_v29 = vpop.f32.mrf.mxu1 }
 0x32c   :  { %13901 = vst [vmem:[#allocation75_spill] sm:$0xff] %v9127_v45 }
 0x32d   :  { %3227 = vmax.xlane.f32.xlu0 %v3226_v57  ;;  %v9109_v57 = vadd.f32 %v8739_v16, %v8994_v15  ;;  %v2853_v15 = vpop.f32.mrf.mxu2 }
 0x32f   :  { %v3229_v27 = vsel %vm3198_vm4, %v9109_v57, -inf }
 0x330   :  { %v762_v8 = vpop.f32.mrf.mxu0 }
 0x331   :  { %v9140_v45 = vpop.permute.xlu2 %2360 }
 0x33d   :  { %3230 = vmax.xlane.f32.xlu1 %v3229_v27  ;;  %v9133_v27 = vadd.f32 %v8739_v16, %v2853_v15 }
 0x33f   :  { %v3238_v52 = vsel %vm3198_vm4, %v9133_v27, -inf }
 0x341   :  { %5640 = vrot.lane.b32.xlu0 %v748_v9, %s7854_s15 }
 0x346   :  { %v4372_v2 = vpop.f32.mrf.mxu3 }
 0x347   :  { %7335 = vrcp.f32 %v4372_v2 }
 0x349   :  { %2368 = vrot.lane.b32.xlu0 %v2060_v56, %s7855_s29 }
 0x34a   :  { %v3219_v46 = vpop.xlane.xlu0 %3218 }
 0x34b   :  { %v3589_v56 = vsub.f32 %v8963_v63, %v3219_v46 }
 0x34c   :  { %3239 = vmax.xlane.f32.xlu2 %v3238_v52  ;;  %v1020_v52 = vmax.f32 %v9062_v41, 0.0 }
 0x34d   :  { %v7336_v9 = vpop.eup %7335  ;;  %v3216_v51 = vpop.xlane.xlu1 %3215  ;;  %v3723_v59 = vmul.f32 1.442695, %v3589_v56 }
 0x34e   :  { %v4884_v55 = vmul.f32 %v7336_v9, %v4372_v2  ;;  %v3588_v34 = vsub.f32 %v8978_v19, %v3216_v51  ;;  %v1775_v19 = vpop.f32.mrf.mxu1  ;;  %v3222_v2 = vpop.xlane.xlu2 %3221 }
 0x350   :  { %v5012_v15 = vsub.f32 2.0, %v4884_v55  ;;  %v3721_v47 = vmul.f32 1.442695, %v3588_v34  ;;  %v9152_v55 = vadd.f32 %v8702_v10, %v9046_v0  ;;  %v3590_v34 = vsub.f32 %v8916_v37, %v3222_v2 }
 0x352   :  { %v5140_v3 = vmul.f32 %v7336_v9, %v5012_v15  ;;  %7337 = vpow2.f32 %v3721_v47  ;;  %13902 = vst [vmem:[#allocation76_spill] sm:$0xff] %v9152_v55  ;;  %v3725_v0 = vmul.f32 1.442695, %v3590_v34  ;;  %v9176_v9 = vadd.f32 %v8576_v21, %v762_v8  ;;  %v2856_v15 = vpop.f32.mrf.mxu2 }
 0x353   :  { %v4375_v32 = vpop.f32.mrf.mxu3 }
 0x354   :  { %v5268_v44 = vmul.f32 %v8935_v39, %v5140_v3  ;;  %7339 = vrcp.f32 %v4375_v32  ;;  %v1148_v3 = vsel %vm959_vm1, %v1020_v52, %v9062_v41  ;;  %v2061_v39 = vmax.f32 %v9152_v55, 0.0 }
 0x355   :  { %6996 = vmatmul.msk.f32.gmra.mxu1 %vm1232_vm2, %v1148_v3  ;;  %7341 = vpow2.f32 %v3723_v59  ;;  %v102_v3 = vld [vmem:[%s13676_s0 + $0x248] sm:$0xff] }
 0x356   :  { %v5908_v49 = vmul.f32 %v8275_v58, %v5268_v44  ;;  %5642 = vrot.lane.b32.xlu1 %v751_v28, %s7854_s15  ;;  %v9165_v58 = vpop.f32.mrf.mxu0  ;;  %v9171_v41 = vpop.f32.mrf.mxu1  ;;  %6881 = vmatmul.msk.f32.gmra.mxu0 %vm171_vm0, %v102_v3 }
 0x358   :  { %v9148_v51 = vpop.eup %7337  ;;  %v6548_v47 = vsel %vm3198_vm4, %v5908_v49, %v8422_v24 }
 0x359   :  { %6676 = vst.msk [vmem:[%s13682_s8] sm:$0xff] %vm2540_vm3, %v6548_v47  ;;  %7197 = vmatmul.msk.f32.gmra.mxu3 %vm3198_vm4, %v9148_v51 }
 0x35a   :  { %v7340_v44 = vpop.eup %7339 }
 0x35b   :  { %v4885_v24 = vmul.f32 %v7340_v44, %v4375_v32  ;;  %v4378_v49 = vpop.f32.mrf.mxu3  ;;  %v9173_v46 = vpop.eup %7341 }
 0x35c   :  { %7343 = vrcp.f32 %v4378_v49 }
 0x35d   :  { %v5013_v63 = vsub.f32 2.0, %v4885_v24  ;;  %7345 = vpow2.f32 %v3725_v0  ;;  %v9205_v34 = vpop.permute.xlu0 %6240  ;;  %v9211_v24 = vpop.f32.mrf.mxu2  ;;  %v9219_v0 = vadd.f32 %v8739_v16, %v9002_v20 }
 0x35e   :  { %2370 = vrot.lane.b32.xlu1 %v2061_v39, %s7855_s29  ;;  %v9182_v52 = vpop.f32.mrf.mxu0 }
 0x35f   :  { %v5141_v28 = vmul.f32 %v7340_v44, %v5013_v63  ;;  %v9202_v44 = vpop.f32.mrf.mxu1  ;;  %v3232_v20 = vsel %vm3198_vm4, %v9219_v0, -inf }
 0x361   :  { %v5269_v59 = vmul.f32 %v8955_v12, %v5141_v28  ;;  %7198 = vmatmul.msk.f32.gmra.mxu3 %vm3198_vm4, %v9173_v46  ;;  %v9191_v12 = vadd.f32 %v8702_v10, %v1775_v19 }
 0x362   :  { %v7344_v32 = vpop.eup %7343 }
 0x363   :  { %v5909_v37 = vmul.f32 %v8313_v17, %v5269_v59  ;;  %v4886_v56 = vmul.f32 %v7344_v32, %v4378_v49  ;;  %13904 = vst [vmem:[#allocation78_spill] sm:$0xff] %v9191_v12  ;;  %v9197_v47 = vpop.eup %7345  ;;  %v2065_v19 = vmax.f32 %v9191_v12, 0.0 }
 0x364   :  { %5650 = vrot.lane.b32.xlu2 %v9176_v9, %s7854_s15 }
 0x365   :  { %v6549_v8 = vsel %vm3198_vm4, %v5909_v37, %v8395_v6  ;;  %v5014_v21 = vsub.f32 2.0, %v4886_v56  ;;  %v9188_v2 = vpop.permute.xlu1 %5630  ;;  %v9246_v56 = vpop.f32.mrf.mxu2 }
 0x366   :  { %13903 = vst [vmem:[#allocation77_spill] sm:$0xff] %v9188_v2 }
 0x367   :  { %6677 = vst.msk [vmem:[%s13682_s8 + $0x8] sm:$0xff] %vm2540_vm3, %v6549_v8  ;;  %v5142_v17 = vmul.f32 %v7344_v32, %v5014_v21  ;;  %v1784_v59 = vpop.f32.mrf.mxu1  ;;  %v9240_v32 = vpop.permute.xlu0 %5634 }
 0x368   :  { %13905 = vst [vmem:[#allocation79_spill] sm:$0xff] %v9240_v32  ;;  %v9251_v21 = vadd.f32 %v8702_v10, %v1784_v59 }
 0x369   :  { %v5270_v6 = vmul.f32 %v8982_v53, %v5142_v17  ;;  %7199 = vmatmul.msk.f32.gmra.mxu3 %vm3198_vm4, %v9197_v47  ;;  %v771_v53 = vpop.f32.mrf.mxu0 }
 0x36a   :  { %13906 = vst [vmem:[#allocation80_spill] sm:$0xff] %v9251_v21  ;;  %v2068_v3 = vmax.f32 %v9251_v21, 0.0 }
 0x36b   :  { %v5910_v49 = vmul.f32 %v8303_v13, %v5270_v6  ;;  %v103_v13 = vld [vmem:[%s13676_s0 + $0x250] sm:$0xff] }
 0x36c   :  { %2378 = vrot.lane.b32.xlu2 %v2065_v19, %s7855_s29  ;;  %6882 = vmatmul.msk.f32.gmra.mxu0 %vm171_vm0, %v103_v13  ;;  %v9276_v13 = vpop.permute.xlu2 %5638 }
 0x36d   :  { %v6550_v39 = vsel %vm3198_vm4, %v5910_v49, %v8464_v4  ;;  %v2359_v63 = vpop.permute.xlu1 %2358  ;;  %v9232_v4 = vld [vmem:[%s13675_s2] ss:$0 sm:$0xff]  ;;  %13908 = vst [vmem:[#allocation82_spill] sm:$0xff] %v9276_v13 }
 0x36e   :  { %6678 = vst.msk [vmem:[%s13682_s8 + $0x10] sm:$0xff] %vm2540_vm3, %v6550_v39  ;;  %7101 = vmatmul.msk.f32.gmra.mxu2 %vm2540_vm3, %v2359_v63  ;;  %v9235_v28 = vadd.f32 %v9232_v4, %v771_v53  ;;  %v757_v37 = vadd.f32 %v9232_v4, %v9114_v42  ;;  %v760_v6 = vadd.f32 %v9232_v4, %v9129_v60  ;;  %v9268_v63 = vpop.f32.mrf.mxu2 }
 0x36f   :  { %v2363_v19 = vpop.permute.xlu0 %2362  ;;  %v9274_v53 = vadd.f32 %v8739_v16, %v2856_v15 }
 0x370   :  { %v1021_v17 = vmax.f32 %v757_v37, 0.0  ;;  %v1022_v39 = vmax.f32 %v760_v6, 0.0 }
 0x371   :  { %v3241_v59 = vsel %vm3198_vm4, %v9274_v53, -inf }
 0x372   :  { %v1149_v42 = vsel %vm959_vm1, %v1021_v17, %v757_v37  ;;  %v1150_v60 = vsel %vm959_vm1, %v1022_v39, %v760_v6  ;;  %v9285_v17 = vadd.f32 %v8702_v10, %v9123_v22  ;;  %v766_v39 = vadd.f32 %v9232_v4, %v9165_v58 }
 0x373   :  { %3233 = vmax.xlane.f32.xlu0 %v3232_v20  ;;  %6997 = vmatmul.msk.f32.gmra.mxu1 %vm1232_vm2, %v1149_v42 }
 0x374   :  { %5656 = vrot.lane.b32.xlu2 %v9235_v28, %s7854_s15  ;;  %13909 = vst [vmem:[#allocation83_spill] sm:$0xff] %v9285_v17  ;;  %v2063_v15 = vmax.f32 %v9285_v17, 0.0  ;;  %v2367_v42 = vpop.permute.xlu2 %2366 }
 0x375   :  { %v9248_v8 = vpop.permute.xlu1 %6242 }
 0x376   :  { %7102 = vmatmul.msk.f32.gmra.mxu2 %vm2540_vm3, %v9140_v45  ;;  %v104_v45 = vld [vmem:[%s13676_s0 + $0x258] sm:$0xff] }
 0x377   :  { %6883 = vmatmul.msk.f32.gmra.mxu0 %vm171_vm0, %v104_v45  ;;  %v9297_v45 = vpop.f32.mrf.mxu0 }
 0x37b   :  { %6998 = vmatmul.msk.f32.gmra.mxu1 %vm1232_vm2, %v1150_v60 }
 0x37c   :  { %2384 = vrot.lane.b32.xlu2 %v2068_v3, %s7855_s29  ;;  %v9287_v3 = vpop.f32.mrf.mxu2 }
 0x37d   :  { %v9262_v49 = vpop.permute.xlu1 %5636 }
 0x37e   :  { %13907 = vst [vmem:[#allocation81_spill] sm:$0xff] %v9262_v49  ;;  %7103 = vmatmul.msk.f32.gmra.mxu2 %vm2540_vm3, %v2363_v19  ;;  %v1023_v19 = vmax.f32 %v9176_v9, 0.0 }
 0x380   :  { %v1151_v22 = vsel %vm959_vm1, %v1023_v19, %v9176_v9  ;;  %v1024_v9 = vmax.f32 %v766_v39, 0.0  ;;  %v9312_v19 = vpop.f32.mrf.mxu0 }
 0x383   :  { %6999 = vmatmul.msk.f32.gmra.mxu1 %vm1232_vm2, %v1151_v22 }
 0x385   :  { %v2365_v20 = vpop.permute.xlu1 %2364 }
 0x386   :  { %7104 = vmatmul.msk.f32.gmra.mxu2 %vm2540_vm3, %v2365_v20  ;;  %v9306_v20 = vadd.f32 %v8702_v10, %v9171_v41 }
 0x387   :  { %5646 = vrot.lane.b32.xlu0 %v757_v37, %s7854_s15  ;;  %v9293_v37 = vpop.f32.mrf.mxu2 }
 0x388   :  { %3242 = vmax.xlane.f32.xlu1 %v3241_v59  ;;  %13910 = vst [vmem:[#allocation84_spill] sm:$0xff] %v9306_v20  ;;  %v2066_v32 = vmax.f32 %v9306_v20, 0.0 }
 0x38e   :  { %7105 = vmatmul.msk.f32.gmra.mxu2 %vm2540_vm3, %v2367_v42  ;;  %v9309_v42 = vpop.f32.mrf.mxu1 }
 0x38f   :  { %2374 = vrot.lane.b32.xlu0 %v2063_v15, %s7855_s29  ;;  %v2874_v13 = vpop.f32.mrf.mxu2 }
 0x390   :  { %v9316_v41 = vadd.f32 %v8739_v16, %v2874_v13  ;;  %v9331_v13 = vadd.f32 %v8702_v10, %v9138_v29 }
 0x392   :  { %13911 = vst [vmem:[#allocation85_spill] sm:$0xff] %v9331_v13 }
 0x397   :  { %5652 = vrot.lane.b32.xlu0 %v766_v39, %s7854_s15 }
 0x398   :  { %v3225_v60 = vpop.xlane.xlu0 %3224 }
 0x399   :  { %v3591_v59 = vsub.f32 %v9079_v61, %v3225_v60  ;;  %v4381_v15 = vpop.f32.mrf.mxu3  ;;  %v9320_v61 = vadd.f32 %v9232_v4, %v9182_v52 }
 0x39a   :  { %7347 = vrcp.f32 %v4381_v15 }
 0x39b   :  { %v3727_v58 = vmul.f32 1.442695, %v3591_v59 }
 0x39d   :  { %7349 = vpow2.f32 %v3727_v58  ;;  %v1152_v58 = vsel %vm959_vm1, %v1024_v9, %v766_v39  ;;  %v9338_v39 = vpop.f32.mrf.mxu1  ;;  %v780_v9 = vpop.f32.mrf.mxu0 }
 0x39e   :  { %7000 = vmatmul.msk.f32.gmra.mxu1 %vm1232_vm2, %v1152_v58 }
 0x39f   :  { %2380 = vrot.lane.b32.xlu0 %v2066_v32, %s7855_s29 }
 0x3a0   :  { %v7348_v22 = vpop.eup %7347  ;;  %v3228_v49 = vpop.xlane.xlu0 %3227 }
 0x3a1   :  { %v4887_v60 = vmul.f32 %v7348_v22, %v4381_v15  ;;  %v3592_v59 = vsub.f32 %v9092_v7, %v3228_v49  ;;  %5648 = vrot.lane.b32.xlu1 %v760_v6, %s7854_s15  ;;  %v4384_v2 = vpop.f32.mrf.mxu3  ;;  %v3259_v7 = vsel %vm3198_vm4, %v9316_v41, -inf  ;;  %v1025_v6 = vmax.f32 %v9320_v61, 0.0 }
 0x3a2   :  { %7351 = vrcp.f32 %v4384_v2  ;;  %v2064_v15 = vmax.f32 %v9331_v13, 0.0 }
 0x3a3   :  { %v9327_v32 = vpop.eup %7349  ;;  %v5015_v52 = vsub.f32 2.0, %v4887_v60  ;;  %v3729_v20 = vmul.f32 1.442695, %v3592_v59  ;;  %v1153_v58 = vsel %vm959_vm1, %v1025_v6, %v9320_v61 }
 0x3a4   :  { %7200 = vmatmul.msk.f32.gmra.mxu3 %vm3198_vm4, %v9327_v32 }
 0x3a5   :  { %v5143_v49 = vmul.f32 %v7348_v22, %v5015_v52  ;;  %7353 = vpow2.f32 %v3729_v20  ;;  %3260 = vmax.xlane.f32.xlu2 %v3259_v7  ;;  %v1793_v7 = vpop.f32.mrf.mxu1 }
 0x3a6   :  { %7001 = vmatmul.msk.f32.gmra.mxu1 %vm1232_vm2, %v1153_v58 }
 0x3a7   :  { %v5271_v29 = vmul.f32 %v9054_v23, %v5143_v49 }
 0x3a8   :  { %v7352_v10 = vpop.eup %7351 }
 0x3a9   :  { %v5911_v60 = vmul.f32 %v8290_v5, %v5271_v29  ;;  %v4888_v59 = vmul.f32 %v7352_v10, %v4384_v2  ;;  %2376 = vrot.lane.b32.xlu1 %v2064_v15, %s7855_s29  ;;  %v1026_v5 = vmax.f32 %v9235_v28, 0.0  ;;  %v105_v2 = vld [vmem:[%s13676_s0 + $0x260] sm:$0xff] }
 0x3aa   :  { %6884 = vmatmul.msk.f32.gmra.mxu0 %vm171_vm0, %v105_v2 }
 0x3ab   :  { %v9348_v20 = vpop.eup %7353  ;;  %v6551_v22 = vsel %vm3198_vm4, %v5911_v60, %v8472_v11  ;;  %v5016_v52 = vsub.f32 2.0, %v4888_v59  ;;  %v1154_v29 = vsel %vm959_vm1, %v1026_v5, %v9235_v28  ;;  %v9369_v60 = vpop.f32.mrf.mxu0  ;;  %v107_v5 = vld [vmem:[%s13676_s0 + $0x270] sm:$0xff] }
 0x3ac   :  { %6679 = vst.msk [vmem:[%s13682_s8 + $0x18] sm:$0xff] %vm2540_vm3, %v6551_v22  ;;  %7201 = vmatmul.msk.f32.gmra.mxu3 %vm3198_vm4, %v9348_v20 }
 0x3ad   :  { %v5144_v23 = vmul.f32 %v7352_v10, %v5016_v52 }
 0x3ae   :  { %7002 = vmatmul.msk.f32.gmra.mxu1 %vm1232_vm2, %v1154_v29 }
 0x3af   :  { %v5272_v11 = vmul.f32 %v9069_v50, %v5144_v23  ;;  %v9385_v50 = vadd.f32 %v9232_v4, %v780_v9  ;;  %v9401_v9 = vld [vmem:[%s13678_s4] ss:$0 sm:$0xff] }
 0x3b0   :  { %v3231_v6 = vpop.xlane.xlu1 %3230  ;;  %v9404_v52 = vadd.f32 %v9401_v9, %v1793_v7  ;;  %v9492_v13 = vadd.f32 %v9401_v9, %v9309_v42 }
 0x3b1   :  { %v5912_v49 = vmul.f32 %v8324_v25, %v5272_v11  ;;  %v3593_v15 = vsub.f32 %v9109_v57, %v3231_v6  ;;  %v106_v25 = vld [vmem:[%s13676_s0 + $0x268] sm:$0xff]  ;;  %v9387_v57 = vpop.f32.mrf.mxu1  ;;  %v9415_v11 = vadd.f32 %v8739_v16, %v9268_v63  ;;  %v9417_v6 = vpop.xlane.xlu2 %3236  ;;  %v9434_v63 = vld [vmem:[%s13680_s6] ss:$0 sm:$0xff] }
 0x3b2   :  { %6885 = vmatmul.msk.f32.gmra.mxu0 %vm171_vm0, %v106_v25  ;;  %13913 = vst [vmem:[#allocation87_spill] sm:$0xff] %v9404_v52  ;;  %v2071_v2 = vmax.f32 %v9404_v52, 0.0  ;;  %v3595_v55 = vsub.f32 %v9018_v18, %v9417_v6 }
 0x3b3   :  { %v6552_v10 = vsel %vm3198_vm4, %v5912_v49, %v8436_v36  ;;  %v3731_v59 = vmul.f32 1.442695, %v3593_v15  ;;  %v9374_v58 = vpop.permute.xlu0 %5640  ;;  %v9394_v22 = vpop.f32.mrf.mxu0  ;;  %v108_v49 = vld [vmem:[%s13676_s0 + $0x278] sm:$0xff]  ;;  %v3250_v29 = vsel %vm3198_vm4, %v9415_v11, -inf }
 0x3b4   :  { %13912 = vst [vmem:[#allocation86_spill] sm:$0xff] %v9374_v58 }
 0x3b5   :  { %6680 = vst.msk [vmem:[%s13682_s8 + $0x20] sm:$0xff] %vm2540_vm3, %v6552_v10  ;;  %7355 = vpow2.f32 %v3731_v59  ;;  %v9438_v10 = vadd.f32 %v9434_v63, %v9293_v37  ;;  %v9440_v59 = vpop.f32.mrf.mxu2  ;;  %v109_v37 = vld [vmem:[%s13676_s0 + $0x280] sm:$0xff] }
 0x3b9   :  { %v9410_v23 = vpop.f32.mrf.mxu1 }
 0x3ba   :  { %6886 = vmatmul.msk.f32.gmra.mxu0 %vm171_vm0, %v107_v5  ;;  %v9448_v5 = vpop.permute.xlu2 %5644 }
 0x3bb   :  { %v9389_v36 = vpop.eup %7355  ;;  %v2369_v28 = vpop.permute.xlu0 %2368  ;;  %13915 = vst [vmem:[#allocation89_spill] sm:$0xff] %v9448_v5 }
 0x3bc   :  { %7106 = vmatmul.msk.f32.gmra.mxu2 %vm2540_vm3, %v2369_v28  ;;  %7202 = vmatmul.msk.f32.gmra.mxu3 %vm3198_vm4, %v9389_v36  ;;  %v789_v7 = vpop.f32.mrf.mxu0  ;;  %v9446_v28 = vadd.f32 %v9434_v63, %v9211_v24 }
 0x3bd   :  { %5662 = vrot.lane.b32.xlu2 %v9385_v50, %s7854_s15  ;;  %v9429_v16 = vadd.f32 %v9232_v4, %v789_v7  ;;  %v9468_v5 = vpop.f32.mrf.mxu2 }
 0x3be   :  { %v3244_v24 = vsel %vm3198_vm4, %v9446_v28, -inf }
 0x3c1   :  { %v1802_v25 = vpop.f32.mrf.mxu1 }
 0x3c2   :  { %6887 = vmatmul.msk.f32.gmra.mxu0 %vm171_vm0, %v108_v49  ;;  %v3256_v49 = vsel %vm3198_vm4, %v9438_v10, -inf }
 0x3c5   :  { %2390 = vrot.lane.b32.xlu2 %v2071_v2, %s7855_s29  ;;  %v9451_v2 = vadd.f32 %v9401_v9, %v1802_v25  ;;  %v9466_v25 = vadd.f32 %v9434_v63, %v9246_v56  ;;  %v9479_v58 = vpop.f32.mrf.mxu2 }
 0x3c7   :  { %13916 = vst [vmem:[#allocation90_spill] sm:$0xff] %v9451_v2 }
 0x3c8   :  { %v9423_v15 = vpop.permute.xlu1 %5642 }
 0x3c9   :  { %13914 = vst [vmem:[#allocation88_spill] sm:$0xff] %v9423_v15  ;;  %3251 = vmax.xlane.f32.xlu0 %v3250_v29  ;;  %v2074_v29 = vmax.f32 %v9451_v2, 0.0  ;;  %v9483_v15 = vadd.f32 %v9232_v4, %v9312_v19 }
 0x3ca   :  { %6888 = vmatmul.msk.f32.gmra.mxu0 %vm171_vm0, %v109_v37  ;;  %v110_v37 = vld [vmem:[%s13676_s0 + $0x288] sm:$0xff] }
 0x3cd   :  { %5668 = vrot.lane.b32.xlu2 %v9429_v16, %s7854_s15  ;;  %v9495_v12 = vpop.f32.mrf.mxu2 }
 0x3d0   :  { %v2371_v7 = vpop.permute.xlu1 %2370 }
 0x3d1   :  { %3257 = vmax.xlane.f32.xlu0 %v3256_v49  ;;  %7107 = vmatmul.msk.f32.gmra.mxu2 %vm2540_vm3, %v2371_v7  ;;  %v2373_v49 = vpop.permute.xlu2 %2372  ;;  %v3247_v7 = vsel %vm3198_vm4, %v9466_v25, -inf }
 0x3d2   :  { %6889 = vmatmul.msk.f32.gmra.mxu0 %vm171_vm0, %v110_v37 }
 0x3d3   :  { %3245 = vmax.xlane.f32.xlu1 %v3244_v24  ;;  %v775_v24 = vadd.f32 %v9232_v4, %v9297_v45  ;;  %v1028_v45 = vmax.f32 %v9483_v15, 0.0 }
 0x3d5   :  { %2396 = vrot.lane.b32.xlu2 %v2074_v29, %s7855_s29  ;;  %v1027_v29 = vmax.f32 %v775_v24, 0.0 }
 0x3d7   :  { %v1155_v37 = vsel %vm959_vm1, %v1027_v29, %v775_v24 }
 0x3d8   :  { %7003 = vmatmul.msk.f32.gmra.mxu1 %vm1232_vm2, %v1155_v37 }
 0x3d9   :  { %7108 = vmatmul.msk.f32.gmra.mxu2 %vm2540_vm3, %v2373_v49  ;;  %v3240_v18 = vpop.xlane.xlu2 %3239 }
 0x3db   :  { %3248 = vmax.xlane.f32.xlu1 %v3247_v7 }
 0x3dc   :  { %v4387_v56 = vpop.f32.mrf.mxu3 }
 0x3dd   :  { %7357 = vrcp.f32 %v4387_v56 }
 0x3e3   :  { %v7358_v49 = vpop.eup %7357 }
 0x3e4   :  { %v4889_v2 = vmul.f32 %v7358_v49, %v4387_v56  ;;  %v4390_v7 = vpop.f32.mrf.mxu3 }
 0x3e5   :  { %5658 = vrot.lane.b32.xlu0 %v775_v24, %s7854_s15  ;;  %7359 = vrcp.f32 %v4390_v7  ;;  %v1156_v24 = vsel %vm959_vm1, %v1028_v45, %v9483_v15 }
 0x3e6   :  { %v5017_v52 = vsub.f32 2.0, %v4889_v2  ;;  %v3234_v17 = vpop.xlane.xlu0 %3233  ;;  %v2069_v2 = vmax.f32 %v9492_v13, 0.0  ;;  %7004 = vmatmul.msk.f32.gmra.mxu1 %vm1232_vm2, %v1156_v24 }
 0x3e7   :  { %v3594_v19 = vsub.f32 %v9219_v0, %v3234_v17 }
 0x3e8   :  { %v5145_v21 = vmul.f32 %v7358_v49, %v5017_v52  ;;  %v3735_v49 = vmul.f32 1.442695, %v3595_v55 }
 0x3e9   :  { %v3733_v29 = vmul.f32 1.442695, %v3594_v19  ;;  %v3596_v19 = vsub.f32 %v9133_v27, %v3240_v18 }
 0x3ea   :  { %v5273_v56 = vmul.f32 %v9148_v51, %v5145_v21  ;;  %v1029_v51 = vmax.f32 %v9385_v50, 0.0 }
 0x3eb   :  { %v7360_v37 = vpop.eup %7359  ;;  %7361 = vpow2.f32 %v3733_v29  ;;  %v2889_v29 = vpop.f32.mrf.mxu2  ;;  %v3737_v27 = vmul.f32 1.442695, %v3596_v19  ;;  %v1032_v19 = vmax.f32 %v9429_v16, 0.0 }
 0x3ec   :  { %v5913_v0 = vmul.f32 %v8339_v31, %v5273_v56  ;;  %v4890_v17 = vmul.f32 %v7360_v37, %v4390_v7  ;;  %v4393_v42 = vpop.f32.mrf.mxu3  ;;  %v9518_v7 = vadd.f32 %v9232_v4, %v9369_v60 }
 0x3ed   :  { %2386 = vrot.lane.b32.xlu0 %v2069_v2, %s7855_s29  ;;  %7363 = vrcp.f32 %v4393_v42 }
 0x3ee   :  { %v6553_v21 = vsel %vm3198_vm4, %v5913_v0, %v8493_v38  ;;  %v5018_v52 = vsub.f32 2.0, %v4890_v17  ;;  %v1157_v38 = vsel %vm959_vm1, %v1029_v51, %v9385_v50  ;;  %7365 = vpow2.f32 %v3735_v49 }
 0x3ef   :  { %6681 = vst.msk [vmem:[%s13682_s8 + $0x28] sm:$0xff] %vm2540_vm3, %v6553_v21  ;;  %7005 = vmatmul.msk.f32.gmra.mxu1 %vm1232_vm2, %v1157_v38  ;;  %v1030_v24 = vmax.f32 %v9518_v7, 0.0  ;;  %7367 = vpow2.f32 %v3737_v27 }
 0x3f0   :  { %v5146_v6 = vmul.f32 %v7360_v37, %v5018_v52 }
 0x3f1   :  { %v9514_v31 = vpop.eup %7361 }
 0x3f2   :  { %v5274_v45 = vmul.f32 %v9173_v46, %v5146_v6  ;;  %7203 = vmatmul.msk.f32.gmra.mxu3 %vm3198_vm4, %v9514_v31  ;;  %v9533_v46 = vadd.f32 %v9401_v9, %v9202_v44  ;;  %v9549_v44 = vadd.f32 %v9434_v63, %v2889_v29 }
 0x3f3   :  { %v7364_v55 = vpop.eup %7363  ;;  %v2892_v49 = vpop.f32.mrf.mxu2 }
 0x3f4   :  { %v5914_v56 = vmul.f32 %v8305_v14, %v5274_v45  ;;  %v4891_v60 = vmul.f32 %v7364_v55, %v4393_v42  ;;  %5654 = vrot.lane.b32.xlu1 %v9320_v61, %s7854_s15  ;;  %v9544_v14 = vadd.f32 %v9232_v4, %v9394_v22  ;;  %v9546_v2 = vpop.eup %7365  ;;  %v1158_v22 = vsel %vm959_vm1, %v1030_v24, %v9518_v7 }
 0x3f5   :  { %v9579_v45 = vadd.f32 %v9434_v63, %v2892_v49  ;;  %v9642_v49 = vadd.f32 %v9434_v63, %v9287_v3 }
 0x3f6   :  { %v6554_v50 = vsel %vm3198_vm4, %v5914_v56, %v8512_v62  ;;  %v5019_v37 = vsub.f32 2.0, %v4891_v60  ;;  %v2067_v62 = vmax.f32 %v9533_v46, 0.0  ;;  %v1031_v51 = vmax.f32 %v9544_v14, 0.0  ;;  %v9597_v60 = vpop.f32.mrf.mxu1 }
 0x3f7   :  { %6682 = vst.msk [vmem:[%s13682_s8 + $0x30] sm:$0xff] %vm2540_vm3, %v6554_v50  ;;  %7006 = vmatmul.msk.f32.gmra.mxu1 %vm1232_vm2, %v1158_v22  ;;  %v1160_v56 = vsel %vm959_vm1, %v1032_v19, %v9429_v16  ;;  %v111_v50 = vld [vmem:[%s13676_s0 + $0x290] sm:$0xff]  ;;  %v9619_v22 = vpop.permute.xlu2 %5650 }
 0x3f8   :  { %v5147_v61 = vmul.f32 %v7364_v55, %v5019_v37  ;;  %v3277_v55 = vsel %vm3198_vm4, %v9579_v45, -inf  ;;  %6890 = vmatmul.msk.f32.gmra.mxu0 %vm171_vm0, %v111_v50  ;;  %v9608_v37 = vadd.f32 %v9434_v63, %v9440_v59  ;;  %13919 = vst [vmem:[#allocation93_spill] sm:$0xff] %v9619_v22  ;;  %v9624_v59 = vadd.f32 %v9434_v63, %v9468_v5  ;;  %v113_v5 = vld [vmem:[%s13676_s0 + $0x2a0] sm:$0xff] }
 0x3f9   :  { %v9551_v0 = vpop.permute.xlu0 %5646 }
 0x3fa   :  { %13917 = vst [vmem:[#allocation91_spill] sm:$0xff] %v9551_v0  ;;  %v5275_v17 = vmul.f32 %v9197_v47, %v5147_v61  ;;  %7204 = vmatmul.msk.f32.gmra.mxu3 %vm3198_vm4, %v9546_v2  ;;  %v3274_v47 = vsel %vm3198_vm4, %v9549_v44, -inf  ;;  %v3262_v16 = vsel %vm3198_vm4, %v9608_v37, -inf }
 0x3fb   :  { %v3243_v42 = vpop.xlane.xlu1 %3242  ;;  %v9652_v19 = vpop.f32.mrf.mxu2 }
 0x3fc   :  { %v5915_v21 = vmul.f32 %v8355_v43, %v5275_v17  ;;  %v3597_v52 = vsub.f32 %v9274_v53, %v3243_v42  ;;  %2382 = vrot.lane.b32.xlu1 %v2067_v62, %s7855_s29  ;;  %v1159_v43 = vsel %vm959_vm1, %v1031_v51, %v9544_v14  ;;  %v9576_v53 = vpop.eup %7367  ;;  %v112_v17 = vld [vmem:[%s13676_s0 + $0x298] sm:$0xff] }
 0x3fe   :  { %v6555_v18 = vsel %vm3198_vm4, %v5915_v21, %v8490_v35  ;;  %3275 = vmax.xlane.f32.xlu2 %v3274_v47  ;;  %v3739_v6 = vmul.f32 1.442695, %v3597_v52  ;;  %v9584_v35 = vpop.f32.mrf.mxu0  ;;  %v9610_v27 = vpop.f32.mrf.mxu1  ;;  %v3265_v52 = vsel %vm3198_vm4, %v9624_v59, -inf }
 0x3ff   :  { %6683 = vst.msk [vmem:[%s13682_s8 + $0x38] sm:$0xff] %vm2540_vm3, %v6555_v18  ;;  %7007 = vmatmul.msk.f32.gmra.mxu1 %vm1232_vm2, %v1159_v43 }
 0x400   :  { %7369 = vpow2.f32 %v3739_v6  ;;  %6891 = vmatmul.msk.f32.gmra.mxu0 %vm171_vm0, %v112_v17  ;;  %v2379_v6 = vpop.permute.xlu2 %2378 }
 0x401   :  { %v2375_v38 = vpop.permute.xlu0 %2374 }
 0x402   :  { %7109 = vmatmul.msk.f32.gmra.mxu2 %vm2540_vm3, %v2375_v38  ;;  %7205 = vmatmul.msk.f32.gmra.mxu3 %vm3198_vm4, %v9576_v53  ;;  %v3253_v38 = vsel %vm3198_vm4, %v9642_v49, -inf }
 0x403   :  { %v9655_v17 = vpop.f32.mrf.mxu2 }
 0x406   :  { %3278 = vmax.xlane.f32.xlu2 %v3277_v55  ;;  %v9590_v29 = vpop.eup %7369  ;;  %v9600_v24 = vpop.f32.mrf.mxu0 }
 0x407   :  { %7008 = vmatmul.msk.f32.gmra.mxu1 %vm1232_vm2, %v1160_v56  ;;  %v1811_v21 = vpop.f32.mrf.mxu1 }
 0x408   :  { %v9635_v47 = vadd.f32 %v9401_v9, %v1811_v21  ;;  %6892 = vmatmul.msk.f32.gmra.mxu0 %vm171_vm0, %v113_v5  ;;  %v9661_v21 = vadd.f32 %v9401_v9, %v9387_v57 }
 0x409   :  { %v9644_v18 = vpop.permute.xlu0 %5652 }
 0x40a   :  { %7206 = vmatmul.msk.f32.gmra.mxu3 %vm3198_vm4, %v9590_v29  ;;  %13920 = vst [vmem:[#allocation94_spill] sm:$0xff] %v9644_v18  ;;  %v2077_v43 = vmax.f32 %v9635_v47, 0.0 }
 0x40b   :  { %v9673_v57 = vpop.f32.mrf.mxu2 }
 0x40e   :  { %v798_v62 = vpop.f32.mrf.mxu0 }
 0x40f   :  { %v9627_v42 = vadd.f32 %v9232_v4, %v798_v62 }
 0x411   :  { %v2381_v3 = vpop.permute.xlu0 %2380 }
 0x413   :  { %v9612_v61 = vpop.permute.xlu1 %5648 }
 0x414   :  { %13918 = vst [vmem:[#allocation92_spill] sm:$0xff] %v9612_v61 }
 0x417   :  { %3263 = vmax.xlane.f32.xlu0 %v3262_v16 }
 0x41b   :  { %v2377_v51 = vpop.permute.xlu1 %2376 }
 0x41c   :  { %7110 = vmatmul.msk.f32.gmra.mxu2 %vm2540_vm3, %v2377_v51 }
 0x41e   :  { %5674 = vrot.lane.b32.xlu2 %v9627_v42, %s7854_s15 }
 0x41f   :  { %3266 = vmax.xlane.f32.xlu0 %v3265_v52 }
 0x424   :  { %7111 = vmatmul.msk.f32.gmra.mxu2 %vm2540_vm3, %v2379_v6 }
 0x426   :  { %3254 = vmax.xlane.f32.xlu1 %v3253_v38  ;;  %2402 = vrot.lane.b32.xlu2 %v2077_v43, %s7855_s29  ;;  %v2072_v38 = vmax.f32 %v9661_v21, 0.0 }
 0x427   :  { %v4396_v55 = vpop.f32.mrf.mxu3 }
 0x428   :  { %7371 = vrcp.f32 %v4396_v55 }
 0x42c   :  { %7112 = vmatmul.msk.f32.gmra.mxu2 %vm2540_vm3, %v2381_v3 }
 0x42e   :  { %v7372_v56 = vpop.eup %7371 }
 0x42f   :  { %v4892_v50 = vmul.f32 %v7372_v56, %v4396_v55  ;;  %v4399_v16 = vpop.f32.mrf.mxu3 }
 0x430   :  { %7373 = vrcp.f32 %v4399_v16 }
 0x431   :  { %v5020_v62 = vsub.f32 2.0, %v4892_v50 }
 0x433   :  { %v5148_v51 = vmul.f32 %v7372_v56, %v5020_v62  ;;  %5664 = vrot.lane.b32.xlu0 %v9518_v7, %s7854_s15  ;;  %v9680_v56 = vadd.f32 %v9232_v4, %v9584_v35 }
 0x435   :  { %v5276_v52 = vmul.f32 %v9327_v32, %v5148_v51  ;;  %v1033_v35 = vmax.f32 %v9680_v56, 0.0  ;;  %v2904_v51 = vpop.f32.mrf.mxu2 }
 0x436   :  { %v7374_v5 = vpop.eup %7373 }
 0x437   :  { %v5916_v6 = vmul.f32 %v8367_v48, %v5276_v52  ;;  %v4893_v43 = vmul.f32 %v7374_v5, %v4399_v16  ;;  %v9676_v48 = vpop.f32.mrf.mxu0  ;;  %v9687_v16 = vadd.f32 %v9401_v9, %v9338_v39  ;;  %v9702_v39 = vpop.f32.mrf.mxu1 }
 0x438   :  { %v9835_v18 = vadd.f32 %v9232_v4, %v9676_v48 }
 0x439   :  { %v6556_v55 = vsel %vm3198_vm4, %v5916_v6, %v8538_v33  ;;  %v5021_v3 = vsub.f32 2.0, %v4893_v43 }
 0x43a   :  { %6684 = vst.msk [vmem:[%s13682_s8 + $0x40] sm:$0xff] %vm2540_vm3, %v6556_v55  ;;  %v9708_v55 = vadd.f32 %v9434_v63, %v2904_v51 }
 0x43b   :  { %v5149_v7 = vmul.f32 %v7374_v5, %v5021_v3  ;;  %2392 = vrot.lane.b32.xlu0 %v2072_v38, %s7855_s29 }
 0x43d   :  { %v5277_v32 = vmul.f32 %v9348_v20, %v5149_v7 }
 0x43f   :  { %v5917_v33 = vmul.f32 %v8326_v26, %v5277_v32  ;;  %5660 = vrot.lane.b32.xlu1 %v9483_v15, %s7854_s15  ;;  %v4402_v50 = vpop.f32.mrf.mxu3  ;;  %v2070_v26 = vmax.f32 %v9687_v16, 0.0  ;;  %v9704_v6 = vpop.f32.mrf.mxu0 }
 0x440   :  { %7375 = vrcp.f32 %v4402_v50  ;;  %v9846_v48 = vadd.f32 %v9232_v4, %v9704_v6 }
 0x441   :  { %v6557_v20 = vsel %vm3198_vm4, %v5917_v33, %v8559_v1  ;;  %v1161_v1 = vsel %vm959_vm1, %v1033_v35, %v9680_v56  ;;  %v3289_v33 = vsel %vm3198_vm4, %v9708_v55, -inf }
 0x442   :  { %6685 = vst.msk [vmem:[%s13682_s8 + $0x48] sm:$0xff] %vm2540_vm3, %v6557_v20  ;;  %7009 = vmatmul.msk.f32.gmra.mxu1 %vm1232_vm2, %v1161_v1 }
 0x446   :  { %v7376_v62 = vpop.eup %7375  ;;  %v3246_v15 = vpop.xlane.xlu1 %3245 }
 0x447   :  { %v4894_v52 = vmul.f32 %v7376_v62, %v4402_v50  ;;  %v3598_v5 = vsub.f32 %v9446_v28, %v3246_v15  ;;  %2388 = vrot.lane.b32.xlu1 %v2070_v26, %s7855_s29  ;;  %v9712_v28 = vadd.f32 %v9232_v4, %v9600_v24  ;;  %v9722_v24 = vpop.f32.mrf.mxu1  ;;  %v3252_v26 = vpop.xlane.xlu0 %3251 }
 0x449   :  { %v5022_v43 = vsub.f32 2.0, %v4894_v52  ;;  %v3741_v38 = vmul.f32 1.442695, %v3598_v5  ;;  %v1034_v50 = vmax.f32 %v9712_v28, 0.0  ;;  %v1035_v52 = vmax.f32 %v9627_v42, 0.0 }
 0x44b   :  { %v5150_v3 = vmul.f32 %v7376_v62, %v5022_v43  ;;  %7377 = vpow2.f32 %v3741_v38  ;;  %v1163_v43 = vsel %vm959_vm1, %v1035_v52, %v9627_v42  ;;  %v9758_v38 = vadd.f32 %v9434_v63, %v9479_v58 }
 0x44d   :  { %v5278_v7 = vmul.f32 %v9389_v36, %v5150_v3  ;;  %v9728_v36 = vadd.f32 %v9401_v9, %v9410_v23  ;;  %v1162_v23 = vsel %vm959_vm1, %v1034_v50, %v9712_v28 }
 0x44e   :  { %v3249_v32 = vpop.xlane.xlu1 %3248  ;;  %7010 = vmatmul.msk.f32.gmra.mxu1 %vm1232_vm2, %v1162_v23  ;;  %v9793_v23 = vpop.f32.mrf.mxu2 }
 0x44f   :  { %v5918_v20 = vmul.f32 %v8375_v54, %v5278_v7  ;;  %v3599_v35 = vsub.f32 %v9466_v25, %v3249_v32  ;;  %5666 = vrot.lane.b32.xlu1 %v9544_v14, %s7854_s15  ;;  %3290 = vmax.xlane.f32.xlu2 %v3289_v33  ;;  %v807_v54 = vpop.f32.mrf.mxu0  ;;  %v3600_v25 = vsub.f32 %v9415_v11, %v3252_v26  ;;  %v1820_v1 = vpop.f32.mrf.mxu1  ;;  %v3268_v33 = vsel %vm3198_vm4, %v9758_v38, -inf }
 0x450   :  { %v9767_v32 = vadd.f32 %v9232_v4, %v807_v54  ;;  %v9778_v58 = vadd.f32 %v9401_v9, %v1820_v1 }
 0x451   :  { %v9724_v62 = vpop.eup %7377  ;;  %v6558_v15 = vsel %vm3198_vm4, %v5918_v20, %v8535_v30  ;;  %v3743_v51 = vmul.f32 1.442695, %v3599_v35  ;;  %v2073_v30 = vmax.f32 %v9728_v36, 0.0  ;;  %v3745_v14 = vmul.f32 1.442695, %v3600_v25  ;;  %v114_v20 = vld [vmem:[%s13676_s0 + $0x2a8] sm:$0xff]  ;;  %v9783_v35 = vpop.permute.xlu2 %5656 }
 0x452   :  { %6686 = vst.msk [vmem:[%s13682_s8 + $0x50] sm:$0xff] %vm2540_vm3, %v6558_v15  ;;  %7207 = vmatmul.msk.f32.gmra.mxu3 %vm3198_vm4, %v9724_v62  ;;  %6893 = vmatmul.msk.f32.gmra.mxu0 %vm171_vm0, %v114_v20  ;;  %v9788_v15 = vpop.xlane.xlu0 %3257 }
 0x453   :  { %7379 = vpow2.f32 %v3743_v51  ;;  %13922 = vst [vmem:[#allocation96_spill] sm:$0xff] %v9778_v58  ;;  %v2080_v51 = vmax.f32 %v9778_v58, 0.0 }
 0x454   :  { %7381 = vpow2.f32 %v3745_v14  ;;  %13923 = vst [vmem:[#allocation97_spill] sm:$0xff] %v9783_v35 }
 0x456   :  { %7011 = vmatmul.msk.f32.gmra.mxu1 %vm1232_vm2, %v1163_v43 }
 0x457   :  { %2394 = vrot.lane.b32.xlu1 %v2073_v30, %s7855_s29  ;;  %v9750_v11 = vpop.f32.mrf.mxu0  ;;  %v9762_v7 = vpop.f32.mrf.mxu1  ;;  %v115_v30 = vld [vmem:[%s13676_s0 + $0x2b0] sm:$0xff] }
 0x459   :  { %v9746_v5 = vpop.eup %7379  ;;  %v2385_v43 = vpop.permute.xlu2 %2384 }
 0x45a   :  { %7208 = vmatmul.msk.f32.gmra.mxu3 %vm3198_vm4, %v9746_v5  ;;  %v9760_v3 = vpop.eup %7381  ;;  %6894 = vmatmul.msk.f32.gmra.mxu0 %vm171_vm0, %v115_v30  ;;  %v9802_v52 = vpop.permute.xlu0 %5658 }
 0x45b   :  { %13924 = vst [vmem:[#allocation98_spill] sm:$0xff] %v9802_v52  ;;  %v9824_v30 = vpop.f32.mrf.mxu2 }
 0x45f   :  { %v9773_v50 = vpop.f32.mrf.mxu0  ;;  %v9786_v26 = vpop.f32.mrf.mxu1 }
 0x462   :  { %7209 = vmatmul.msk.f32.gmra.mxu3 %vm3198_vm4, %v9760_v3  ;;  %v2387_v35 = vpop.permute.xlu0 %2386 }
 0x463   :  { %v9838_v61 = vpop.f32.mrf.mxu2 }
 0x465   :  { %3269 = vmax.xlane.f32.xlu0 %v3268_v33 }
 0x466   :  { %v9771_v42 = vpop.permute.xlu1 %5654 }
 0x467   :  { %13921 = vst [vmem:[#allocation95_spill] sm:$0xff] %v9771_v42  ;;  %5680 = vrot.lane.b32.xlu2 %v9767_v32, %s7854_s15  ;;  %v816_v25 = vpop.f32.mrf.mxu0  ;;  %v1829_v33 = vpop.f32.mrf.mxu1 }
 0x468   :  { %v9799_v14 = vadd.f32 %v9232_v4, %v816_v25  ;;  %v9808_v20 = vadd.f32 %v9401_v9, %v1829_v33  ;;  %v9822_v25 = vadd.f32 %v9434_v63, %v9495_v12 }
 0x46a   :  { %13925 = vst [vmem:[#allocation99_spill] sm:$0xff] %v9808_v20  ;;  %v2083_v33 = vmax.f32 %v9808_v20, 0.0  ;;  %v3271_v12 = vsel %vm3198_vm4, %v9822_v25, -inf  ;;  %v1036_v20 = vmax.f32 %v9835_v18, 0.0 }
 0x46e   :  { %v2383_v54 = vpop.permute.xlu1 %2382 }
 0x46f   :  { %2408 = vrot.lane.b32.xlu2 %v2080_v51, %s7855_s29  ;;  %7113 = vmatmul.msk.f32.gmra.mxu2 %vm2540_vm3, %v2383_v54  ;;  %v116_v51 = vld [vmem:[%s13676_s0 + $0x2b8] sm:$0xff]  ;;  %v9817_v54 = vadd.f32 %v9401_v9, %v9597_v60 }
 0x470   :  { %6895 = vmatmul.msk.f32.gmra.mxu0 %vm171_vm0, %v116_v51 }
 0x471   :  { %13926 = vst [vmem:[#allocation100_spill] sm:$0xff] %v9817_v54  ;;  %v2075_v52 = vmax.f32 %v9817_v54, 0.0  ;;  %v13928_v54 = vld [vmem:[#allocation20_spill] sm:$0xff] }
 0x475   :  { %v4405_v1 = vpop.f32.mrf.mxu3 }
 0x476   :  { %7383 = vrcp.f32 %v4405_v1 }
 0x477   :  { %5686 = vrot.lane.b32.xlu2 %v9799_v14, %s7854_s15  ;;  %7114 = vmatmul.msk.f32.gmra.mxu2 %vm2540_vm3, %v2385_v43 }
 0x479   :  { %5670 = vrot.lane.b32.xlu0 %v9680_v56, %s7854_s15 }
 0x47c   :  { %v7384_v43 = vpop.eup %7383 }
 0x47d   :  { %v4408_v56 = vpop.f32.mrf.mxu3  ;;  %v4895_v22 = vmul.f32 %v7384_v43, %v4405_v1 }
 0x47e   :  { %7385 = vrcp.f32 %v4408_v56 }
 0x47f   :  { %2414 = vrot.lane.b32.xlu2 %v2083_v33, %s7855_s29  ;;  %7115 = vmatmul.msk.f32.gmra.mxu2 %vm2540_vm3, %v2387_v35  ;;  %v5023_v60 = vsub.f32 2.0, %v4895_v22  ;;  %v13927_v33 = vld [vmem:[#allocation4_spill] sm:$0xff] }
 0x481   :  { %2398 = vrot.lane.b32.xlu0 %v2075_v52, %s7855_s29  ;;  %3272 = vmax.xlane.f32.xlu1 %v3271_v12  ;;  %v5151_v51 = vmul.f32 %v7384_v43, %v5023_v60 }
 0x483   :  { %v5279_v1 = vmul.f32 %v9514_v31, %v5151_v51 }
 0x484   :  { %v7386_v42 = vpop.eup %7385 }
 0x485   :  { %v4411_v0 = vpop.f32.mrf.mxu3  ;;  %v5919_v35 = vmul.f32 %v13927_v33, %v5279_v1  ;;  %v4896_v22 = vmul.f32 %v7386_v42, %v4408_v56  ;;  %v1164_v56 = vsel %vm959_vm1, %v1036_v20, %v9835_v18  ;;  %v9858_v1 = vpop.f32.mrf.mxu2  ;;  %v13929_v33 = vld [vmem:[#allocation2_spill] sm:$0xff] }
 0x486   :  { %7387 = vrcp.f32 %v4411_v0  ;;  %7012 = vmatmul.msk.f32.gmra.mxu1 %vm1232_vm2, %v1164_v56  ;;  %v13931_v56 = vld [vmem:[#allocation5_spill] sm:$0xff] }
 0x487   :  { %v6559_v52 = vsel %vm3198_vm4, %v5919_v35, %v13928_v54  ;;  %v5024_v43 = vsub.f32 2.0, %v4896_v22  ;;  %v1037_v54 = vmax.f32 %v9846_v48, 0.0 }
 0x488   :  { %6687 = vst.msk [vmem:[%s13682_s8 + $0x58] sm:$0xff] %vm2540_vm3, %v6559_v52 }
 0x489   :  { %v5152_v31 = vmul.f32 %v7386_v42, %v5024_v43  ;;  %v13930_v42 = vld [vmem:[#allocation23_spill] sm:$0xff]  ;;  %v1165_v20 = vsel %vm959_vm1, %v1037_v54, %v9846_v48 }
 0x48b   :  { %v5280_v12 = vmul.f32 %v9546_v2, %v5152_v31 }
 0x48c   :  { %v7388_v60 = vpop.eup %7387 }
 0x48d   :  { %v4897_v51 = vmul.f32 %v7388_v60, %v4411_v0  ;;  %v4414_v6 = vpop.f32.mrf.mxu3  ;;  %v5920_v35 = vmul.f32 %v13929_v33, %v5280_v12  ;;  %v117_v0 = vld [vmem:[%s13676_s0 + $0x2c0] sm:$0xff]  ;;  %v13932_v33 = vld [vmem:[#allocation19_spill] sm:$0xff] }
 0x48e   :  { %7389 = vrcp.f32 %v4414_v6  ;;  %6896 = vmatmul.msk.f32.gmra.mxu0 %vm171_vm0, %v117_v0  ;;  %7013 = vmatmul.msk.f32.gmra.mxu1 %vm1232_vm2, %v1165_v20  ;;  %v9895_v0 = vadd.f32 %v9401_v9, %v9610_v27 }
 0x48f   :  { %v5025_v22 = vsub.f32 2.0, %v4897_v51  ;;  %v6560_v52 = vsel %vm3198_vm4, %v5920_v35, %v13930_v42  ;;  %v9880_v42 = vpop.f32.mrf.mxu2 }
 0x490   :  { %6688 = vst.msk [vmem:[%s13682_s8 + $0x60] sm:$0xff] %vm2540_vm3, %v6560_v52  ;;  %v2076_v27 = vmax.f32 %v9895_v0, 0.0 }
 0x491   :  { %v5153_v2 = vmul.f32 %v7388_v60, %v5025_v22  ;;  %v1038_v60 = vmax.f32 %v9767_v32, 0.0  ;;  %13933 = vst [vmem:[#allocation4_spill] sm:$0xff] %v9895_v0 }
 0x493   :  { %v5281_v43 = vmul.f32 %v9576_v53, %v5153_v2 }
 0x494   :  { %v7390_v31 = vpop.eup %7389 }
 0x495   :  { %v5921_v12 = vmul.f32 %v13931_v56, %v5281_v43  ;;  %v4898_v51 = vmul.f32 %v7390_v31, %v4414_v6  ;;  %v1166_v6 = vsel %vm959_vm1, %v1038_v60, %v9767_v32  ;;  %v9900_v43 = vadd.f32 %v9232_v4, %v9750_v11  ;;  %v13935_v32 = vld [vmem:[#allocation26_spill] sm:$0xff] }
 0x496   :  { %7014 = vmatmul.msk.f32.gmra.mxu1 %vm1232_vm2, %v1166_v6 }
 0x497   :  { %v6561_v35 = vsel %vm3198_vm4, %v5921_v12, %v13932_v33  ;;  %v5026_v22 = vsub.f32 2.0, %v4898_v51  ;;  %v2922_v56 = vpop.f32.mrf.mxu2  ;;  %v1039_v11 = vmax.f32 %v9900_v43, 0.0  ;;  %v9925_v33 = vpop.f32.mrf.mxu0 }
 0x498   :  { %6689 = vst.msk [vmem:[%s13682_s8 + $0x68] sm:$0xff] %vm2540_vm3, %v6561_v35  ;;  %v9915_v51 = vadd.f32 %v9434_v63, %v2922_v56 }
 0x499   :  { %v5154_v53 = vmul.f32 %v7390_v31, %v5026_v22  ;;  %v3255_v54 = vpop.xlane.xlu1 %3254  ;;  %v1167_v35 = vsel %vm959_vm1, %v1039_v11, %v9900_v43  ;;  %v9932_v22 = vadd.f32 %v9434_v63, %v9652_v19 }
 0x49a   :  { %v3601_v52 = vsub.f32 %v9642_v49, %v3255_v54  ;;  %5672 = vrot.lane.b32.xlu1 %v9712_v28, %s7854_s15  ;;  %v13934_v49 = vld [vmem:[#allocation6_spill] sm:$0xff]  ;;  %v3602_v28 = vsub.f32 %v9438_v10, %v9788_v15  ;;  %v3261_v10 = vpop.xlane.xlu2 %3260  ;;  %v9919_v15 = vadd.f32 %v9232_v4, %v9773_v50  ;;  %v3307_v50 = vsel %vm3198_vm4, %v9915_v51, -inf  ;;  %v3264_v54 = vpop.xlane.xlu0 %3263 }
 0x49b   :  { %v5282_v2 = vmul.f32 %v9590_v29, %v5154_v53  ;;  %v3603_v53 = vsub.f32 %v9316_v41, %v3261_v10  ;;  %v3280_v6 = vsel %vm3198_vm4, %v9932_v22, -inf }
 0x49c   :  { %v3747_v20 = vmul.f32 1.442695, %v3601_v52  ;;  %v3749_v12 = vmul.f32 1.442695, %v3602_v28  ;;  %v1040_v4 = vmax.f32 %v9919_v15, 0.0 }
 0x49d   :  { %v5922_v31 = vmul.f32 %v13934_v49, %v5282_v2  ;;  %v3751_v52 = vmul.f32 1.442695, %v3603_v53  ;;  %v9946_v2 = vpop.f32.mrf.mxu1  ;;  %v1041_v49 = vmax.f32 %v9799_v14, 0.0 }
 0x49e   :  { %7391 = vpow2.f32 %v3747_v20  ;;  %7015 = vmatmul.msk.f32.gmra.mxu1 %vm1232_vm2, %v1167_v35  ;;  %v1168_v19 = vsel %vm959_vm1, %v1040_v4, %v9919_v15  ;;  %v3604_v20 = vsub.f32 %v9608_v37, %v3264_v54 }
 0x49f   :  { %v6562_v29 = vsel %vm3198_vm4, %v5922_v31, %v13935_v32  ;;  %7393 = vpow2.f32 %v3749_v12  ;;  %v9953_v31 = vpop.f32.mrf.mxu0  ;;  %v1169_v56 = vsel %vm959_vm1, %v1041_v49, %v9799_v14  ;;  %v118_v14 = vld [vmem:[%s13676_s0 + $0x2c8] sm:$0xff]  ;;  %v119_v49 = vld [vmem:[%s13676_s0 + $0x2d0] sm:$0xff] }
 0x4a0   :  { %6690 = vst.msk [vmem:[%s13682_s8 + $0x70] sm:$0xff] %vm2540_vm3, %v6562_v29  ;;  %7395 = vpow2.f32 %v3751_v52  ;;  %v3753_v32 = vmul.f32 1.442695, %v3604_v20  ;;  %6897 = vmatmul.msk.f32.gmra.mxu0 %vm171_vm0, %v118_v14 }
 0x4a2   :  { %2400 = vrot.lane.b32.xlu1 %v2076_v27, %s7855_s29  ;;  %v3267_v29 = vpop.xlane.xlu0 %3266  ;;  %7397 = vpow2.f32 %v3753_v32  ;;  %v9968_v12 = vpop.permute.xlu2 %5662 }
 0x4a3   :  { %v3605_v37 = vsub.f32 %v9624_v59, %v3267_v29  ;;  %13937 = vst [vmem:[#allocation2_spill] sm:$0xff] %v9968_v12  ;;  %v10013_v29 = vadd.f32 %v9434_v63, %v9655_v17  ;;  %v10032_v17 = vadd.f32 %v9401_v9, %v9762_v7 }
 0x4a4   :  { %v9921_v60 = vpop.eup %7391 }
 0x4a5   :  { %7210 = vmatmul.msk.f32.gmra.mxu3 %vm3198_vm4, %v9921_v60  ;;  %v9944_v41 = vpop.eup %7393  ;;  %v9962_v11 = vpop.f32.mrf.mxu1  ;;  %v3755_v53 = vmul.f32 1.442695, %v3605_v37  ;;  %13943 = vst [vmem:[#allocation101_spill] sm:$0xff] %v10032_v17 }
 0x4a6   :  { %7016 = vmatmul.msk.f32.gmra.mxu1 %vm1232_vm2, %v1168_v19  ;;  %v9960_v27 = vpop.eup %7395 }
 0x4a7   :  { %v825_v35 = vpop.f32.mrf.mxu0  ;;  %7399 = vpow2.f32 %v3755_v53 }
 0x4a8   :  { %3308 = vmax.xlane.f32.xlu2 %v3307_v50  ;;  %v9974_v4 = vpop.eup %7397  ;;  %v9979_v50 = vld [vmem:[%s13675_s2] ss:$0 sm:$0xff]  ;;  %6898 = vmatmul.msk.f32.gmra.mxu0 %vm171_vm0, %v119_v49 }
 0x4a9   :  { %v9982_v59 = vadd.f32 %v9979_v50, %v825_v35  ;;  %v10024_v35 = vadd.f32 %v9434_v63, %v9673_v57  ;;  %v120_v57 = vld [vmem:[%s13676_s0 + $0x2d8] sm:$0xff] }
 0x4aa   :  { %v9987_v52 = vpop.permute.xlu0 %5664  ;;  %v2391_v19 = vpop.permute.xlu2 %2390 }
 0x4ab   :  { %3281 = vmax.xlane.f32.xlu0 %v3280_v6  ;;  %13938 = vst [vmem:[#allocation23_spill] sm:$0xff] %v9987_v52  ;;  %v9995_v6 = vadd.f32 %v9401_v9, %v9702_v39 }
 0x4ad   :  { %7211 = vmatmul.msk.f32.gmra.mxu3 %vm3198_vm4, %v9944_v41  ;;  %v1838_v54 = vpop.f32.mrf.mxu1  ;;  %13939 = vst [vmem:[#allocation5_spill] sm:$0xff] %v9995_v6  ;;  %v10004_v32 = vpop.eup %7399 }
 0x4ae   :  { %7017 = vmatmul.msk.f32.gmra.mxu1 %vm1232_vm2, %v1169_v56  ;;  %v9998_v20 = vadd.f32 %v9401_v9, %v1838_v54  ;;  %v3286_v54 = vsel %vm3198_vm4, %v10024_v35, -inf }
 0x4b0   :  { %13940 = vst [vmem:[#allocation19_spill] sm:$0xff] %v9998_v20  ;;  %v2086_v39 = vmax.f32 %v9998_v20, 0.0  ;;  %6899 = vmatmul.msk.f32.gmra.mxu0 %vm171_vm0, %v120_v57 }
 0x4b1   :  { %v9955_v28 = vpop.permute.xlu1 %5660 }
 0x4b2   :  { %13936 = vst [vmem:[#allocation20_spill] sm:$0xff] %v9955_v28  ;;  %v2393_v37 = vpop.permute.xlu0 %2392  ;;  %v10026_v53 = vpop.permute.xlu2 %5668 }
 0x4b3   :  { %13942 = vst [vmem:[#allocation26_spill] sm:$0xff] %v10026_v53  ;;  %v13946_v53 = vld [vmem:[#allocation29_spill] sm:$0xff] }
 0x4b5   :  { %7212 = vmatmul.msk.f32.gmra.mxu3 %vm3198_vm4, %v9960_v27 }
 0x4b9   :  { %v2389_v10 = vpop.permute.xlu1 %2388 }
 0x4ba   :  { %7116 = vmatmul.msk.f32.gmra.mxu2 %vm2540_vm3, %v2389_v10  ;;  %v3283_v10 = vsel %vm3198_vm4, %v10013_v29, -inf  ;;  %v2397_v49 = vpop.permute.xlu2 %2396 }
 0x4bd   :  { %7213 = vmatmul.msk.f32.gmra.mxu3 %vm3198_vm4, %v9974_v4 }
 0x4bf   :  { %5676 = vrot.lane.b32.xlu0 %v9835_v18, %s7854_s15  ;;  %v2078_v18 = vmax.f32 %v9995_v6, 0.0 }
 0x4c0   :  { %5692 = vrot.lane.b32.xlu2 %v9982_v59, %s7854_s15 }
 0x4c1   :  { %v10015_v56 = vpop.permute.xlu1 %5666 }
 0x4c2   :  { %7117 = vmatmul.msk.f32.gmra.mxu2 %vm2540_vm3, %v2391_v19  ;;  %13941 = vst [vmem:[#allocation6_spill] sm:$0xff] %v10015_v56  ;;  %v2081_v19 = vmax.f32 %v10032_v17, 0.0 }
 0x4c5   :  { %7214 = vmatmul.msk.f32.gmra.mxu3 %vm3198_vm4, %v10004_v32 }
 0x4c7   :  { %2404 = vrot.lane.b32.xlu0 %v2078_v18, %s7855_s29 }
 0x4c8   :  { %2420 = vrot.lane.b32.xlu2 %v2086_v39, %s7855_s29  ;;  %v121_v39 = vld [vmem:[%s13676_s0 + $0x2e0] sm:$0xff] }
 0x4c9   :  { %v2395_v14 = vpop.permute.xlu1 %2394  ;;  %6900 = vmatmul.msk.f32.gmra.mxu0 %vm171_vm0, %v121_v39  ;;  %v2925_v39 = vpop.f32.mrf.mxu2 }
 0x4ca   :  { %7118 = vmatmul.msk.f32.gmra.mxu2 %vm2540_vm3, %v2393_v37  ;;  %v820_v37 = vadd.f32 %v9979_v50, %v9925_v33  ;;  %v122_v33 = vld [vmem:[%s13676_s0 + $0x2e8] sm:$0xff] }
 0x4cc   :  { %3284 = vmax.xlane.f32.xlu1 %v3283_v10 }
 0x4cf   :  { %5682 = vrot.lane.b32.xlu0 %v9900_v43, %s7854_s15 }
 0x4d1   :  { %6901 = vmatmul.msk.f32.gmra.mxu0 %vm171_vm0, %v122_v33  ;;  %v123_v33 = vld [vmem:[%s13676_s0 + $0x2f0] sm:$0xff] }
 0x4d2   :  { %7119 = vmatmul.msk.f32.gmra.mxu2 %vm2540_vm3, %v2395_v14 }
 0x4d4   :  { %3287 = vmax.xlane.f32.xlu1 %v3286_v54 }
 0x4d5   :  { %v4417_v43 = vpop.f32.mrf.mxu3 }
 0x4d6   :  { %7401 = vrcp.f32 %v4417_v43 }
 0x4d7   :  { %2410 = vrot.lane.b32.xlu0 %v2081_v19, %s7855_s29 }
 0x4d8   :  { %v3270_v7 = vpop.xlane.xlu0 %3269 }
 0x4d9   :  { %v3606_v18 = vsub.f32 %v9758_v38, %v3270_v7  ;;  %v10054_v38 = vadd.f32 %v9401_v9, %v9946_v2  ;;  %v13945_v2 = vld [vmem:[#allocation3_spill] sm:$0xff]  ;;  %6902 = vmatmul.msk.f32.gmra.mxu0 %vm171_vm0, %v123_v33 }
 0x4da   :  { %7120 = vmatmul.msk.f32.gmra.mxu2 %vm2540_vm3, %v2397_v49 }
 0x4db   :  { %v3757_v10 = vmul.f32 1.442695, %v3606_v18  ;;  %13944 = vst [vmem:[#allocation102_spill] sm:$0xff] %v10054_v38 }
 0x4dc   :  { %v7402_v14 = vpop.eup %7401 }
 0x4dd   :  { %v4899_v54 = vmul.f32 %v7402_v14, %v4417_v43  ;;  %7403 = vpow2.f32 %v3757_v10  ;;  %v4420_v57 = vpop.f32.mrf.mxu3  ;;  %v2084_v10 = vmax.f32 %v10054_v38, 0.0 }
 0x4de   :  { %7405 = vrcp.f32 %v4420_v57 }
 0x4df   :  { %v5027_v19 = vsub.f32 2.0, %v4899_v54  ;;  %5688 = vrot.lane.b32.xlu0 %v820_v37, %s7854_s15 }
 0x4e1   :  { %v5155_v7 = vmul.f32 %v7402_v14, %v5027_v19 }
 0x4e3   :  { %v10059_v49 = vpop.eup %7403  ;;  %v5283_v18 = vmul.f32 %v9724_v62, %v5155_v7  ;;  %v1042_v62 = vmax.f32 %v820_v37, 0.0 }
 0x4e4   :  { %v7406_v43 = vpop.eup %7405  ;;  %7215 = vmatmul.msk.f32.gmra.mxu3 %vm3198_vm4, %v10059_v49 }
 0x4e5   :  { %v5923_v54 = vmul.f32 %v13945_v2, %v5283_v18  ;;  %v4900_v14 = vmul.f32 %v7406_v43, %v4420_v57  ;;  %v4423_v19 = vpop.f32.mrf.mxu3 }
 0x4e6   :  { %7407 = vrcp.f32 %v4423_v19 }
 0x4e7   :  { %v6563_v12 = vsel %vm3198_vm4, %v5923_v54, %v13946_v53  ;;  %v5028_v52 = vsub.f32 2.0, %v4900_v14  ;;  %2416 = vrot.lane.b32.xlu0 %v2084_v10, %s7855_s29  ;;  %v10081_v53 = vadd.f32 %v9434_v63, %v2925_v39  ;;  %v10085_v10 = vadd.f32 %v9979_v50, %v9953_v31  ;;  %v13950_v31 = vld [vmem:[#allocation25_spill] sm:$0xff] }
 0x4e8   :  { %6691 = vst.msk [vmem:[%s13682_s8 + $0x78] sm:$0xff] %vm2540_vm3, %v6563_v12  ;;  %v1170_v12 = vsel %vm959_vm1, %v1042_v62, %v820_v37  ;;  %v10096_v39 = vadd.f32 %v9401_v9, %v9722_v24 }
 0x4e9   :  { %v5156_v7 = vmul.f32 %v7406_v43, %v5028_v52  ;;  %v13948_v52 = vld [vmem:[#allocation7_spill] sm:$0xff]  ;;  %7018 = vmatmul.msk.f32.gmra.mxu1 %vm1232_vm2, %v1170_v12  ;;  %v1043_v33 = vmax.f32 %v10085_v10, 0.0 }
 0x4ea   :  { %13949 = vst [vmem:[#allocation29_spill] sm:$0xff] %v10096_v39 }
 0x4eb   :  { %v5284_v57 = vmul.f32 %v9746_v5, %v5156_v7  ;;  %v10078_v18 = vpop.permute.xlu0 %5670  ;;  %v2928_v5 = vpop.f32.mrf.mxu2 }
 0x4ec   :  { %13947 = vst [vmem:[#allocation3_spill] sm:$0xff] %v10078_v18  ;;  %v7408_v2 = vpop.eup %7407  ;;  %v10110_v62 = vadd.f32 %v9434_v63, %v2928_v5 }
 0x4ed   :  { %v5924_v43 = vmul.f32 %v13948_v52, %v5284_v57  ;;  %v4901_v54 = vmul.f32 %v7408_v2, %v4423_v19  ;;  %5678 = vrot.lane.b32.xlu1 %v9846_v48, %s7854_s15  ;;  %v3310_v48 = vsel %vm3198_vm4, %v10081_v53, -inf  ;;  %v2079_v19 = vmax.f32 %v10096_v39, 0.0  ;;  %v3276_v57 = vpop.xlane.xlu2 %3275 }
 0x4ee   :  { %v1171_v52 = vsel %vm959_vm1, %v1043_v33, %v10085_v10  ;;  %v10133_v33 = vld [vmem:[%s13680_s6] ss:$0 sm:$0xff] }
 0x4ef   :  { %v6564_v14 = vsel %vm3198_vm4, %v5924_v43, %v13950_v31  ;;  %v5029_v7 = vsub.f32 2.0, %v4901_v54  ;;  %v13951_v43 = vld [vmem:[#allocation9_spill] sm:$0xff]  ;;  %v3313_v31 = vsel %vm3198_vm4, %v10110_v62, -inf }
 0x4f0   :  { %6692 = vst.msk [vmem:[%s13682_s8 + $0x80] sm:$0xff] %vm2540_vm3, %v6564_v14 }
 0x4f1   :  { %v5157_v37 = vmul.f32 %v7408_v2, %v5029_v7  ;;  %3311 = vmax.xlane.f32.xlu2 %v3310_v48  ;;  %7019 = vmatmul.msk.f32.gmra.mxu1 %vm1232_vm2, %v1171_v52  ;;  %v3608_v7 = vsub.f32 %v9549_v44, %v3276_v57  ;;  %v1841_v52 = vpop.f32.mrf.mxu1 }
 0x4f3   :  { %v5285_v9 = vmul.f32 %v9760_v3, %v5157_v37  ;;  %v2399_v24 = vpop.permute.xlu0 %2398  ;;  %v13952_v3 = vld [vmem:[#allocation32_spill] sm:$0xff]  ;;  %v2931_v14 = vpop.f32.mrf.mxu2  ;;  %v3761_v37 = vmul.f32 1.442695, %v3608_v7 }
 0x4f4   :  { %7121 = vmatmul.msk.f32.gmra.mxu2 %vm2540_vm3, %v2399_v24  ;;  %v3273_v12 = vpop.xlane.xlu1 %3272  ;;  %v10136_v48 = vadd.f32 %v10133_v33, %v2931_v14 }
 0x4f5   :  { %v5925_v54 = vmul.f32 %v13951_v43, %v5285_v9  ;;  %v3607_v2 = vsub.f32 %v9822_v25, %v3273_v12  ;;  %2406 = vrot.lane.b32.xlu1 %v2079_v19, %s7855_s29  ;;  %v1044_v25 = vmax.f32 %v9982_v59, 0.0  ;;  %v3279_v19 = vpop.xlane.xlu2 %3278  ;;  %v828_v9 = vpop.f32.mrf.mxu0 }
 0x4f6   :  { %v3316_v57 = vsel %vm3198_vm4, %v10136_v48, -inf  ;;  %v3609_v12 = vsub.f32 %v9579_v45, %v3279_v19  ;;  %v10182_v19 = vadd.f32 %v10133_v33, %v9793_v23 }
 0x4f7   :  { %v6565_v63 = vsel %vm3198_vm4, %v5925_v54, %v13952_v3  ;;  %v3759_v5 = vmul.f32 1.442695, %v3607_v2  ;;  %v1172_v24 = vsel %vm959_vm1, %v1044_v25, %v9982_v59  ;;  %v10157_v2 = vadd.f32 %v10133_v33, %v9880_v42 }
 0x4f8   :  { %6693 = vst.msk [vmem:[%s13682_s8 + $0x88] sm:$0xff] %vm2540_vm3, %v6565_v63  ;;  %v3763_v43 = vmul.f32 1.442695, %v3609_v12 }
 0x4f9   :  { %7409 = vpow2.f32 %v3759_v5  ;;  %3314 = vmax.xlane.f32.xlu2 %v3313_v31  ;;  %7020 = vmatmul.msk.f32.gmra.mxu1 %vm1232_vm2, %v1172_v24  ;;  %v10161_v63 = vpop.f32.mrf.mxu1  ;;  %v3304_v5 = vsel %vm3198_vm4, %v10157_v2, -inf  ;;  %v10188_v24 = vld [vmem:[%s13678_s4] ss:$0 sm:$0xff] }
 0x4fa   :  { %7411 = vpow2.f32 %v3761_v37  ;;  %v124_v37 = vld [vmem:[%s13676_s0 + $0x2f8] sm:$0xff] }
 0x4fb   :  { %7413 = vpow2.f32 %v3763_v43  ;;  %6903 = vmatmul.msk.f32.gmra.mxu0 %vm171_vm0, %v124_v37 }
 0x4fd   :  { %v10153_v59 = vpop.f32.mrf.mxu0  ;;  %v10169_v31 = vpop.permute.xlu2 %5674 }
 0x4fe   :  { %13954 = vst [vmem:[#allocation25_spill] sm:$0xff] %v10169_v31 }
 0x4ff   :  { %v10141_v44 = vpop.eup %7409 }
 0x500   :  { %7216 = vmatmul.msk.f32.gmra.mxu3 %vm3198_vm4, %v10141_v44  ;;  %v10149_v54 = vpop.eup %7411 }
 0x501   :  { %3317 = vmax.xlane.f32.xlu2 %v3316_v57  ;;  %v10163_v45 = vpop.eup %7413  ;;  %v1847_v25 = vpop.f32.mrf.mxu1 }
 0x502   :  { %v10191_v57 = vadd.f32 %v10188_v24, %v1847_v25  ;;  %v125_v25 = vld [vmem:[%s13676_s0 + $0x300] sm:$0xff] }
 0x503   :  { %6904 = vmatmul.msk.f32.gmra.mxu0 %vm171_vm0, %v125_v25 }
 0x504   :  { %13955 = vst [vmem:[#allocation9_spill] sm:$0xff] %v10191_v57  ;;  %v2089_v23 = vmax.f32 %v10191_v57, 0.0 }
 0x505   :  { %v834_v14 = vpop.f32.mrf.mxu0  ;;  %v2403_v12 = vpop.permute.xlu2 %2402 }
 0x506   :  { %v10173_v42 = vadd.f32 %v9979_v50, %v834_v14 }
 0x508   :  { %7217 = vmatmul.msk.f32.gmra.mxu3 %vm3198_vm4, %v10149_v54 }
 0x50c   :  { %v10159_v3 = vpop.permute.xlu1 %5672 }
 0x50d   :  { %13953 = vst [vmem:[#allocation7_spill] sm:$0xff] %v10159_v3 }
 0x510   :  { %7218 = vmatmul.msk.f32.gmra.mxu3 %vm3198_vm4, %v10163_v45 }
 0x511   :  { %3305 = vmax.xlane.f32.xlu0 %v3304_v5  ;;  %v3292_v5 = vsel %vm3198_vm4, %v10182_v19, -inf }
 0x514   :  { %v2401_v7 = vpop.permute.xlu1 %2400 }
 0x515   :  { %7122 = vmatmul.msk.f32.gmra.mxu2 %vm2540_vm3, %v2401_v7  ;;  %v10199_v7 = vadd.f32 %v9979_v50, %v828_v9  ;;  %v10215_v9 = vadd.f32 %v10188_v24, %v1841_v52  ;;  %v837_v52 = vpop.f32.mrf.mxu0 }
 0x516   :  { %v10232_v18 = vadd.f32 %v9979_v50, %v837_v52  ;;  %v13959_v52 = vld [vmem:[#allocation8_spill] sm:$0xff] }
 0x517   :  { %13956 = vst [vmem:[#allocation32_spill] sm:$0xff] %v10215_v9 }
 0x519   :  { %5698 = vrot.lane.b32.xlu2 %v10173_v42, %s7854_s15 }
 0x51d   :  { %7123 = vmatmul.msk.f32.gmra.mxu2 %vm2540_vm3, %v2403_v12  ;;  %v10207_v12 = vadd.f32 %v10133_v33, %v9824_v30  ;;  %v126_v30 = vld [vmem:[%s13676_s0 + $0x308] sm:$0xff] }
 0x51e   :  { %v3282_v43 = vpop.xlane.xlu0 %3281  ;;  %6905 = vmatmul.msk.f32.gmra.mxu0 %vm171_vm0, %v126_v30  ;;  %v127_v30 = vld [vmem:[%s13676_s0 + $0x310] sm:$0xff] }
 0x51f   :  { %v3610_v14 = vsub.f32 %v9932_v22, %v3282_v43  ;;  %3293 = vmax.xlane.f32.xlu1 %v3292_v5  ;;  %v3295_v22 = vsel %vm3198_vm4, %v10207_v12, -inf }
 0x521   :  { %v3765_v37 = vmul.f32 1.442695, %v3610_v14  ;;  %2426 = vrot.lane.b32.xlu2 %v2089_v23, %s7855_s29  ;;  %v2087_v23 = vmax.f32 %v10215_v9, 0.0 }
 0x523   :  { %7415 = vpow2.f32 %v3765_v37  ;;  %v10227_v37 = vpop.f32.mrf.mxu2 }
 0x525   :  { %5694 = vrot.lane.b32.xlu0 %v10199_v7, %s7854_s15 }
 0x526   :  { %6906 = vmatmul.msk.f32.gmra.mxu0 %vm171_vm0, %v127_v30 }
 0x527   :  { %3296 = vmax.xlane.f32.xlu1 %v3295_v22 }
 0x528   :  { %v4426_v43 = vpop.f32.mrf.mxu3 }
 0x529   :  { %v10217_v5 = vpop.eup %7415  ;;  %7417 = vrcp.f32 %v4426_v43 }
 0x52a   :  { %7219 = vmatmul.msk.f32.gmra.mxu3 %vm3198_vm4, %v10217_v5 }
 0x52d   :  { %2422 = vrot.lane.b32.xlu0 %v2087_v23, %s7855_s29  ;;  %v1850_v23 = vpop.f32.mrf.mxu1 }
 0x52f   :  { %v7418_v14 = vpop.eup %7417 }
 0x530   :  { %v4902_v25 = vmul.f32 %v7418_v14, %v4426_v43  ;;  %v4429_v22 = vpop.f32.mrf.mxu3 }
 0x531   :  { %7419 = vrcp.f32 %v4429_v22  ;;  %v10229_v31 = vpop.permute.xlu0 %5676 }
 0x532   :  { %13957 = vst [vmem:[#allocation103_spill] sm:$0xff] %v10229_v31  ;;  %v5030_v3 = vsub.f32 2.0, %v4902_v25  ;;  %v10242_v31 = vadd.f32 %v10188_v24, %v1850_v23  ;;  %v128_v25 = vld [vmem:[%s13676_s0 + $0x318] sm:$0xff] }
 0x533   :  { %6907 = vmatmul.msk.f32.gmra.mxu0 %vm171_vm0, %v128_v25 }
 0x534   :  { %v5158_v56 = vmul.f32 %v7418_v14, %v5030_v3  ;;  %13958 = vst [vmem:[#allocation104_spill] sm:$0xff] %v10242_v31  ;;  %v10248_v3 = vpop.f32.mrf.mxu2  ;;  %v13960_v14 = vld [vmem:[#allocation35_spill] sm:$0xff] }
 0x535   :  { %5700 = vrot.lane.b32.xlu0 %v10232_v18, %s7854_s15 }
 0x536   :  { %v5286_v43 = vmul.f32 %v9921_v60, %v5158_v56  ;;  %v2090_v56 = vmax.f32 %v10242_v31, 0.0 }
 0x537   :  { %v7420_v9 = vpop.eup %7419 }
 0x538   :  { %v5926_v28 = vmul.f32 %v13959_v52, %v5286_v43  ;;  %v4903_v57 = vmul.f32 %v7420_v9, %v4429_v22  ;;  %v4432_v38 = vpop.f32.mrf.mxu3 }
 0x539   :  { %7421 = vrcp.f32 %v4432_v38  ;;  %v2405_v17 = vpop.permute.xlu0 %2404 }
 0x53a   :  { %v6566_v30 = vsel %vm3198_vm4, %v5926_v28, %v13960_v14  ;;  %v5031_v60 = vsub.f32 2.0, %v4903_v57  ;;  %7124 = vmatmul.msk.f32.gmra.mxu2 %vm2540_vm3, %v2405_v17  ;;  %v129_v28 = vld [vmem:[%s13676_s0 + $0x320] sm:$0xff]  ;;  %v13961_v17 = vld [vmem:[#allocation11_spill] sm:$0xff] }
 0x53b   :  { %6694 = vst.msk [vmem:[%s13682_s8 + $0x90] sm:$0xff] %vm2540_vm3, %v6566_v30  ;;  %6908 = vmatmul.msk.f32.gmra.mxu0 %vm171_vm0, %v129_v28  ;;  %v10287_v28 = vadd.f32 %v9979_v50, %v10153_v59 }
 0x53c   :  { %v5159_v22 = vmul.f32 %v7420_v9, %v5031_v60  ;;  %v10270_v9 = vadd.f32 %v10188_v24, %v9786_v26  ;;  %v13963_v60 = vld [vmem:[#allocation31_spill] sm:$0xff] }
 0x53d   :  { %2428 = vrot.lane.b32.xlu0 %v2090_v56, %s7855_s29 }
 0x53e   :  { %v5287_v23 = vmul.f32 %v9944_v41, %v5159_v22  ;;  %13962 = vst [vmem:[#allocation8_spill] sm:$0xff] %v10270_v9  ;;  %v2940_v41 = vpop.f32.mrf.mxu2 }
 0x53f   :  { %v7422_v43 = vpop.eup %7421  ;;  %v3285_v52 = vpop.xlane.xlu1 %3284  ;;  %v10281_v26 = vadd.f32 %v10133_v33, %v2940_v41 }
 0x540   :  { %v5927_v57 = vmul.f32 %v13961_v17, %v5287_v23  ;;  %v4904_v25 = vmul.f32 %v7422_v43, %v4432_v38  ;;  %v3611_v14 = vsub.f32 %v10013_v29, %v3285_v52  ;;  %5684 = vrot.lane.b32.xlu1 %v9919_v15, %s7854_s15  ;;  %v4435_v30 = vpop.f32.mrf.mxu3  ;;  %v1045_v38 = vmax.f32 %v10199_v7, 0.0 }
 0x541   :  { %7423 = vrcp.f32 %v4435_v30  ;;  %v2082_v29 = vmax.f32 %v10270_v9, 0.0  ;;  %v3325_v59 = vsel %vm3198_vm4, %v10281_v26, -inf }
 0x542   :  { %v6567_v56 = vsel %vm3198_vm4, %v5927_v57, %v13963_v60  ;;  %v5032_v22 = vsub.f32 2.0, %v4904_v25  ;;  %v3767_v31 = vmul.f32 1.442695, %v3611_v14  ;;  %v1173_v57 = vsel %vm959_vm1, %v1045_v38, %v10199_v7  ;;  %v13964_v25 = vld [vmem:[#allocation12_spill] sm:$0xff] }
 0x543   :  { %6695 = vst.msk [vmem:[%s13682_s8 + $0x98] sm:$0xff] %vm2540_vm3, %v6567_v56  ;;  %7021 = vmatmul.msk.f32.gmra.mxu1 %vm1232_vm2, %v1173_v57  ;;  %v13965_v56 = vld [vmem:[#allocation38_spill] sm:$0xff] }
 0x544   :  { %v5160_v15 = vmul.f32 %v7422_v43, %v5032_v22  ;;  %7425 = vpow2.f32 %v3767_v31 }
 0x546   :  { %v5288_v23 = vmul.f32 %v9960_v27, %v5160_v15  ;;  %v3291_v27 = vpop.xlane.xlu2 %3290 }
 0x547   :  { %v7424_v52 = vpop.eup %7423  ;;  %v3288_v17 = vpop.xlane.xlu1 %3287 }
 0x548   :  { %v5928_v43 = vmul.f32 %v13964_v25, %v5288_v23  ;;  %v4905_v31 = vmul.f32 %v7424_v52, %v4435_v30  ;;  %v3612_v14 = vsub.f32 %v10024_v35, %v3288_v17  ;;  %2412 = vrot.lane.b32.xlu1 %v2082_v29, %s7855_s29  ;;  %v4438_v41 = vpop.f32.mrf.mxu3  ;;  %v1046_v35 = vmax.f32 %v10287_v28, 0.0  ;;  %v13966_v25 = vld [vmem:[#allocation10_spill] sm:$0xff] }
 0x549   :  { %7427 = vrcp.f32 %v4438_v41  ;;  %v3613_v30 = vsub.f32 %v9708_v55, %v3291_v27  ;;  %v13967_v55 = vld [vmem:[#allocation41_spill] sm:$0xff] }
 0x54a   :  { %v10298_v60 = vpop.eup %7425  ;;  %v6568_v7 = vsel %vm3198_vm4, %v5928_v43, %v13965_v56  ;;  %v5033_v22 = vsub.f32 2.0, %v4905_v31  ;;  %v3769_v38 = vmul.f32 1.442695, %v3612_v14  ;;  %3326 = vmax.xlane.f32.xlu2 %v3325_v59  ;;  %v1174_v17 = vsel %vm959_vm1, %v1046_v35, %v10287_v28  ;;  %v10316_v14 = vpop.f32.mrf.mxu0 }
 0x54b   :  { %6696 = vst.msk [vmem:[%s13682_s8 + $0xa0] sm:$0xff] %vm2540_vm3, %v6568_v7  ;;  %7220 = vmatmul.msk.f32.gmra.mxu3 %vm3198_vm4, %v10298_v60  ;;  %v3771_v57 = vmul.f32 1.442695, %v3613_v30  ;;  %7022 = vmatmul.msk.f32.gmra.mxu1 %vm1232_vm2, %v1174_v17  ;;  %v10330_v7 = vpop.f32.mrf.mxu1 }
 0x54c   :  { %v5161_v15 = vmul.f32 %v7424_v52, %v5033_v22  ;;  %7429 = vpow2.f32 %v3769_v38  ;;  %v13968_v38 = vld [vmem:[#allocation14_spill] sm:$0xff] }
 0x54d   :  { %7431 = vpow2.f32 %v3771_v57  ;;  %v10354_v57 = vadd.f32 %v10133_v33, %v10248_v3  ;;  %v10370_v3 = vadd.f32 %v10133_v33, %v9838_v61 }
 0x54e   :  { %v5289_v29 = vmul.f32 %v9974_v4, %v5161_v15  ;;  %v1047_v4 = vmax.f32 %v10173_v42, 0.0  ;;  %v13969_v15 = vld [vmem:[#allocation37_spill] sm:$0xff] }
 0x54f   :  { %v7428_v23 = vpop.eup %7427 }
 0x550   :  { %v5929_v43 = vmul.f32 %v13966_v25, %v5289_v29  ;;  %v4906_v31 = vmul.f32 %v7428_v23, %v4438_v41  ;;  %v1175_v22 = vsel %vm959_vm1, %v1047_v4, %v10173_v42 }
 0x552   :  { %v10318_v59 = vpop.eup %7429  ;;  %v6569_v52 = vsel %vm3198_vm4, %v5929_v43, %v13967_v55  ;;  %v5034_v27 = vsub.f32 2.0, %v4906_v31  ;;  %v10361_v43 = vpop.permute.xlu2 %5680  ;;  %v3322_v31 = vsel %vm3198_vm4, %v10354_v57, -inf }
 0x553   :  { %6697 = vst.msk [vmem:[%s13682_s8 + $0xa8] sm:$0xff] %vm2540_vm3, %v6569_v52  ;;  %7221 = vmatmul.msk.f32.gmra.mxu3 %vm3198_vm4, %v10318_v59  ;;  %7023 = vmatmul.msk.f32.gmra.mxu1 %vm1232_vm2, %v1175_v22  ;;  %v10337_v30 = vpop.eup %7431  ;;  %v1856_v17 = vpop.f32.mrf.mxu1 }
 0x554   :  { %v5162_v41 = vmul.f32 %v7428_v23, %v5034_v27  ;;  %v10359_v25 = vadd.f32 %v10188_v24, %v1856_v17  ;;  %13972 = vst [vmem:[#allocation31_spill] sm:$0xff] %v10361_v43  ;;  %v3298_v17 = vsel %vm3198_vm4, %v10370_v3, -inf }
 0x556   :  { %v5290_v56 = vmul.f32 %v10004_v32, %v5162_v41  ;;  %v843_v32 = vpop.f32.mrf.mxu0  ;;  %13971 = vst [vmem:[#allocation11_spill] sm:$0xff] %v10359_v25  ;;  %v2092_v4 = vmax.f32 %v10359_v25, 0.0  ;;  %v10372_v41 = vpop.permute.xlu0 %5682  ;;  %v13978_v25 = vld [vmem:[#allocation13_spill] sm:$0xff] }
 0x557   :  { %v10348_v42 = vadd.f32 %v9979_v50, %v843_v32  ;;  %13973 = vst [vmem:[#allocation12_spill] sm:$0xff] %v10372_v41 }
 0x558   :  { %v5930_v35 = vmul.f32 %v13968_v38, %v5290_v56  ;;  %v1048_v38 = vmax.f32 %v10232_v18, 0.0 }
 0x55a   :  { %v6570_v29 = vsel %vm3198_vm4, %v5930_v35, %v13969_v15  ;;  %v2409_v35 = vpop.permute.xlu2 %2408  ;;  %v1176_v61 = vsel %vm959_vm1, %v1048_v38, %v10232_v18  ;;  %v13975_v18 = vld [vmem:[#allocation43_spill] sm:$0xff] }
 0x55b   :  { %6698 = vst.msk [vmem:[%s13682_s8 + $0xb0] sm:$0xff] %vm2540_vm3, %v6570_v29  ;;  %7222 = vmatmul.msk.f32.gmra.mxu3 %vm3198_vm4, %v10337_v30  ;;  %v1859_v22 = vpop.f32.mrf.mxu1  ;;  %7024 = vmatmul.msk.f32.gmra.mxu1 %vm1232_vm2, %v1176_v61 }
 0x55e   :  { %v846_v55 = vpop.f32.mrf.mxu0 }
 0x55f   :  { %v10350_v23 = vpop.permute.xlu1 %5678 }
 0x560   :  { %13970 = vst [vmem:[#allocation35_spill] sm:$0xff] %v10350_v23 }
 0x562   :  { %5704 = vrot.lane.b32.xlu2 %v10348_v42, %s7854_s15 }
 0x566   :  { %v10376_v29 = vpop.f32.mrf.mxu0 }
 0x567   :  { %3323 = vmax.xlane.f32.xlu0 %v3322_v31  ;;  %v4441_v52 = vpop.f32.mrf.mxu3  ;;  %v2407_v27 = vpop.permute.xlu1 %2406 }
 0x568   :  { %7433 = vrcp.f32 %v4441_v52  ;;  %7125 = vmatmul.msk.f32.gmra.mxu2 %vm2540_vm3, %v2407_v27  ;;  %v10386_v27 = vadd.f32 %v10133_v33, %v9858_v1 }
 0x56a   :  { %2432 = vrot.lane.b32.xlu2 %v2092_v4, %s7855_s29  ;;  %v10389_v4 = vpop.f32.mrf.mxu1  ;;  %v3301_v38 = vsel %vm3198_vm4, %v10386_v27, -inf }
 0x56e   :  { %v7434_v56 = vpop.eup %7433  ;;  %v10404_v1 = vpop.f32.mrf.mxu0 }
 0x56f   :  { %v4907_v15 = vmul.f32 %v7434_v56, %v4441_v52 }
 0x570   :  { %7126 = vmatmul.msk.f32.gmra.mxu2 %vm2540_vm3, %v2409_v35  ;;  %v2411_v35 = vpop.permute.xlu0 %2410 }
 0x571   :  { %v5035_v32 = vsub.f32 2.0, %v4907_v15  ;;  %v13974_v15 = vld [vmem:[#allocation15_spill] sm:$0xff] }
 0x572   :  { %3299 = vmax.xlane.f32.xlu1 %v3298_v17  ;;  %v10393_v17 = vadd.f32 %v9979_v50, %v846_v55  ;;  %v10414_v55 = vpop.f32.mrf.mxu1 }
 0x573   :  { %v5163_v31 = vmul.f32 %v7434_v56, %v5035_v32 }
 0x575   :  { %v5291_v52 = vmul.f32 %v10059_v49, %v5163_v31  ;;  %v10409_v49 = vadd.f32 %v10188_v24, %v1859_v22  ;;  %v131_v22 = vld [vmem:[%s13676_s0 + $0x330] sm:$0xff] }
 0x576   :  { %v855_v31 = vpop.f32.mrf.mxu0 }
 0x577   :  { %v5931_v43 = vmul.f32 %v13974_v15, %v5291_v52  ;;  %13976 = vst [vmem:[#allocation38_spill] sm:$0xff] %v10409_v49  ;;  %v2093_v32 = vmax.f32 %v10409_v49, 0.0  ;;  %v10423_v52 = vadd.f32 %v9979_v50, %v855_v31  ;;  %v2943_v15 = vpop.f32.mrf.mxu2 }
 0x578   :  { %7127 = vmatmul.msk.f32.gmra.mxu2 %vm2540_vm3, %v2411_v35  ;;  %v10432_v41 = vadd.f32 %v10133_v33, %v2943_v15 }
 0x579   :  { %v6571_v56 = vsel %vm3198_vm4, %v5931_v43, %v13975_v18  ;;  %v130_v43 = vld [vmem:[%s13676_s0 + $0x328] sm:$0xff] }
 0x57a   :  { %6699 = vst.msk [vmem:[%s13682_s8 + $0xb8] sm:$0xff] %vm2540_vm3, %v6571_v56  ;;  %3302 = vmax.xlane.f32.xlu1 %v3301_v38  ;;  %6909 = vmatmul.msk.f32.gmra.mxu0 %vm171_vm0, %v130_v43  ;;  %v1868_v18 = vpop.f32.mrf.mxu1 }
 0x57b   :  { %5706 = vrot.lane.b32.xlu0 %v10393_v17, %s7854_s15  ;;  %v10429_v43 = vadd.f32 %v10188_v24, %v1868_v18 }
 0x57d   :  { %13977 = vst [vmem:[#allocation10_spill] sm:$0xff] %v10429_v43  ;;  %v2096_v23 = vmax.f32 %v10429_v43, 0.0 }
 0x582   :  { %6910 = vmatmul.msk.f32.gmra.mxu0 %vm171_vm0, %v131_v22  ;;  %v132_v22 = vld [vmem:[%s13676_s0 + $0x338] sm:$0xff] }
 0x583   :  { %2434 = vrot.lane.b32.xlu0 %v2093_v32, %s7855_s29  ;;  %v4444_v61 = vpop.f32.mrf.mxu3 }
 0x584   :  { %7435 = vrcp.f32 %v4444_v61 }
 0x58a   :  { %v7436_v35 = vpop.eup %7435  ;;  %6911 = vmatmul.msk.f32.gmra.mxu0 %vm171_vm0, %v132_v22  ;;  %v2946_v22 = vpop.f32.mrf.mxu2 }
 0x58b   :  { %v4908_v56 = vmul.f32 %v7436_v35, %v4444_v61  ;;  %5712 = vrot.lane.b32.xlu0 %v10423_v52, %s7854_s15  ;;  %v4447_v38 = vpop.f32.mrf.mxu3  ;;  %v10439_v61 = vadd.f32 %v9979_v50, %v10316_v14  ;;  %v3328_v14 = vsel %vm3198_vm4, %v10432_v41, -inf }
 0x58c   :  { %7437 = vrcp.f32 %v4447_v38 }
 0x58d   :  { %v5036_v32 = vsub.f32 2.0, %v4908_v56  ;;  %v1049_v43 = vmax.f32 %v10439_v61, 0.0 }
 0x58f   :  { %v5164_v31 = vmul.f32 %v7436_v35, %v5036_v32 }
 0x591   :  { %v5292_v18 = vmul.f32 %v10141_v44, %v5164_v31  ;;  %v10454_v44 = vadd.f32 %v10188_v24, %v9962_v11  ;;  %v1177_v11 = vsel %vm959_vm1, %v1049_v43, %v10439_v61  ;;  %v1050_v43 = vmax.f32 %v10348_v42, 0.0 }
 0x592   :  { %v7438_v49 = vpop.eup %7437  ;;  %v3294_v56 = vpop.xlane.xlu1 %3293  ;;  %7025 = vmatmul.msk.f32.gmra.mxu1 %vm1232_vm2, %v1177_v11 }
 0x593   :  { %v5932_v15 = vmul.f32 %v13978_v25, %v5292_v18  ;;  %v4909_v9 = vmul.f32 %v7438_v49, %v4447_v38  ;;  %v3614_v35 = vsub.f32 %v10182_v19, %v3294_v56  ;;  %2440 = vrot.lane.b32.xlu0 %v2096_v23, %s7855_s29  ;;  %5690 = vrot.lane.b32.xlu1 %v10085_v10, %s7854_s15  ;;  %v4450_v32 = vpop.f32.mrf.mxu3  ;;  %v13980_v25 = vld [vmem:[#allocation46_spill] sm:$0xff]  ;;  %v2085_v18 = vmax.f32 %v10454_v44, 0.0 }
 0x594   :  { %3329 = vmax.xlane.f32.xlu2 %v3328_v14  ;;  %7439 = vrcp.f32 %v4450_v32  ;;  %13979 = vst [vmem:[#allocation41_spill] sm:$0xff] %v10454_v44  ;;  %v10463_v10 = vadd.f32 %v10133_v33, %v2946_v22 }
 0x595   :  { %v6572_v19 = vsel %vm3198_vm4, %v5932_v15, %v13980_v25  ;;  %v5037_v23 = vsub.f32 2.0, %v4909_v9  ;;  %v3773_v38 = vmul.f32 1.442695, %v3614_v35  ;;  %v13981_v35 = vld [vmem:[#allocation17_spill] sm:$0xff] }
 0x596   :  { %6700 = vst.msk [vmem:[%s13682_s8 + $0xc0] sm:$0xff] %vm2540_vm3, %v6572_v19  ;;  %v2949_v19 = vpop.f32.mrf.mxu2 }
 0x597   :  { %v5165_v31 = vmul.f32 %v7438_v49, %v5037_v23  ;;  %7441 = vpow2.f32 %v3773_v38  ;;  %v3331_v49 = vsel %vm3198_vm4, %v10463_v10, -inf }
 0x599   :  { %v5293_v56 = vmul.f32 %v10149_v54, %v5165_v31  ;;  %v13982_v54 = vld [vmem:[#allocation44_spill] sm:$0xff] }
 0x59a   :  { %v7440_v9 = vpop.eup %7439  ;;  %v3297_v15 = vpop.xlane.xlu1 %3296 }
 0x59b   :  { %v5933_v14 = vmul.f32 %v13981_v35, %v5293_v56  ;;  %v4910_v25 = vmul.f32 %v7440_v9, %v4450_v32  ;;  %v3615_v22 = vsub.f32 %v10207_v12, %v3297_v15  ;;  %2418 = vrot.lane.b32.xlu1 %v2085_v18, %s7855_s29  ;;  %v10488_v12 = vadd.f32 %v10133_v33, %v2949_v19  ;;  %v13983_v15 = vld [vmem:[#allocation18_spill] sm:$0xff] }
 0x59c   :  { %3332 = vmax.xlane.f32.xlu2 %v3331_v49  ;;  %v1178_v18 = vsel %vm959_vm1, %v1050_v43, %v10348_v42  ;;  %v13985_v42 = vld [vmem:[#allocation49_spill] sm:$0xff]  ;;  %v10521_v43 = vpop.f32.mrf.mxu1 }
 0x59d   :  { %v10477_v23 = vpop.eup %7441  ;;  %v6573_v38 = vsel %vm3198_vm4, %v5933_v14, %v13982_v54  ;;  %v5038_v31 = vsub.f32 2.0, %v4910_v25  ;;  %v3775_v11 = vmul.f32 1.442695, %v3615_v22  ;;  %7026 = vmatmul.msk.f32.gmra.mxu1 %vm1232_vm2, %v1178_v18  ;;  %v3334_v14 = vsel %vm3198_vm4, %v10488_v12, -inf }
 0x59e   :  { %6701 = vst.msk [vmem:[%s13682_s8 + $0xc8] sm:$0xff] %vm2540_vm3, %v6573_v38  ;;  %7223 = vmatmul.msk.f32.gmra.mxu3 %vm3198_vm4, %v10477_v23  ;;  %v10517_v49 = vpop.f32.mrf.mxu2  ;;  %v10525_v54 = vadd.f32 %v9979_v50, %v10376_v29  ;;  %v10539_v29 = vpop.permute.xlu2 %5686 }
 0x59f   :  { %v5166_v32 = vmul.f32 %v7440_v9, %v5038_v31  ;;  %7443 = vpow2.f32 %v3775_v11  ;;  %v10504_v9 = vadd.f32 %v10188_v24, %v10161_v63  ;;  %v1051_v63 = vmax.f32 %v10393_v17, 0.0  ;;  %13987 = vst [vmem:[#allocation15_spill] sm:$0xff] %v10539_v29 }
 0x5a0   :  { %v1052_v18 = vmax.f32 %v10525_v54, 0.0  ;;  %v10647_v58 = vadd.f32 %v10133_v33, %v10517_v49 }
 0x5a1   :  { %v5294_v56 = vmul.f32 %v10163_v45, %v5166_v32  ;;  %13984 = vst [vmem:[#allocation14_spill] sm:$0xff] %v10504_v9  ;;  %v2088_v22 = vmax.f32 %v10504_v9, 0.0  ;;  %v1179_v38 = vsel %vm959_vm1, %v1051_v63, %v10393_v17  ;;  %v853_v17 = vadd.f32 %v9979_v50, %v10404_v1 }
 0x5a3   :  { %v5934_v35 = vmul.f32 %v13983_v15, %v5294_v56  ;;  %5696 = vrot.lane.b32.xlu1 %v10287_v28, %s7854_s15  ;;  %v10514_v28 = vpop.f32.mrf.mxu0 }
 0x5a4   :  { %3335 = vmax.xlane.f32.xlu2 %v3334_v14 }
 0x5a5   :  { %v10500_v25 = vpop.eup %7443  ;;  %v6574_v45 = vsel %vm3198_vm4, %v5934_v35, %v13985_v42  ;;  %7027 = vmatmul.msk.f32.gmra.mxu1 %vm1232_vm2, %v1179_v38  ;;  %v1180_v42 = vsel %vm959_vm1, %v1052_v18, %v10525_v54  ;;  %v1053_v38 = vmax.f32 %v853_v17, 0.0  ;;  %v13990_v18 = vld [vmem:[#allocation52_spill] sm:$0xff] }
 0x5a6   :  { %6702 = vst.msk [vmem:[%s13682_s8 + $0xd0] sm:$0xff] %vm2540_vm3, %v6574_v45  ;;  %7224 = vmatmul.msk.f32.gmra.mxu3 %vm3198_vm4, %v10500_v25  ;;  %v2955_v56 = vpop.f32.mrf.mxu2 }
 0x5a7   :  { %v10537_v14 = vadd.f32 %v10133_v33, %v2955_v56 }
 0x5a9   :  { %v3340_v1 = vsel %vm3198_vm4, %v10537_v14, -inf }
 0x5ab   :  { %2424 = vrot.lane.b32.xlu1 %v2088_v22, %s7855_s29  ;;  %v10533_v11 = vpop.f32.mrf.mxu0  ;;  %v10547_v22 = vpop.f32.mrf.mxu1 }
 0x5ad   :  { %v4453_v19 = vpop.f32.mrf.mxu3  ;;  %7028 = vmatmul.msk.f32.gmra.mxu1 %vm1232_vm2, %v1180_v42  ;;  %v1181_v42 = vsel %vm959_vm1, %v1053_v38, %v853_v17 }
 0x5ae   :  { %7445 = vrcp.f32 %v4453_v19 }
 0x5b2   :  { %v10531_v31 = vpop.permute.xlu1 %5684 }
 0x5b3   :  { %13986 = vst [vmem:[#allocation37_spill] sm:$0xff] %v10531_v31  ;;  %v864_v56 = vpop.f32.mrf.mxu0 }
 0x5b4   :  { %v7446_v32 = vpop.eup %7445 }
 0x5b5   :  { %v4911_v15 = vmul.f32 %v7446_v32, %v4453_v19  ;;  %7029 = vmatmul.msk.f32.gmra.mxu1 %vm1232_vm2, %v1181_v42  ;;  %v10594_v42 = vpop.f32.mrf.mxu2 }
 0x5b7   :  { %v5039_v35 = vsub.f32 2.0, %v4911_v15  ;;  %v13988_v15 = vld [vmem:[#allocation16_spill] sm:$0xff] }
 0x5b9   :  { %v5167_v45 = vmul.f32 %v7446_v32, %v5039_v35  ;;  %v10557_v32 = vadd.f32 %v10188_v24, %v10414_v55  ;;  %v1877_v55 = vpop.f32.mrf.mxu1 }
 0x5ba   :  { %v2413_v63 = vpop.permute.xlu1 %2412 }
 0x5bb   :  { %v5295_v19 = vmul.f32 %v10217_v5, %v5167_v45  ;;  %7128 = vmatmul.msk.f32.gmra.mxu2 %vm2540_vm3, %v2413_v63  ;;  %13989 = vst [vmem:[#allocation43_spill] sm:$0xff] %v10557_v32  ;;  %v10561_v5 = vpop.permute.xlu0 %5688  ;;  %v2415_v45 = vpop.permute.xlu2 %2414  ;;  %v2095_v63 = vmax.f32 %v10557_v32, 0.0 }
 0x5bc   :  { %5710 = vrot.lane.b32.xlu2 %v853_v17, %s7854_s15  ;;  %13991 = vst [vmem:[#allocation13_spill] sm:$0xff] %v10561_v5 }
 0x5bd   :  { %v5935_v29 = vmul.f32 %v13988_v15, %v5295_v19  ;;  %3341 = vmax.xlane.f32.xlu0 %v3340_v1  ;;  %v10574_v19 = vpop.f32.mrf.mxu0  ;;  %v10584_v15 = vadd.f32 %v9979_v50, %v864_v56  ;;  %v10601_v56 = vadd.f32 %v10188_v24, %v1877_v55  ;;  %v10612_v55 = vpop.f32.mrf.mxu2 }
 0x5bf   :  { %v6575_v35 = vsel %vm3198_vm4, %v5935_v29, %v13990_v18  ;;  %v1054_v29 = vmax.f32 %v10423_v52, 0.0  ;;  %v133_v18 = vld [vmem:[%s13676_s0 + $0x340] sm:$0xff]  ;;  %13992 = vst [vmem:[#allocation46_spill] sm:$0xff] %v10601_v56  ;;  %v2099_v31 = vmax.f32 %v10601_v56, 0.0 }
 0x5c0   :  { %6703 = vst.msk [vmem:[%s13682_s8 + $0xd8] sm:$0xff] %vm2540_vm3, %v6575_v35  ;;  %6912 = vmatmul.msk.f32.gmra.mxu0 %vm171_vm0, %v133_v18  ;;  %v13993_v56 = vld [vmem:[#allocation22_spill] sm:$0xff] }
 0x5c1   :  { %v1182_v1 = vsel %vm959_vm1, %v1054_v29, %v10423_v52  ;;  %v10581_v38 = vpop.f32.mrf.mxu1  ;;  %v10592_v52 = vadd.f32 %v10133_v33, %v10227_v37  ;;  %v134_v29 = vld [vmem:[%s13676_s0 + $0x348] sm:$0xff] }
 0x5c2   :  { %7030 = vmatmul.msk.f32.gmra.mxu1 %vm1232_vm2, %v1182_v1 }
 0x5c3   :  { %7129 = vmatmul.msk.f32.gmra.mxu2 %vm2540_vm3, %v2415_v45  ;;  %v2417_v17 = vpop.permute.xlu0 %2416  ;;  %v10614_v32 = vpop.xlane.xlu2 %3308 }
 0x5c4   :  { %2438 = vrot.lane.b32.xlu2 %v2095_v63, %s7855_s29  ;;  %v3319_v63 = vsel %vm3198_vm4, %v10592_v52, -inf }
 0x5c5   :  { %v10596_v45 = vpop.f32.mrf.mxu0 }
 0x5c8   :  { %6913 = vmatmul.msk.f32.gmra.mxu0 %vm171_vm0, %v134_v29 }
 0x5c9   :  { %v10608_v37 = vpop.f32.mrf.mxu1 }
 0x5cb   :  { %7130 = vmatmul.msk.f32.gmra.mxu2 %vm2540_vm3, %v2417_v17 }
 0x5cd   :  { %v873_v44 = vpop.f32.mrf.mxu0 }
 0x5ce   :  { %v4456_v35 = vpop.f32.mrf.mxu3  ;;  %v10622_v29 = vadd.f32 %v9979_v50, %v873_v44  ;;  %v10634_v50 = vpop.f32.mrf.mxu2 }
 0x5cf   :  { %7447 = vrcp.f32 %v4456_v35  ;;  %v10636_v44 = vpop.permute.xlu2 %5692 }
 0x5d0   :  { %13995 = vst [vmem:[#allocation17_spill] sm:$0xff] %v10636_v44 }
 0x5d1   :  { %5718 = vrot.lane.b32.xlu0 %v10584_v15, %s7854_s15  ;;  %v1886_v0 = vpop.f32.mrf.mxu1 }
 0x5d5   :  { %v7448_v1 = vpop.eup %7447  ;;  %3320 = vmax.xlane.f32.xlu1 %v3319_v63 }
 0x5d6   :  { %v4912_v17 = vmul.f32 %v7448_v1, %v4456_v35  ;;  %v4459_v18 = vpop.f32.mrf.mxu3  ;;  %v135_v35 = vld [vmem:[%s13676_s0 + $0x350] sm:$0xff] }
 0x5d7   :  { %7449 = vrcp.f32 %v4459_v18  ;;  %6914 = vmatmul.msk.f32.gmra.mxu0 %vm171_vm0, %v135_v35 }
 0x5d8   :  { %v5040_v5 = vsub.f32 2.0, %v4912_v17 }
 0x5d9   :  { %2446 = vrot.lane.b32.xlu0 %v2099_v31, %s7855_s29  ;;  %v13994_v31 = vld [vmem:[#allocation50_spill] sm:$0xff] }
 0x5da   :  { %v5168_v9 = vmul.f32 %v7448_v1, %v5040_v5 }
 0x5dc   :  { %v5296_v63 = vmul.f32 %v10298_v60, %v5168_v9  ;;  %v10639_v9 = vadd.f32 %v10188_v24, %v1886_v0  ;;  %v10652_v0 = vld [vmem:[%s13675_s2] ss:$0 sm:$0xff] }
 0x5dd   :  { %v7450_v20 = vpop.eup %7449 }
 0x5de   :  { %v5936_v6 = vmul.f32 %v13993_v56, %v5296_v63  ;;  %v4913_v39 = vmul.f32 %v7450_v20, %v4459_v18  ;;  %v4462_v17 = vpop.f32.mrf.mxu3  ;;  %13996 = vst [vmem:[#allocation44_spill] sm:$0xff] %v10639_v9  ;;  %v13997_v18 = vld [vmem:[#allocation24_spill] sm:$0xff] }
 0x5df   :  { %7451 = vrcp.f32 %v4462_v17 }
 0x5e0   :  { %v6576_v5 = vsel %vm3198_vm4, %v5936_v6, %v13994_v31  ;;  %v5041_v1 = vsub.f32 2.0, %v4913_v39  ;;  %v2102_v31 = vmax.f32 %v10639_v9, 0.0 }
 0x5e1   :  { %6704 = vst.msk [vmem:[%s13682_s8 + $0xe0] sm:$0xff] %vm2540_vm3, %v6576_v5  ;;  %5724 = vrot.lane.b32.xlu0 %v10622_v29, %s7854_s15 }
 0x5e2   :  { %v5169_v60 = vmul.f32 %v7450_v20, %v5041_v1  ;;  %v10656_v20 = vadd.f32 %v10652_v0, %v10514_v28  ;;  %v3337_v28 = vsel %vm3198_vm4, %v10647_v58, -inf }
 0x5e4   :  { %v5297_v6 = vmul.f32 %v10318_v59, %v5169_v60  ;;  %v13998_v59 = vld [vmem:[#allocation55_spill] sm:$0xff]  ;;  %v10665_v60 = vpop.f32.mrf.mxu2 }
 0x5e5   :  { %v3300_v39 = vpop.xlane.xlu1 %3299  ;;  %v7452_v56 = vpop.eup %7451 }
 0x5e6   :  { %v5937_v63 = vmul.f32 %v13997_v18, %v5297_v6  ;;  %v3616_v35 = vsub.f32 %v10370_v3, %v3300_v39  ;;  %v4914_v5 = vmul.f32 %v7452_v56, %v4462_v17  ;;  %v1055_v6 = vmax.f32 %v10656_v20, 0.0  ;;  %v10670_v39 = vpop.permute.xlu2 %2420 }
 0x5e8   :  { %v6577_v1 = vsel %vm3198_vm4, %v5937_v63, %v13998_v59  ;;  %v3777_v3 = vmul.f32 1.442695, %v3616_v35  ;;  %v5042_v49 = vsub.f32 2.0, %v4914_v5 }
 0x5e9   :  { %6705 = vst.msk [vmem:[%s13682_s8 + $0xe8] sm:$0xff] %vm2540_vm3, %v6577_v1  ;;  %2452 = vrot.lane.b32.xlu0 %v2102_v31, %s7855_s29  ;;  %v3306_v31 = vpop.xlane.xlu0 %3305  ;;  %v10681_v1 = vadd.f32 %v10188_v24, %v10330_v7 }
 0x5ea   :  { %7453 = vpow2.f32 %v3777_v3  ;;  %v5170_v17 = vmul.f32 %v7452_v56, %v5042_v49  ;;  %v13999_v56 = vld [vmem:[#allocation21_spill] sm:$0xff] }
 0x5eb   :  { %14000 = vst [vmem:[#allocation18_spill] sm:$0xff] %v10681_v1  ;;  %v14001_v49 = vld [vmem:[#allocation57_spill] sm:$0xff]  ;;  %v2091_v7 = vmax.f32 %v10681_v1, 0.0 }
 0x5ec   :  { %v5298_v18 = vmul.f32 %v10337_v30, %v5170_v17  ;;  %v1183_v30 = vsel %vm959_vm1, %v1055_v6, %v10656_v20  ;;  %v10697_v17 = vpop.f32.mrf.mxu2 }
 0x5ed   :  { %3338 = vmax.xlane.f32.xlu2 %v3337_v28  ;;  %v3303_v63 = vpop.xlane.xlu1 %3302  ;;  %7031 = vmatmul.msk.f32.gmra.mxu1 %vm1232_vm2, %v1183_v30  ;;  %v10719_v30 = vadd.f32 %v10188_v24, %v10389_v4 }
 0x5ee   :  { %v3617_v35 = vsub.f32 %v10386_v27, %v3303_v63  ;;  %5702 = vrot.lane.b32.xlu1 %v10439_v61, %s7854_s15  ;;  %v5938_v5 = vmul.f32 %v13999_v56, %v5298_v18  ;;  %v3618_v61 = vsub.f32 %v10157_v2, %v3306_v31  ;;  %v3312_v6 = vpop.xlane.xlu2 %3311  ;;  %v862_v18 = vadd.f32 %v10652_v0, %v10533_v11 }
 0x5ef   :  { %14002 = vst [vmem:[#allocation49_spill] sm:$0xff] %v10719_v30 }
 0x5f0   :  { %v10677_v59 = vpop.eup %7453  ;;  %v3779_v3 = vmul.f32 1.442695, %v3617_v35  ;;  %v6578_v27 = vsel %vm3198_vm4, %v5938_v5, %v14001_v49  ;;  %v3781_v28 = vmul.f32 1.442695, %v3618_v61  ;;  %v1056_v2 = vmax.f32 %v862_v18, 0.0 }
 0x5f1   :  { %7225 = vmatmul.msk.f32.gmra.mxu3 %vm3198_vm4, %v10677_v59  ;;  %6706 = vst.msk [vmem:[%s13682_s8 + $0xf0] sm:$0xff] %vm2540_vm3, %v6578_v27  ;;  %v3619_v35 = vsub.f32 %v9915_v51, %v10614_v32  ;;  %v3620_v51 = vsub.f32 %v10081_v53, %v3312_v6  ;;  %v1057_v32 = vmax.f32 %v10584_v15, 0.0  ;;  %v2094_v49 = vmax.f32 %v10719_v30, 0.0 }
 0x5f2   :  { %7455 = vpow2.f32 %v3779_v3  ;;  %v1184_v31 = vsel %vm959_vm1, %v1056_v2, %v862_v18  ;;  %v10731_v61 = vadd.f32 %v10652_v0, %v10574_v19  ;;  %v10739_v53 = vadd.f32 %v10188_v24, %v10547_v22 }
 0x5f3   :  { %7457 = vpow2.f32 %v3781_v28  ;;  %v3783_v56 = vmul.f32 1.442695, %v3619_v35  ;;  %v3785_v27 = vmul.f32 1.442695, %v3620_v51  ;;  %v1185_v4 = vsel %vm959_vm1, %v1057_v32, %v10584_v15 }
 0x5f4   :  { %v10711_v5 = vpop.f32.mrf.mxu2  ;;  %14004 = vst [vmem:[#allocation52_spill] sm:$0xff] %v10739_v53  ;;  %v2098_v15 = vmax.f32 %v10739_v53, 0.0 }
 0x5f5   :  { %7032 = vmatmul.msk.f32.gmra.mxu1 %vm1232_vm2, %v1184_v31  ;;  %7459 = vpow2.f32 %v3783_v56  ;;  %v10755_v31 = vadd.f32 %v10652_v0, %v10596_v45 }
 0x5f6   :  { %2430 = vrot.lane.b32.xlu1 %v2091_v7, %s7855_s29  ;;  %v3315_v11 = vpop.xlane.xlu2 %3314  ;;  %7461 = vpow2.f32 %v3785_v27  ;;  %v10778_v27 = vpop.permute.xlu0 %5694 }
 0x5f7   :  { %v3621_v19 = vsub.f32 %v10110_v62, %v3315_v11  ;;  %v10768_v11 = vadd.f32 %v10188_v24, %v10521_v43  ;;  %v1059_v51 = vmax.f32 %v10755_v31, 0.0  ;;  %14007 = vst [vmem:[#allocation24_spill] sm:$0xff] %v10778_v27 }
 0x5f8   :  { %v10702_v63 = vpop.eup %7455 }
 0x5f9   :  { %7226 = vmatmul.msk.f32.gmra.mxu3 %vm3198_vm4, %v10702_v63  ;;  %v10715_v3 = vpop.eup %7457  ;;  %v3787_v35 = vmul.f32 1.442695, %v3621_v19  ;;  %14005 = vst [vmem:[#allocation22_spill] sm:$0xff] %v10768_v11  ;;  %v2097_v43 = vmax.f32 %v10768_v11, 0.0 }
 0x5fb   :  { %v10742_v7 = vpop.eup %7459  ;;  %7463 = vpow2.f32 %v3787_v35 }
 0x5fc   :  { %v2976_v6 = vpop.f32.mrf.mxu2  ;;  %v10764_v56 = vpop.eup %7461 }
 0x5fd   :  { %7033 = vmatmul.msk.f32.gmra.mxu1 %vm1232_vm2, %v1185_v4  ;;  %v10751_v2 = vadd.f32 %v10133_v33, %v2976_v6  ;;  %v10781_v4 = vpop.f32.mrf.mxu0 }
 0x5fe   :  { %5708 = vrot.lane.b32.xlu1 %v10525_v54, %s7854_s15  ;;  %v3318_v28 = vpop.xlane.xlu2 %3317 }
 0x5ff   :  { %v3361_v32 = vsel %vm3198_vm4, %v10751_v2, -inf }
 0x601   :  { %7227 = vmatmul.msk.f32.gmra.mxu3 %vm3198_vm4, %v10715_v3 }
 0x604   :  { %v2979_v45 = vpop.f32.mrf.mxu2 }
 0x605   :  { %5716 = vrot.lane.b32.xlu2 %v862_v18, %s7854_s15  ;;  %v10727_v54 = vpop.permute.xlu1 %5690  ;;  %v1058_v18 = vmax.f32 %v10731_v61, 0.0  ;;  %v10784_v6 = vadd.f32 %v10133_v33, %v2979_v45  ;;  %v10798_v33 = vpop.f32.mrf.mxu1 }
 0x606   :  { %14003 = vst [vmem:[#allocation16_spill] sm:$0xff] %v10727_v54  ;;  %2436 = vrot.lane.b32.xlu1 %v2094_v49, %s7855_s29  ;;  %v10776_v49 = vpop.permute.xlu2 %5698  ;;  %v2423_v45 = vpop.permute.xlu0 %2422 }
 0x607   :  { %v1186_v62 = vsel %vm959_vm1, %v1058_v18, %v10731_v61  ;;  %14006 = vst [vmem:[#allocation50_spill] sm:$0xff] %v10776_v49  ;;  %v1060_v18 = vmax.f32 %v10622_v29, 0.0 }
 0x608   :  { %7034 = vmatmul.msk.f32.gmra.mxu1 %vm1232_vm2, %v1186_v62 }
 0x609   :  { %7228 = vmatmul.msk.f32.gmra.mxu3 %vm3198_vm4, %v10742_v7  ;;  %v1188_v35 = vsel %vm959_vm1, %v1060_v18, %v10622_v29 }
 0x60d   :  { %2444 = vrot.lane.b32.xlu2 %v2098_v15, %s7855_s29  ;;  %v2419_v22 = vpop.permute.xlu1 %2418  ;;  %v3364_v15 = vsel %vm3198_vm4, %v10784_v6, -inf  ;;  %v10822_v29 = vpop.f32.mrf.mxu1 }
 0x60e   :  { %5714 = vrot.lane.b32.xlu1 %v10656_v20, %s7854_s15  ;;  %7131 = vmatmul.msk.f32.gmra.mxu2 %vm2540_vm3, %v2419_v22  ;;  %v3622_v20 = vsub.f32 %v10136_v48, %v3318_v28  ;;  %v1187_v48 = vsel %vm959_vm1, %v1059_v51, %v10755_v31  ;;  %v10793_v28 = vpop.eup %7463  ;;  %v136_v22 = vld [vmem:[%s13676_s0 + $0x358] sm:$0xff]  ;;  %v2427_v62 = vpop.permute.xlu2 %2426 }
 0x60f   :  { %6915 = vmatmul.msk.f32.gmra.mxu0 %vm171_vm0, %v136_v22 }
 0x610   :  { %v3789_v19 = vmul.f32 1.442695, %v3622_v20  ;;  %7035 = vmatmul.msk.f32.gmra.mxu1 %vm1232_vm2, %v1187_v48  ;;  %v10812_v20 = vpop.f32.mrf.mxu0 }
 0x611   :  { %7229 = vmatmul.msk.f32.gmra.mxu3 %vm3198_vm4, %v10764_v56 }
 0x612   :  { %7465 = vpow2.f32 %v3789_v19 }
 0x613   :  { %3362 = vmax.xlane.f32.xlu0 %v3361_v32 }
 0x615   :  { %v1895_v54 = vpop.f32.mrf.mxu1 }
 0x616   :  { %2442 = vrot.lane.b32.xlu1 %v2097_v43, %s7855_s29  ;;  %7132 = vmatmul.msk.f32.gmra.mxu2 %vm2540_vm3, %v10670_v39  ;;  %v10802_v39 = vpop.permute.xlu1 %5696  ;;  %v137_v43 = vld [vmem:[%s13676_s0 + $0x360] sm:$0xff]  ;;  %v10825_v19 = vpop.xlane.xlu2 %3326 }
 0x617   :  { %14008 = vst [vmem:[#allocation55_spill] sm:$0xff] %v10802_v39  ;;  %6916 = vmatmul.msk.f32.gmra.mxu0 %vm171_vm0, %v137_v43  ;;  %v138_v43 = vld [vmem:[%s13676_s0 + $0x368] sm:$0xff] }
 0x618   :  { %7036 = vmatmul.msk.f32.gmra.mxu1 %vm1232_vm2, %v1188_v35  ;;  %v10815_v51 = vpop.eup %7465 }
 0x619   :  { %7230 = vmatmul.msk.f32.gmra.mxu3 %vm3198_vm4, %v10793_v28 }
 0x61b   :  { %3365 = vmax.xlane.f32.xlu0 %v3364_v15  ;;  %v882_v15 = vpop.f32.mrf.mxu0 }
 0x61c   :  { %v10831_v44 = vadd.f32 %v10652_v0, %v882_v15  ;;  %v10846_v15 = vld [vmem:[%s13680_s6] ss:$0 sm:$0xff] }
 0x61e   :  { %7133 = vmatmul.msk.f32.gmra.mxu2 %vm2540_vm3, %v2423_v45  ;;  %v2425_v48 = vpop.permute.xlu1 %2424  ;;  %v10828_v45 = vpop.permute.xlu0 %5700 }
 0x61f   :  { %14009 = vst [vmem:[#allocation21_spill] sm:$0xff] %v10828_v45  ;;  %6917 = vmatmul.msk.f32.gmra.mxu0 %vm171_vm0, %v138_v43  ;;  %v10850_v43 = vadd.f32 %v10846_v15, %v10612_v55 }
 0x621   :  { %v4465_v32 = vpop.f32.mrf.mxu3  ;;  %7231 = vmatmul.msk.f32.gmra.mxu3 %vm3198_vm4, %v10815_v51 }
 0x622   :  { %7467 = vrcp.f32 %v4465_v32 }
 0x626   :  { %7134 = vmatmul.msk.f32.gmra.mxu2 %vm2540_vm3, %v2425_v48  ;;  %v10838_v48 = vpop.permute.xlu2 %5704  ;;  %v2429_v27 = vpop.permute.xlu0 %2428 }
 0x627   :  { %14010 = vst [vmem:[#allocation57_spill] sm:$0xff] %v10838_v48 }
 0x628   :  { %v7468_v18 = vpop.eup %7467 }
 0x629   :  { %v4915_v22 = vmul.f32 %v7468_v18, %v4465_v32  ;;  %v4468_v35 = vpop.f32.mrf.mxu3 }
 0x62a   :  { %7469 = vrcp.f32 %v4468_v35 }
 0x62b   :  { %v5043_v49 = vsub.f32 2.0, %v4915_v22 }
 0x62d   :  { %v5171_v39 = vmul.f32 %v7468_v18, %v5043_v49  ;;  %v10853_v49 = vadd.f32 %v10188_v24, %v1895_v54  ;;  %v3346_v24 = vsel %vm3198_vm4, %v10850_v43, -inf }
 0x62e   :  { %7135 = vmatmul.msk.f32.gmra.mxu2 %vm2540_vm3, %v2427_v62  ;;  %v14012_v62 = vld [vmem:[#allocation28_spill] sm:$0xff] }
 0x62f   :  { %v5299_v32 = vmul.f32 %v10477_v23, %v5171_v39  ;;  %5730 = vrot.lane.b32.xlu0 %v10831_v44, %s7854_s15  ;;  %14011 = vst [vmem:[#allocation105_spill] sm:$0xff] %v10853_v49  ;;  %v14013_v23 = vld [vmem:[#allocation58_spill] sm:$0xff]  ;;  %v2105_v9 = vmax.f32 %v10853_v49, 0.0 }
 0x630   :  { %v7470_v22 = vpop.eup %7469 }
 0x631   :  { %v5939_v18 = vmul.f32 %v14012_v62, %v5299_v32  ;;  %v4916_v48 = vmul.f32 %v7470_v22, %v4468_v35  ;;  %v10870_v35 = vadd.f32 %v10846_v15, %v10634_v50  ;;  %v14014_v32 = vld [vmem:[#allocation30_spill] sm:$0xff] }
 0x633   :  { %v6579_v39 = vsel %vm3198_vm4, %v5939_v18, %v14013_v23  ;;  %v5044_v45 = vsub.f32 2.0, %v4916_v48  ;;  %v10872_v48 = vpop.permute.xlu2 %2432 }
 0x634   :  { %6707 = vst.msk [vmem:[%s13682_s8 + $0xf8] sm:$0xff] %vm2540_vm3, %v6579_v39 }
 0x635   :  { %v5172_v55 = vmul.f32 %v7470_v22, %v5044_v45  ;;  %v10877_v45 = vadd.f32 %v10846_v15, %v10594_v42  ;;  %v14015_v22 = vld [vmem:[#allocation61_spill] sm:$0xff]  ;;  %v10891_v42 = vadd.f32 %v10846_v15, %v10665_v60  ;;  %v10903_v60 = vadd.f32 %v10652_v0, %v10781_v4  ;;  %v10917_v4 = vld [vmem:[%s13678_s4] ss:$0 sm:$0xff] }
 0x636   :  { %3347 = vmax.xlane.f32.xlu2 %v3346_v24  ;;  %7136 = vmatmul.msk.f32.gmra.mxu2 %vm2540_vm3, %v2429_v27 }
 0x637   :  { %v5300_v54 = vmul.f32 %v10500_v25, %v5172_v55  ;;  %2458 = vrot.lane.b32.xlu0 %v2105_v9, %s7855_s29  ;;  %v3349_v25 = vsel %vm3198_vm4, %v10870_v35, -inf  ;;  %v3343_v50 = vsel %vm3198_vm4, %v10877_v45, -inf  ;;  %v3352_v27 = vsel %vm3198_vm4, %v10891_v42, -inf  ;;  %v3324_v55 = vpop.xlane.xlu0 %3323 }
 0x639   :  { %v5940_v62 = vmul.f32 %v14014_v32, %v5300_v54  ;;  %v3624_v32 = vsub.f32 %v10354_v57, %v3324_v55  ;;  %v1061_v57 = vmax.f32 %v10903_v60, 0.0 }
 0x63b   :  { %v6580_v18 = vsel %vm3198_vm4, %v5940_v62, %v14015_v22  ;;  %v3330_v9 = vpop.xlane.xlu2 %3329  ;;  %v3793_v62 = vmul.f32 1.442695, %v3624_v32  ;;  %v10946_v32 = vadd.f32 %v10917_v4, %v10608_v37 }
 0x63c   :  { %6708 = vst.msk [vmem:[%s13682_s8 + $0x100] sm:$0xff] %vm2540_vm3, %v6580_v18 }
 0x63d   :  { %14019 = vst [vmem:[#allocation61_spill] sm:$0xff] %v10946_v32 }
 0x63e   :  { %3350 = vmax.xlane.f32.xlu2 %v3349_v25 }
 0x63f   :  { %v10899_v18 = vpop.permute.xlu0 %5706 }
 0x640   :  { %3344 = vmax.xlane.f32.xlu1 %v3343_v50  ;;  %14016 = vst [vmem:[#allocation28_spill] sm:$0xff] %v10899_v18  ;;  %v2982_v50 = vpop.f32.mrf.mxu2 }
 0x643   :  { %v3333_v24 = vpop.xlane.xlu2 %3332 }
 0x646   :  { %3353 = vmax.xlane.f32.xlu2 %v3352_v27 }
 0x647   :  { %v10935_v55 = vpop.permute.xlu0 %2434 }
 0x648   :  { %v3321_v23 = vpop.xlane.xlu1 %3320 }
 0x649   :  { %v3623_v39 = vsub.f32 %v10592_v52, %v3321_v23  ;;  %v3625_v52 = vsub.f32 %v10281_v26, %v10825_v19  ;;  %v10924_v26 = vadd.f32 %v10846_v15, %v2982_v50  ;;  %v10928_v19 = vadd.f32 %v10652_v0, %v10812_v20  ;;  %v10957_v50 = vpop.f32.mrf.mxu0 }
 0x64b   :  { %v3791_v54 = vmul.f32 1.442695, %v3623_v39  ;;  %v3336_v25 = vpop.xlane.xlu2 %3335  ;;  %v3795_v27 = vmul.f32 1.442695, %v3625_v52  ;;  %v10921_v39 = vadd.f32 %v10917_v4, %v10581_v38  ;;  %v3626_v38 = vsub.f32 %v10432_v41, %v3330_v9  ;;  %v139_v9 = vld [vmem:[%s13676_s0 + $0x370] sm:$0xff] }
 0x64c   :  { %v3367_v41 = vsel %vm3198_vm4, %v10924_v26, -inf  ;;  %6918 = vmatmul.msk.f32.gmra.mxu0 %vm171_vm0, %v139_v9  ;;  %v1063_v9 = vmax.f32 %v10831_v44, 0.0 }
 0x64d   :  { %7471 = vpow2.f32 %v3791_v54  ;;  %14017 = vst [vmem:[#allocation58_spill] sm:$0xff] %v10921_v39  ;;  %v2100_v20 = vmax.f32 %v10921_v39, 0.0 }
 0x64e   :  { %7473 = vpow2.f32 %v3793_v62  ;;  %v1062_v62 = vmax.f32 %v10928_v19, 0.0 }
 0x64f   :  { %7475 = vpow2.f32 %v3795_v27 }
 0x653   :  { %v10897_v22 = vpop.eup %7471  ;;  %v10942_v54 = vpop.permute.xlu2 %5710 }
 0x654   :  { %7232 = vmatmul.msk.f32.gmra.mxu3 %vm3198_vm4, %v10897_v22  ;;  %v10912_v23 = vpop.eup %7473  ;;  %14018 = vst [vmem:[#allocation30_spill] sm:$0xff] %v10942_v54 }
 0x655   :  { %v10960_v37 = vpop.eup %7475 }
 0x659   :  { %5720 = vrot.lane.b32.xlu1 %v10731_v61, %s7854_s15  ;;  %v1189_v61 = vsel %vm959_vm1, %v1061_v57, %v10903_v60  ;;  %v3797_v57 = vmul.f32 1.442695, %v3626_v38  ;;  %v1190_v38 = vsel %vm959_vm1, %v1062_v62, %v10928_v19 }
 0x65a   :  { %7037 = vmatmul.msk.f32.gmra.mxu1 %vm1232_vm2, %v1189_v61  ;;  %v2101_v61 = vmax.f32 %v10946_v32, 0.0 }
 0x65b   :  { %7477 = vpow2.f32 %v3797_v57  ;;  %v10982_v57 = vpop.permute.xlu2 %2438 }
 0x65c   :  { %7233 = vmatmul.msk.f32.gmra.mxu3 %vm3198_vm4, %v10912_v23 }
 0x65e   :  { %5722 = vrot.lane.b32.xlu2 %v10755_v31, %s7854_s15  ;;  %v2985_v31 = vpop.f32.mrf.mxu2 }
 0x65f   :  { %v10963_v27 = vadd.f32 %v10846_v15, %v2985_v31 }
 0x660   :  { %v10949_v52 = vpop.permute.xlu1 %5702 }
 0x661   :  { %14020 = vst [vmem:[#allocation106_spill] sm:$0xff] %v10949_v52  ;;  %3368 = vmax.xlane.f32.xlu0 %v3367_v41  ;;  %2448 = vrot.lane.b32.xlu1 %v2100_v20, %s7855_s29  ;;  %v3627_v20 = vsub.f32 %v10463_v10, %v3333_v24  ;;  %v10974_v41 = vpop.permute.xlu0 %5712  ;;  %v3370_v54 = vsel %vm3198_vm4, %v10963_v27, -inf  ;;  %v140_v52 = vld [vmem:[%s13676_s0 + $0x378] sm:$0xff]  ;;  %v10985_v10 = vpop.f32.mrf.mxu1 }
 0x662   :  { %7038 = vmatmul.msk.f32.gmra.mxu1 %vm1232_vm2, %v1190_v38  ;;  %14021 = vst [vmem:[#allocation107_spill] sm:$0xff] %v10974_v41  ;;  %6919 = vmatmul.msk.f32.gmra.mxu0 %vm171_vm0, %v140_v52  ;;  %v10988_v24 = vpop.eup %7477  ;;  %v10993_v38 = vpop.f32.mrf.mxu0  ;;  %v141_v52 = vld [vmem:[%s13676_s0 + $0x380] sm:$0xff] }
 0x663   :  { %v3799_v62 = vmul.f32 1.442695, %v3627_v20  ;;  %v1191_v20 = vsel %vm959_vm1, %v1063_v9, %v10831_v44 }
 0x664   :  { %7234 = vmatmul.msk.f32.gmra.mxu3 %vm3198_vm4, %v10960_v37 }
 0x665   :  { %7479 = vpow2.f32 %v3799_v62 }
 0x666   :  { %2450 = vrot.lane.b32.xlu2 %v2101_v61, %s7855_s29  ;;  %v3628_v61 = vsub.f32 %v10488_v12, %v3336_v25  ;;  %v3339_v12 = vpop.xlane.xlu2 %3338 }
 0x667   :  { %v3629_v44 = vsub.f32 %v10647_v58, %v3339_v12 }
 0x668   :  { %v2431_v31 = vpop.permute.xlu1 %2430 }
 0x669   :  { %3371 = vmax.xlane.f32.xlu0 %v3370_v54  ;;  %7137 = vmatmul.msk.f32.gmra.mxu2 %vm2540_vm3, %v2431_v31  ;;  %v3801_v54 = vmul.f32 1.442695, %v3628_v61  ;;  %v11002_v31 = vpop.permute.xlu0 %2440  ;;  %v11006_v25 = vpop.f32.mrf.mxu1 }
 0x66a   :  { %7039 = vmatmul.msk.f32.gmra.mxu1 %vm1232_vm2, %v1191_v20  ;;  %6920 = vmatmul.msk.f32.gmra.mxu0 %vm171_vm0, %v141_v52  ;;  %v891_v61 = vpop.f32.mrf.mxu0  ;;  %v3803_v20 = vmul.f32 1.442695, %v3629_v44 }
 0x66b   :  { %v11009_v41 = vpop.eup %7479  ;;  %7481 = vpow2.f32 %v3801_v54  ;;  %v11020_v52 = vadd.f32 %v10652_v0, %v891_v61 }
 0x66c   :  { %7235 = vmatmul.msk.f32.gmra.mxu3 %vm3198_vm4, %v10988_v24 }
 0x670   :  { %v11014_v62 = vpop.permute.xlu1 %5708 }
 0x671   :  { %7138 = vmatmul.msk.f32.gmra.mxu2 %vm2540_vm3, %v10872_v48  ;;  %14022 = vst [vmem:[#allocation108_spill] sm:$0xff] %v11014_v62  ;;  %v142_v48 = vld [vmem:[%s13676_s0 + $0x388] sm:$0xff]  ;;  %v3342_v18 = vpop.xlane.xlu0 %3341  ;;  %v11024_v58 = vpop.eup %7481 }
 0x672   :  { %6921 = vmatmul.msk.f32.gmra.mxu0 %vm171_vm0, %v142_v48  ;;  %v3630_v12 = vsub.f32 %v10537_v14, %v3342_v18  ;;  %v1904_v62 = vpop.f32.mrf.mxu1  ;;  %v143_v14 = vld [vmem:[%s13676_s0 + $0x390] sm:$0xff] }
 0x674   :  { %v4471_v9 = vpop.f32.mrf.mxu3  ;;  %7236 = vmatmul.msk.f32.gmra.mxu3 %vm3198_vm4, %v11009_v41  ;;  %v3805_v32 = vmul.f32 1.442695, %v3630_v12 }
 0x675   :  { %7483 = vrcp.f32 %v4471_v9 }
 0x676   :  { %7485 = vpow2.f32 %v3803_v20 }
 0x678   :  { %v2437_v39 = vpop.permute.xlu1 %2436 }
 0x679   :  { %7139 = vmatmul.msk.f32.gmra.mxu2 %vm2540_vm3, %v10935_v55  ;;  %v11033_v55 = vadd.f32 %v10917_v4, %v1904_v62  ;;  %v14024_v62 = vld [vmem:[#allocation27_spill] sm:$0xff] }
 0x67a   :  { %6922 = vmatmul.msk.f32.gmra.mxu0 %vm171_vm0, %v143_v14 }
 0x67b   :  { %v7484_v54 = vpop.eup %7483  ;;  %14023 = vst [vmem:[#allocation109_spill] sm:$0xff] %v11033_v55 }
 0x67c   :  { %v4917_v44 = vmul.f32 %v7484_v54, %v4471_v9  ;;  %v4474_v49 = vpop.f32.mrf.mxu3  ;;  %7237 = vmatmul.msk.f32.gmra.mxu3 %vm3198_vm4, %v11024_v58  ;;  %v11039_v18 = vpop.eup %7485 }
 0x67d   :  { %5736 = vrot.lane.b32.xlu0 %v11020_v52, %s7854_s15  ;;  %7487 = vrcp.f32 %v4474_v49 }
 0x67e   :  { %v5045_v61 = vsub.f32 2.0, %v4917_v44  ;;  %v2108_v44 = vmax.f32 %v11033_v55, 0.0  ;;  %7489 = vpow2.f32 %v3805_v32  ;;  %v11100_v55 = vpop.f32.mrf.mxu2 }
 0x680   :  { %v5173_v48 = vmul.f32 %v7484_v54, %v5045_v61 }
 0x681   :  { %7140 = vmatmul.msk.f32.gmra.mxu2 %vm2540_vm3, %v2437_v39  ;;  %v11050_v39 = vadd.f32 %v10846_v15, %v10711_v5 }
 0x682   :  { %v5301_v9 = vmul.f32 %v10677_v59, %v5173_v48  ;;  %v11054_v59 = vadd.f32 %v10652_v0, %v10957_v50  ;;  %v14025_v48 = vld [vmem:[#allocation63_spill] sm:$0xff] }
 0x683   :  { %v7488_v20 = vpop.eup %7487 }
 0x684   :  { %v5941_v12 = vmul.f32 %v14024_v62, %v5301_v9  ;;  %v4918_v54 = vmul.f32 %v7488_v20, %v4474_v49  ;;  %v4477_v61 = vpop.f32.mrf.mxu3  ;;  %7238 = vmatmul.msk.f32.gmra.mxu3 %vm3198_vm4, %v11039_v18  ;;  %v11064_v9 = vadd.f32 %v10846_v15, %v10697_v17  ;;  %v11068_v5 = vpop.eup %7489  ;;  %v1064_v50 = vmax.f32 %v11054_v59, 0.0 }
 0x685   :  { %2464 = vrot.lane.b32.xlu0 %v2108_v44, %s7855_s29  ;;  %7491 = vrcp.f32 %v4477_v61  ;;  %v3358_v62 = vsel %vm3198_vm4, %v11050_v39, -inf }
 0x686   :  { %v6581_v32 = vsel %vm3198_vm4, %v5941_v12, %v14025_v48  ;;  %v5046_v14 = vsub.f32 2.0, %v4918_v54  ;;  %v14026_v54 = vld [vmem:[#allocation34_spill] sm:$0xff]  ;;  %v3355_v17 = vsel %vm3198_vm4, %v11064_v9, -inf }
 0x687   :  { %6709 = vst.msk [vmem:[%s13682_s8 + $0x108] sm:$0xff] %vm2540_vm3, %v6581_v32 }
 0x688   :  { %v5174_v49 = vmul.f32 %v7488_v20, %v5046_v14 }
 0x689   :  { %7141 = vmatmul.msk.f32.gmra.mxu2 %vm2540_vm3, %v10982_v57  ;;  %v11081_v57 = vadd.f32 %v10652_v0, %v10993_v38 }
 0x68a   :  { %v5302_v44 = vmul.f32 %v10702_v63, %v5174_v49  ;;  %v14027_v63 = vld [vmem:[#allocation64_spill] sm:$0xff]  ;;  %v11085_v49 = vpop.permute.xlu1 %5714 }
 0x68b   :  { %v7492_v12 = vpop.eup %7491  ;;  %3359 = vmax.xlane.f32.xlu1 %v3358_v62  ;;  %14028 = vst [vmem:[#allocation27_spill] sm:$0xff] %v11085_v49 }
 0x68c   :  { %v5942_v20 = vmul.f32 %v14026_v54, %v5302_v44  ;;  %v4919_v48 = vmul.f32 %v7492_v12, %v4477_v61  ;;  %v4480_v32 = vpop.f32.mrf.mxu3  ;;  %7239 = vmatmul.msk.f32.gmra.mxu3 %vm3198_vm4, %v11068_v5  ;;  %v1192_v61 = vsel %vm959_vm1, %v1064_v50, %v11054_v59  ;;  %v1065_v44 = vmax.f32 %v11081_v57, 0.0 }
 0x68d   :  { %7493 = vrcp.f32 %v4480_v32  ;;  %7040 = vmatmul.msk.f32.gmra.mxu1 %vm1232_vm2, %v1192_v61  ;;  %v1066_v61 = vmax.f32 %v11020_v52, 0.0 }
 0x68e   :  { %v6582_v14 = vsel %vm3198_vm4, %v5942_v20, %v14027_v63  ;;  %v5047_v62 = vsub.f32 2.0, %v4919_v48  ;;  %v14029_v48 = vld [vmem:[#allocation36_spill] sm:$0xff] }
 0x68f   :  { %6710 = vst.msk [vmem:[%s13682_s8 + $0x110] sm:$0xff] %vm2540_vm3, %v6582_v14  ;;  %3356 = vmax.xlane.f32.xlu2 %v3355_v17  ;;  %v11102_v14 = vpop.permute.xlu2 %5716  ;;  %v14031_v17 = vld [vmem:[#allocation68_spill] sm:$0xff] }
 0x690   :  { %v5175_v38 = vmul.f32 %v7492_v12, %v5047_v62  ;;  %14030 = vst [vmem:[#allocation63_spill] sm:$0xff] %v11102_v14 }
 0x691   :  { %7142 = vmatmul.msk.f32.gmra.mxu2 %vm2540_vm3, %v11002_v31  ;;  %v1193_v31 = vsel %vm959_vm1, %v1065_v44, %v11081_v57 }
 0x692   :  { %v5303_v54 = vmul.f32 %v10715_v3, %v5175_v38  ;;  %v2443_v3 = vpop.permute.xlu1 %2442 }
 0x693   :  { %v7494_v20 = vpop.eup %7493 }
 0x694   :  { %v5943_v63 = vmul.f32 %v14029_v48, %v5303_v54  ;;  %v4920_v50 = vmul.f32 %v7494_v20, %v4480_v32  ;;  %v4483_v49 = vpop.f32.mrf.mxu3  ;;  %v894_v48 = vpop.f32.mrf.mxu0 }
 0x695   :  { %7495 = vrcp.f32 %v4483_v49  ;;  %7041 = vmatmul.msk.f32.gmra.mxu1 %vm1232_vm2, %v1193_v31  ;;  %v11119_v14 = vadd.f32 %v10652_v0, %v894_v48  ;;  %v14034_v31 = vld [vmem:[#allocation75_spill] sm:$0xff] }
 0x696   :  { %v6583_v12 = vsel %vm3198_vm4, %v5943_v63, %v14031_v17  ;;  %v5048_v62 = vsub.f32 2.0, %v4920_v50  ;;  %v14032_v63 = vld [vmem:[#allocation33_spill] sm:$0xff] }
 0x697   :  { %6711 = vst.msk [vmem:[%s13682_s8 + $0x118] sm:$0xff] %vm2540_vm3, %v6583_v12  ;;  %v11121_v12 = vpop.permute.xlu0 %5718 }
 0x698   :  { %v5176_v32 = vmul.f32 %v7494_v20, %v5048_v62  ;;  %14033 = vst [vmem:[#allocation34_spill] sm:$0xff] %v11121_v12 }
 0x699   :  { %7143 = vmatmul.msk.f32.gmra.mxu2 %vm2540_vm3, %v2443_v3  ;;  %v2991_v3 = vpop.f32.mrf.mxu2 }
 0x69a   :  { %v5304_v38 = vmul.f32 %v10742_v7, %v5176_v32  ;;  %v1194_v7 = vsel %vm959_vm1, %v1066_v61, %v11020_v52 }
 0x69b   :  { %v7496_v54 = vpop.eup %7495 }
 0x69c   :  { %v5944_v50 = vmul.f32 %v14032_v63, %v5304_v38  ;;  %v4921_v44 = vmul.f32 %v7496_v54, %v4483_v49  ;;  %v4486_v17 = vpop.f32.mrf.mxu3  ;;  %v2445_v49 = vpop.permute.xlu2 %2444  ;;  %v1067_v38 = vmax.f32 %v11119_v14, 0.0 }
 0x69d   :  { %7497 = vrcp.f32 %v4486_v17  ;;  %7042 = vmatmul.msk.f32.gmra.mxu1 %vm1232_vm2, %v1194_v7 }
 0x69e   :  { %v6584_v20 = vsel %vm3198_vm4, %v5944_v50, %v14034_v31  ;;  %v5049_v62 = vsub.f32 2.0, %v4921_v44  ;;  %v14035_v50 = vld [vmem:[#allocation40_spill] sm:$0xff]  ;;  %v1195_v31 = vsel %vm959_vm1, %v1067_v38, %v11119_v14 }
 0x69f   :  { %6712 = vst.msk [vmem:[%s13682_s8 + $0x120] sm:$0xff] %vm2540_vm3, %v6584_v20  ;;  %v14037_v20 = vld [vmem:[#allocation72_spill] sm:$0xff] }
 0x6a0   :  { %v5177_v32 = vmul.f32 %v7496_v54, %v5049_v62  ;;  %v11144_v54 = vadd.f32 %v10917_v4, %v10798_v33  ;;  %v11159_v33 = vadd.f32 %v10917_v4, %v10822_v29 }
 0x6a1   :  { %7144 = vmatmul.msk.f32.gmra.mxu2 %vm2540_vm3, %v2445_v49  ;;  %v11148_v7 = vpop.f32.mrf.mxu2  ;;  %v11163_v49 = vadd.f32 %v10846_v15, %v2991_v3 }
 0x6a2   :  { %v5305_v48 = vmul.f32 %v10764_v56, %v5177_v32  ;;  %14036 = vst [vmem:[#allocation64_spill] sm:$0xff] %v11144_v54  ;;  %v2103_v32 = vmax.f32 %v11144_v54, 0.0 }
 0x6a3   :  { %v7498_v63 = vpop.eup %7497  ;;  %14038 = vst [vmem:[#allocation36_spill] sm:$0xff] %v11159_v33  ;;  %v3376_v3 = vsel %vm3198_vm4, %v11163_v49, -inf }
 0x6a4   :  { %v5945_v44 = vmul.f32 %v14035_v50, %v5305_v48  ;;  %v4922_v52 = vmul.f32 %v7498_v63, %v4486_v17  ;;  %5726 = vrot.lane.b32.xlu1 %v10903_v60, %s7854_s15  ;;  %v4489_v61 = vpop.f32.mrf.mxu3  ;;  %v2447_v60 = vpop.permute.xlu0 %2446  ;;  %v14039_v50 = vld [vmem:[#allocation42_spill] sm:$0xff] }
 0x6a5   :  { %7499 = vrcp.f32 %v4489_v61  ;;  %7043 = vmatmul.msk.f32.gmra.mxu1 %vm1232_vm2, %v1195_v31 }
 0x6a6   :  { %v6585_v56 = vsel %vm3198_vm4, %v5945_v44, %v14037_v20  ;;  %v5050_v62 = vsub.f32 2.0, %v4922_v52 }
 0x6a7   :  { %6713 = vst.msk [vmem:[%s13682_s8 + $0x128] sm:$0xff] %vm2540_vm3, %v6585_v56  ;;  %5728 = vrot.lane.b32.xlu2 %v10928_v19, %s7854_s15 }
 0x6a8   :  { %v5178_v17 = vmul.f32 %v7498_v63, %v5050_v62  ;;  %v2104_v63 = vmax.f32 %v11159_v33, 0.0  ;;  %v14040_v62 = vld [vmem:[#allocation39_spill] sm:$0xff] }
 0x6a9   :  { %7145 = vmatmul.msk.f32.gmra.mxu2 %vm2540_vm3, %v2447_v60  ;;  %v2997_v31 = vpop.f32.mrf.mxu2 }
 0x6aa   :  { %v5306_v38 = vmul.f32 %v10793_v28, %v5178_v17  ;;  %v11180_v20 = vadd.f32 %v10846_v15, %v2997_v31 }
 0x6ab   :  { %v7500_v48 = vpop.eup %7499 }
 0x6ac   :  { %v5946_v19 = vmul.f32 %v14039_v50, %v5306_v38  ;;  %v4923_v44 = vmul.f32 %v7500_v48, %v4489_v61  ;;  %2454 = vrot.lane.b32.xlu1 %v2103_v32, %s7855_s29  ;;  %v3348_v61 = vpop.xlane.xlu2 %3347  ;;  %v11189_v32 = vadd.f32 %v10917_v4, %v10985_v10  ;;  %v1907_v38 = vpop.f32.mrf.mxu1  ;;  %v11204_v10 = vadd.f32 %v10917_v4, %v11006_v25 }
 0x6ae   :  { %v6586_v29 = vsel %vm3198_vm4, %v5946_v19, %v9205_v34  ;;  %v5051_v52 = vsub.f32 2.0, %v4923_v44  ;;  %14041 = vst [vmem:[#allocation68_spill] sm:$0xff] %v11189_v32  ;;  %v897_v19 = vpop.f32.mrf.mxu0 }
 0x6af   :  { %6714 = vst.msk [vmem:[%s13682_s8 + $0x130] sm:$0xff] %vm2540_vm3, %v6586_v29  ;;  %2456 = vrot.lane.b32.xlu2 %v2104_v63, %s7855_s29  ;;  %3377 = vmax.xlane.f32.xlu0 %v3376_v3 }
 0x6b0   :  { %v5179_v28 = vmul.f32 %v7500_v48, %v5051_v52  ;;  %14042 = vst [vmem:[#allocation33_spill] sm:$0xff] %v11204_v10  ;;  %v145_v52 = vld [vmem:[%s13676_s0 + $0x3a0] sm:$0xff] }
 0x6b2   :  { %v5307_v34 = vmul.f32 %v10815_v51, %v5179_v28  ;;  %v3382_v51 = vsel %vm3198_vm4, %v11180_v20, -inf }
 0x6b3   :  { %v3345_v56 = vpop.xlane.xlu1 %3344 }
 0x6b4   :  { %v5947_v60 = vmul.f32 %v14040_v62, %v5307_v34  ;;  %v3631_v17 = vsub.f32 %v10877_v45, %v3345_v56  ;;  %5732 = vrot.lane.b32.xlu1 %v11054_v59, %s7854_s15  ;;  %v3632_v45 = vsub.f32 %v10850_v43, %v3348_v61  ;;  %v2106_v59 = vmax.f32 %v11189_v32, 0.0  ;;  %v3351_v44 = vpop.xlane.xlu2 %3350  ;;  %v11218_v25 = vpop.f32.mrf.mxu1  ;;  %v146_v62 = vld [vmem:[%s13676_s0 + $0x3a8] sm:$0xff] }
 0x6b5   :  { %v2107_v43 = vmax.f32 %v11204_v10, 0.0  ;;  %v3633_v29 = vsub.f32 %v10870_v35, %v3351_v44  ;;  %v11230_v34 = vadd.f32 %v10917_v4, %v1907_v38 }
 0x6b6   :  { %v6587_v48 = vsel %vm3198_vm4, %v5947_v60, %v9248_v8  ;;  %v3807_v50 = vmul.f32 1.442695, %v3631_v17  ;;  %v144_v8 = vld [vmem:[%s13676_s0 + $0x398] sm:$0xff]  ;;  %v3809_v63 = vmul.f32 1.442695, %v3632_v45  ;;  %v900_v31 = vpop.f32.mrf.mxu0 }
 0x6b7   :  { %6715 = vst.msk [vmem:[%s13682_s8 + $0x138] sm:$0xff] %vm2540_vm3, %v6587_v48  ;;  %5734 = vrot.lane.b32.xlu2 %v11081_v57, %s7854_s15  ;;  %3383 = vmax.xlane.f32.xlu0 %v3382_v51  ;;  %v3811_v3 = vmul.f32 1.442695, %v3633_v29  ;;  %v901_v56 = vadd.f32 %v10652_v0, %v900_v31  ;;  %v898_v29 = vadd.f32 %v10652_v0, %v897_v19 }
 0x6b8   :  { %7501 = vpow2.f32 %v3807_v50  ;;  %6923 = vmatmul.msk.f32.gmra.mxu0 %vm171_vm0, %v144_v8  ;;  %14043 = vst [vmem:[#allocation75_spill] sm:$0xff] %v11230_v34 }
 0x6b9   :  { %7503 = vpow2.f32 %v3809_v63  ;;  %v11266_v63 = vadd.f32 %v10846_v15, %v11100_v55  ;;  %v11277_v55 = vadd.f32 %v10846_v15, %v11148_v7 }
 0x6ba   :  { %7505 = vpow2.f32 %v3811_v3 }
 0x6bb   :  { %v3373_v3 = vsel %vm3198_vm4, %v11266_v63, -inf }
 0x6bc   :  { %2460 = vrot.lane.b32.xlu1 %v2106_v59, %s7855_s29  ;;  %v3354_v28 = vpop.xlane.xlu2 %3353  ;;  %v1913_v60 = vpop.f32.mrf.mxu1 }
 0x6bd   :  { %v3634_v35 = vsub.f32 %v10891_v42, %v3354_v28  ;;  %v11246_v48 = vadd.f32 %v10917_v4, %v1913_v60  ;;  %v11261_v59 = vpop.permute.xlu0 %5724  ;;  %v3000_v28 = vpop.f32.mrf.mxu2 }
 0x6be   :  { %v11213_v57 = vpop.eup %7501  ;;  %14048 = vst [vmem:[#allocation110_spill] sm:$0xff] %v11261_v59  ;;  %v11289_v7 = vadd.f32 %v10846_v15, %v3000_v28  ;;  %v147_v28 = vld [vmem:[%s13676_s0 + $0x3b0] sm:$0xff] }
 0x6bf   :  { %2462 = vrot.lane.b32.xlu2 %v2107_v43, %s7855_s29  ;;  %7240 = vmatmul.msk.f32.gmra.mxu3 %vm3198_vm4, %v11213_v57  ;;  %v11227_v61 = vpop.eup %7503  ;;  %v3813_v38 = vmul.f32 1.442695, %v3634_v35  ;;  %14045 = vst [vmem:[#allocation72_spill] sm:$0xff] %v11246_v48  ;;  %v2111_v50 = vmax.f32 %v11246_v48, 0.0  ;;  %v1069_v35 = vmax.f32 %v901_v56, 0.0 }
 0x6c0   :  { %6924 = vmatmul.msk.f32.gmra.mxu0 %vm171_vm0, %v145_v52  ;;  %v11248_v42 = vpop.eup %7505  ;;  %v1068_v52 = vmax.f32 %v898_v29, 0.0 }
 0x6c1   :  { %7507 = vpow2.f32 %v3813_v38  ;;  %v3379_v38 = vsel %vm3198_vm4, %v11277_v55, -inf }
 0x6c2   :  { %v1196_v31 = vsel %vm959_vm1, %v1068_v52, %v898_v29 }
 0x6c3   :  { %7044 = vmatmul.msk.f32.gmra.mxu1 %vm1232_vm2, %v1196_v31  ;;  %v3385_v31 = vsel %vm3198_vm4, %v11289_v7, -inf }
 0x6c4   :  { %5738 = vrot.lane.b32.xlu1 %v11119_v14, %s7854_s15  ;;  %v2109_v14 = vmax.f32 %v11230_v34, 0.0  ;;  %v11253_v51 = vpop.permute.xlu2 %5722 }
 0x6c5   :  { %14046 = vst [vmem:[#allocation42_spill] sm:$0xff] %v11253_v51  ;;  %v2453_v43 = vpop.permute.xlu0 %2452  ;;  %v3003_v60 = vpop.f32.mrf.mxu2 }
 0x6c7   :  { %7241 = vmatmul.msk.f32.gmra.mxu3 %vm3198_vm4, %v11227_v61  ;;  %v11257_v8 = vpop.eup %7507 }
 0x6c8   :  { %6925 = vmatmul.msk.f32.gmra.mxu0 %vm171_vm0, %v146_v62  ;;  %14047 = vst [vmem:[#allocation39_spill] sm:$0xff] %v11257_v8 }
 0x6c9   :  { %v903_v62 = vpop.f32.mrf.mxu0 }
 0x6ca   :  { %v904_v19 = vadd.f32 %v10652_v0, %v903_v62  ;;  %v11305_v62 = vadd.f32 %v10917_v4, %v11218_v25  ;;  %v148_v25 = vld [vmem:[%s13676_s0 + $0x3b8] sm:$0xff] }
 0x6cb   :  { %5742 = vrot.lane.b32.xlu0 %v901_v56, %s7854_s15  ;;  %v11242_v17 = vpop.permute.xlu1 %5720 }
 0x6cc   :  { %14044 = vst [vmem:[#allocation40_spill] sm:$0xff] %v11242_v17  ;;  %2466 = vrot.lane.b32.xlu1 %v2109_v14, %s7855_s29  ;;  %v2451_v44 = vpop.permute.xlu2 %2450  ;;  %v1197_v14 = vsel %vm959_vm1, %v1069_v35, %v901_v56  ;;  %v1916_v56 = vpop.f32.mrf.mxu1 }
 0x6cd   :  { %7045 = vmatmul.msk.f32.gmra.mxu1 %vm1232_vm2, %v1197_v14  ;;  %14049 = vst [vmem:[#allocation111_spill] sm:$0xff] %v11305_v62 }
 0x6cf   :  { %7242 = vmatmul.msk.f32.gmra.mxu3 %vm3198_vm4, %v11248_v42 }
 0x6d0   :  { %6926 = vmatmul.msk.f32.gmra.mxu0 %vm171_vm0, %v147_v28 }
 0x6d3   :  { %2470 = vrot.lane.b32.xlu0 %v2111_v50, %s7855_s29  ;;  %v2449_v45 = vpop.permute.xlu1 %2448  ;;  %v1070_v50 = vmax.f32 %v904_v19, 0.0 }
 0x6d4   :  { %7146 = vmatmul.msk.f32.gmra.mxu2 %vm2540_vm3, %v2449_v45  ;;  %v3363_v45 = vpop.xlane.xlu0 %3362 }
 0x6d7   :  { %7243 = vmatmul.msk.f32.gmra.mxu3 %vm3198_vm4, %v11257_v8  ;;  %v11617_v33 = vpop.f32.mrf.mxu3  ;;  %v14147_v8 = vld [vmem:[#allocation45_spill] sm:$0xff] }
 0x6d8   :  { %6927 = vmatmul.msk.f32.gmra.mxu0 %vm171_vm0, %v148_v25 }
 0x6dc   :  { %7147 = vmatmul.msk.f32.gmra.mxu2 %vm2540_vm3, %v2451_v44  ;;  %v11286_v44 = vadd.f32 %v10846_v15, %v3003_v60  ;;  %v3366_v35 = vpop.xlane.xlu0 %3365  ;;  %v1919_v60 = vpop.f32.mrf.mxu1 }
 0x6df   :  { %v906_v52 = vpop.f32.mrf.mxu0 }
 0x6e4   :  { %7148 = vmatmul.msk.f32.gmra.mxu2 %vm2540_vm3, %v2453_v43  ;;  %v1198_v43 = vsel %vm959_vm1, %v1070_v50, %v904_v19  ;;  %v11310_v51 = vpop.permute.xlu0 %5730  ;;  %v1922_v28 = vpop.f32.mrf.mxu1 }
 0x6e5   :  { %7046 = vmatmul.msk.f32.gmra.mxu1 %vm1232_vm2, %v1198_v43  ;;  %14050 = vst [vmem:[#allocation112_spill] sm:$0xff] %v11310_v51 }
 0x6e8   :  { %3374 = vmax.xlane.f32.xlu2 %v3373_v3  ;;  %v3388_v3 = vsel %vm3198_vm4, %v11286_v44, -inf }
 0x6f6   :  { %3380 = vmax.xlane.f32.xlu1 %v3379_v38 }
 0x6fd   :  { %3389 = vmax.xlane.f32.xlu0 %v3388_v3  ;;  %v909_v3 = vpop.f32.mrf.mxu0 }
 0x6fe   :  { %3386 = vmax.xlane.f32.xlu1 %v3385_v31  ;;  %v3360_v50 = vpop.xlane.xlu1 %3359  ;;  %v2110_v31 = vmax.f32 %v11305_v62, 0.0 }
 0x700   :  { %5740 = vrot.lane.b32.xlu2 %v898_v29, %s7854_s15  ;;  %v3636_v29 = vsub.f32 %v11050_v39, %v3360_v50  ;;  %v11323_v39 = vadd.f32 %v10652_v0, %v909_v3  ;;  %v3637_v50 = vsub.f32 %v10751_v2, %v3363_v45  ;;  %v11342_v45 = vadd.f32 %v10917_v4, %v1922_v28 }
 0x701   :  { %v11358_v28 = vadd.f32 %v10917_v4, %v1916_v56 }
 0x702   :  { %v3357_v14 = vpop.xlane.xlu2 %3356  ;;  %v3819_v2 = vmul.f32 1.442695, %v3637_v50  ;;  %14052 = vst [vmem:[#allocation114_spill] sm:$0xff] %v11342_v45 }
 0x703   :  { %v3635_v38 = vsub.f32 %v11064_v9, %v3357_v14  ;;  %v3817_v9 = vmul.f32 1.442695, %v3636_v29  ;;  %v11318_v14 = vadd.f32 %v10652_v0, %v906_v52  ;;  %v11339_v0 = vadd.f32 %v10917_v4, %v1919_v60  ;;  %v2459_v52 = vpop.permute.xlu0 %2458  ;;  %v11346_v29 = vpop.f32.mrf.mxu1  ;;  %14054 = vst [vmem:[#allocation116_spill] sm:$0xff] %v11358_v28 }
 0x704   :  { %v3638_v60 = vsub.f32 %v10784_v6, %v3366_v35  ;;  %v11366_v6 = vld [vmem:[%s13675_s2] ss:$0 sm:$0xff]  ;;  %v2112_v56 = vmax.f32 %v11358_v28, 0.0 }
 0x705   :  { %v3815_v43 = vmul.f32 1.442695, %v3635_v38  ;;  %14051 = vst [vmem:[#allocation113_spill] sm:$0xff] %v11339_v0  ;;  %v2113_v25 = vmax.f32 %v11339_v0, 0.0 }
 0x706   :  { %v3821_v51 = vmul.f32 1.442695, %v3638_v60 }
 0x707   :  { %7509 = vpow2.f32 %v3815_v43  ;;  %v11328_v43 = vpop.f32.mrf.mxu0 }
 0x708   :  { %2468 = vrot.lane.b32.xlu2 %v2110_v31, %s7855_s29  ;;  %7511 = vpow2.f32 %v3817_v9  ;;  %v149_v31 = vld [vmem:[%s13676_s0 + $0x3c0] sm:$0xff] }
 0x709   :  { %6928 = vmatmul.msk.f32.gmra.mxu0 %vm171_vm0, %v149_v31  ;;  %7513 = vpow2.f32 %v3819_v2  ;;  %v2114_v31 = vmax.f32 %v11342_v45, 0.0 }
 0x70a   :  { %v11361_v59 = vpop.permute.xlu2 %5728  ;;  %7515 = vpow2.f32 %v3821_v51 }
 0x70b   :  { %v3369_v17 = vpop.xlane.xlu0 %3368  ;;  %14055 = vst [vmem:[#allocation117_spill] sm:$0xff] %v11361_v59 }
 0x70c   :  { %v3639_v60 = vsub.f32 %v10924_v26, %v3369_v17 }
 0x70d   :  { %v11320_v38 = vpop.eup %7509 }
 0x70e   :  { %7244 = vmatmul.msk.f32.gmra.mxu3 %vm3198_vm4, %v11320_v38  ;;  %v11344_v3 = vpop.eup %7511  ;;  %v3823_v59 = vmul.f32 1.442695, %v3639_v60 }
 0x70f   :  { %v915_v50 = vpop.f32.mrf.mxu0 }
 0x710   :  { %5746 = vrot.lane.b32.xlu2 %v11318_v14, %s7854_s15  ;;  %v11369_v35 = vadd.f32 %v11366_v6, %v915_v50  ;;  %v3006_v50 = vpop.f32.mrf.mxu2  ;;  %7517 = vpow2.f32 %v3823_v59  ;;  %v1071_v59 = vmax.f32 %v11318_v14, 0.0 }
 0x711   :  { %5748 = vrot.lane.b32.xlu0 %v11323_v39, %s7854_s15 }
 0x712   :  { %v2457_v45 = vpop.permute.xlu2 %2456 }
 0x716   :  { %7245 = vmatmul.msk.f32.gmra.mxu3 %vm3198_vm4, %v11344_v3  ;;  %v11351_v9 = vpop.permute.xlu1 %5726 }
 0x717   :  { %14053 = vst [vmem:[#allocation115_spill] sm:$0xff] %v11351_v9  ;;  %5744 = vrot.lane.b32.xlu1 %v904_v19, %s7854_s15  ;;  %v11371_v19 = vpop.eup %7513  ;;  %v3372_v9 = vpop.xlane.xlu0 %3371 }
 0x718   :  { %2474 = vrot.lane.b32.xlu2 %v2113_v25, %s7855_s29  ;;  %14056 = vst [vmem:[#allocation118_spill] sm:$0xff] %v11371_v19  ;;  %v1928_v25 = vpop.f32.mrf.mxu1  ;;  %v11384_v12 = vpop.eup %7515  ;;  %v3640_v26 = vsub.f32 %v10963_v27, %v3372_v9  ;;  %v1199_v27 = vsel %vm959_vm1, %v1071_v59, %v11318_v14 }
 0x719   :  { %2476 = vrot.lane.b32.xlu0 %v2114_v31, %s7855_s29  ;;  %v11382_v31 = vadd.f32 %v10917_v4, %v1928_v25  ;;  %v3009_v25 = vpop.f32.mrf.mxu2  ;;  %7047 = vmatmul.msk.f32.gmra.mxu1 %vm1232_vm2, %v1199_v27 }
 0x71a   :  { %v3825_v17 = vmul.f32 1.442695, %v3640_v26  ;;  %v11400_v60 = vpop.permute.xlu2 %5734  ;;  %v11423_v59 = vadd.f32 %v10846_v15, %v3009_v25 }
 0x71b   :  { %14057 = vst [vmem:[#allocation119_spill] sm:$0xff] %v11382_v31  ;;  %v2116_v51 = vmax.f32 %v11382_v31, 0.0 }
 0x71c   :  { %7519 = vpow2.f32 %v3825_v17  ;;  %14059 = vst [vmem:[#allocation121_spill] sm:$0xff] %v11400_v60  ;;  %v913_v17 = vadd.f32 %v11366_v6, %v11328_v43  ;;  %v11429_v43 = vadd.f32 %v10846_v15, %v3006_v50 }
 0x71e   :  { %7246 = vmatmul.msk.f32.gmra.mxu3 %vm3198_vm4, %v11371_v19  ;;  %v2455_v2 = vpop.permute.xlu1 %2454 }
 0x71f   :  { %2472 = vrot.lane.b32.xlu1 %v2112_v56, %s7855_s29  ;;  %7149 = vmatmul.msk.f32.gmra.mxu2 %vm2540_vm3, %v2455_v2  ;;  %v11394_v2 = vpop.eup %7517  ;;  %v11414_v26 = vpop.permute.xlu0 %5736 }
 0x720   :  { %5752 = vrot.lane.b32.xlu2 %v11369_v35, %s7854_s15  ;;  %14061 = vst [vmem:[#allocation123_spill] sm:$0xff] %v11414_v26 }
 0x722   :  { %v2463_v27 = vpop.permute.xlu2 %2462 }
 0x726   :  { %7247 = vmatmul.msk.f32.gmra.mxu3 %vm3198_vm4, %v11384_v12  ;;  %v11392_v56 = vpop.permute.xlu1 %5732 }
 0x727   :  { %7150 = vmatmul.msk.f32.gmra.mxu2 %vm2540_vm3, %v2457_v45  ;;  %14058 = vst [vmem:[#allocation120_spill] sm:$0xff] %v11392_v56  ;;  %v11405_v45 = vpop.eup %7519  ;;  %v3394_v56 = vsel %vm3198_vm4, %v11423_v59, -inf }
 0x728   :  { %2480 = vrot.lane.b32.xlu2 %v2116_v51, %s7855_s29  ;;  %14060 = vst [vmem:[#allocation122_spill] sm:$0xff] %v11405_v45  ;;  %v11410_v51 = vpop.f32.mrf.mxu2 }
 0x72e   :  { %7248 = vmatmul.msk.f32.gmra.mxu3 %vm3198_vm4, %v11394_v2  ;;  %v2461_v9 = vpop.permute.xlu1 %2460 }
 0x72f   :  { %7151 = vmatmul.msk.f32.gmra.mxu2 %vm2540_vm3, %v2459_v52  ;;  %v1072_v52 = vmax.f32 %v11323_v39, 0.0 }
 0x730   :  { %v3015_v60 = vpop.f32.mrf.mxu2 }
 0x731   :  { %v1200_v14 = vsel %vm959_vm1, %v1072_v52, %v11323_v39  ;;  %v11437_v25 = vadd.f32 %v10846_v15, %v3015_v60  ;;  %v2465_v52 = vpop.permute.xlu0 %2464 }
 0x732   :  { %7048 = vmatmul.msk.f32.gmra.mxu1 %vm1232_vm2, %v1200_v14  ;;  %v3391_v14 = vsel %vm3198_vm4, %v11429_v43, -inf }
 0x733   :  { %v3400_v50 = vsel %vm3198_vm4, %v11437_v25, -inf }
 0x736   :  { %7249 = vmatmul.msk.f32.gmra.mxu3 %vm3198_vm4, %v11405_v45  ;;  %v11431_v26 = vpop.permute.xlu1 %5738 }
 0x737   :  { %7152 = vmatmul.msk.f32.gmra.mxu2 %vm2540_vm3, %v2461_v9  ;;  %v1073_v9 = vmax.f32 %v913_v17, 0.0  ;;  %14062 = vst [vmem:[#allocation124_spill] sm:$0xff] %v11431_v26 }
 0x739   :  { %v1201_v39 = vsel %vm959_vm1, %v1073_v9, %v913_v17 }
 0x73a   :  { %7049 = vmatmul.msk.f32.gmra.mxu1 %vm1232_vm2, %v1201_v39  ;;  %v918_v39 = vpop.f32.mrf.mxu0 }
 0x73e   :  { %v2467_v60 = vpop.permute.xlu1 %2466 }
 0x73f   :  { %7153 = vmatmul.msk.f32.gmra.mxu2 %vm2540_vm3, %v2463_v27  ;;  %v150_v27 = vld [vmem:[%s13676_s0 + $0x3c8] sm:$0xff] }
 0x740   :  { %6929 = vmatmul.msk.f32.gmra.mxu0 %vm171_vm0, %v150_v27  ;;  %v152_v27 = vld [vmem:[%s13676_s0 + $0x3d8] sm:$0xff] }
 0x742   :  { %v921_v26 = vpop.f32.mrf.mxu0 }
 0x743   :  { %3395 = vmax.xlane.f32.xlu0 %v3394_v56  ;;  %v3018_v56 = vpop.f32.mrf.mxu2 }
 0x744   :  { %v11448_v9 = vadd.f32 %v10846_v15, %v3018_v56  ;;  %v1074_v15 = vmax.f32 %v11369_v35, 0.0  ;;  %v3378_v56 = vpop.xlane.xlu0 %3377 }
 0x745   :  { %v3642_v28 = vsub.f32 %v11163_v49, %v3378_v56 }
 0x747   :  { %7154 = vmatmul.msk.f32.gmra.mxu2 %vm2540_vm3, %v2465_v52  ;;  %v3403_v52 = vsel %vm3198_vm4, %v11448_v9, -inf }
 0x749   :  { %3392 = vmax.xlane.f32.xlu1 %v3391_v14  ;;  %v151_v14 = vld [vmem:[%s13676_s0 + $0x3d0] sm:$0xff] }
 0x74a   :  { %6930 = vmatmul.msk.f32.gmra.mxu0 %vm171_vm0, %v151_v14 }
 0x74b   :  { %3401 = vmax.xlane.f32.xlu0 %v3400_v50  ;;  %v1931_v50 = vpop.f32.mrf.mxu1 }
 0x74c   :  { %v3384_v62 = vpop.xlane.xlu0 %3383 }
 0x74f   :  { %7155 = vmatmul.msk.f32.gmra.mxu2 %vm2540_vm3, %v2467_v60  ;;  %v919_v60 = vadd.f32 %v11366_v6, %v918_v39  ;;  %v11474_v39 = vadd.f32 %v10917_v4, %v1931_v50 }
 0x751   :  { %3404 = vmax.xlane.f32.xlu2 %v3403_v52  ;;  %v1202_v52 = vsel %vm959_vm1, %v1074_v15, %v11369_v35  ;;  %14063 = vst [vmem:[#allocation125_spill] sm:$0xff] %v11474_v39  ;;  %v924_v35 = vpop.f32.mrf.mxu0  ;;  %v2117_v15 = vmax.f32 %v11474_v39, 0.0 }
 0x752   :  { %6931 = vmatmul.msk.f32.gmra.mxu0 %vm171_vm0, %v152_v27  ;;  %7050 = vmatmul.msk.f32.gmra.mxu1 %vm1232_vm2, %v1202_v52  ;;  %v11485_v27 = vadd.f32 %v11366_v6, %v924_v35 }
 0x753   :  { %v11470_v0 = vpop.f32.mrf.mxu1 }
 0x754   :  { %v11493_v56 = vpop.permute.xlu0 %5742 }
 0x755   :  { %14067 = vst [vmem:[#allocation129_spill] sm:$0xff] %v11493_v56  ;;  %v922_v56 = vadd.f32 %v11366_v6, %v921_v26 }
 0x75b   :  { %v3375_v48 = vpop.xlane.xlu2 %3374  ;;  %v1937_v50 = vpop.f32.mrf.mxu1 }
 0x75c   :  { %v3641_v31 = vsub.f32 %v11266_v63, %v3375_v48  ;;  %v11481_v63 = vadd.f32 %v10917_v4, %v11346_v29  ;;  %v11500_v52 = vadd.f32 %v10917_v4, %v1937_v50  ;;  %v11512_v4 = vpop.f32.mrf.mxu2 }
 0x75e   :  { %v3827_v14 = vmul.f32 1.442695, %v3641_v31  ;;  %14065 = vst [vmem:[#allocation127_spill] sm:$0xff] %v11481_v63  ;;  %v3829_v31 = vmul.f32 1.442695, %v3642_v28 }
 0x75f   :  { %5754 = vrot.lane.b32.xlu0 %v919_v60, %s7854_s15  ;;  %14068 = vst [vmem:[#allocation130_spill] sm:$0xff] %v11500_v52 }
 0x760   :  { %7521 = vpow2.f32 %v3827_v14 }
 0x761   :  { %7523 = vpow2.f32 %v3829_v31  ;;  %v2119_v31 = vmax.f32 %v11500_v52, 0.0  ;;  %v1077_v52 = vmax.f32 %v11485_v27, 0.0 }
 0x762   :  { %5750 = vrot.lane.b32.xlu1 %v913_v17, %s7854_s15  ;;  %v2115_v17 = vmax.f32 %v11481_v63, 0.0 }
 0x763   :  { %v11477_v48 = vpop.permute.xlu2 %5740 }
 0x764   :  { %14064 = vst [vmem:[#allocation126_spill] sm:$0xff] %v11477_v48  ;;  %v3644_v48 = vsub.f32 %v11180_v20, %v3384_v62 }
 0x766   :  { %v11487_v49 = vpop.eup %7521  ;;  %v3833_v50 = vmul.f32 1.442695, %v3644_v48  ;;  %v1075_v48 = vmax.f32 %v919_v60, 0.0 }
 0x767   :  { %14066 = vst [vmem:[#allocation128_spill] sm:$0xff] %v11487_v49  ;;  %2482 = vrot.lane.b32.xlu0 %v2117_v15, %s7855_s29  ;;  %7250 = vmatmul.msk.f32.gmra.mxu3 %vm3198_vm4, %v11487_v49  ;;  %v11503_v15 = vpop.eup %7523 }
 0x768   :  { %14069 = vst [vmem:[#allocation131_spill] sm:$0xff] %v11503_v15 }
 0x769   :  { %5758 = vrot.lane.b32.xlu2 %v11485_v27, %s7854_s15  ;;  %v3381_v29 = vpop.xlane.xlu1 %3380 }
 0x76a   :  { %v3643_v28 = vsub.f32 %v11277_v55, %v3381_v29  ;;  %2478 = vrot.lane.b32.xlu1 %v2115_v17, %s7855_s29  ;;  %v2471_v55 = vpop.permute.xlu0 %2470 }
 0x76b   :  { %v2469_v14 = vpop.permute.xlu2 %2468 }
 0x76c   :  { %v3831_v35 = vmul.f32 1.442695, %v3643_v28  ;;  %7156 = vmatmul.msk.f32.gmra.mxu2 %vm2540_vm3, %v2469_v14 }
 0x76e   :  { %7525 = vpow2.f32 %v3831_v35 }
 0x76f   :  { %7251 = vmatmul.msk.f32.gmra.mxu3 %vm3198_vm4, %v11503_v15  ;;  %7527 = vpow2.f32 %v3833_v50  ;;  %v3024_v50 = vpop.f32.mrf.mxu2 }
 0x771   :  { %2486 = vrot.lane.b32.xlu2 %v2119_v31, %s7855_s29  ;;  %v3387_v29 = vpop.xlane.xlu1 %3386 }
 0x772   :  { %v3645_v28 = vsub.f32 %v11289_v7, %v3387_v29  ;;  %v3390_v35 = vpop.xlane.xlu0 %3389  ;;  %v1203_v7 = vsel %vm959_vm1, %v1075_v48, %v919_v60 }
 0x773   :  { %v3646_v62 = vsub.f32 %v11286_v44, %v3390_v35  ;;  %7051 = vmatmul.msk.f32.gmra.mxu1 %vm1232_vm2, %v1203_v7  ;;  %v1076_v44 = vmax.f32 %v922_v56, 0.0  ;;  %v11547_v35 = vpop.permute.xlu2 %5746 }
 0x774   :  { %v11510_v17 = vpop.eup %7525  ;;  %7157 = vmatmul.msk.f32.gmra.mxu2 %vm2540_vm3, %v2471_v55  ;;  %v3835_v14 = vmul.f32 1.442695, %v3645_v28  ;;  %v11536_v28 = vld [vmem:[%s13680_s6] ss:$0 sm:$0xff]  ;;  %14075 = vst [vmem:[#allocation137_spill] sm:$0xff] %v11547_v35 }
 0x775   :  { %14070 = vst [vmem:[#allocation132_spill] sm:$0xff] %v11510_v17  ;;  %v11518_v20 = vpop.eup %7527  ;;  %v3837_v31 = vmul.f32 1.442695, %v3646_v62  ;;  %v11539_v26 = vadd.f32 %v11536_v28, %v3024_v50  ;;  %v11545_v60 = vadd.f32 %v11536_v28, %v11410_v51  ;;  %v1204_v62 = vsel %vm959_vm1, %v1076_v44, %v922_v56  ;;  %v153_v51 = vld [vmem:[%s13676_s0 + $0x3e0] sm:$0xff] }
 0x776   :  { %14071 = vst [vmem:[#allocation133_spill] sm:$0xff] %v11518_v20  ;;  %7529 = vpow2.f32 %v3835_v14  ;;  %6932 = vmatmul.msk.f32.gmra.mxu0 %vm171_vm0, %v153_v51  ;;  %v1940_v51 = vpop.f32.mrf.mxu1 }
 0x777   :  { %7252 = vmatmul.msk.f32.gmra.mxu3 %vm3198_vm4, %v11510_v17  ;;  %7531 = vpow2.f32 %v3837_v31  ;;  %v3409_v48 = vsel %vm3198_vm4, %v11539_v26, -inf  ;;  %v3027_v7 = vpop.f32.mrf.mxu2  ;;  %v3397_v50 = vsel %vm3198_vm4, %v11545_v60, -inf }
 0x778   :  { %v11564_v44 = vadd.f32 %v11536_v28, %v3027_v7 }
 0x77b   :  { %7052 = vmatmul.msk.f32.gmra.mxu1 %vm1232_vm2, %v1204_v62  ;;  %v927_v62 = vpop.f32.mrf.mxu0 }
 0x77c   :  { %v11523_v55 = vpop.eup %7529  ;;  %v928_v7 = vadd.f32 %v11366_v6, %v927_v62  ;;  %v11591_v62 = vld [vmem:[%s13678_s4] ss:$0 sm:$0xff] }
 0x77d   :  { %14072 = vst [vmem:[#allocation134_spill] sm:$0xff] %v11523_v55  ;;  %v11541_v14 = vpop.eup %7531 }
 0x77e   :  { %14074 = vst [vmem:[#allocation136_spill] sm:$0xff] %v11541_v14 }
 0x77f   :  { %7253 = vmatmul.msk.f32.gmra.mxu3 %vm3198_vm4, %v11518_v20 }
 0x783   :  { %v11566_v35 = vpop.permute.xlu0 %5748  ;;  %v930_v39 = vpop.f32.mrf.mxu0 }
 0x784   :  { %14076 = vst [vmem:[#allocation138_spill] sm:$0xff] %v11566_v35  ;;  %v11576_v35 = vpop.f32.mrf.mxu2 }
 0x787   :  { %7254 = vmatmul.msk.f32.gmra.mxu3 %vm3198_vm4, %v11523_v55 }
 0x789   :  { %v11531_v29 = vpop.permute.xlu1 %5744 }
 0x78a   :  { %14073 = vst [vmem:[#allocation135_spill] sm:$0xff] %v11531_v29  ;;  %v3412_v29 = vsel %vm3198_vm4, %v11564_v44, -inf }
 0x78b   :  { %v933_v34 = vpop.f32.mrf.mxu0 }
 0x78f   :  { %7255 = vmatmul.msk.f32.gmra.mxu3 %vm3198_vm4, %v11541_v14 }
 0x791   :  { %3410 = vmax.xlane.f32.xlu0 %v3409_v48  ;;  %v2473_v31 = vpop.permute.xlu1 %2472  ;;  %v2475_v48 = vpop.permute.xlu2 %2474 }
 0x792   :  { %7158 = vmatmul.msk.f32.gmra.mxu2 %vm2540_vm3, %v2473_v31  ;;  %v154_v31 = vld [vmem:[%s13676_s0 + $0x3e8] sm:$0xff] }
 0x793   :  { %6933 = vmatmul.msk.f32.gmra.mxu0 %vm171_vm0, %v154_v31  ;;  %v11594_v31 = vadd.f32 %v11591_v62, %v1940_v51 }
 0x794   :  { %3398 = vmax.xlane.f32.xlu1 %v3397_v50  ;;  %v2477_v50 = vpop.permute.xlu0 %2476 }
 0x795   :  { %14077 = vst [vmem:[#allocation139_spill] sm:$0xff] %v11594_v31  ;;  %v2120_v63 = vmax.f32 %v11594_v31, 0.0 }
 0x79a   :  { %3413 = vmax.xlane.f32.xlu2 %v3412_v29  ;;  %7159 = vmatmul.msk.f32.gmra.mxu2 %vm2540_vm3, %v2475_v48  ;;  %v155_v29 = vld [vmem:[%s13676_s0 + $0x3f0] sm:$0xff]  ;;  %v1205_v48 = vsel %vm959_vm1, %v1077_v52, %v11485_v27  ;;  %v934_v27 = vadd.f32 %v11366_v6, %v933_v34  ;;  %v11605_v52 = vadd.f32 %v11591_v62, %v11470_v0 }
 0x79b   :  { %6934 = vmatmul.msk.f32.gmra.mxu0 %vm171_vm0, %v155_v29  ;;  %7053 = vmatmul.msk.f32.gmra.mxu1 %vm1232_vm2, %v1205_v48 }
 0x79c   :  { %14078 = vst [vmem:[#allocation140_spill] sm:$0xff] %v11605_v52  ;;  %v2118_v51 = vmax.f32 %v11605_v52, 0.0 }
 0x7a2   :  { %7160 = vmatmul.msk.f32.gmra.mxu2 %vm2540_vm3, %v2477_v50  ;;  %v11597_v50 = vpop.f32.mrf.mxu1 }
 0x7a5   :  { %5760 = vrot.lane.b32.xlu0 %v928_v7, %s7854_s15 }
 0x7aa   :  { %v1946_v29 = vpop.f32.mrf.mxu1 }
 0x7ab   :  { %v11610_v48 = vadd.f32 %v11591_v62, %v1946_v29  ;;  %v1078_v29 = vmax.f32 %v928_v7, 0.0 }
 0x7ad   :  { %2488 = vrot.lane.b32.xlu0 %v2120_v63, %s7855_s29  ;;  %5756 = vrot.lane.b32.xlu1 %v922_v56, %s7854_s15  ;;  %14079 = vst [vmem:[#allocation141_spill] sm:$0xff] %v11610_v48  ;;  %v2122_v63 = vmax.f32 %v11610_v48, 0.0  ;;  %v11625_v48 = vpop.f32.mrf.mxu3 }
 0x7b2   :  { %5764 = vrot.lane.b32.xlu2 %v934_v27, %s7854_s15 }
 0x7b5   :  { %2484 = vrot.lane.b32.xlu1 %v2118_v51, %s7855_s29 }
 0x7b6   :  { %v3396_v31 = vpop.xlane.xlu0 %3395 }
 0x7b7   :  { %v3648_v10 = vsub.f32 %v11423_v59, %v3396_v31 }
 0x7b9   :  { %v3841_v32 = vmul.f32 1.442695, %v3648_v10  ;;  %v931_v10 = vadd.f32 %v11366_v6, %v930_v39  ;;  %v11646_v39 = vadd.f32 %v11536_v28, %v11512_v4 }
 0x7ba   :  { %2492 = vrot.lane.b32.xlu2 %v2122_v63, %s7855_s29  ;;  %v3033_v63 = vpop.f32.mrf.mxu2 }
 0x7bb   :  { %v11630_v59 = vadd.f32 %v11536_v28, %v3033_v63  ;;  %v1079_v31 = vmax.f32 %v931_v10, 0.0 }
 0x7bc   :  { %v3393_v56 = vpop.xlane.xlu1 %3392 }
 0x7bd   :  { %v3647_v34 = vsub.f32 %v11429_v43, %v3393_v56  ;;  %v1206_v43 = vsel %vm959_vm1, %v1078_v29, %v928_v7  ;;  %v3418_v56 = vsel %vm3198_vm4, %v11630_v59, -inf  ;;  %v11648_v7 = vpop.permute.xlu2 %5752  ;;  %v1207_v29 = vsel %vm959_vm1, %v1079_v31, %v931_v10  ;;  %v936_v4 = vpop.f32.mrf.mxu0 }
 0x7be   :  { %7054 = vmatmul.msk.f32.gmra.mxu1 %vm1232_vm2, %v1206_v43  ;;  %14083 = vst [vmem:[#allocation145_spill] sm:$0xff] %v11648_v7 }
 0x7bf   :  { %v3839_v0 = vmul.f32 1.442695, %v3647_v34  ;;  %v156_v34 = vld [vmem:[%s13676_s0 + $0x3f8] sm:$0xff] }
 0x7c0   :  { %6935 = vmatmul.msk.f32.gmra.mxu0 %vm171_vm0, %v156_v34  ;;  %v3406_v34 = vsel %vm3198_vm4, %v11646_v39, -inf }
 0x7c1   :  { %7533 = vpow2.f32 %v3839_v0  ;;  %v3402_v0 = vpop.xlane.xlu0 %3401 }
 0x7c2   :  { %7535 = vpow2.f32 %v3841_v32  ;;  %v3036_v63 = vpop.f32.mrf.mxu2 }
 0x7c5   :  { %v2481_v31 = vpop.permute.xlu2 %2480 }
 0x7c6   :  { %7055 = vmatmul.msk.f32.gmra.mxu1 %vm1232_vm2, %v1207_v29  ;;  %v1949_v29 = vpop.f32.mrf.mxu1 }
 0x7c7   :  { %v11619_v52 = vpop.eup %7533  ;;  %v939_v54 = vpop.f32.mrf.mxu0 }
 0x7c8   :  { %14080 = vst [vmem:[#allocation142_spill] sm:$0xff] %v11619_v52  ;;  %7256 = vmatmul.msk.f32.gmra.mxu3 %vm3198_vm4, %v11619_v52  ;;  %v11623_v51 = vpop.eup %7535 }
 0x7c9   :  { %14081 = vst [vmem:[#allocation143_spill] sm:$0xff] %v11623_v51 }
 0x7ca   :  { %v11666_v11 = vpop.f32.mrf.mxu2 }
 0x7d0   :  { %7257 = vmatmul.msk.f32.gmra.mxu3 %vm3198_vm4, %v11623_v51 }
 0x7d4   :  { %v11636_v32 = vpop.permute.xlu1 %5750 }
 0x7d5   :  { %14082 = vst [vmem:[#allocation144_spill] sm:$0xff] %v11636_v32  ;;  %v11659_v32 = vpop.permute.xlu0 %5754 }
 0x7d6   :  { %14084 = vst [vmem:[#allocation146_spill] sm:$0xff] %v11659_v32  ;;  %v11674_v32 = vpop.f32.mrf.mxu1 }
 0x7d7   :  { %3419 = vmax.xlane.f32.xlu0 %v3418_v56  ;;  %v11655_v56 = vadd.f32 %v11536_v28, %v3036_v63  ;;  %v1080_v63 = vmax.f32 %v934_v27, 0.0 }
 0x7d9   :  { %v3421_v7 = vsel %vm3198_vm4, %v11655_v56, -inf }
 0x7dc   :  { %v2479_v43 = vpop.permute.xlu1 %2478 }
 0x7dd   :  { %7161 = vmatmul.msk.f32.gmra.mxu2 %vm2540_vm3, %v2479_v43  ;;  %v937_v43 = vadd.f32 %v11366_v6, %v936_v4  ;;  %v2483_v53 = vpop.permute.xlu0 %2482 }
 0x7df   :  { %3407 = vmax.xlane.f32.xlu1 %v3406_v34  ;;  %v11669_v34 = vadd.f32 %v11591_v62, %v1949_v29  ;;  %v1955_v29 = vpop.f32.mrf.mxu1 }
 0x7e1   :  { %14085 = vst [vmem:[#allocation147_spill] sm:$0xff] %v11669_v34  ;;  %v2123_v4 = vmax.f32 %v11669_v34, 0.0  ;;  %v11698_v34 = vpop.f32.mrf.mxu3 }
 0x7e3   :  { %3422 = vmax.xlane.f32.xlu2 %v3421_v7  ;;  %v1208_v7 = vsel %vm959_vm1, %v1080_v63, %v934_v27  ;;  %v11690_v27 = vadd.f32 %v11591_v62, %v1955_v29  ;;  %v3405_v29 = vpop.xlane.xlu2 %3404 }
 0x7e4   :  { %7056 = vmatmul.msk.f32.gmra.mxu1 %vm1232_vm2, %v1208_v7 }
 0x7e5   :  { %7162 = vmatmul.msk.f32.gmra.mxu2 %vm2540_vm3, %v2481_v31  ;;  %v942_v31 = vpop.f32.mrf.mxu0  ;;  %14087 = vst [vmem:[#allocation149_spill] sm:$0xff] %v11690_v27  ;;  %v2125_v7 = vmax.f32 %v11690_v27, 0.0  ;;  %v1081_v27 = vmax.f32 %v937_v43, 0.0 }
 0x7e6   :  { %v11680_v30 = vadd.f32 %v11366_v6, %v942_v31  ;;  %v3650_v31 = vsub.f32 %v11437_v25, %v3402_v0 }
 0x7e7   :  { %v1209_v0 = vsel %vm959_vm1, %v1081_v27, %v937_v43 }
 0x7e8   :  { %v3845_v1 = vmul.f32 1.442695, %v3650_v31 }
 0x7e9   :  { %v11708_v25 = vpop.f32.mrf.mxu3 }
 0x7eb   :  { %5766 = vrot.lane.b32.xlu0 %v937_v43, %s7854_s15 }
 0x7ec   :  { %7057 = vmatmul.msk.f32.gmra.mxu1 %vm1232_vm2, %v1209_v0 }
 0x7ed   :  { %7163 = vmatmul.msk.f32.gmra.mxu2 %vm2540_vm3, %v2483_v53  ;;  %v11685_v53 = vadd.f32 %v11591_v62, %v11597_v50 }
 0x7ef   :  { %14086 = vst [vmem:[#allocation148_spill] sm:$0xff] %v11685_v53  ;;  %v2121_v63 = vmax.f32 %v11685_v53, 0.0 }
 0x7f1   :  { %v11724_v43 = vpop.f32.mrf.mxu3 }
 0x7f3   :  { %2494 = vrot.lane.b32.xlu0 %v2123_v4, %s7855_s29 }
 0x7f8   :  { %5762 = vrot.lane.b32.xlu1 %v931_v10, %s7854_s15 }
 0x7fb   :  { %5770 = vrot.lane.b32.xlu2 %v11680_v30, %s7854_s15 }
 0x800   :  { %2490 = vrot.lane.b32.xlu1 %v2121_v63, %s7855_s29  ;;  %v3651_v63 = vsub.f32 %v11448_v9, %v3405_v29 }
 0x803   :  { %2498 = vrot.lane.b32.xlu2 %v2125_v7, %s7855_s29  ;;  %v3042_v7 = vpop.f32.mrf.mxu2 }
 0x807   :  { %v3399_v10 = vpop.xlane.xlu1 %3398 }
 0x808   :  { %v3649_v4 = vsub.f32 %v11545_v60, %v3399_v10  ;;  %v11706_v60 = vadd.f32 %v11536_v28, %v3042_v7  ;;  %v3847_v10 = vmul.f32 1.442695, %v3651_v63  ;;  %v11734_v7 = vpop.permute.xlu2 %5758 }
 0x809   :  { %14092 = vst [vmem:[#allocation154_spill] sm:$0xff] %v11734_v7 }
 0x80a   :  { %v3843_v50 = vmul.f32 1.442695, %v3649_v4  ;;  %v3427_v9 = vsel %vm3198_vm4, %v11706_v60, -inf }
 0x80b   :  { %v3045_v27 = vpop.f32.mrf.mxu2 }
 0x80c   :  { %7537 = vpow2.f32 %v3843_v50  ;;  %v11738_v0 = vadd.f32 %v11536_v28, %v3045_v27 }
 0x80d   :  { %7539 = vpow2.f32 %v3845_v1  ;;  %v940_v1 = vadd.f32 %v11366_v6, %v939_v54  ;;  %v11732_v54 = vadd.f32 %v11536_v28, %v11576_v35 }
 0x80e   :  { %7541 = vpow2.f32 %v3847_v10  ;;  %v3411_v10 = vpop.xlane.xlu0 %3410  ;;  %v3430_v35 = vsel %vm3198_vm4, %v11738_v0, -inf }
 0x80f   :  { %v1082_v31 = vmax.f32 %v940_v1, 0.0 }
 0x811   :  { %v1210_v63 = vsel %vm959_vm1, %v1082_v31, %v940_v1  ;;  %v945_v31 = vpop.f32.mrf.mxu0 }
 0x812   :  { %v11700_v14 = vpop.eup %7537  ;;  %7058 = vmatmul.msk.f32.gmra.mxu1 %vm1232_vm2, %v1210_v63  ;;  %v946_v7 = vadd.f32 %v11366_v6, %v945_v31  ;;  %v1958_v63 = vpop.f32.mrf.mxu1 }
 0x813   :  { %14088 = vst [vmem:[#allocation150_spill] sm:$0xff] %v11700_v14  ;;  %7258 = vmatmul.msk.f32.gmra.mxu3 %vm3198_vm4, %v11700_v14  ;;  %v11712_v4 = vpop.eup %7539  ;;  %v2487_v14 = vpop.permute.xlu2 %2486  ;;  %v11751_v27 = vadd.f32 %v11591_v62, %v1958_v63 }
 0x814   :  { %14089 = vst [vmem:[#allocation151_spill] sm:$0xff] %v11712_v4  ;;  %v11722_v29 = vpop.eup %7541 }
 0x815   :  { %14091 = vst [vmem:[#allocation153_spill] sm:$0xff] %v11722_v29 }
 0x816   :  { %14094 = vst [vmem:[#allocation156_spill] sm:$0xff] %v11751_v27 }
 0x817   :  { %v11745_v53 = vpop.permute.xlu0 %5760 }
 0x818   :  { %14093 = vst [vmem:[#allocation155_spill] sm:$0xff] %v11745_v53 }
 0x81b   :  { %7259 = vmatmul.msk.f32.gmra.mxu3 %vm3198_vm4, %v11712_v4  ;;  %v2126_v4 = vmax.f32 %v11751_v27, 0.0  ;;  %v3414_v51 = vpop.xlane.xlu2 %3413 }
 0x81d   :  { %3428 = vmax.xlane.f32.xlu0 %v3427_v9 }
 0x81f   :  { %v11720_v50 = vpop.permute.xlu1 %5756  ;;  %v2489_v52 = vpop.permute.xlu0 %2488 }
 0x820   :  { %14090 = vst [vmem:[#allocation152_spill] sm:$0xff] %v11720_v50  ;;  %v3415_v50 = vsel %vm3198_vm4, %v11732_v54, -inf }
 0x823   :  { %7260 = vmatmul.msk.f32.gmra.mxu3 %vm3198_vm4, %v11722_v29  ;;  %v3653_v29 = vsub.f32 %v11539_v26, %v3411_v10 }
 0x827   :  { %v2485_v9 = vpop.permute.xlu1 %2484 }
 0x828   :  { %7164 = vmatmul.msk.f32.gmra.mxu2 %vm2540_vm3, %v2485_v9  ;;  %v948_v9 = vpop.f32.mrf.mxu0 }
 0x82a   :  { %3416 = vmax.xlane.f32.xlu1 %v3415_v50  ;;  %v1083_v50 = vmax.f32 %v11680_v30, 0.0 }
 0x82c   :  { %3431 = vmax.xlane.f32.xlu2 %v3430_v35  ;;  %v11755_v35 = vpop.f32.mrf.mxu2  ;;  %v1211_v31 = vsel %vm959_vm1, %v1083_v50, %v11680_v30 }
 0x82d   :  { %7059 = vmatmul.msk.f32.gmra.mxu1 %vm1232_vm2, %v1211_v31 }
 0x830   :  { %7165 = vmatmul.msk.f32.gmra.mxu2 %vm2540_vm3, %v2487_v14  ;;  %v11761_v14 = vpop.f32.mrf.mxu1  ;;  %v951_v63 = vpop.f32.mrf.mxu0 }
 0x831   :  { %5772 = vrot.lane.b32.xlu0 %v946_v7, %s7854_s15  ;;  %v11766_v53 = vadd.f32 %v11366_v6, %v951_v63 }
 0x834   :  { %v3051_v17 = vpop.f32.mrf.mxu2 }
 0x838   :  { %7166 = vmatmul.msk.f32.gmra.mxu2 %vm2540_vm3, %v2489_v52  ;;  %v1964_v27 = vpop.f32.mrf.mxu1  ;;  %v11773_v52 = vadd.f32 %v11591_v62, %v11674_v32  ;;  %v11784_v32 = vpop.f32.mrf.mxu3 }
 0x839   :  { %2500 = vrot.lane.b32.xlu0 %v2126_v4, %s7855_s29  ;;  %v11776_v30 = vadd.f32 %v11591_v62, %v1964_v27  ;;  %v3851_v27 = vmul.f32 1.442695, %v3653_v29 }
 0x83a   :  { %14095 = vst [vmem:[#allocation157_spill] sm:$0xff] %v11773_v52  ;;  %v2124_v4 = vmax.f32 %v11773_v52, 0.0 }
 0x83b   :  { %14096 = vst [vmem:[#allocation158_spill] sm:$0xff] %v11776_v30  ;;  %v2128_v50 = vmax.f32 %v11776_v30, 0.0  ;;  %v11789_v30 = vadd.f32 %v11536_v28, %v3051_v17 }
 0x83d   :  { %v3436_v26 = vsel %vm3198_vm4, %v11789_v30, -inf }
 0x843   :  { %5768 = vrot.lane.b32.xlu1 %v940_v1, %s7854_s15 }
 0x844   :  { %5776 = vrot.lane.b32.xlu2 %v11766_v53, %s7854_s15 }
 0x84b   :  { %2496 = vrot.lane.b32.xlu1 %v2124_v4, %s7855_s29  ;;  %v1084_v4 = vmax.f32 %v946_v7, 0.0 }
 0x84c   :  { %2504 = vrot.lane.b32.xlu2 %v2128_v50, %s7855_s29  ;;  %v11798_v50 = vpop.f32.mrf.mxu3 }
 0x84d   :  { %v1212_v29 = vsel %vm959_vm1, %v1084_v4, %v946_v7 }
 0x84e   :  { %7060 = vmatmul.msk.f32.gmra.mxu1 %vm1232_vm2, %v1212_v29 }
 0x852   :  { %v3408_v31 = vpop.xlane.xlu1 %3407 }
 0x853   :  { %v3652_v1 = vsub.f32 %v11646_v39, %v3408_v31  ;;  %v3654_v39 = vsub.f32 %v11564_v44, %v3414_v51  ;;  %v949_v31 = vadd.f32 %v11366_v6, %v948_v9  ;;  %v11821_v9 = vadd.f32 %v11536_v28, %v11666_v11  ;;  %v1967_v11 = vpop.f32.mrf.mxu1 }
 0x855   :  { %v3849_v63 = vmul.f32 1.442695, %v3652_v1  ;;  %v3853_v10 = vmul.f32 1.442695, %v3654_v39  ;;  %v1085_v44 = vmax.f32 %v949_v31, 0.0  ;;  %v11816_v39 = vpop.permute.xlu2 %5764 }
 0x856   :  { %14101 = vst [vmem:[#allocation163_spill] sm:$0xff] %v11816_v39  ;;  %v11836_v39 = vadd.f32 %v11591_v62, %v1967_v11 }
 0x857   :  { %7543 = vpow2.f32 %v3849_v63  ;;  %v3054_v63 = vpop.f32.mrf.mxu2  ;;  %v1213_v7 = vsel %vm959_vm1, %v1085_v44, %v949_v31 }
 0x858   :  { %7545 = vpow2.f32 %v3851_v27  ;;  %v11810_v27 = vpop.f32.mrf.mxu3  ;;  %7061 = vmatmul.msk.f32.gmra.mxu1 %vm1232_vm2, %v1213_v7  ;;  %v11824_v4 = vadd.f32 %v11536_v28, %v3054_v63  ;;  %v3424_v7 = vsel %vm3198_vm4, %v11821_v9, -inf  ;;  %14103 = vst [vmem:[#allocation165_spill] sm:$0xff] %v11836_v39 }
 0x859   :  { %7547 = vpow2.f32 %v3853_v10  ;;  %v954_v10 = vpop.f32.mrf.mxu0 }
 0x85a   :  { %v3439_v44 = vsel %vm3198_vm4, %v11824_v4, -inf }
 0x85b   :  { %v1970_v11 = vpop.f32.mrf.mxu1 }
 0x85d   :  { %v11786_v45 = vpop.eup %7543  ;;  %v2493_v52 = vpop.permute.xlu2 %2492 }
 0x85e   :  { %14097 = vst [vmem:[#allocation159_spill] sm:$0xff] %v11786_v45  ;;  %7261 = vmatmul.msk.f32.gmra.mxu3 %vm3198_vm4, %v11786_v45  ;;  %v11801_v17 = vpop.eup %7545 }
 0x85f   :  { %14098 = vst [vmem:[#allocation160_spill] sm:$0xff] %v11801_v17  ;;  %v11808_v1 = vpop.eup %7547 }
 0x860   :  { %14100 = vst [vmem:[#allocation162_spill] sm:$0xff] %v11808_v1 }
 0x863   :  { %3437 = vmax.xlane.f32.xlu0 %v3436_v26  ;;  %v3420_v26 = vpop.xlane.xlu0 %3419 }
 0x866   :  { %7262 = vmatmul.msk.f32.gmra.mxu3 %vm3198_vm4, %v11801_v17 }
 0x86a   :  { %v11806_v51 = vpop.permute.xlu1 %5762 }
 0x86b   :  { %14099 = vst [vmem:[#allocation161_spill] sm:$0xff] %v11806_v51  ;;  %v955_v51 = vadd.f32 %v11366_v6, %v954_v10  ;;  %v11833_v63 = vpop.permute.xlu0 %5766  ;;  %v2129_v6 = vmax.f32 %v11836_v39, 0.0  ;;  %v1086_v10 = vmax.f32 %v11766_v53, 0.0  ;;  %v3656_v39 = vsub.f32 %v11630_v59, %v3420_v26  ;;  %v1973_v26 = vpop.f32.mrf.mxu1 }
 0x86c   :  { %14102 = vst [vmem:[#allocation164_spill] sm:$0xff] %v11833_v63  ;;  %v11848_v63 = vadd.f32 %v11591_v62, %v1970_v11 }
 0x86e   :  { %7263 = vmatmul.msk.f32.gmra.mxu3 %vm3198_vm4, %v11808_v1  ;;  %14104 = vst [vmem:[#allocation166_spill] sm:$0xff] %v11848_v63 }
 0x872   :  { %v2491_v29 = vpop.permute.xlu1 %2490 }
 0x873   :  { %7167 = vmatmul.msk.f32.gmra.mxu2 %vm2540_vm3, %v2491_v29  ;;  %v1214_v29 = vsel %vm959_vm1, %v1086_v10, %v11766_v53 }
 0x874   :  { %7062 = vmatmul.msk.f32.gmra.mxu1 %vm1232_vm2, %v1214_v29 }
 0x875   :  { %3440 = vmax.xlane.f32.xlu2 %v3439_v44  ;;  %3425 = vmax.xlane.f32.xlu1 %v3424_v7  ;;  %v2495_v44 = vpop.permute.xlu0 %2494  ;;  %v3057_v7 = vpop.f32.mrf.mxu2 }
 0x877   :  { %5778 = vrot.lane.b32.xlu0 %v955_v51, %s7854_s15 }
 0x87b   :  { %7168 = vmatmul.msk.f32.gmra.mxu2 %vm2540_vm3, %v2493_v52  ;;  %v2130_v52 = vmax.f32 %v11848_v63, 0.0  ;;  %v3857_v63 = vmul.f32 1.442695, %v3656_v39 }
 0x87d   :  { %v3060_v11 = vpop.f32.mrf.mxu2 }
 0x87f   :  { %2506 = vrot.lane.b32.xlu0 %v2129_v6, %s7855_s29  ;;  %v11855_v6 = vadd.f32 %v11591_v62, %v11761_v14  ;;  %v3423_v14 = vpop.xlane.xlu2 %3422 }
 0x880   :  { %v3657_v59 = vsub.f32 %v11655_v56, %v3423_v14  ;;  %v1976_v56 = vpop.f32.mrf.mxu1 }
 0x881   :  { %14105 = vst [vmem:[#allocation167_spill] sm:$0xff] %v11855_v6  ;;  %v2127_v53 = vmax.f32 %v11855_v6, 0.0 }
 0x883   :  { %7169 = vmatmul.msk.f32.gmra.mxu2 %vm2540_vm3, %v2495_v44 }
 0x888   :  { %v1979_v6 = vpop.f32.mrf.mxu1 }
 0x88d   :  { %2508 = vrot.lane.b32.xlu2 %v2130_v52, %s7855_s29  ;;  %v11862_v52 = vadd.f32 %v11536_v28, %v3060_v11 }
 0x88e   :  { %5774 = vrot.lane.b32.xlu1 %v949_v31, %s7854_s15  ;;  %v11864_v31 = vpop.f32.mrf.mxu3 }
 0x896   :  { %2502 = vrot.lane.b32.xlu1 %v2127_v53, %s7855_s29  ;;  %v3445_v53 = vsel %vm3198_vm4, %v11862_v52, -inf }
 0x89d   :  { %v3417_v10 = vpop.xlane.xlu1 %3416 }
 0x89e   :  { %v3655_v29 = vsub.f32 %v11732_v54, %v3417_v10  ;;  %v1087_v54 = vmax.f32 %v955_v51, 0.0  ;;  %v3063_v10 = vpop.f32.mrf.mxu2 }
 0x8a0   :  { %v3855_v44 = vmul.f32 1.442695, %v3655_v29  ;;  %v3859_v29 = vmul.f32 1.442695, %v3657_v59  ;;  %v1215_v39 = vsel %vm959_vm1, %v1087_v54, %v955_v51  ;;  %v11890_v51 = vadd.f32 %v11591_v62, %v1976_v56 }
 0x8a1   :  { %7063 = vmatmul.msk.f32.gmra.mxu1 %vm1232_vm2, %v1215_v39  ;;  %v11900_v54 = vadd.f32 %v11536_v28, %v11755_v35  ;;  %v3429_v39 = vpop.xlane.xlu0 %3428 }
 0x8a2   :  { %7549 = vpow2.f32 %v3855_v44  ;;  %v11875_v44 = vpop.f32.mrf.mxu3  ;;  %14109 = vst [vmem:[#allocation171_spill] sm:$0xff] %v11890_v51 }
 0x8a3   :  { %7551 = vpow2.f32 %v3857_v63 }
 0x8a4   :  { %7553 = vpow2.f32 %v3859_v29  ;;  %v11903_v29 = vpop.permute.xlu2 %5770 }
 0x8a5   :  { %14111 = vst [vmem:[#allocation173_spill] sm:$0xff] %v11903_v29 }
 0x8a8   :  { %v11866_v45 = vpop.eup %7549 }
 0x8a9   :  { %14106 = vst [vmem:[#allocation168_spill] sm:$0xff] %v11866_v45  ;;  %3446 = vmax.xlane.f32.xlu0 %v3445_v53  ;;  %7264 = vmatmul.msk.f32.gmra.mxu3 %vm3198_vm4, %v11866_v45  ;;  %v11878_v11 = vpop.eup %7551  ;;  %v11881_v53 = vadd.f32 %v11536_v28, %v3063_v10  ;;  %v2132_v10 = vmax.f32 %v11890_v51, 0.0  ;;  %v11912_v35 = vpop.permute.xlu0 %5772 }
 0x8aa   :  { %14107 = vst [vmem:[#allocation169_spill] sm:$0xff] %v11878_v11  ;;  %v11892_v14 = vpop.eup %7553  ;;  %v11894_v59 = vpop.f32.mrf.mxu3 }
 0x8ab   :  { %v3448_v40 = vsel %vm3198_vm4, %v11881_v53, -inf  ;;  %14110 = vst [vmem:[#allocation172_spill] sm:$0xff] %v11892_v14  ;;  %v1982_v51 = vpop.f32.mrf.mxu1 }
 0x8ac   :  { %14112 = vst [vmem:[#allocation174_spill] sm:$0xff] %v11912_v35  ;;  %v2499_v45 = vpop.permute.xlu2 %2498 }
 0x8b1   :  { %7265 = vmatmul.msk.f32.gmra.mxu3 %vm3198_vm4, %v11878_v11  ;;  %v3066_v11 = vpop.f32.mrf.mxu2 }
 0x8b5   :  { %v11885_v63 = vpop.permute.xlu1 %5768 }
 0x8b6   :  { %14108 = vst [vmem:[#allocation170_spill] sm:$0xff] %v11885_v63  ;;  %3449 = vmax.xlane.f32.xlu2 %v3448_v40  ;;  %v3433_v40 = vsel %vm3198_vm4, %v11900_v54, -inf  ;;  %v11910_v63 = vadd.f32 %v11536_v28, %v3057_v7  ;;  %v11924_v7 = vadd.f32 %v11591_v62, %v1982_v51 }
 0x8b8   :  { %v3442_v29 = vsel %vm3198_vm4, %v11910_v63, -inf  ;;  %14114 = vst [vmem:[#allocation176_spill] sm:$0xff] %v11924_v7 }
 0x8b9   :  { %7266 = vmatmul.msk.f32.gmra.mxu3 %vm3198_vm4, %v11892_v14 }
 0x8bd   :  { %2512 = vrot.lane.b32.xlu0 %v2132_v10, %s7855_s29  ;;  %v2497_v56 = vpop.permute.xlu1 %2496  ;;  %v11918_v10 = vadd.f32 %v11591_v62, %v1979_v6  ;;  %v11929_v6 = vadd.f32 %v11591_v62, %v1973_v26  ;;  %v3659_v26 = vsub.f32 %v11706_v60, %v3429_v39 }
 0x8be   :  { %7170 = vmatmul.msk.f32.gmra.mxu2 %vm2540_vm3, %v2497_v56 }
 0x8bf   :  { %14113 = vst [vmem:[#allocation175_spill] sm:$0xff] %v11918_v10  ;;  %v2133_v56 = vmax.f32 %v11918_v10, 0.0  ;;  %v2131_v35 = vmax.f32 %v11929_v6, 0.0  ;;  %v3863_v17 = vmul.f32 1.442695, %v3659_v26 }
 0x8c0   :  { %3434 = vmax.xlane.f32.xlu1 %v3433_v40  ;;  %v2501_v40 = vpop.permute.xlu0 %2500  ;;  %14115 = vst [vmem:[#allocation177_spill] sm:$0xff] %v11929_v6  ;;  %v11940_v6 = vpop.f32.mrf.mxu3 }
 0x8c6   :  { %7171 = vmatmul.msk.f32.gmra.mxu2 %vm2540_vm3, %v2499_v45  ;;  %v2134_v45 = vmax.f32 %v11924_v7, 0.0  ;;  %v1985_v7 = vpop.f32.mrf.mxu1 }
 0x8c8   :  { %3443 = vmax.xlane.f32.xlu1 %v3442_v29  ;;  %v3069_v29 = vpop.f32.mrf.mxu2 }
 0x8c9   :  { %v11934_v10 = vadd.f32 %v11536_v28, %v3069_v29 }
 0x8ce   :  { %2514 = vrot.lane.b32.xlu2 %v2133_v56, %s7855_s29  ;;  %7172 = vmatmul.msk.f32.gmra.mxu2 %vm2540_vm3, %v2501_v40  ;;  %v3454_v56 = vsel %vm3198_vm4, %v11934_v10, -inf  ;;  %v1988_v14 = vpop.f32.mrf.mxu1 }
 0x8cf   :  { %v11945_v29 = vadd.f32 %v11591_v62, %v1988_v14 }
 0x8d1   :  { %14117 = vst [vmem:[#allocation179_spill] sm:$0xff] %v11945_v29  ;;  %v2136_v60 = vmax.f32 %v11945_v29, 0.0 }
 0x8d6   :  { %2516 = vrot.lane.b32.xlu2 %v2134_v45, %s7855_s29 }
 0x8e1   :  { %2510 = vrot.lane.b32.xlu1 %v2131_v35, %s7855_s29  ;;  %v3432_v35 = vpop.xlane.xlu2 %3431 }
 0x8e7   :  { %3455 = vmax.xlane.f32.xlu0 %v3454_v56  ;;  %v3072_v56 = vpop.f32.mrf.mxu2 }
 0x8e8   :  { %v3426_v51 = vpop.xlane.xlu1 %3425  ;;  %v11952_v39 = vadd.f32 %v11536_v28, %v3072_v56  ;;  %v3438_v56 = vpop.xlane.xlu0 %3437 }
 0x8e9   :  { %v3658_v40 = vsub.f32 %v11821_v9, %v3426_v51  ;;  %v3660_v9 = vsub.f32 %v11738_v0, %v3432_v35  ;;  %v11967_v26 = vpop.permute.xlu2 %5776 }
 0x8ea   :  { %v3457_v0 = vsel %vm3198_vm4, %v11952_v39, -inf  ;;  %14121 = vst [vmem:[#allocation183_spill] sm:$0xff] %v11967_v26 }
 0x8eb   :  { %v3861_v45 = vmul.f32 1.442695, %v3658_v40  ;;  %v3865_v51 = vmul.f32 1.442695, %v3660_v9  ;;  %v11954_v40 = vpop.f32.mrf.mxu3  ;;  %v11974_v9 = vadd.f32 %v11536_v28, %v3066_v11 }
 0x8ed   :  { %7555 = vpow2.f32 %v3861_v45 }
 0x8ee   :  { %7557 = vpow2.f32 %v3863_v17 }
 0x8ef   :  { %7559 = vpow2.f32 %v3865_v51  ;;  %v3451_v51 = vsel %vm3198_vm4, %v11974_v9, -inf  ;;  %v3075_v29 = vpop.f32.mrf.mxu2 }
 0x8f3   :  { %v11942_v1 = vpop.eup %7555  ;;  %v11969_v35 = vpop.f32.mrf.mxu3 }
 0x8f4   :  { %14116 = vst [vmem:[#allocation178_spill] sm:$0xff] %v11942_v1  ;;  %7267 = vmatmul.msk.f32.gmra.mxu3 %vm3198_vm4, %v11942_v1  ;;  %v11957_v45 = vpop.eup %7557  ;;  %v11979_v1 = vpop.permute.xlu0 %5778 }
 0x8f5   :  { %14118 = vst [vmem:[#allocation180_spill] sm:$0xff] %v11957_v45  ;;  %v11965_v14 = vpop.eup %7559 }
 0x8f6   :  { %14120 = vst [vmem:[#allocation182_spill] sm:$0xff] %v11965_v14 }
 0x8f7   :  { %14122 = vst [vmem:[#allocation184_spill] sm:$0xff] %v11979_v1 }
 0x8fb   :  { %2520 = vrot.lane.b32.xlu0 %v2136_v60, %s7855_s29  ;;  %v12003_v49 = vpop.f32.mrf.mxu3 }
 0x8fc   :  { %7268 = vmatmul.msk.f32.gmra.mxu3 %vm3198_vm4, %v11957_v45 }
 0x8ff   :  { %3458 = vmax.xlane.f32.xlu2 %v3457_v0  ;;  %v1991_v0 = vpop.f32.mrf.mxu1 }
 0x900   :  { %v11963_v17 = vpop.permute.xlu1 %5774  ;;  %v11982_v26 = vadd.f32 %v11591_v62, %v1991_v0 }
 0x901   :  { %14119 = vst [vmem:[#allocation181_spill] sm:$0xff] %v11963_v17  ;;  %v2505_v17 = vpop.permute.xlu2 %2504 }
 0x902   :  { %14123 = vst [vmem:[#allocation185_spill] sm:$0xff] %v11982_v26  ;;  %v2137_v11 = vmax.f32 %v11982_v26, 0.0 }
 0x904   :  { %7269 = vmatmul.msk.f32.gmra.mxu3 %vm3198_vm4, %v11965_v14  ;;  %v3078_v14 = vpop.f32.mrf.mxu2 }
 0x905   :  { %v11992_v1 = vadd.f32 %v11536_v28, %v3078_v14 }
 0x907   :  { %v1994_v26 = vpop.f32.mrf.mxu1 }
 0x908   :  { %v2503_v60 = vpop.permute.xlu1 %2502 }
 0x909   :  { %7173 = vmatmul.msk.f32.gmra.mxu2 %vm2540_vm3, %v2503_v60  ;;  %v3441_v45 = vpop.xlane.xlu2 %3440  ;;  %v2507_v60 = vpop.permute.xlu0 %2506 }
 0x90b   :  { %3452 = vmax.xlane.f32.xlu1 %v3451_v51  ;;  %v11989_v51 = vadd.f32 %v11591_v62, %v1985_v7 }
 0x90c   :  { %v3081_v55 = vpop.f32.mrf.mxu2 }
 0x90d   :  { %14124 = vst [vmem:[#allocation186_spill] sm:$0xff] %v11989_v51 }
 0x911   :  { %7174 = vmatmul.msk.f32.gmra.mxu2 %vm2540_vm3, %v2505_v17  ;;  %v2509_v0 = vpop.permute.xlu2 %2508  ;;  %v2135_v17 = vmax.f32 %v11989_v51, 0.0  ;;  %v3662_v51 = vsub.f32 %v11789_v30, %v3438_v56  ;;  %v12018_v30 = vpop.f32.mrf.mxu3 }
 0x917   :  { %2522 = vrot.lane.b32.xlu2 %v2137_v11, %s7855_s29  ;;  %v3463_v11 = vsel %vm3198_vm4, %v11992_v1, -inf }
 0x919   :  { %7175 = vmatmul.msk.f32.gmra.mxu2 %vm2540_vm3, %v2507_v60  ;;  %v12000_v60 = vadd.f32 %v11591_v62, %v1994_v26 }
 0x91b   :  { %14125 = vst [vmem:[#allocation187_spill] sm:$0xff] %v12000_v60 }
 0x921   :  { %7176 = vmatmul.msk.f32.gmra.mxu2 %vm2540_vm3, %v2509_v0  ;;  %v2138_v0 = vmax.f32 %v12000_v60, 0.0 }
 0x924   :  { %2518 = vrot.lane.b32.xlu1 %v2135_v17, %s7855_s29  ;;  %v12009_v17 = vadd.f32 %v11536_v28, %v3081_v55 }
 0x925   :  { %3464 = vmax.xlane.f32.xlu0 %v3463_v11  ;;  %v3869_v11 = vmul.f32 1.442695, %v3662_v51  ;;  %v12026_v51 = vadd.f32 %v11536_v28, %v3075_v29 }
 0x933   :  { %v3435_v7 = vpop.xlane.xlu1 %3434 }
 0x934   :  { %v3661_v20 = vsub.f32 %v11900_v54, %v3435_v7  ;;  %v3466_v54 = vsel %vm3198_vm4, %v12009_v17, -inf }
 0x936   :  { %v3867_v14 = vmul.f32 1.442695, %v3661_v20  ;;  %v3663_v20 = vsub.f32 %v11824_v4, %v3441_v45  ;;  %v3447_v4 = vpop.xlane.xlu0 %3446  ;;  %v3460_v45 = vsel %vm3198_vm4, %v12026_v51, -inf }
 0x938   :  { %7561 = vpow2.f32 %v3867_v14  ;;  %v3871_v56 = vmul.f32 1.442695, %v3663_v20  ;;  %v3665_v20 = vsub.f32 %v11862_v52, %v3447_v4  ;;  %v1997_v4 = vpop.f32.mrf.mxu1 }
 0x939   :  { %2524 = vrot.lane.b32.xlu0 %v2138_v0, %s7855_s29  ;;  %7563 = vpow2.f32 %v3869_v11  ;;  %v12028_v0 = vpop.f32.mrf.mxu3 }
 0x93a   :  { %7565 = vpow2.f32 %v3871_v56  ;;  %v3875_v29 = vmul.f32 1.442695, %v3665_v20 }
 0x93b   :  { %v3444_v7 = vpop.xlane.xlu1 %3443 }
 0x93c   :  { %v3664_v55 = vsub.f32 %v11910_v63, %v3444_v7  ;;  %v3084_v63 = vpop.f32.mrf.mxu2 }
 0x93e   :  { %v12011_v26 = vpop.eup %7561  ;;  %v3873_v11 = vmul.f32 1.442695, %v3664_v55  ;;  %v3450_v55 = vpop.xlane.xlu2 %3449 }
 0x93f   :  { %14126 = vst [vmem:[#allocation188_spill] sm:$0xff] %v12011_v26  ;;  %7270 = vmatmul.msk.f32.gmra.mxu3 %vm3198_vm4, %v12011_v26  ;;  %v12020_v14 = vpop.eup %7563  ;;  %v14131_v26 = vld [vmem:[#allocation69_spill] sm:$0xff] }
 0x940   :  { %3467 = vmax.xlane.f32.xlu2 %v3466_v54  ;;  %14127 = vst [vmem:[#allocation189_spill] sm:$0xff] %v12020_v14  ;;  %v12032_v54 = vpop.eup %7565  ;;  %7567 = vpow2.f32 %v3873_v11  ;;  %v2513_v11 = vpop.permute.xlu0 %2512 }
 0x941   :  { %14128 = vst [vmem:[#allocation190_spill] sm:$0xff] %v12032_v54  ;;  %v12038_v7 = vpop.f32.mrf.mxu3  ;;  %7569 = vpow2.f32 %v3875_v29 }
 0x942   :  { %14129 = vst [vmem:[#allocation191_spill] sm:$0xff] %v12038_v7 }
 0x944   :  { %v3087_v52 = vpop.f32.mrf.mxu2 }
 0x946   :  { %v12040_v60 = vpop.eup %7567 }
 0x947   :  { %7271 = vmatmul.msk.f32.gmra.mxu3 %vm3198_vm4, %v12020_v14  ;;  %14130 = vst [vmem:[#allocation192_spill] sm:$0xff] %v12040_v60  ;;  %v12053_v14 = vadd.f32 %v11536_v28, %v3087_v52  ;;  %v2000_v52 = vpop.f32.mrf.mxu1 }
 0x949   :  { %v3472_v29 = vsel %vm3198_vm4, %v12053_v14, -inf }
 0x94e   :  { %3461 = vmax.xlane.f32.xlu1 %v3460_v45  ;;  %v3666_v45 = vsub.f32 %v11881_v53, %v3450_v55  ;;  %v12058_v53 = vadd.f32 %v11591_v62, %v1997_v4 }
 0x94f   :  { %7272 = vmatmul.msk.f32.gmra.mxu3 %vm3198_vm4, %v12032_v54  ;;  %v12050_v54 = vpop.eup %7569 }
 0x950   :  { %v3877_v20 = vmul.f32 1.442695, %v3666_v45  ;;  %14133 = vst [vmem:[#allocation193_spill] sm:$0xff] %v12050_v54  ;;  %v2139_v55 = vmax.f32 %v12058_v53, 0.0 }
 0x951   :  { %14134 = vst [vmem:[#allocation194_spill] sm:$0xff] %v12058_v53 }
 0x952   :  { %7571 = vpow2.f32 %v3877_v20  ;;  %v3090_v20 = vpop.f32.mrf.mxu2 }
 0x953   :  { %v2511_v56 = vpop.permute.xlu1 %2510 }
 0x954   :  { %7177 = vmatmul.msk.f32.gmra.mxu2 %vm2540_vm3, %v2511_v56  ;;  %v12048_v56 = vpop.f32.mrf.mxu3 }
 0x955   :  { %14132 = vst [vmem:[#allocation69_spill] sm:$0xff] %v12048_v56 }
 0x957   :  { %7273 = vmatmul.msk.f32.gmra.mxu3 %vm3198_vm4, %v12040_v60  ;;  %v2003_v60 = vpop.f32.mrf.mxu1 }
 0x958   :  { %6244 = vrot.lane.b32.xlu2 %v14131_v26, %s7854_s15  ;;  %v2515_v26 = vpop.permute.xlu2 %2514  ;;  %v12064_v45 = vpop.eup %7571 }
 0x959   :  { %14135 = vst [vmem:[#allocation195_spill] sm:$0xff] %v12064_v45 }
 0x95c   :  { %7178 = vmatmul.msk.f32.gmra.mxu2 %vm2540_vm3, %v2513_v11  ;;  %v12066_v11 = vpop.f32.mrf.mxu3 }
 0x95d   :  { %14136 = vst [vmem:[#allocation196_spill] sm:$0xff] %v12066_v11 }
 0x95f   :  { %7274 = vmatmul.msk.f32.gmra.mxu3 %vm3198_vm4, %v12050_v54  ;;  %v2006_v53 = vpop.f32.mrf.mxu1 }
 0x960   :  { %v2517_v4 = vpop.permute.xlu2 %2516  ;;  %v12078_v54 = vadd.f32 %v11591_v62, %v2006_v53 }
 0x962   :  { %14138 = vst [vmem:[#allocation198_spill] sm:$0xff] %v12078_v54 }
 0x963   :  { %3473 = vmax.xlane.f32.xlu0 %v3472_v29  ;;  %v12073_v29 = vadd.f32 %v11591_v62, %v2003_v60  ;;  %v3456_v60 = vpop.xlane.xlu0 %3455 }
 0x964   :  { %7179 = vmatmul.msk.f32.gmra.mxu2 %vm2540_vm3, %v2515_v26  ;;  %v12089_v53 = vpop.f32.mrf.mxu3 }
 0x965   :  { %14137 = vst [vmem:[#allocation197_spill] sm:$0xff] %v12073_v29  ;;  %v2141_v26 = vmax.f32 %v12073_v29, 0.0 }
 0x966   :  { %14139 = vst [vmem:[#allocation199_spill] sm:$0xff] %v12089_v53 }
 0x967   :  { %2526 = vrot.lane.b32.xlu1 %v2139_v55, %s7855_s29  ;;  %7275 = vmatmul.msk.f32.gmra.mxu3 %vm3198_vm4, %v12064_v45  ;;  %v12081_v55 = vadd.f32 %v11536_v28, %v3090_v20  ;;  %v2142_v45 = vmax.f32 %v12078_v54, 0.0  ;;  %v12091_v15 = vpop.f32.mrf.mxu1 }
 0x969   :  { %v3475_v29 = vsel %vm3198_vm4, %v12081_v55, -inf }
 0x96c   :  { %7180 = vmatmul.msk.f32.gmra.mxu2 %vm2540_vm3, %v2517_v4 }
 0x972   :  { %v3459_v54 = vpop.xlane.xlu2 %3458 }
 0x977   :  { %2530 = vrot.lane.b32.xlu0 %v2141_v26, %s7855_s29  ;;  %v3668_v26 = vsub.f32 %v11934_v10, %v3456_v60  ;;  %v12101_v10 = vpop.f32.mrf.mxu3  ;;  %v3093_v60 = vpop.f32.mrf.mxu2 }
 0x978   :  { %14141 = vst [vmem:[#allocation201_spill] sm:$0xff] %v12101_v10 }
 0x979   :  { %v3881_v20 = vmul.f32 1.442695, %v3668_v26 }
 0x97e   :  { %v3453_v7 = vpop.xlane.xlu1 %3452 }
 0x97f   :  { %v3667_v4 = vsub.f32 %v11974_v9, %v3453_v7  ;;  %2532 = vrot.lane.b32.xlu0 %v2142_v45, %s7855_s29  ;;  %v3669_v9 = vsub.f32 %v11952_v39, %v3459_v54  ;;  %v12099_v7 = vadd.f32 %v11536_v28, %v3084_v63 }
 0x981   :  { %v3879_v56 = vmul.f32 1.442695, %v3667_v4  ;;  %3476 = vmax.xlane.f32.xlu2 %v3475_v29  ;;  %v3883_v45 = vmul.f32 1.442695, %v3669_v9  ;;  %v3469_v29 = vsel %vm3198_vm4, %v12099_v7, -inf  ;;  %v3096_v9 = vpop.f32.mrf.mxu2 }
 0x983   :  { %7573 = vpow2.f32 %v3879_v56  ;;  %v2012_v56 = vpop.f32.mrf.mxu1 }
 0x984   :  { %7575 = vpow2.f32 %v3881_v20  ;;  %v12110_v26 = vadd.f32 %v11591_v62, %v2012_v56  ;;  %v12117_v20 = vpop.f32.mrf.mxu3  ;;  %v12127_v56 = vadd.f32 %v11591_v62, %v2000_v52 }
 0x985   :  { %7577 = vpow2.f32 %v3883_v45  ;;  %14145 = vst [vmem:[#allocation205_spill] sm:$0xff] %v12117_v20  ;;  %v12124_v45 = vadd.f32 %v11536_v28, %v3096_v9 }
 0x986   :  { %14143 = vst [vmem:[#allocation203_spill] sm:$0xff] %v12110_v26  ;;  %v2144_v54 = vmax.f32 %v12110_v26, 0.0  ;;  %7579 = vrcp.f32 %v11617_v33  ;;  %v2523_v26 = vpop.permute.xlu2 %2522 }
 0x987   :  { %14146 = vst [vmem:[#allocation206_spill] sm:$0xff] %v12127_v56 }
 0x989   :  { %v12093_v19 = vpop.eup %7573 }
 0x98a   :  { %14140 = vst [vmem:[#allocation200_spill] sm:$0xff] %v12093_v19  ;;  %7276 = vmatmul.msk.f32.gmra.mxu3 %vm3198_vm4, %v12093_v19  ;;  %v12105_v4 = vpop.eup %7575 }
 0x98b   :  { %14142 = vst [vmem:[#allocation202_spill] sm:$0xff] %v12105_v4  ;;  %v12114_v63 = vpop.eup %7577 }
 0x98c   :  { %14144 = vst [vmem:[#allocation204_spill] sm:$0xff] %v12114_v63  ;;  %v7580_v19 = vpop.eup %7579 }
 0x991   :  { %3470 = vmax.xlane.f32.xlu1 %v3469_v29  ;;  %v2521_v29 = vpop.permute.xlu0 %2520 }
 0x992   :  { %7277 = vmatmul.msk.f32.gmra.mxu3 %vm3198_vm4, %v12105_v4  ;;  %v3481_v4 = vsel %vm3198_vm4, %v12124_v45, -inf }
 0x996   :  { %v2519_v39 = vpop.permute.xlu1 %2518 }
 0x997   :  { %7181 = vmatmul.msk.f32.gmra.mxu2 %vm2540_vm3, %v2519_v39  ;;  %v3099_v39 = vpop.f32.mrf.mxu2 }
 0x999   :  { %2536 = vrot.lane.b32.xlu2 %v2144_v54, %s7855_s29  ;;  %v3465_v54 = vpop.xlane.xlu0 %3464 }
 0x99a   :  { %7278 = vmatmul.msk.f32.gmra.mxu3 %vm3198_vm4, %v12114_v63  ;;  %v2140_v63 = vmax.f32 %v12127_v56, 0.0 }
 0x99f   :  { %7182 = vmatmul.msk.f32.gmra.mxu2 %vm2540_vm3, %v2521_v29  ;;  %v4924_v29 = vmul.f32 %v7580_v19, %v11617_v33  ;;  %v12135_v52 = vpop.f32.mrf.mxu2  ;;  %v12144_v33 = vld [vmem:[%s13680_s6] ss:$0 sm:$0xff] }
 0x9a1   :  { %v5052_v28 = vsub.f32 2.0, %v4924_v29  ;;  %v12161_v29 = vpop.f32.mrf.mxu3 }
 0x9a3   :  { %v5180_v53 = vmul.f32 %v7580_v19, %v5052_v28 }
 0x9a7   :  { %7183 = vmatmul.msk.f32.gmra.mxu2 %vm2540_vm3, %v2523_v26  ;;  %v5308_v26 = vmul.f32 %v10897_v22, %v5180_v53  ;;  %v14148_v22 = vld [vmem:[#allocation65_spill] sm:$0xff] }
 0x9a9   :  { %3482 = vmax.xlane.f32.xlu0 %v3481_v4  ;;  %v5948_v56 = vmul.f32 %v14147_v8, %v5308_v26  ;;  %v12147_v4 = vadd.f32 %v12144_v33, %v3099_v39 }
 0x9aa   :  { %2528 = vrot.lane.b32.xlu1 %v2140_v63, %s7855_s29 }
 0x9ab   :  { %v2525_v9 = vpop.permute.xlu0 %2524  ;;  %v3484_v19 = vsel %vm3198_vm4, %v12147_v4, -inf }
 0x9af   :  { %7184 = vmatmul.msk.f32.gmra.mxu2 %vm2540_vm3, %v2525_v9  ;;  %v2015_v9 = vpop.f32.mrf.mxu1 }
 0x9b3   :  { %v3468_v10 = vpop.xlane.xlu2 %3467 }
 0x9b4   :  { %v3672_v28 = vsub.f32 %v12009_v17, %v3468_v10 }
 0x9b6   :  { %v3889_v26 = vmul.f32 1.442695, %v3672_v28 }
 0x9bb   :  { %v6245_v20 = vpop.permute.xlu2 %6244 }
 0x9bc   :  { %v6588_v11 = vsel %vm3198_vm4, %v5948_v56, %v6245_v20  ;;  %v14149_v20 = vld [vmem:[#allocation71_spill] sm:$0xff]  ;;  %v3671_v56 = vsub.f32 %v11992_v1, %v3465_v54 }
 0x9bd   :  { %6716 = vst.msk [vmem:[%s13682_s8 + $0x140] sm:$0xff] %vm2540_vm3, %v6588_v11  ;;  %6246 = vrot.lane.b32.xlu0 %v14148_v22, %s7854_s15  ;;  %v12171_v22 = vpop.f32.mrf.mxu3 }
 0x9be   :  { %v3887_v39 = vmul.f32 1.442695, %v3671_v56 }
 0x9c1   :  { %v3462_v8 = vpop.xlane.xlu1 %3461 }
 0x9c2   :  { %v3670_v53 = vsub.f32 %v12026_v51, %v3462_v8  ;;  %3485 = vmax.xlane.f32.xlu2 %v3484_v19  ;;  %v12169_v51 = vadd.f32 %v12144_v33, %v3093_v60  ;;  %v12178_v8 = vadd.f32 %v11591_v62, %v2015_v9  ;;  %v3105_v60 = vpop.f32.mrf.mxu2  ;;  %v14153_v62 = vld [vmem:[#allocation76_spill] sm:$0xff]  ;;  %v14155_v9 = vld [vmem:[#allocation73_spill] sm:$0xff] }
 0x9c3   :  { %v12200_v56 = vadd.f32 %v12144_v33, %v3105_v60 }
 0x9c4   :  { %v3885_v63 = vmul.f32 1.442695, %v3670_v53  ;;  %v3478_v1 = vsel %vm3198_vm4, %v12169_v51, -inf  ;;  %14151 = vst [vmem:[#allocation65_spill] sm:$0xff] %v12178_v8  ;;  %v2145_v17 = vmax.f32 %v12178_v8, 0.0 }
 0x9c5   :  { %6252 = vrot.lane.b32.xlu0 %v14149_v20, %s7854_s15  ;;  %v12187_v53 = vpop.f32.mrf.mxu3  ;;  %v3490_v28 = vsel %vm3198_vm4, %v12200_v56, -inf }
 0x9c6   :  { %7581 = vpow2.f32 %v3885_v63  ;;  %v7852_v63 = vld [vmem:[%s13678_s4] ss:$0 sm:$0xff] }
 0x9c7   :  { %7583 = vpow2.f32 %v3887_v39  ;;  %v12197_v20 = vadd.f32 %v7852_v63, %v12091_v15 }
 0x9c8   :  { %7585 = vpow2.f32 %v3889_v26 }
 0x9c9   :  { %14154 = vst [vmem:[#allocation76_spill] sm:$0xff] %v12197_v20  ;;  %v2143_v39 = vmax.f32 %v12197_v20, 0.0  ;;  %v14162_v20 = vld [vmem:[#allocation48_spill] sm:$0xff] }
 0x9ca   :  { %v3108_v26 = vpop.f32.mrf.mxu2 }
 0x9cc   :  { %v12163_v11 = vpop.eup %7581 }
 0x9cd   :  { %14150 = vst [vmem:[#allocation45_spill] sm:$0xff] %v12163_v11  ;;  %7279 = vmatmul.msk.f32.gmra.mxu3 %vm3198_vm4, %v12163_v11  ;;  %v12175_v54 = vpop.eup %7583 }
 0x9ce   :  { %v12185_v19 = vpop.eup %7585 }
 0x9cf   :  { %14152 = vst [vmem:[#allocation71_spill] sm:$0xff] %v12185_v19 }
 0x9d4   :  { %3479 = vmax.xlane.f32.xlu1 %v3478_v1  ;;  %v14156_v1 = vld [vmem:[#allocation78_spill] sm:$0xff] }
 0x9d5   :  { %7280 = vmatmul.msk.f32.gmra.mxu3 %vm3198_vm4, %v12175_v54 }
 0x9d6   :  { %v3474_v60 = vpop.xlane.xlu0 %3473 }
 0x9d7   :  { %v3674_v63 = vsub.f32 %v12053_v14, %v3474_v60 }
 0x9d9   :  { %v2527_v10 = vpop.permute.xlu1 %2526 }
 0x9da   :  { %2538 = vrot.lane.b32.xlu2 %v2145_v17, %s7855_s29  ;;  %7185 = vmatmul.msk.f32.gmra.mxu2 %vm2540_vm3, %v2527_v10  ;;  %v12212_v10 = vadd.f32 %v12144_v33, %v3108_v26 }
 0x9dd   :  { %7281 = vmatmul.msk.f32.gmra.mxu3 %vm3198_vm4, %v12185_v19 }
 0x9e2   :  { %6250 = vrot.lane.b32.xlu2 %v14153_v62, %s7854_s15 }
 0x9e9   :  { %v2531_v26 = vpop.permute.xlu0 %2530 }
 0x9ed   :  { %2534 = vrot.lane.b32.xlu1 %v2143_v39, %s7855_s29  ;;  %v3493_v39 = vsel %vm3198_vm4, %v12212_v10, -inf }
 0x9ef   :  { %3491 = vmax.xlane.f32.xlu0 %v3490_v28  ;;  %v14157_v28 = vld [vmem:[#allocation80_spill] sm:$0xff] }
 0x9f4   :  { %v3477_v11 = vpop.xlane.xlu2 %3476 }
 0x9f5   :  { %6248 = vrot.lane.b32.xlu1 %v14155_v9, %s7854_s15  ;;  %v12219_v9 = vpop.f32.mrf.mxu3  ;;  %v3675_v14 = vsub.f32 %v12081_v55, %v3477_v11 }
 0xa03   :  { %6258 = vrot.lane.b32.xlu0 %v14156_v1, %s7854_s15  ;;  %v3893_v1 = vmul.f32 1.442695, %v3674_v63 }
 0xa04   :  { %v3471_v15 = vpop.xlane.xlu1 %3470 }
 0xa05   :  { %v3673_v17 = vsub.f32 %v12099_v7, %v3471_v15  ;;  %v3895_v15 = vmul.f32 1.442695, %v3675_v14 }
 0xa07   :  { %v3891_v62 = vmul.f32 1.442695, %v3673_v17  ;;  %v12227_v17 = vpop.f32.mrf.mxu3 }
 0xa09   :  { %7587 = vpow2.f32 %v3891_v62  ;;  %v12235_v62 = vadd.f32 %v12144_v33, %v12135_v52 }
 0xa0a   :  { %7589 = vpow2.f32 %v3893_v1  ;;  %v2533_v1 = vpop.permute.xlu0 %2532 }
 0xa0b   :  { %3494 = vmax.xlane.f32.xlu2 %v3493_v39  ;;  %6264 = vrot.lane.b32.xlu0 %v14157_v28, %s7854_s15  ;;  %7591 = vrcp.f32 %v11625_v48  ;;  %v3487_v11 = vsel %vm3198_vm4, %v12235_v62, -inf }
 0xa0c   :  { %7593 = vpow2.f32 %v3895_v15 }
 0xa0d   :  { %7595 = vrcp.f32 %v11724_v43 }
 0xa0e   :  { %7597 = vrcp.f32 %v11708_v25 }
 0xa0f   :  { %v12221_v7 = vpop.eup %7587  ;;  %v12244_v14 = vpop.f32.mrf.mxu3 }
 0xa10   :  { %14158 = vst [vmem:[#allocation73_spill] sm:$0xff] %v12221_v7  ;;  %7282 = vmatmul.msk.f32.gmra.mxu3 %vm3198_vm4, %v12221_v7  ;;  %v12229_v60 = vpop.eup %7589  ;;  %v14161_v7 = vld [vmem:[#allocation85_spill] sm:$0xff] }
 0xa11   :  { %14159 = vst [vmem:[#allocation78_spill] sm:$0xff] %v12229_v60  ;;  %v7592_v63 = vpop.eup %7591 }
 0xa12   :  { %v4925_v55 = vmul.f32 %v7592_v63, %v11625_v48  ;;  %v12242_v28 = vpop.eup %7593 }
 0xa13   :  { %14160 = vst [vmem:[#allocation80_spill] sm:$0xff] %v12242_v28  ;;  %v7596_v15 = vpop.eup %7595 }
 0xa14   :  { %v5053_v52 = vsub.f32 2.0, %v4925_v55  ;;  %v4928_v19 = vmul.f32 %v7596_v15, %v11724_v43 }
 0xa16   :  { %v5181_v48 = vmul.f32 %v7592_v63, %v5053_v52 }
 0xa18   :  { %7283 = vmatmul.msk.f32.gmra.mxu3 %vm3198_vm4, %v12229_v60  ;;  %v5056_v60 = vsub.f32 2.0, %v4928_v19  ;;  %v7598_v19 = vpop.eup %7597 }
 0xa19   :  { %v4927_v52 = vmul.f32 %v7598_v19, %v11708_v25 }
 0xa1c   :  { %v2529_v39 = vpop.permute.xlu1 %2528  ;;  %v3483_v8 = vpop.xlane.xlu0 %3482 }
 0xa1d   :  { %7186 = vmatmul.msk.f32.gmra.mxu2 %vm2540_vm3, %v2529_v39  ;;  %v12250_v39 = vpop.f32.mrf.mxu2 }
 0xa1f   :  { %3488 = vmax.xlane.f32.xlu1 %v3487_v11  ;;  %v5309_v11 = vmul.f32 %v10912_v23, %v5181_v48 }
 0xa20   :  { %7284 = vmatmul.msk.f32.gmra.mxu3 %vm3198_vm4, %v12242_v28  ;;  %v12258_v28 = vpop.permute.xlu2 %2536 }
 0xa23   :  { %6256 = vrot.lane.b32.xlu2 %v14161_v7, %s7854_s15  ;;  %v5184_v7 = vmul.f32 %v7596_v15, %v5056_v60 }
 0xa25   :  { %7187 = vmatmul.msk.f32.gmra.mxu2 %vm2540_vm3, %v2531_v26  ;;  %v3114_v55 = vpop.f32.mrf.mxu2  ;;  %v5949_v26 = vmul.f32 %v14162_v20, %v5309_v11  ;;  %v5055_v11 = vsub.f32 2.0, %v4927_v52 }
 0xa26   :  { %v12263_v43 = vadd.f32 %v12144_v33, %v3114_v55 }
 0xa28   :  { %v3499_v60 = vsel %vm3198_vm4, %v12263_v43, -inf }
 0xa2b   :  { %6262 = vrot.lane.b32.xlu2 %v9533_v46, %s7854_s15  ;;  %v5312_v46 = vmul.f32 %v11009_v41, %v5184_v7  ;;  %v5183_v41 = vmul.f32 %v7598_v19, %v5055_v11  ;;  %v3677_v11 = vsub.f32 %v12124_v45, %v3483_v8 }
 0xa2d   :  { %7188 = vmatmul.msk.f32.gmra.mxu2 %vm2540_vm3, %v2533_v1  ;;  %v14163_v1 = vld [vmem:[#allocation54_spill] sm:$0xff]  ;;  %v5311_v7 = vmul.f32 %v10988_v24, %v5183_v41  ;;  %v3899_v41 = vmul.f32 1.442695, %v3677_v11  ;;  %v12332_v11 = vadd.f32 %v12144_v33, %v12250_v39 }
 0xa2e   :  { %v5952_v15 = vmul.f32 %v14163_v1, %v5312_v46 }
 0xa2f   :  { %v6247_v63 = vpop.permute.xlu0 %6246 }
 0xa30   :  { %v6589_v23 = vsel %vm3198_vm4, %v5949_v26, %v6247_v63  ;;  %v14164_v26 = vld [vmem:[#allocation83_spill] sm:$0xff]  ;;  %v14165_v63 = vld [vmem:[#allocation84_spill] sm:$0xff] }
 0xa31   :  { %6717 = vst.msk [vmem:[%s13682_s8 + $0x148] sm:$0xff] %vm2540_vm3, %v6589_v23  ;;  %v14166_v23 = vld [vmem:[#allocation51_spill] sm:$0xff] }
 0xa32   :  { %v5951_v46 = vmul.f32 %v14166_v23, %v5311_v7  ;;  %v14168_v7 = vld [vmem:[#allocation90_spill] sm:$0xff] }
 0xa35   :  { %v3486_v20 = vpop.xlane.xlu2 %3485  ;;  %3500 = vmax.xlane.f32.xlu0 %v3499_v60 }
 0xa36   :  { %v3678_v45 = vsub.f32 %v12147_v4, %v3486_v20 }
 0xa37   :  { %v6253_v48 = vpop.permute.xlu0 %6252 }
 0xa38   :  { %v6592_v55 = vsel %vm3198_vm4, %v5952_v15, %v6253_v48  ;;  %6254 = vrot.lane.b32.xlu1 %v14164_v26, %s7854_s15  ;;  %v14167_v15 = vld [vmem:[#allocation87_spill] sm:$0xff]  ;;  %v3117_v48 = vpop.f32.mrf.mxu2  ;;  %v12301_v26 = vpop.f32.mrf.mxu3 }
 0xa39   :  { %6720 = vst.msk [vmem:[%s13682_s8 + $0x160] sm:$0xff] %vm2540_vm3, %v6592_v55  ;;  %v12299_v55 = vadd.f32 %v12144_v33, %v3117_v48 }
 0xa3b   :  { %v3502_v23 = vsel %vm3198_vm4, %v12299_v55, -inf }
 0xa3d   :  { %v12282_v25 = vpop.permute.xlu2 %2538 }
 0xa40   :  { %6260 = vrot.lane.b32.xlu1 %v14165_v63, %s7854_s15 }
 0xa45   :  { %v6251_v52 = vpop.permute.xlu2 %6250 }
 0xa46   :  { %v6591_v60 = vsel %vm3198_vm4, %v5951_v46, %v6251_v52  ;;  %v3901_v46 = vmul.f32 1.442695, %v3678_v45  ;;  %v12313_v52 = vpop.f32.mrf.mxu3  ;;  %v12335_v45 = vpop.f32.mrf.mxu2 }
 0xa47   :  { %6719 = vst.msk [vmem:[%s13682_s8 + $0x158] sm:$0xff] %vm2540_vm3, %v6591_v60  ;;  %v3480_v1 = vpop.xlane.xlu1 %3479 }
 0xa48   :  { %v3676_v19 = vsub.f32 %v12169_v51, %v3480_v1 }
 0xa49   :  { %6270 = vrot.lane.b32.xlu0 %v14167_v15, %s7854_s15 }
 0xa4a   :  { %v3897_v24 = vmul.f32 1.442695, %v3676_v19 }
 0xa4c   :  { %7599 = vpow2.f32 %v3897_v24 }
 0xa4d   :  { %7601 = vrcp.f32 %v11698_v34 }
 0xa4e   :  { %7603 = vpow2.f32 %v3899_v41  ;;  %v12325_v24 = vpop.f32.mrf.mxu3  ;;  %v14170_v41 = vld [vmem:[#allocation47_spill] sm:$0xff] }
 0xa4f   :  { %7605 = vrcp.f32 %v11810_v27 }
 0xa50   :  { %7607 = vpow2.f32 %v3901_v46 }
 0xa51   :  { %6276 = vrot.lane.b32.xlu0 %v14168_v7, %s7854_s15  ;;  %7609 = vrcp.f32 %v11894_v59 }
 0xa52   :  { %v12305_v51 = vpop.eup %7599  ;;  %7611 = vrcp.f32 %v11798_v50 }
 0xa53   :  { %14169 = vst [vmem:[#allocation85_spill] sm:$0xff] %v12305_v51  ;;  %v7602_v63 = vpop.eup %7601  ;;  %7285 = vmatmul.msk.f32.gmra.mxu3 %vm3198_vm4, %v12305_v51  ;;  %7613 = vrcp.f32 %v11875_v44  ;;  %v14250_v51 = vld [vmem:[#allocation159_spill] sm:$0xff] }
 0xa54   :  { %3503 = vmax.xlane.f32.xlu2 %v3502_v23  ;;  %v4926_v8 = vmul.f32 %v7602_v63, %v11698_v34  ;;  %v12315_v60 = vpop.eup %7603  ;;  %7615 = vrcp.f32 %v11784_v32 }
 0xa55   :  { %v7606_v4 = vpop.eup %7605 }
 0xa56   :  { %v5054_v1 = vsub.f32 2.0, %v4926_v8  ;;  %v12321_v20 = vpop.eup %7607  ;;  %v4931_v48 = vmul.f32 %v7606_v4, %v11810_v27  ;;  %v3496_v27 = vsel %vm3198_vm4, %v12332_v11, -inf }
 0xa57   :  { %v7610_v8 = vpop.eup %7609 }
 0xa58   :  { %v5182_v19 = vmul.f32 %v7602_v63, %v5054_v1  ;;  %v5059_v23 = vsub.f32 2.0, %v4931_v48  ;;  %v4934_v46 = vmul.f32 %v7610_v8, %v11894_v59 }
 0xa5a   :  { %v5310_v34 = vmul.f32 %v10960_v37, %v5182_v19  ;;  %v5187_v39 = vmul.f32 %v7606_v4, %v5059_v23  ;;  %v5062_v19 = vsub.f32 2.0, %v4934_v46  ;;  %v14171_v4 = vld [vmem:[#allocation59_spill] sm:$0xff] }
 0xa5b   :  { %7286 = vmatmul.msk.f32.gmra.mxu3 %vm3198_vm4, %v12315_v60 }
 0xa5c   :  { %v5950_v7 = vmul.f32 %v14170_v41, %v5310_v34  ;;  %v7612_v34 = vpop.eup %7611  ;;  %v5190_v48 = vmul.f32 %v7610_v8, %v5062_v19 }
 0xa5d   :  { %v4930_v41 = vmul.f32 %v7612_v34, %v11798_v50  ;;  %v7614_v23 = vpop.eup %7613  ;;  %v14172_v50 = vld [vmem:[#allocation66_spill] sm:$0xff] }
 0xa5f   :  { %v2535_v15 = vpop.permute.xlu1 %2534 }
 0xa60   :  { %7189 = vmatmul.msk.f32.gmra.mxu2 %vm2540_vm3, %v2535_v15  ;;  %v3123_v15 = vpop.f32.mrf.mxu2 }
 0xa62   :  { %v3492_v1 = vpop.xlane.xlu0 %3491 }
 0xa63   :  { %7287 = vmatmul.msk.f32.gmra.mxu3 %vm3198_vm4, %v12321_v20 }
 0xa67   :  { %v6249_v63 = vpop.permute.xlu1 %6248 }
 0xa68   :  { %v6590_v37 = vsel %vm3198_vm4, %v5950_v7, %v6249_v63  ;;  %7190 = vmatmul.msk.f32.gmra.mxu2 %vm2540_vm3, %v12258_v28  ;;  %v5315_v28 = vmul.f32 %v11068_v5, %v5187_v39  ;;  %v12359_v7 = vadd.f32 %v12144_v33, %v3123_v15  ;;  %v5058_v63 = vsub.f32 2.0, %v4930_v41 }
 0xa69   :  { %6718 = vst.msk [vmem:[%s13682_s8 + $0x150] sm:$0xff] %vm2540_vm3, %v6590_v37 }
 0xa6a   :  { %3497 = vmax.xlane.f32.xlu1 %v3496_v27  ;;  %v5955_v59 = vmul.f32 %v14171_v4, %v5315_v28  ;;  %v5186_v8 = vmul.f32 %v7612_v34, %v5058_v63  ;;  %v4933_v27 = vmul.f32 %v7614_v23, %v11875_v44  ;;  %v7616_v63 = vpop.eup %7615 }
 0xa6c   :  { %6268 = vrot.lane.b32.xlu2 %v9687_v16, %s7854_s15  ;;  %v5061_v19 = vsub.f32 2.0, %v4933_v27 }
 0xa6e   :  { %v5189_v15 = vmul.f32 %v7614_v23, %v5061_v19  ;;  %v3680_v23 = vsub.f32 %v12200_v56, %v3492_v1 }
 0xa70   :  { %7191 = vmatmul.msk.f32.gmra.mxu2 %vm2540_vm3, %v12282_v25  ;;  %v5318_v25 = vmul.f32 %v11248_v42, %v5190_v48  ;;  %v5314_v42 = vmul.f32 %v11039_v18, %v5186_v8  ;;  %v14173_v48 = vld [vmem:[#allocation56_spill] sm:$0xff]  ;;  %v14174_v18 = vld [vmem:[#allocation62_spill] sm:$0xff]  ;;  %v3905_v8 = vmul.f32 1.442695, %v3680_v23 }
 0xa72   :  { %v5958_v37 = vmul.f32 %v14172_v50, %v5318_v25  ;;  %v5954_v34 = vmul.f32 %v14173_v48, %v5314_v42  ;;  %v3126_v25 = vpop.f32.mrf.mxu2  ;;  %v4929_v50 = vmul.f32 %v7616_v63, %v11784_v32 }
 0xa74   :  { %6274 = vrot.lane.b32.xlu2 %v9728_v36, %s7854_s15  ;;  %v3508_v36 = vsel %vm3198_vm4, %v12359_v7, -inf  ;;  %v5057_v56 = vsub.f32 2.0, %v4929_v50 }
 0xa75   :  { %v6259_v16 = vpop.permute.xlu0 %6258 }
 0xa76   :  { %v6595_v5 = vsel %vm3198_vm4, %v5955_v59, %v6259_v16  ;;  %v5317_v59 = vmul.f32 %v11227_v61, %v5189_v15 }
 0xa77   :  { %6723 = vst.msk [vmem:[%s13682_s8 + $0x178] sm:$0xff] %vm2540_vm3, %v6595_v5 }
 0xa78   :  { %v5957_v41 = vmul.f32 %v14174_v18, %v5317_v59 }
 0xa7b   :  { %3509 = vmax.xlane.f32.xlu0 %v3508_v36  ;;  %v14175_v36 = vld [vmem:[#allocation96_spill] sm:$0xff] }
 0xa7d   :  { %v6265_v39 = vpop.permute.xlu0 %6264 }
 0xa7e   :  { %v6598_v46 = vsel %vm3198_vm4, %v5958_v37, %v6265_v39  ;;  %v3495_v28 = vpop.xlane.xlu2 %3494  ;;  %v12406_v37 = vpop.f32.mrf.mxu3 }
 0xa7f   :  { %6726 = vst.msk [vmem:[%s13682_s8 + $0x190] sm:$0xff] %vm2540_vm3, %v6598_v46  ;;  %v3681_v39 = vsub.f32 %v12212_v10, %v3495_v28  ;;  %v5185_v46 = vmul.f32 %v7616_v63, %v5057_v56  ;;  %v14177_v10 = vld [vmem:[#allocation53_spill] sm:$0xff] }
 0xa81   :  { %v3907_v42 = vmul.f32 1.442695, %v3681_v39  ;;  %v5313_v48 = vmul.f32 %v11024_v58, %v5185_v46  ;;  %v14180_v39 = vld [vmem:[#allocation77_spill] sm:$0xff] }
 0xa83   :  { %6266 = vrot.lane.b32.xlu1 %v9492_v13, %s7854_s15 }
 0xa86   :  { %v6257_v4 = vpop.permute.xlu2 %6256  ;;  %v12417_v19 = vpop.f32.mrf.mxu3 }
 0xa87   :  { %v6594_v44 = vsel %vm3198_vm4, %v5954_v34, %v6257_v4 }
 0xa88   :  { %6722 = vst.msk [vmem:[%s13682_s8 + $0x170] sm:$0xff] %vm2540_vm3, %v6594_v44 }
 0xa8b   :  { %6272 = vrot.lane.b32.xlu1 %v9661_v21, %s7854_s15 }
 0xa8e   :  { %v6263_v16 = vpop.permute.xlu2 %6262 }
 0xa8f   :  { %v6597_v13 = vsel %vm3198_vm4, %v5957_v41, %v6263_v16  ;;  %6282 = vrot.lane.b32.xlu0 %v9635_v47, %s7854_s15  ;;  %v12403_v47 = vadd.f32 %v12144_v33, %v3126_v25  ;;  %v14178_v25 = vld [vmem:[#allocation60_spill] sm:$0xff] }
 0xa90   :  { %6725 = vst.msk [vmem:[%s13682_s8 + $0x188] sm:$0xff] %vm2540_vm3, %v6597_v13  ;;  %v12435_v13 = vpop.f32.mrf.mxu3 }
 0xa92   :  { %v3489_v5 = vpop.xlane.xlu1 %3488 }
 0xa93   :  { %v3679_v61 = vsub.f32 %v12235_v62, %v3489_v5  ;;  %v3511_v62 = vsel %vm3198_vm4, %v12403_v47, -inf }
 0xa95   :  { %v3903_v21 = vmul.f32 1.442695, %v3679_v61  ;;  %v12443_v61 = vpop.f32.mrf.mxu2 }
 0xa97   :  { %7617 = vpow2.f32 %v3903_v21  ;;  %6288 = vrot.lane.b32.xlu0 %v14175_v36, %s7854_s15 }
 0xa98   :  { %7619 = vrcp.f32 %v11864_v31 }
 0xa99   :  { %7621 = vpow2.f32 %v3905_v8  ;;  %v14179_v8 = vld [vmem:[#allocation4_spill] sm:$0xff] }
 0xa9a   :  { %7623 = vrcp.f32 %v11969_v35 }
 0xa9b   :  { %7625 = vpow2.f32 %v3907_v42 }
 0xa9c   :  { %7627 = vrcp.f32 %v12028_v0 }
 0xa9d   :  { %v12410_v27 = vpop.eup %7617  ;;  %3512 = vmax.xlane.f32.xlu2 %v3511_v62  ;;  %7629 = vrcp.f32 %v11954_v40  ;;  %v3132_v56 = vpop.f32.mrf.mxu2 }
 0xa9e   :  { %14176 = vst [vmem:[#allocation48_spill] sm:$0xff] %v12410_v27  ;;  %v7620_v1 = vpop.eup %7619  ;;  %7288 = vmatmul.msk.f32.gmra.mxu3 %vm3198_vm4, %v12410_v27  ;;  %7631 = vrcp.f32 %v12018_v30 }
 0xa9f   :  { %v4932_v32 = vmul.f32 %v7620_v1, %v11864_v31  ;;  %v12419_v15 = vpop.eup %7621  ;;  %v5953_v31 = vmul.f32 %v14177_v10, %v5313_v48  ;;  %v12462_v48 = vadd.f32 %v12144_v33, %v3132_v56  ;;  %7633 = vrcp.f32 %v11940_v6 }
 0xaa0   :  { %v7624_v4 = vpop.eup %7623 }
 0xaa1   :  { %v5060_v34 = vsub.f32 2.0, %v4932_v32  ;;  %v4937_v28 = vmul.f32 %v7624_v4, %v11969_v35  ;;  %v12432_v58 = vpop.eup %7625  ;;  %v12441_v35 = vadd.f32 %v12144_v33, %v12335_v45  ;;  %v3517_v10 = vsel %vm3198_vm4, %v12462_v48, -inf }
 0xaa2   :  { %v7628_v5 = vpop.eup %7627 }
 0xaa3   :  { %v5188_v44 = vmul.f32 %v7620_v1, %v5060_v34  ;;  %v5065_v16 = vsub.f32 2.0, %v4937_v28  ;;  %v4940_v23 = vmul.f32 %v7628_v5, %v12028_v0  ;;  %v3505_v45 = vsel %vm3198_vm4, %v12441_v35, -inf  ;;  %v7630_v32 = vpop.eup %7629  ;;  %v14182_v28 = vld [vmem:[#allocation81_spill] sm:$0xff] }
 0xaa5   :  { %v5316_v41 = vmul.f32 %v11213_v57, %v5188_v44  ;;  %v5193_v63 = vmul.f32 %v7624_v4, %v5065_v16  ;;  %v5068_v62 = vsub.f32 2.0, %v4940_v23  ;;  %v4936_v4 = vmul.f32 %v7630_v32, %v11954_v40  ;;  %v14183_v23 = vld [vmem:[#allocation70_spill] sm:$0xff] }
 0xaa6   :  { %7289 = vmatmul.msk.f32.gmra.mxu3 %vm3198_vm4, %v12419_v15 }
 0xaa7   :  { %v5956_v21 = vmul.f32 %v14178_v25, %v5316_v41  ;;  %v5321_v0 = vmul.f32 %v11344_v3, %v5193_v63  ;;  %v5196_v1 = vmul.f32 %v7628_v5, %v5068_v62  ;;  %v14181_v3 = vld [vmem:[#allocation29_spill] sm:$0xff]  ;;  %v14186_v62 = vld [vmem:[#allocation79_spill] sm:$0xff] }
 0xaa8   :  { %v12447_v57 = vpop.xlane.xlu0 %3500 }
 0xaa9   :  { %v5961_v46 = vmul.f32 %v14180_v39, %v5321_v0  ;;  %v5324_v44 = vmul.f32 %v11394_v2, %v5196_v1  ;;  %v3135_v0 = vpop.f32.mrf.mxu2  ;;  %v14187_v1 = vld [vmem:[#allocation5_spill] sm:$0xff] }
 0xaaa   :  { %v6255_v59 = vpop.permute.xlu1 %6254 }
 0xaab   :  { %v6593_v18 = vsel %vm3198_vm4, %v5953_v31, %v6255_v59  ;;  %v5064_v31 = vsub.f32 2.0, %v4936_v4  ;;  %v5964_v59 = vmul.f32 %v14182_v28, %v5324_v44  ;;  %v12510_v44 = vadd.f32 %v12144_v33, %v3135_v0 }
 0xaac   :  { %6721 = vst.msk [vmem:[%s13682_s8 + $0x168] sm:$0xff] %vm2540_vm3, %v6593_v18  ;;  %v7632_v18 = vpop.eup %7631 }
 0xaad   :  { %v5192_v5 = vmul.f32 %v7630_v32, %v5064_v31  ;;  %v4939_v40 = vmul.f32 %v7632_v18, %v12018_v30  ;;  %v7634_v4 = vpop.eup %7633 }
 0xaae   :  { %7290 = vmatmul.msk.f32.gmra.mxu3 %vm3198_vm4, %v12432_v58  ;;  %v4935_v28 = vmul.f32 %v7634_v4, %v11940_v6 }
 0xaaf   :  { %v5320_v25 = vmul.f32 %v11320_v38, %v5192_v5  ;;  %v14185_v38 = vld [vmem:[#allocation99_spill] sm:$0xff] }
 0xab0   :  { %v5063_v5 = vsub.f32 2.0, %v4935_v28  ;;  %v12558_v28 = vadd.f32 %v12144_v33, %v12443_v61 }
 0xab1   :  { %v12504_v32 = vpop.f32.mrf.mxu2 }
 0xab2   :  { %v6261_v36 = vpop.permute.xlu1 %6260  ;;  %v5191_v6 = vmul.f32 %v7634_v4, %v5063_v5  ;;  %v14196_v5 = vld [vmem:[#allocation74_spill] sm:$0xff]  ;;  %v3514_v61 = vsel %vm3198_vm4, %v12558_v28, -inf }
 0xab3   :  { %v6596_v50 = vsel %vm3198_vm4, %v5956_v21, %v6261_v36  ;;  %v5067_v21 = vsub.f32 2.0, %v4939_v40  ;;  %v5960_v36 = vmul.f32 %v14183_v23, %v5320_v25  ;;  %v14191_v23 = vld [vmem:[#allocation205_spill] sm:$0xff] }
 0xab4   :  { %6724 = vst.msk [vmem:[%s13682_s8 + $0x180] sm:$0xff] %vm2540_vm3, %v6596_v50  ;;  %v14184_v50 = vld [vmem:[#allocation100_spill] sm:$0xff] }
 0xab5   :  { %6280 = vrot.lane.b32.xlu2 %v14179_v8, %s7854_s15  ;;  %3506 = vmax.xlane.f32.xlu1 %v3505_v45  ;;  %v5195_v63 = vmul.f32 %v7632_v18, %v5067_v21  ;;  %v3520_v18 = vsel %vm3198_vm4, %v12510_v44, -inf }
 0xab7   :  { %v5323_v30 = vmul.f32 %v11384_v12, %v5195_v63  ;;  %v14188_v12 = vld [vmem:[#allocation19_spill] sm:$0xff] }
 0xab9   :  { %v5963_v56 = vmul.f32 %v14186_v62, %v5323_v30  ;;  %v3141_v31 = vpop.f32.mrf.mxu2 }
 0xabb   :  { %v6271_v42 = vpop.permute.xlu0 %6270 }
 0xabc   :  { %v6601_v34 = vsel %vm3198_vm4, %v5961_v46, %v6271_v42 }
 0xabd   :  { %6729 = vst.msk [vmem:[%s13682_s8 + $0x1a8] sm:$0xff] %vm2540_vm3, %v6601_v34  ;;  %6286 = vrot.lane.b32.xlu2 %v14181_v3, %s7854_s15 }
 0xac1   :  { %3518 = vmax.xlane.f32.xlu0 %v3517_v10  ;;  %v3683_v10 = vsub.f32 %v12263_v43, %v12447_v57  ;;  %v12527_v21 = vpop.f32.mrf.mxu2 }
 0xac3   :  { %v6277_v41 = vpop.permute.xlu0 %6276 }
 0xac4   :  { %v6604_v16 = vsel %vm3198_vm4, %v5964_v59, %v6277_v41  ;;  %v12516_v59 = vpop.f32.mrf.mxu3  ;;  %v14189_v41 = vld [vmem:[#allocation196_spill] sm:$0xff] }
 0xac5   :  { %6732 = vst.msk [vmem:[%s13682_s8 + $0x1c0] sm:$0xff] %vm2540_vm3, %v6604_v16 }
 0xac7   :  { %v3504_v2 = vpop.xlane.xlu2 %3503 }
 0xac8   :  { %v3684_v43 = vsub.f32 %v12299_v55, %v3504_v2  ;;  %v14193_v2 = vld [vmem:[#allocation67_spill] sm:$0xff] }
 0xaca   :  { %v3913_v63 = vmul.f32 1.442695, %v3684_v43 }
 0xace   :  { %6278 = vrot.lane.b32.xlu1 %v14184_v50, %s7854_s15 }
 0xacf   :  { %v6269_v45 = vpop.permute.xlu2 %6268 }
 0xad0   :  { %v6600_v8 = vsel %vm3198_vm4, %v5960_v36, %v6269_v45  ;;  %v12530_v36 = vpop.f32.mrf.mxu3  ;;  %v14192_v45 = vld [vmem:[#allocation39_spill] sm:$0xff] }
 0xad1   :  { %6728 = vst.msk [vmem:[%s13682_s8 + $0x1a0] sm:$0xff] %vm2540_vm3, %v6600_v8  ;;  %v5319_v8 = vmul.f32 %v14192_v45, %v5191_v6  ;;  %v14197_v6 = vld [vmem:[#allocation69_spill] sm:$0xff] }
 0xad5   :  { %6294 = vrot.lane.b32.xlu0 %v14185_v38, %s7854_s15  ;;  %v5959_v38 = vmul.f32 %v14193_v2, %v5319_v8  ;;  %v14200_v2 = vld [vmem:[#allocation134_spill] sm:$0xff] }
 0xad6   :  { %6284 = vrot.lane.b32.xlu1 %v14187_v1, %s7854_s15 }
 0xad7   :  { %v6275_v39 = vpop.permute.xlu2 %6274 }
 0xad8   :  { %v6603_v46 = vsel %vm3198_vm4, %v5963_v56, %v6275_v39  ;;  %v12540_v39 = vpop.f32.mrf.mxu2  ;;  %v12550_v4 = vpop.f32.mrf.mxu3 }
 0xad9   :  { %6731 = vst.msk [vmem:[%s13682_s8 + $0x1b8] sm:$0xff] %vm2540_vm3, %v6603_v46 }
 0xadd   :  { %6300 = vrot.lane.b32.xlu0 %v14188_v12, %s7854_s15  ;;  %v3498_v42 = vpop.xlane.xlu1 %3497  ;;  %v14194_v12 = vld [vmem:[#allocation118_spill] sm:$0xff] }
 0xade   :  { %v3682_v34 = vsub.f32 %v12332_v11, %v3498_v42  ;;  %v3911_v11 = vmul.f32 1.442695, %v3683_v10 }
 0xae0   :  { %v3909_v3 = vmul.f32 1.442695, %v3682_v34  ;;  %v3150_v8 = vpop.f32.mrf.mxu2 }
 0xae2   :  { %7635 = vpow2.f32 %v3909_v3 }
 0xae3   :  { %7637 = vrcp.f32 %v12003_v49 }
 0xae4   :  { %7639 = vrcp.f32 %v14189_v41 }
 0xae5   :  { %7641 = vpow2.f32 %v3911_v11 }
 0xae6   :  { %3521 = vmax.xlane.f32.xlu2 %v3520_v18  ;;  %7643 = vrcp.f32 %v14191_v23  ;;  %v14195_v18 = vld [vmem:[#allocation131_spill] sm:$0xff] }
 0xae7   :  { %7645 = vpow2.f32 %v3913_v63 }
 0xae8   :  { %v12521_v16 = vpop.eup %7635  ;;  %7647 = vrcp.f32 %v14197_v6 }
 0xae9   :  { %14190 = vst [vmem:[#allocation54_spill] sm:$0xff] %v12521_v16  ;;  %v7638_v40 = vpop.eup %7637  ;;  %7291 = vmatmul.msk.f32.gmra.mxu3 %vm3198_vm4, %v12521_v16 }
 0xaea   :  { %v4938_v57 = vmul.f32 %v7638_v40, %v12003_v49  ;;  %v7640_v25 = vpop.eup %7639 }
 0xaeb   :  { %v12532_v50 = vpop.eup %7641  ;;  %v4943_v30 = vmul.f32 %v7640_v25, %v14189_v41 }
 0xaec   :  { %v5066_v0 = vsub.f32 2.0, %v4938_v57  ;;  %v7644_v62 = vpop.eup %7643 }
 0xaed   :  { %v5071_v55 = vsub.f32 2.0, %v4943_v30  ;;  %v12546_v46 = vpop.eup %7645  ;;  %v4946_v3 = vmul.f32 %v7644_v62, %v14191_v23  ;;  %v14199_v23 = vld [vmem:[#allocation88_spill] sm:$0xff]  ;;  %v12574_v30 = vadd.f32 %v12144_v33, %v3141_v31 }
 0xaee   :  { %v5194_v49 = vmul.f32 %v7638_v40, %v5066_v0  ;;  %v12552_v10 = vpop.xlane.xlu0 %3509 }
 0xaef   :  { %v5199_v34 = vmul.f32 %v7640_v25, %v5071_v55  ;;  %v5074_v41 = vsub.f32 2.0, %v4946_v3  ;;  %v14198_v25 = vld [vmem:[#allocation8_spill] sm:$0xff]  ;;  %v7648_v55 = vpop.eup %7647 }
 0xaf0   :  { %v5322_v42 = vmul.f32 %v14194_v12, %v5194_v49  ;;  %v4942_v31 = vmul.f32 %v7648_v55, %v14197_v6  ;;  %v14203_v12 = vld [vmem:[#allocation92_spill] sm:$0xff] }
 0xaf1   :  { %7292 = vmatmul.msk.f32.gmra.mxu3 %vm3198_vm4, %v12532_v50  ;;  %v5327_v11 = vmul.f32 %v14195_v18, %v5199_v34  ;;  %v5202_v63 = vmul.f32 %v7644_v62, %v5074_v41  ;;  %v14202_v62 = vld [vmem:[#allocation41_spill] sm:$0xff]  ;;  %v3153_v34 = vpop.f32.mrf.mxu2  ;;  %v12590_v18 = vadd.f32 %v12144_v33, %v3150_v8  ;;  %v14205_v8 = vld [vmem:[#allocation86_spill] sm:$0xff] }
 0xaf2   :  { %v5962_v40 = vmul.f32 %v14196_v5, %v5322_v42  ;;  %v5070_v41 = vsub.f32 2.0, %v4942_v31 }
 0xaf3   :  { %v5967_v45 = vmul.f32 %v14199_v23, %v5327_v11 }
 0xaf5   :  { %v6267_v56 = vpop.permute.xlu1 %6266 }
 0xaf6   :  { %v6599_v1 = vsel %vm3198_vm4, %v5959_v38, %v6267_v56  ;;  %v5330_v38 = vmul.f32 %v14200_v2, %v5202_v63  ;;  %v14201_v56 = vld [vmem:[#allocation201_spill] sm:$0xff] }
 0xaf7   :  { %6727 = vst.msk [vmem:[%s13682_s8 + $0x198] sm:$0xff] %vm2540_vm3, %v6599_v1  ;;  %7649 = vrcp.f32 %v14201_v56  ;;  %v3526_v1 = vsel %vm3198_vm4, %v12574_v30, -inf }
 0xaf8   :  { %v5970_v42 = vmul.f32 %v14203_v12, %v5330_v38  ;;  %v14206_v38 = vld [vmem:[#allocation101_spill] sm:$0xff] }
 0xaf9   :  { %7293 = vmatmul.msk.f32.gmra.mxu3 %vm3198_vm4, %v12546_v46  ;;  %v12601_v23 = vpop.f32.mrf.mxu2 }
 0xafd   :  { %v6273_v43 = vpop.permute.xlu1 %6272  ;;  %v7650_v5 = vpop.eup %7649 }
 0xafe   :  { %v6602_v57 = vsel %vm3198_vm4, %v5962_v40, %v6273_v43  ;;  %6292 = vrot.lane.b32.xlu2 %v14198_v25, %s7854_s15  ;;  %v3535_v40 = vsel %vm3198_vm4, %v12590_v18, -inf  ;;  %v5198_v43 = vmul.f32 %v7648_v55, %v5070_v41  ;;  %v4945_v6 = vmul.f32 %v7650_v5, %v14201_v56  ;;  %v14204_v25 = vld [vmem:[#allocation128_spill] sm:$0xff]  ;;  %v14207_v55 = vld [vmem:[#allocation133_spill] sm:$0xff]  ;;  %v14211_v41 = vld [vmem:[#allocation191_spill] sm:$0xff] }
 0xaff   :  { %6730 = vst.msk [vmem:[%s13682_s8 + $0x1b0] sm:$0xff] %vm2540_vm3, %v6602_v57  ;;  %7651 = vrcp.f32 %v14211_v41 }
 0xb00   :  { %3515 = vmax.xlane.f32.xlu1 %v3514_v61  ;;  %v5326_v61 = vmul.f32 %v14204_v25, %v5198_v43  ;;  %v5073_v63 = vsub.f32 2.0, %v4945_v6  ;;  %v12630_v6 = vadd.f32 %v12144_v33, %v12527_v21  ;;  %7653 = vrcp.f32 %v12187_v53  ;;  %v12641_v21 = vpop.f32.mrf.mxu3 }
 0xb01   :  { %v6283_v0 = vpop.permute.xlu0 %6282  ;;  %14213 = vst [vmem:[#allocation83_spill] sm:$0xff] %v12641_v21 }
 0xb02   :  { %v6607_v49 = vsel %vm3198_vm4, %v5967_v45, %v6283_v0  ;;  %v5201_v45 = vmul.f32 %v7650_v5, %v5073_v63  ;;  %v5966_v0 = vmul.f32 %v14205_v8, %v5326_v61  ;;  %v3686_v63 = vsub.f32 %v12359_v7, %v12552_v10 }
 0xb03   :  { %6735 = vst.msk [vmem:[%s13682_s8 + $0x1d8] sm:$0xff] %vm2540_vm3, %v6607_v49  ;;  %v3529_v8 = vsel %vm3198_vm4, %v12630_v6, -inf }
 0xb04   :  { %v5329_v56 = vmul.f32 %v14207_v55, %v5201_v45  ;;  %v14212_v45 = vld [vmem:[#allocation199_spill] sm:$0xff] }
 0xb05   :  { %v7652_v61 = vpop.eup %7651 }
 0xb06   :  { %6298 = vrot.lane.b32.xlu2 %v14202_v62, %s7854_s15  ;;  %v12612_v62 = vpop.f32.mrf.mxu2 }
 0xb07   :  { %3527 = vmax.xlane.f32.xlu0 %v3526_v1  ;;  %v14208_v1 = vld [vmem:[#allocation91_spill] sm:$0xff] }
 0xb08   :  { %v5969_v31 = vmul.f32 %v14208_v1, %v5329_v56 }
 0xb09   :  { %v6289_v3 = vpop.permute.xlu0 %6288 }
 0xb0a   :  { %v6610_v11 = vsel %vm3198_vm4, %v5970_v42, %v6289_v3  ;;  %v14209_v3 = vld [vmem:[#allocation102_spill] sm:$0xff] }
 0xb0b   :  { %6738 = vst.msk [vmem:[%s13682_s8 + $0x1f0] sm:$0xff] %vm2540_vm3, %v6610_v11  ;;  %v14210_v11 = vld [vmem:[#allocation9_spill] sm:$0xff] }
 0xb0e   :  { %v12625_v5 = vpop.f32.mrf.mxu2 }
 0xb0f   :  { %3536 = vmax.xlane.f32.xlu0 %v3535_v40 }
 0xb10   :  { %v3513_v57 = vpop.xlane.xlu2 %3512 }
 0xb11   :  { %v3687_v56 = vsub.f32 %v12403_v47, %v3513_v57 }
 0xb18   :  { %v6281_v49 = vpop.permute.xlu2 %6280 }
 0xb19   :  { %v6606_v2 = vsel %vm3198_vm4, %v5966_v0, %v6281_v49  ;;  %6290 = vrot.lane.b32.xlu1 %v14206_v38, %s7854_s15  ;;  %v4941_v0 = vmul.f32 %v7652_v61, %v14211_v41  ;;  %v3917_v49 = vmul.f32 1.442695, %v3686_v63  ;;  %v12644_v38 = vadd.f32 %v12144_v33, %v3153_v34 }
 0xb1a   :  { %6734 = vst.msk [vmem:[%s13682_s8 + $0x1d0] sm:$0xff] %vm2540_vm3, %v6606_v2  ;;  %v7654_v2 = vpop.eup %7653 }
 0xb1b   :  { %v5069_v7 = vsub.f32 2.0, %v4941_v0  ;;  %v4949_v1 = vmul.f32 %v7654_v2, %v12187_v53 }
 0xb1d   :  { %v5077_v41 = vsub.f32 2.0, %v4949_v1 }
 0xb1f   :  { %v5205_v53 = vmul.f32 %v7654_v2, %v5077_v41  ;;  %v14219_v2 = vld [vmem:[#allocation132_spill] sm:$0xff]  ;;  %v12684_v41 = vadd.f32 %v12144_v33, %v12504_v32 }
 0xb20   :  { %v6287_v12 = vpop.permute.xlu2 %6286 }
 0xb21   :  { %v6609_v42 = vsel %vm3198_vm4, %v5969_v31, %v6287_v12  ;;  %6296 = vrot.lane.b32.xlu1 %v14209_v3, %s7854_s15  ;;  %v3538_v31 = vsel %vm3198_vm4, %v12644_v38, -inf  ;;  %v5197_v12 = vmul.f32 %v7652_v61, %v5069_v7  ;;  %v3919_v3 = vmul.f32 1.442695, %v3687_v56  ;;  %v14217_v56 = vld [vmem:[#allocation143_spill] sm:$0xff] }
 0xb22   :  { %6737 = vst.msk [vmem:[%s13682_s8 + $0x1e8] sm:$0xff] %vm2540_vm3, %v6609_v42  ;;  %v5333_v1 = vmul.f32 %v14217_v56, %v5205_v53  ;;  %v14221_v53 = vld [vmem:[#allocation89_spill] sm:$0xff] }
 0xb23   :  { %6306 = vrot.lane.b32.xlu0 %v14210_v11, %s7854_s15 }
 0xb28   :  { %v3507_v40 = vpop.xlane.xlu1 %3506 }
 0xb29   :  { %v3685_v43 = vsub.f32 %v12441_v35, %v3507_v40  ;;  %v12639_v35 = vpop.f32.mrf.mxu2  ;;  %v12656_v40 = vpop.f32.mrf.mxu3 }
 0xb2b   :  { %v3915_v25 = vmul.f32 1.442695, %v3685_v43 }
 0xb2d   :  { %7655 = vpow2.f32 %v3915_v25  ;;  %v14215_v25 = vld [vmem:[#allocation122_spill] sm:$0xff] }
 0xb2e   :  { %7657 = vrcp.f32 %v14212_v45  ;;  %v5325_v63 = vmul.f32 %v14215_v25, %v5197_v12  ;;  %v14220_v25 = vld [vmem:[#allocation95_spill] sm:$0xff] }
 0xb2f   :  { %3530 = vmax.xlane.f32.xlu2 %v3529_v8  ;;  %7659 = vrcp.f32 %v12244_v14  ;;  %v14216_v8 = vld [vmem:[#allocation82_spill] sm:$0xff] }
 0xb30   :  { %7661 = vpow2.f32 %v3917_v49  ;;  %v5965_v0 = vmul.f32 %v14216_v8, %v5325_v63  ;;  %v5973_v63 = vmul.f32 %v14220_v25, %v5333_v1 }
 0xb31   :  { %v3168_v42 = vpop.f32.mrf.mxu2  ;;  %7663 = vpow2.f32 %v3919_v3 }
 0xb32   :  { %7665 = vrcp.f32 %v12171_v22 }
 0xb33   :  { %v12646_v55 = vpop.eup %7655  ;;  %7667 = vrcp.f32 %v12227_v17 }
 0xb34   :  { %14214 = vst [vmem:[#allocation84_spill] sm:$0xff] %v12646_v55  ;;  %v7658_v10 = vpop.eup %7657  ;;  %7294 = vmatmul.msk.f32.gmra.mxu3 %vm3198_vm4, %v12646_v55  ;;  %7669 = vrcp.f32 %v12161_v29 }
 0xb35   :  { %v4944_v34 = vmul.f32 %v7658_v10, %v14212_v45  ;;  %v7660_v11 = vpop.eup %7659  ;;  %v12664_v45 = vpop.xlane.xlu0 %3518 }
 0xb36   :  { %v12658_v43 = vpop.eup %7661  ;;  %v4952_v57 = vmul.f32 %v7660_v11, %v12244_v14 }
 0xb37   :  { %3539 = vmax.xlane.f32.xlu2 %v3538_v31  ;;  %v5072_v47 = vsub.f32 2.0, %v4944_v34  ;;  %v12673_v12 = vpop.eup %7663  ;;  %v12678_v34 = vpop.f32.mrf.mxu3 }
 0xb38   :  { %v5080_v31 = vsub.f32 2.0, %v4952_v57  ;;  %14218 = vst [vmem:[#allocation51_spill] sm:$0xff] %v12673_v12  ;;  %v7666_v56 = vpop.eup %7665 }
 0xb39   :  { %v5200_v61 = vmul.f32 %v7658_v10, %v5072_v47  ;;  %v12676_v10 = vpop.f32.mrf.mxu2  ;;  %v4948_v25 = vmul.f32 %v7666_v56, %v12171_v22 }
 0xb3a   :  { %v5208_v3 = vmul.f32 %v7660_v11, %v5080_v31  ;;  %v14222_v11 = vld [vmem:[#allocation153_spill] sm:$0xff]  ;;  %v14223_v31 = vld [vmem:[#allocation20_spill] sm:$0xff] }
 0xb3b   :  { %v5328_v14 = vmul.f32 %v14219_v2, %v5200_v61  ;;  %v12691_v61 = vadd.f32 %v12144_v33, %v12612_v62  ;;  %v3523_v62 = vsel %vm3198_vm4, %v12684_v41, -inf }
 0xb3c   :  { %7295 = vmatmul.msk.f32.gmra.mxu3 %vm3198_vm4, %v12658_v43 }
 0xb3d   :  { %v5968_v57 = vmul.f32 %v14221_v53, %v5328_v14  ;;  %v14224_v14 = vld [vmem:[#allocation14_spill] sm:$0xff]  ;;  %v5076_v53 = vsub.f32 2.0, %v4948_v25  ;;  %v14227_v25 = vld [vmem:[#allocation151_spill] sm:$0xff] }
 0xb40   :  { %v6279_v49 = vpop.permute.xlu1 %6278 }
 0xb41   :  { %v6605_v7 = vsel %vm3198_vm4, %v5965_v0, %v6279_v49  ;;  %v5336_v49 = vmul.f32 %v14222_v11, %v5208_v3  ;;  %v12708_v1 = vpop.f32.mrf.mxu2 }
 0xb42   :  { %6733 = vst.msk [vmem:[%s13682_s8 + $0x1c8] sm:$0xff] %vm2540_vm3, %v6605_v7  ;;  %v3544_v7 = vsel %vm3198_vm4, %v12691_v61, -inf }
 0xb43   :  { %v5976_v2 = vmul.f32 %v14223_v31, %v5336_v49  ;;  %v14225_v49 = vld [vmem:[#allocation142_spill] sm:$0xff] }
 0xb44   :  { %7296 = vmatmul.msk.f32.gmra.mxu3 %vm3198_vm4, %v12673_v12 }
 0xb47   :  { %v6295_v47 = vpop.permute.xlu0 %6294 }
 0xb48   :  { %v6613_v8 = vsel %vm3198_vm4, %v5973_v63, %v6295_v47  ;;  %v6285_v0 = vpop.permute.xlu1 %6284  ;;  %v12716_v63 = vadd.f32 %v12144_v33, %v3168_v42  ;;  %v12729_v33 = vld [vmem:[%s13680_s6] ss:$0 sm:$0xff] }
 0xb49   :  { %6741 = vst.msk [vmem:[%s13682_s8 + $0x208] sm:$0xff] %vm2540_vm3, %v6613_v8  ;;  %v6608_v32 = vsel %vm3198_vm4, %v5968_v57, %v6285_v0  ;;  %v7668_v8 = vpop.eup %7667  ;;  %v3177_v0 = vpop.f32.mrf.mxu2 }
 0xb4a   :  { %6736 = vst.msk [vmem:[%s13682_s8 + $0x1e0] sm:$0xff] %vm2540_vm3, %v6608_v32  ;;  %v3553_v57 = vsel %vm3198_vm4, %v12716_v63, -inf  ;;  %v5204_v32 = vmul.f32 %v7666_v56, %v5076_v53  ;;  %v4951_v22 = vmul.f32 %v7668_v8, %v12227_v17  ;;  %v12732_v42 = vadd.f32 %v12729_v33, %v3177_v0  ;;  %v14226_v56 = vld [vmem:[#allocation94_spill] sm:$0xff]  ;;  %v14228_v53 = vld [vmem:[#allocation32_spill] sm:$0xff] }
 0xb4b   :  { %3524 = vmax.xlane.f32.xlu1 %v3523_v62 }
 0xb4c   :  { %v5332_v62 = vmul.f32 %v14225_v49, %v5204_v32  ;;  %v3562_v31 = vsel %vm3198_vm4, %v12732_v42, -inf  ;;  %v12757_v49 = vadd.f32 %v12729_v33, %v12625_v5 }
 0xb4d   :  { %3545 = vmax.xlane.f32.xlu0 %v3544_v7  ;;  %v5079_v7 = vsub.f32 2.0, %v4951_v22  ;;  %v14230_v22 = vld [vmem:[#allocation11_spill] sm:$0xff] }
 0xb4f   :  { %6304 = vrot.lane.b32.xlu2 %v14224_v14, %s7854_s15  ;;  %v6301_v3 = vpop.permute.xlu0 %6300  ;;  %v5972_v14 = vmul.f32 %v14226_v56, %v5332_v62  ;;  %v7670_v56 = vpop.eup %7669 }
 0xb50   :  { %v6616_v47 = vsel %vm3198_vm4, %v5976_v2, %v6301_v3  ;;  %v5207_v2 = vmul.f32 %v7668_v8, %v5079_v7  ;;  %v4947_v5 = vmul.f32 %v7670_v56, %v12161_v29 }
 0xb51   :  { %6744 = vst.msk [vmem:[%s13682_s8 + $0x220] sm:$0xff] %vm2540_vm3, %v6616_v47 }
 0xb52   :  { %v5335_v47 = vmul.f32 %v14227_v25, %v5207_v2 }
 0xb55   :  { %3554 = vmax.xlane.f32.xlu0 %v3553_v57  ;;  %v14229_v57 = vld [vmem:[#allocation98_spill] sm:$0xff] }
 0xb56   :  { %v5975_v0 = vmul.f32 %v14229_v57, %v5335_v47  ;;  %v5075_v47 = vsub.f32 2.0, %v4947_v5  ;;  %v3180_v57 = vpop.f32.mrf.mxu2 }
 0xb59   :  { %v3522_v11 = vpop.xlane.xlu2 %3521 }
 0xb5a   :  { %v3690_v29 = vsub.f32 %v12510_v44, %v3522_v11  ;;  %v12798_v11 = vadd.f32 %v12729_v33, %v12540_v39 }
 0xb5c   :  { %v3532_v39 = vsel %vm3198_vm4, %v12798_v11, -inf }
 0xb5d   :  { %3563 = vmax.xlane.f32.xlu0 %v3562_v31  ;;  %v12760_v31 = vpop.f32.mrf.mxu3 }
 0xb5e   :  { %14231 = vst [vmem:[#allocation87_spill] sm:$0xff] %v12760_v31  ;;  %v14263_v31 = vld [vmem:[#allocation36_spill] sm:$0xff] }
 0xb61   :  { %v6293_v17 = vpop.permute.xlu2 %6292 }
 0xb62   :  { %v6612_v3 = vsel %vm3198_vm4, %v5972_v14, %v6293_v17  ;;  %v3547_v14 = vsel %vm3198_vm4, %v12757_v49, -inf  ;;  %v3689_v17 = vsub.f32 %v12462_v48, %v12664_v45 }
 0xb63   :  { %6740 = vst.msk [vmem:[%s13682_s8 + $0x200] sm:$0xff] %vm2540_vm3, %v6612_v3 }
 0xb64   :  { %6302 = vrot.lane.b32.xlu1 %v14228_v53, %s7854_s15  ;;  %v3923_v3 = vmul.f32 1.442695, %v3689_v17 }
 0xb65   :  { %v12779_v45 = vpop.f32.mrf.mxu3 }
 0xb69   :  { %v6299_v32 = vpop.permute.xlu2 %6298 }
 0xb6a   :  { %v6615_v8 = vsel %vm3198_vm4, %v5975_v0, %v6299_v32  ;;  %v5203_v0 = vmul.f32 %v7670_v56, %v5075_v47  ;;  %v14234_v47 = vld [vmem:[#allocation93_spill] sm:$0xff] }
 0xb6b   :  { %6743 = vst.msk [vmem:[%s13682_s8 + $0x218] sm:$0xff] %vm2540_vm3, %v6615_v8  ;;  %v12784_v8 = vadd.f32 %v12729_v33, %v3180_v57 }
 0xb6d   :  { %v3565_v44 = vsel %vm3198_vm4, %v12784_v8, -inf }
 0xb71   :  { %6312 = vrot.lane.b32.xlu0 %v14230_v22, %s7854_s15 }
 0xb73   :  { %v3516_v62 = vpop.xlane.xlu1 %3515 }
 0xb74   :  { %v3688_v7 = vsub.f32 %v12558_v28, %v3516_v62  ;;  %v12771_v28 = vadd.f32 %v12729_v33, %v12676_v10 }
 0xb76   :  { %v3921_v2 = vmul.f32 1.442695, %v3688_v7  ;;  %v3556_v48 = vsel %vm3198_vm4, %v12771_v28, -inf  ;;  %v3925_v7 = vmul.f32 1.442695, %v3690_v29 }
 0xb78   :  { %7671 = vpow2.f32 %v3921_v2  ;;  %3548 = vmax.xlane.f32.xlu2 %v3547_v14  ;;  %v14233_v14 = vld [vmem:[#allocation136_spill] sm:$0xff] }
 0xb79   :  { %7673 = vrcp.f32 %v12219_v9  ;;  %v5331_v17 = vmul.f32 %v14233_v14, %v5203_v0 }
 0xb7a   :  { %7675 = vrcp.f32 %v12325_v24  ;;  %v12786_v22 = vpop.xlane.xlu0 %3527 }
 0xb7b   :  { %7677 = vpow2.f32 %v3923_v3  ;;  %v12802_v3 = vpop.f32.mrf.mxu3  ;;  %v5971_v57 = vmul.f32 %v14234_v47, %v5331_v17  ;;  %v12822_v17 = vadd.f32 %v12729_v33, %v12601_v23 }
 0xb7c   :  { %7679 = vpow2.f32 %v3925_v7 }
 0xb7d   :  { %v3541_v23 = vsel %vm3198_vm4, %v12822_v17, -inf  ;;  %7681 = vrcp.f32 %v12313_v52 }
 0xb7e   :  { %v12773_v25 = vpop.eup %7671  ;;  %7683 = vrcp.f32 %v12301_v26 }
 0xb7f   :  { %14232 = vst [vmem:[#allocation90_spill] sm:$0xff] %v12773_v25  ;;  %v7674_v53 = vpop.eup %7673  ;;  %7297 = vmatmul.msk.f32.gmra.mxu3 %vm3198_vm4, %v12773_v25  ;;  %v14245_v25 = vld [vmem:[#allocation104_spill] sm:$0xff] }
 0xb80   :  { %3557 = vmax.xlane.f32.xlu2 %v3556_v48  ;;  %v7676_v10 = vpop.eup %7675  ;;  %v4950_v32 = vmul.f32 %v7674_v53, %v12219_v9 }
 0xb81   :  { %v4955_v62 = vmul.f32 %v7676_v10, %v12325_v24  ;;  %v12789_v2 = vpop.eup %7677  ;;  %v12800_v24 = vpop.f32.mrf.mxu2 }
 0xb82   :  { %v5078_v5 = vsub.f32 2.0, %v4950_v32  ;;  %v12806_v32 = vpop.xlane.xlu0 %3536 }
 0xb83   :  { %v5083_v9 = vsub.f32 2.0, %v4955_v62  ;;  %v12814_v62 = vpop.eup %7679 }
 0xb84   :  { %v5206_v56 = vmul.f32 %v7674_v53, %v5078_v5  ;;  %14235 = vst [vmem:[#allocation47_spill] sm:$0xff] %v12814_v62  ;;  %v14236_v53 = vld [vmem:[#allocation150_spill] sm:$0xff]  ;;  %v12824_v5 = vpop.f32.mrf.mxu3 }
 0xb85   :  { %v5211_v29 = vmul.f32 %v7676_v10, %v5083_v9  ;;  %v14237_v10 = vld [vmem:[#allocation162_spill] sm:$0xff]  ;;  %14238 = vst [vmem:[#allocation59_spill] sm:$0xff] %v12824_v5 }
 0xb86   :  { %v5334_v7 = vmul.f32 %v14236_v53, %v5206_v56 }
 0xb87   :  { %7298 = vmatmul.msk.f32.gmra.mxu3 %vm3198_vm4, %v12789_v2  ;;  %v5339_v14 = vmul.f32 %v14237_v10, %v5211_v29 }
 0xb88   :  { %3566 = vmax.xlane.f32.xlu2 %v3565_v44  ;;  %v14239_v44 = vld [vmem:[#allocation97_spill] sm:$0xff] }
 0xb89   :  { %v5974_v9 = vmul.f32 %v14239_v44, %v5334_v7  ;;  %v3186_v47 = vpop.f32.mrf.mxu2  ;;  %v14241_v44 = vld [vmem:[#allocation18_spill] sm:$0xff] }
 0xb8b   :  { %v6291_v48 = vpop.permute.xlu1 %6290 }
 0xb8c   :  { %v6611_v0 = vsel %vm3198_vm4, %v5971_v57, %v6291_v48  ;;  %v12846_v10 = vpop.f32.mrf.mxu3 }
 0xb8d   :  { %6739 = vst.msk [vmem:[%s13682_s8 + $0x1f8] sm:$0xff] %vm2540_vm3, %v6611_v0  ;;  %v14240_v0 = vld [vmem:[#allocation6_spill] sm:$0xff] }
 0xb8e   :  { %3533 = vmax.xlane.f32.xlu1 %v3532_v39  ;;  %v5979_v56 = vmul.f32 %v14240_v0, %v5339_v14  ;;  %v12836_v39 = vadd.f32 %v12729_v33, %v3186_v47  ;;  %v7682_v14 = vpop.eup %7681 }
 0xb8f   :  { %7299 = vmatmul.msk.f32.gmra.mxu3 %vm3198_vm4, %v12814_v62 }
 0xb90   :  { %v3571_v7 = vsel %vm3198_vm4, %v12836_v39, -inf }
 0xb93   :  { %v6297_v57 = vpop.permute.xlu1 %6296 }
 0xb94   :  { %v6614_v48 = vsel %vm3198_vm4, %v5974_v9, %v6297_v57  ;;  %v4954_v9 = vmul.f32 %v7682_v14, %v12313_v52 }
 0xb95   :  { %6742 = vst.msk [vmem:[%s13682_s8 + $0x210] sm:$0xff] %vm2540_vm3, %v6614_v48  ;;  %v6307_v29 = vpop.permute.xlu0 %6306  ;;  %v12851_v48 = vpop.f32.mrf.mxu3 }
 0xb96   :  { %v6619_v53 = vsel %vm3198_vm4, %v5979_v56, %v6307_v29  ;;  %3542 = vmax.xlane.f32.xlu1 %v3541_v23  ;;  %v5082_v57 = vsub.f32 2.0, %v4954_v9  ;;  %v14242_v29 = vld [vmem:[#allocation160_spill] sm:$0xff] }
 0xb97   :  { %6747 = vst.msk [vmem:[%s13682_s8 + $0x238] sm:$0xff] %vm2540_vm3, %v6619_v53 }
 0xb98   :  { %v5210_v0 = vmul.f32 %v7682_v14, %v5082_v57  ;;  %v3189_v57 = vpop.f32.mrf.mxu2 }
 0xb9a   :  { %v5338_v23 = vmul.f32 %v14242_v29, %v5210_v0 }
 0xb9b   :  { %3572 = vmax.xlane.f32.xlu0 %v3571_v7  ;;  %v14244_v7 = vld [vmem:[#allocation43_spill] sm:$0xff] }
 0xb9d   :  { %v12856_v53 = vpop.f32.mrf.mxu3 }
 0xb9e   :  { %14243 = vst [vmem:[#allocation66_spill] sm:$0xff] %v12856_v53 }
 0xba0   :  { %6310 = vrot.lane.b32.xlu2 %v14241_v44, %s7854_s15  ;;  %v14246_v44 = vld [vmem:[#allocation23_spill] sm:$0xff] }
 0xba1   :  { %v5978_v55 = vmul.f32 %v14246_v44, %v5338_v23  ;;  %v12877_v23 = vadd.f32 %v12729_v33, %v3189_v57 }
 0xba2   :  { %v3531_v47 = vpop.xlane.xlu2 %3530 }
 0xba5   :  { %v12868_v14 = vpop.f32.mrf.mxu3 }
 0xbaa   :  { %v12853_v56 = vpop.xlane.xlu2 %3539 }
 0xbad   :  { %v12872_v16 = vpop.f32.mrf.mxu3 }
 0xbaf   :  { %6318 = vrot.lane.b32.xlu0 %v14244_v7, %s7854_s15  ;;  %6308 = vrot.lane.b32.xlu1 %v14245_v25, %s7854_s15  ;;  %v7684_v25 = vpop.eup %7683 }
 0xbb0   :  { %v4953_v44 = vmul.f32 %v7684_v25, %v12301_v26  ;;  %v3693_v26 = vsub.f32 %v12630_v6, %v3531_v47 }
 0xbb2   :  { %v6305_v52 = vpop.permute.xlu2 %6304 }
 0xbb3   :  { %v6618_v9 = vsel %vm3198_vm4, %v5978_v55, %v6305_v52  ;;  %v3692_v55 = vsub.f32 %v12574_v30, %v12786_v22  ;;  %v12880_v52 = vpop.f32.mrf.mxu2 }
 0xbb4   :  { %6746 = vst.msk [vmem:[%s13682_s8 + $0x230] sm:$0xff] %vm2540_vm3, %v6618_v9 }
 0xbb5   :  { %v3929_v9 = vmul.f32 1.442695, %v3692_v55  ;;  %v12891_v30 = vpop.f32.mrf.mxu3 }
 0xbb6   :  { %14248 = vst [vmem:[#allocation62_spill] sm:$0xff] %v12891_v30 }
 0xbbb   :  { %v3195_v5 = vpop.f32.mrf.mxu2 }
 0xbbc   :  { %v12907_v6 = vadd.f32 %v12729_v33, %v3195_v5 }
 0xbbd   :  { %v12909_v47 = vpop.f32.mrf.mxu3 }
 0xbbe   :  { %v3525_v0 = vpop.xlane.xlu1 %3524  ;;  %14251 = vst [vmem:[#allocation53_spill] sm:$0xff] %v12907_v6 }
 0xbbf   :  { %v3691_v29 = vsub.f32 %v12684_v41, %v3525_v0  ;;  %v3574_v41 = vsel %vm3198_vm4, %v12877_v23, -inf }
 0xbc0   :  { %v12882_v27 = vpop.xlane.xlu0 %3545 }
 0xbc1   :  { %v3927_v7 = vmul.f32 1.442695, %v3691_v29  ;;  %v5081_v29 = vsub.f32 2.0, %v4953_v44 }
 0xbc3   :  { %7685 = vpow2.f32 %v3927_v7  ;;  %v5209_v22 = vmul.f32 %v7684_v25, %v5081_v29  ;;  %v3931_v7 = vmul.f32 1.442695, %v3693_v26  ;;  %v14252_v25 = vld [vmem:[#allocation2_spill] sm:$0xff] }
 0xbc4   :  { %7687 = vrcp.f32 %v12435_v13 }
 0xbc5   :  { %7689 = vpow2.f32 %v3929_v9  ;;  %v5337_v53 = vmul.f32 %v14250_v51, %v5209_v22  ;;  %v12904_v9 = vadd.f32 %v12729_v33, %v12639_v35 }
 0xbc6   :  { %7691 = vpow2.f32 %v3931_v7 }
 0xbc7   :  { %v5977_v51 = vmul.f32 %v14252_v25, %v5337_v53  ;;  %v3550_v35 = vsel %vm3198_vm4, %v12904_v9, -inf  ;;  %v14254_v25 = vld [vmem:[#allocation172_spill] sm:$0xff]  ;;  %7693 = vrcp.f32 %v12417_v19 }
 0xbc8   :  { %v12897_v44 = vpop.xlane.xlu0 %3554  ;;  %7695 = vrcp.f32 %v12406_v37 }
 0xbc9   :  { %v12886_v0 = vpop.eup %7685  ;;  %3575 = vmax.xlane.f32.xlu2 %v3574_v41 }
 0xbca   :  { %14247 = vst [vmem:[#allocation56_spill] sm:$0xff] %v12886_v0  ;;  %7300 = vmatmul.msk.f32.gmra.mxu3 %vm3198_vm4, %v12886_v0  ;;  %v7688_v57 = vpop.eup %7687  ;;  %v12941_v0 = vadd.f32 %v12729_v33, %v12800_v24 }
 0xbcb   :  { %v12894_v55 = vpop.eup %7689  ;;  %v4958_v41 = vmul.f32 %v7688_v57, %v12435_v13  ;;  %v3580_v13 = vsel %vm3198_vm4, %v12907_v6, -inf }
 0xbcc   :  { %14249 = vst [vmem:[#allocation96_spill] sm:$0xff] %v12894_v55  ;;  %v12921_v5 = vpop.eup %7691 }
 0xbcd   :  { %v5086_v29 = vsub.f32 2.0, %v4958_v41  ;;  %14253 = vst [vmem:[#allocation60_spill] sm:$0xff] %v12921_v5  ;;  %v12929_v41 = vadd.f32 %v12729_v33, %v12708_v1 }
 0xbcf   :  { %v5214_v53 = vmul.f32 %v7688_v57, %v5086_v29  ;;  %v14256_v57 = vld [vmem:[#allocation7_spill] sm:$0xff] }
 0xbd0   :  { %v12925_v7 = vpop.xlane.xlu0 %3563 }
 0xbd2   :  { %7301 = vmatmul.msk.f32.gmra.mxu3 %vm3198_vm4, %v12894_v55 }
 0xbd6   :  { %v6303_v26 = vpop.permute.xlu1 %6302 }
 0xbd7   :  { %v6617_v22 = vsel %vm3198_vm4, %v5977_v51, %v6303_v26  ;;  %v5342_v51 = vmul.f32 %v14254_v25, %v5214_v53  ;;  %v12932_v26 = vpop.f32.mrf.mxu3  ;;  %v3568_v25 = vsel %vm3198_vm4, %v12941_v0, -inf }
 0xbd8   :  { %6745 = vst.msk [vmem:[%s13682_s8 + $0x228] sm:$0xff] %vm2540_vm3, %v6617_v22  ;;  %v3559_v22 = vsel %vm3198_vm4, %v12929_v41, -inf }
 0xbd9   :  { %3581 = vmax.xlane.f32.xlu0 %v3580_v13  ;;  %3551 = vmax.xlane.f32.xlu1 %v3550_v35  ;;  %v14255_v13 = vld [vmem:[#allocation49_spill] sm:$0xff]  ;;  %v5982_v29 = vmul.f32 %v14256_v57, %v5342_v51  ;;  %v14258_v51 = vld [vmem:[#allocation22_spill] sm:$0xff] }
 0xbda   :  { %7302 = vmatmul.msk.f32.gmra.mxu3 %vm3198_vm4, %v12921_v5 }
 0xbdf   :  { %v12948_v53 = vpop.f32.mrf.mxu3 }
 0xbe0   :  { %14257 = vst [vmem:[#allocation4_spill] sm:$0xff] %v12948_v53  ;;  %v14261_v53 = vld [vmem:[#allocation61_spill] sm:$0xff] }
 0xbe1   :  { %6316 = vrot.lane.b32.xlu2 %v14255_v13, %s7854_s15  ;;  %3560 = vmax.xlane.f32.xlu1 %v3559_v22  ;;  %v14259_v22 = vld [vmem:[#allocation52_spill] sm:$0xff]  ;;  %v7694_v13 = vpop.eup %7693 }
 0xbe3   :  { %v6313_v35 = vpop.permute.xlu0 %6312 }
 0xbe4   :  { %v6622_v1 = vsel %vm3198_vm4, %v5982_v29, %v6313_v35  ;;  %v14260_v29 = vld [vmem:[#allocation58_spill] sm:$0xff]  ;;  %v4957_v35 = vmul.f32 %v7694_v13, %v12417_v19  ;;  %v14265_v19 = vld [vmem:[#allocation68_spill] sm:$0xff] }
 0xbe5   :  { %6750 = vst.msk [vmem:[%s13682_s8 + $0x250] sm:$0xff] %vm2540_vm3, %v6622_v1 }
 0xbe7   :  { %v12959_v57 = vpop.f32.mrf.mxu3 }
 0xbe9   :  { %6322 = vrot.lane.b32.xlu2 %v14258_v51, %s7854_s15  ;;  %3569 = vmax.xlane.f32.xlu1 %v3568_v25  ;;  %v5085_v51 = vsub.f32 2.0, %v4957_v35  ;;  %v14262_v25 = vld [vmem:[#allocation64_spill] sm:$0xff]  ;;  %v14266_v35 = vld [vmem:[#allocation3_spill] sm:$0xff] }
 0xbeb   :  { %v12955_v24 = vpop.xlane.xlu2 %3548  ;;  %v5213_v30 = vmul.f32 %v7694_v13, %v5085_v51 }
 0xbed   :  { %6324 = vrot.lane.b32.xlu0 %v14259_v22, %s7854_s15 }
 0xbef   :  { %v12970_v5 = vpop.f32.mrf.mxu3 }
 0xbf1   :  { %6328 = vrot.lane.b32.xlu2 %v14260_v29, %s7854_s15  ;;  %v14264_v29 = vld [vmem:[#allocation169_spill] sm:$0xff] }
 0xbf2   :  { %v5341_v6 = vmul.f32 %v14264_v29, %v5213_v30  ;;  %v7696_v30 = vpop.eup %7695 }
 0xbf3   :  { %v12964_v1 = vpop.xlane.xlu2 %3557 }
 0xbf4   :  { %v5981_v21 = vmul.f32 %v14266_v35, %v5341_v6 }
 0xbf5   :  { %6330 = vrot.lane.b32.xlu0 %v14261_v53, %s7854_s15 }
 0xbf7   :  { %v12983_v13 = vpop.f32.mrf.mxu3 }
 0xbf9   :  { %6334 = vrot.lane.b32.xlu2 %v14262_v25, %s7854_s15  ;;  %v14267_v25 = vld [vmem:[#allocation38_spill] sm:$0xff] }
 0xbfb   :  { %v12972_v22 = vpop.xlane.xlu2 %3566 }
 0xbfd   :  { %6336 = vrot.lane.b32.xlu0 %v14263_v31, %s7854_s15  ;;  %v14268_v31 = vld [vmem:[#allocation33_spill] sm:$0xff] }
 0xc01   :  { %6340 = vrot.lane.b32.xlu2 %v14265_v19, %s7854_s15  ;;  %v3534_v62 = vpop.xlane.xlu1 %3533  ;;  %v13000_v19 = vpop.f32.mrf.mxu3 }
 0xc02   :  { %v3694_v53 = vsub.f32 %v12798_v11, %v3534_v62  ;;  %6314 = vrot.lane.b32.xlu1 %v14267_v25, %s7854_s15  ;;  %v3695_v11 = vsub.f32 %v12590_v18, %v12806_v32  ;;  %v14269_v62 = vld [vmem:[#allocation75_spill] sm:$0xff]  ;;  %v3696_v18 = vsub.f32 %v12644_v38, %v12853_v56 }
 0xc03   :  { %v6311_v51 = vpop.permute.xlu2 %6310 }
 0xc04   :  { %v3933_v12 = vmul.f32 1.442695, %v3694_v53  ;;  %v6621_v55 = vsel %vm3198_vm4, %v5981_v21, %v6311_v51  ;;  %v3935_v21 = vmul.f32 1.442695, %v3695_v11  ;;  %v14272_v53 = vld [vmem:[#allocation116_spill] sm:$0xff] }
 0xc05   :  { %6749 = vst.msk [vmem:[%s13682_s8 + $0x248] sm:$0xff] %vm2540_vm3, %v6621_v55  ;;  %6342 = vrot.lane.b32.xlu0 %v14268_v31, %s7854_s15  ;;  %v14271_v55 = vld [vmem:[#allocation111_spill] sm:$0xff]  ;;  %v3937_v35 = vmul.f32 1.442695, %v3696_v18 }
 0xc06   :  { %7697 = vpow2.f32 %v3933_v12  ;;  %v4956_v12 = vmul.f32 %v7696_v30, %v12406_v37 }
 0xc07   :  { %7699 = vrcp.f32 %v12550_v4 }
 0xc08   :  { %7701 = vpow2.f32 %v3935_v21  ;;  %v5084_v31 = vsub.f32 2.0, %v4956_v12 }
 0xc09   :  { %6346 = vrot.lane.b32.xlu2 %v14269_v62, %s7854_s15  ;;  %v3543_v25 = vpop.xlane.xlu1 %3542  ;;  %v14273_v62 = vld [vmem:[#allocation113_spill] sm:$0xff]  ;;  %7703 = vpow2.f32 %v3937_v35  ;;  %v13019_v38 = vpop.f32.mrf.mxu3  ;;  %v14277_v35 = vld [vmem:[#allocation119_spill] sm:$0xff] }
 0xc0a   :  { %v3697_v37 = vsub.f32 %v12822_v17, %v3543_v25  ;;  %v3698_v17 = vsub.f32 %v12691_v61, %v12882_v27  ;;  %v14282_v61 = vld [vmem:[#allocation130_spill] sm:$0xff] }
 0xc0c   :  { %v12998_v6 = vpop.eup %7697  ;;  %v3939_v18 = vmul.f32 1.442695, %v3697_v37  ;;  %v14280_v37 = vld [vmem:[#allocation140_spill] sm:$0xff] }
 0xc0d   :  { %14270 = vst [vmem:[#allocation77_spill] sm:$0xff] %v12998_v6  ;;  %v7700_v29 = vpop.eup %7699  ;;  %6348 = vrot.lane.b32.xlu0 %v14271_v55, %s7854_s15  ;;  %7303 = vmatmul.msk.f32.gmra.mxu3 %vm3198_vm4, %v12998_v6  ;;  %v14274_v55 = vld [vmem:[#allocation127_spill] sm:$0xff] }
 0xc0e   :  { %v4961_v32 = vmul.f32 %v7700_v29, %v12550_v4  ;;  %v13012_v51 = vpop.eup %7701  ;;  %v5212_v4 = vmul.f32 %v7696_v30, %v5084_v31  ;;  %v13021_v21 = vpop.xlane.xlu0 %3572  ;;  %7705 = vpow2.f32 %v3939_v18  ;;  %v14279_v31 = vld [vmem:[#allocation26_spill] sm:$0xff]  ;;  %v13061_v18 = vadd.f32 %v12729_v33, %v12880_v52  ;;  %v14285_v52 = vld [vmem:[#allocation157_spill] sm:$0xff] }
 0xc0f   :  { %v13025_v12 = vpop.eup %7703 }
 0xc10   :  { %v5089_v11 = vsub.f32 2.0, %v4961_v32  ;;  %v14275_v32 = vld [vmem:[#allocation168_spill] sm:$0xff] }
 0xc11   :  { %6352 = vrot.lane.b32.xlu2 %v14272_v53, %s7854_s15  ;;  %v5340_v53 = vmul.f32 %v14275_v32, %v5212_v4  ;;  %v13035_v30 = vpop.f32.mrf.mxu3 }
 0xc12   :  { %v5217_v56 = vmul.f32 %v7700_v29, %v5089_v11  ;;  %v14278_v29 = vld [vmem:[#allocation35_spill] sm:$0xff] }
 0xc13   :  { %v5980_v11 = vmul.f32 %v14279_v31, %v5340_v53 }
 0xc14   :  { %v13047_v27 = vpop.eup %7705 }
 0xc15   :  { %6354 = vrot.lane.b32.xlu0 %v14273_v62, %s7854_s15  ;;  %7304 = vmatmul.msk.f32.gmra.mxu3 %vm3198_vm4, %v13012_v51  ;;  %v14276_v62 = vld [vmem:[#allocation182_spill] sm:$0xff]  ;;  %14281 = vst [vmem:[#allocation29_spill] sm:$0xff] %v13047_v27 }
 0xc16   :  { %v5345_v6 = vmul.f32 %v14276_v62, %v5217_v56 }
 0xc18   :  { %v5985_v25 = vmul.f32 %v14278_v29, %v5345_v6  ;;  %v3699_v6 = vsub.f32 %v12757_v49, %v12955_v24  ;;  %v3577_v29 = vsel %vm3198_vm4, %v13061_v18, -inf  ;;  %v14284_v49 = vld [vmem:[#allocation141_spill] sm:$0xff] }
 0xc19   :  { %6358 = vrot.lane.b32.xlu2 %v14274_v55, %s7854_s15  ;;  %v3941_v55 = vmul.f32 1.442695, %v3698_v17  ;;  %v13063_v53 = vpop.f32.mrf.mxu3 }
 0xc1a   :  { %v3943_v17 = vmul.f32 1.442695, %v3699_v6  ;;  %v14288_v6 = vld [vmem:[#allocation158_spill] sm:$0xff] }
 0xc1b   :  { %7707 = vpow2.f32 %v3941_v55  ;;  %v14287_v55 = vld [vmem:[#allocation167_spill] sm:$0xff] }
 0xc1c   :  { %7709 = vrcp.f32 %v12530_v36 }
 0xc1d   :  { %6360 = vrot.lane.b32.xlu0 %v14277_v35, %s7854_s15  ;;  %7305 = vmatmul.msk.f32.gmra.mxu3 %vm3198_vm4, %v13025_v12  ;;  %v14283_v35 = vld [vmem:[#allocation148_spill] sm:$0xff]  ;;  %7711 = vpow2.f32 %v3943_v17 }
 0xc1e   :  { %7713 = vrcp.f32 %v12656_v40 }
 0xc1f   :  { %7715 = vrcp.f32 %v12779_v45 }
 0xc20   :  { %7717 = vrcp.f32 %v12846_v10 }
 0xc21   :  { %6364 = vrot.lane.b32.xlu2 %v14280_v37, %s7854_s15  ;;  %v6319_v4 = vpop.permute.xlu0 %6318  ;;  %v6309_v56 = vpop.permute.xlu1 %6308  ;;  %v14286_v37 = vld [vmem:[#allocation149_spill] sm:$0xff]  ;;  %7719 = vrcp.f32 %v12678_v34 }
 0xc22   :  { %v6625_v32 = vsel %vm3198_vm4, %v5985_v25, %v6319_v4  ;;  %v6620_v62 = vsel %vm3198_vm4, %v5980_v11, %v6309_v56  ;;  %v13070_v25 = vpop.eup %7707  ;;  %v13080_v31 = vpop.f32.mrf.mxu3  ;;  %7721 = vrcp.f32 %v12868_v14 }
 0xc23   :  { %6753 = vst.msk [vmem:[%s13682_s8 + $0x268] sm:$0xff] %vm2540_vm3, %v6625_v32  ;;  %v7710_v33 = vpop.eup %7709  ;;  %7723 = vrcp.f32 %v12802_v3 }
 0xc24   :  { %6748 = vst.msk [vmem:[%s13682_s8 + $0x240] sm:$0xff] %vm2540_vm3, %v6620_v62  ;;  %v4960_v24 = vmul.f32 %v7710_v33, %v12530_v36  ;;  %v13082_v11 = vpop.eup %7711  ;;  %7725 = vrcp.f32 %v12909_v47 }
 0xc25   :  { %6366 = vrot.lane.b32.xlu0 %v14282_v61, %s7854_s15  ;;  %7306 = vmatmul.msk.f32.gmra.mxu3 %vm3198_vm4, %v13047_v27  ;;  %v7714_v56 = vpop.eup %7713 }
 0xc26   :  { %v5088_v4 = vsub.f32 2.0, %v4960_v24  ;;  %v4963_v36 = vmul.f32 %v7714_v56, %v12656_v40  ;;  %v14291_v40 = vld [vmem:[#allocation103_spill] sm:$0xff] }
 0xc28   :  { %v5216_v32 = vmul.f32 %v7710_v33, %v5088_v4 }
 0xc29   :  { %6370 = vrot.lane.b32.xlu2 %v14283_v35, %s7854_s15  ;;  %v14289_v35 = vld [vmem:[#allocation180_spill] sm:$0xff] }
 0xc2a   :  { %v13092_v62 = vpop.f32.mrf.mxu3  ;;  %v5344_v17 = vmul.f32 %v14289_v35, %v5216_v32  ;;  %v14292_v32 = vld [vmem:[#allocation177_spill] sm:$0xff] }
 0xc2c   :  { %3578 = vmax.xlane.f32.xlu1 %v3577_v29  ;;  %v5091_v29 = vsub.f32 2.0, %v4963_v36  ;;  %v14293_v36 = vld [vmem:[#allocation10_spill] sm:$0xff] }
 0xc2d   :  { %6372 = vrot.lane.b32.xlu0 %v14284_v49, %s7854_s15  ;;  %7307 = vmatmul.msk.f32.gmra.mxu3 %vm3198_vm4, %v13070_v25  ;;  %v7716_v49 = vpop.eup %7715 }
 0xc2e   :  { %v5219_v24 = vmul.f32 %v7714_v56, %v5091_v29  ;;  %v4966_v33 = vmul.f32 %v7716_v49, %v12779_v45  ;;  %v14294_v45 = vld [vmem:[#allocation189_spill] sm:$0xff]  ;;  %v14295_v29 = vld [vmem:[#allocation175_spill] sm:$0xff] }
 0xc30   :  { %v5347_v56 = vmul.f32 %v14294_v45, %v5219_v24  ;;  %v5094_v35 = vsub.f32 2.0, %v4966_v33  ;;  %v14297_v24 = vld [vmem:[#allocation176_spill] sm:$0xff]  ;;  %v14298_v33 = vld [vmem:[#allocation46_spill] sm:$0xff] }
 0xc31   :  { %6376 = vrot.lane.b32.xlu2 %v14285_v52, %s7854_s15  ;;  %v14290_v52 = vld [vmem:[#allocation166_spill] sm:$0xff] }
 0xc35   :  { %6378 = vrot.lane.b32.xlu0 %v14286_v37, %s7854_s15  ;;  %7308 = vmatmul.msk.f32.gmra.mxu3 %vm3198_vm4, %v13082_v11  ;;  %v5984_v37 = vmul.f32 %v14291_v40, %v5344_v17  ;;  %v7718_v17 = vpop.eup %7717  ;;  %v5222_v40 = vmul.f32 %v7716_v49, %v5094_v35  ;;  %v14299_v49 = vld [vmem:[#allocation193_spill] sm:$0xff] }
 0xc39   :  { %6382 = vrot.lane.b32.xlu2 %v14287_v55, %s7854_s15  ;;  %v13105_v55 = vpop.f32.mrf.mxu3 }
 0xc3c   :  { %v13094_v61 = vpop.xlane.xlu2 %3575 }
 0xc3d   :  { %6384 = vrot.lane.b32.xlu0 %v14288_v6, %s7854_s15 }
 0xc41   :  { %6388 = vrot.lane.b32.xlu2 %v14290_v52, %s7854_s15  ;;  %v7720_v52 = vpop.eup %7719 }
 0xc42   :  { %v4964_v45 = vmul.f32 %v7720_v52, %v12678_v34 }
 0xc44   :  { %v6317_v4 = vpop.permute.xlu2 %6316  ;;  %v5092_v34 = vsub.f32 2.0, %v4964_v45  ;;  %v14303_v45 = vld [vmem:[#allocation44_spill] sm:$0xff] }
 0xc45   :  { %v6624_v6 = vsel %vm3198_vm4, %v5984_v37, %v6317_v4  ;;  %6390 = vrot.lane.b32.xlu0 %v14292_v32, %s7854_s15  ;;  %6320 = vrot.lane.b32.xlu1 %v14293_v36, %s7854_s15  ;;  %v4969_v37 = vmul.f32 %v7718_v17, %v12846_v10  ;;  %v14296_v4 = vld [vmem:[#allocation12_spill] sm:$0xff] }
 0xc46   :  { %6752 = vst.msk [vmem:[%s13682_s8 + $0x260] sm:$0xff] %vm2540_vm3, %v6624_v6  ;;  %v5987_v32 = vmul.f32 %v14296_v4, %v5347_v56  ;;  %v5350_v56 = vmul.f32 %v14299_v49, %v5222_v40  ;;  %v7722_v4 = vpop.eup %7721  ;;  %v14302_v49 = vld [vmem:[#allocation185_spill] sm:$0xff] }
 0xc47   :  { %v5097_v35 = vsub.f32 2.0, %v4969_v37 }
 0xc49   :  { %6394 = vrot.lane.b32.xlu2 %v14295_v29, %s7854_s15  ;;  %v13135_v29 = vpop.f32.mrf.mxu3 }
 0xc4c   :  { %v6323_v36 = vpop.permute.xlu2 %6322  ;;  %v3552_v27 = vpop.xlane.xlu1 %3551 }
 0xc4d   :  { %v6627_v6 = vsel %vm3198_vm4, %v5987_v32, %v6323_v36  ;;  %6396 = vrot.lane.b32.xlu0 %v14297_v24, %s7854_s15  ;;  %6326 = vrot.lane.b32.xlu1 %v14298_v33, %s7854_s15  ;;  %v3700_v10 = vsub.f32 %v12904_v9, %v3552_v27  ;;  %v14300_v36 = vld [vmem:[#allocation179_spill] sm:$0xff]  ;;  %v3701_v24 = vsub.f32 %v12716_v63, %v12897_v44  ;;  %v14301_v27 = vld [vmem:[#allocation13_spill] sm:$0xff] }
 0xc4e   :  { %6755 = vst.msk [vmem:[%s13682_s8 + $0x278] sm:$0xff] %vm2540_vm3, %v6627_v6  ;;  %v7724_v6 = vpop.eup %7723  ;;  %v5225_v33 = vmul.f32 %v7718_v17, %v5097_v35  ;;  %v4972_v9 = vmul.f32 %v7722_v4, %v12868_v14  ;;  %v5990_v40 = vmul.f32 %v14301_v27, %v5350_v56  ;;  %v14304_v17 = vld [vmem:[#allocation202_spill] sm:$0xff]  ;;  %v13158_v27 = vpop.xlane.xlu0 %3581 }
 0xc4f   :  { %v3945_v32 = vmul.f32 1.442695, %v3700_v10  ;;  %v4967_v63 = vmul.f32 %v7724_v6, %v12802_v3  ;;  %v3947_v44 = vmul.f32 1.442695, %v3701_v24  ;;  %v7726_v14 = vpop.eup %7725  ;;  %v14306_v3 = vld [vmem:[#allocation194_spill] sm:$0xff] }
 0xc50   :  { %v5353_v56 = vmul.f32 %v14304_v17, %v5225_v33  ;;  %v5100_v35 = vsub.f32 2.0, %v4972_v9  ;;  %v3702_v33 = vsub.f32 %v12771_v28, %v12964_v1 }
 0xc51   :  { %6400 = vrot.lane.b32.xlu2 %v14300_v36, %s7854_s15  ;;  %7727 = vpow2.f32 %v3945_v32  ;;  %v5220_v36 = vmul.f32 %v7720_v52, %v5092_v34  ;;  %v13156_v32 = vpop.f32.mrf.mxu3  ;;  %v14307_v52 = vld [vmem:[#allocation190_spill] sm:$0xff]  ;;  %v5095_v24 = vsub.f32 2.0, %v4967_v63 }
 0xc52   :  { %7729 = vrcp.f32 %v12851_v48  ;;  %v3949_v1 = vmul.f32 1.442695, %v3702_v33 }
 0xc53   :  { %7731 = vrcp.f32 %v12516_v59  ;;  %v5348_v34 = vmul.f32 %v14307_v52, %v5220_v36  ;;  %v14310_v36 = vld [vmem:[#allocation105_spill] sm:$0xff] }
 0xc54   :  { %v6329_v37 = vpop.permute.xlu2 %6328  ;;  %7733 = vrcp.f32 %v12959_v57 }
 0xc55   :  { %v6630_v10 = vsel %vm3198_vm4, %v5990_v40, %v6329_v37  ;;  %6402 = vrot.lane.b32.xlu0 %v14302_v49, %s7854_s15  ;;  %6332 = vrot.lane.b32.xlu1 %v14303_v45, %s7854_s15  ;;  %7735 = vpow2.f32 %v3947_v44  ;;  %v5228_v37 = vmul.f32 %v7722_v4, %v5100_v35  ;;  %v14308_v49 = vld [vmem:[#allocation24_spill] sm:$0xff]  ;;  %v5223_v44 = vmul.f32 %v7724_v6, %v5095_v24 }
 0xc56   :  { %6758 = vst.msk [vmem:[%s13682_s8 + $0x290] sm:$0xff] %vm2540_vm3, %v6630_v10  ;;  %v4975_v10 = vmul.f32 %v7726_v14, %v12909_v47  ;;  %v5993_v45 = vmul.f32 %v14308_v49, %v5353_v56  ;;  %7737 = vrcp.f32 %v12872_v16  ;;  %v14311_v47 = vld [vmem:[#allocation37_spill] sm:$0xff] }
 0xc57   :  { %v13160_v40 = vpop.eup %7727  ;;  %v5988_v4 = vmul.f32 %v14311_v47, %v5348_v34  ;;  %v5356_v35 = vmul.f32 %v12175_v54, %v5228_v37  ;;  %7739 = vrcp.f32 %v13000_v19  ;;  %v14312_v34 = vld [vmem:[#allocation198_spill] sm:$0xff]  ;;  %v14313_v54 = vld [vmem:[#allocation195_spill] sm:$0xff]  ;;  %v14314_v47 = vld [vmem:[#allocation21_spill] sm:$0xff] }
 0xc58   :  { %14305 = vst [vmem:[#allocation81_spill] sm:$0xff] %v13160_v40  ;;  %7309 = vmatmul.msk.f32.gmra.mxu3 %vm3198_vm4, %v13160_v40  ;;  %v7730_v9 = vpop.eup %7729  ;;  %v14309_v40 = vld [vmem:[#allocation206_spill] sm:$0xff]  ;;  %v5103_v52 = vsub.f32 2.0, %v4975_v10  ;;  %v5351_v24 = vmul.f32 %v14313_v54, %v5223_v44  ;;  %7741 = vpow2.f32 %v3949_v1  ;;  %v14316_v44 = vld [vmem:[#allocation109_spill] sm:$0xff] }
 0xc59   :  { %6406 = vrot.lane.b32.xlu2 %v14306_v3, %s7854_s15  ;;  %v7732_v63 = vpop.eup %7731  ;;  %v4970_v28 = vmul.f32 %v7730_v9, %v12851_v48  ;;  %v13190_v48 = vpop.f32.mrf.mxu3  ;;  %7743 = vrcp.f32 %v12932_v26 }
 0xc5a   :  { %v7734_v56 = vpop.eup %7733  ;;  %7745 = vrcp.f32 %v13063_v53 }
 0xc5b   :  { %v5098_v33 = vsub.f32 2.0, %v4970_v28 }
 0xc5c   :  { %v6335_v17 = vpop.permute.xlu2 %6334 }
 0xc5d   :  { %v6633_v3 = vsel %vm3198_vm4, %v5993_v45, %v6335_v17  ;;  %6408 = vrot.lane.b32.xlu0 %v14309_v40, %s7854_s15  ;;  %6338 = vrot.lane.b32.xlu1 %v14310_v36, %s7854_s15  ;;  %v3561_v40 = vpop.xlane.xlu1 %3560  ;;  %v13186_v45 = vpop.eup %7735  ;;  %v4959_v17 = vmul.f32 %v7732_v63, %v12516_v59  ;;  %v4978_v36 = vmul.f32 %v7734_v56, %v12959_v57  ;;  %v14317_v57 = vld [vmem:[#allocation16_spill] sm:$0xff] }
 0xc5e   :  { %6761 = vst.msk [vmem:[%s13682_s8 + $0x2a8] sm:$0xff] %vm2540_vm3, %v6633_v3  ;;  %v3703_v37 = vsub.f32 %v12929_v41, %v3561_v40  ;;  %v7738_v10 = vpop.eup %7737  ;;  %v5231_v3 = vmul.f32 %v7726_v14, %v5103_v52  ;;  %v5226_v41 = vmul.f32 %v7730_v9, %v5098_v33  ;;  %v5991_v14 = vmul.f32 %v14317_v57, %v5351_v24  ;;  %v14318_v52 = vld [vmem:[#allocation78_spill] sm:$0xff]  ;;  %v14320_v24 = vld [vmem:[#allocation204_spill] sm:$0xff] }
 0xc5f   :  { %v6325_v49 = vpop.permute.xlu0 %6324  ;;  %v4973_v28 = vmul.f32 %v7738_v10, %v12872_v16  ;;  %v7740_v1 = vpop.eup %7739  ;;  %v5106_v54 = vsub.f32 2.0, %v4978_v36  ;;  %v14319_v16 = vld [vmem:[#allocation65_spill] sm:$0xff] }
 0xc60   :  { %v6628_v6 = vsel %vm3198_vm4, %v5988_v4, %v6325_v49  ;;  %7310 = vmatmul.msk.f32.gmra.mxu3 %vm3198_vm4, %v13186_v45  ;;  %v5996_v4 = vmul.f32 %v14314_v47, %v5356_v35  ;;  %v3951_v59 = vmul.f32 1.442695, %v3703_v37  ;;  %v5087_v35 = vsub.f32 2.0, %v4959_v17 }
 0xc61   :  { %6756 = vst.msk [vmem:[%s13682_s8 + $0x280] sm:$0xff] %vm2540_vm3, %v6628_v6  ;;  %6412 = vrot.lane.b32.xlu2 %v14312_v34, %s7854_s15  ;;  %v14315_v34 = vld [vmem:[#allocation76_spill] sm:$0xff]  ;;  %v5359_v40 = vmul.f32 %v14318_v52, %v5231_v3  ;;  %v5354_v33 = vmul.f32 %v14320_v24, %v5226_v41  ;;  %v5101_v37 = vsub.f32 2.0, %v4973_v28  ;;  %v3704_v17 = vsub.f32 %v12732_v42, %v12925_v7 }
 0xc62   :  { %7747 = vpow2.f32 %v3951_v59  ;;  %v5215_v36 = vmul.f32 %v7732_v63, %v5087_v35  ;;  %v14322_v28 = vld [vmem:[#allocation72_spill] sm:$0xff]  ;;  %v14324_v35 = vld [vmem:[#allocation178_spill] sm:$0xff] }
 0xc63   :  { %7749 = vrcp.f32 %v12970_v5  ;;  %v5229_v42 = vmul.f32 %v7738_v10, %v5101_v37  ;;  %v3953_v63 = vmul.f32 1.442695, %v3704_v17 }
 0xc64   :  { %v6341_v49 = vpop.permute.xlu2 %6340  ;;  %7751 = vrcp.f32 %v13105_v55 }
 0xc65   :  { %v6636_v6 = vsel %vm3198_vm4, %v5996_v4, %v6341_v49  ;;  %6414 = vrot.lane.b32.xlu0 %v14315_v34, %s7854_s15  ;;  %6344 = vrot.lane.b32.xlu1 %v14316_v44, %s7854_s15  ;;  %v13218_v4 = vpop.eup %7741  ;;  %v5234_v49 = vmul.f32 %v7734_v56, %v5106_v54  ;;  %v13234_v34 = vpop.f32.mrf.mxu3  ;;  %v14321_v44 = vld [vmem:[#allocation28_spill] sm:$0xff]  ;;  %7753 = vpow2.f32 %v3953_v63  ;;  %v14329_v63 = vld [vmem:[#allocation106_spill] sm:$0xff] }
 0xc66   :  { %6764 = vst.msk [vmem:[%s13682_s8 + $0x2c0] sm:$0xff] %vm2540_vm3, %v6636_v6  ;;  %v7744_v3 = vpop.eup %7743  ;;  %v4981_v6 = vmul.f32 %v7740_v1, %v13000_v19  ;;  %v5999_v57 = vmul.f32 %v14321_v44, %v5359_v40  ;;  %v14323_v19 = vld [vmem:[#allocation55_spill] sm:$0xff]  ;;  %v5343_v40 = vmul.f32 %v14324_v35, %v5215_v36  ;;  %7755 = vrcp.f32 %v13019_v38 }
 0xc67   :  { %v6331_v47 = vpop.permute.xlu0 %6330  ;;  %v4976_v7 = vmul.f32 %v7744_v3, %v12932_v26  ;;  %v5994_v56 = vmul.f32 %v14323_v19, %v5354_v33  ;;  %v7746_v59 = vpop.eup %7745  ;;  %v5362_v54 = vmul.f32 %v12315_v60, %v5234_v49  ;;  %v3705_v26 = vsub.f32 %v12784_v8, %v12972_v22  ;;  %v14325_v60 = vld [vmem:[#allocation71_spill] sm:$0xff]  ;;  %v14327_v22 = vld [vmem:[#allocation25_spill] sm:$0xff] }
 0xc68   :  { %v6631_v9 = vsel %vm3198_vm4, %v5991_v14, %v6331_v47  ;;  %7311 = vmatmul.msk.f32.gmra.mxu3 %vm3198_vm4, %v13218_v4  ;;  %v13237_v14 = vpop.xlane.xlu1 %3569  ;;  %v5109_v47 = vsub.f32 2.0, %v4981_v6  ;;  %v5357_v24 = vmul.f32 %v14325_v60, %v5229_v42  ;;  %v4984_v36 = vmul.f32 %v7746_v59, %v13063_v53  ;;  %v14326_v6 = vld [vmem:[#allocation107_spill] sm:$0xff] }
 0xc69   :  { %6759 = vst.msk [vmem:[%s13682_s8 + $0x298] sm:$0xff] %vm2540_vm3, %v6631_v9  ;;  %6418 = vrot.lane.b32.xlu2 %v14319_v16, %s7854_s15  ;;  %v13251_v16 = vpop.eup %7747  ;;  %v5104_v33 = vsub.f32 2.0, %v4976_v7  ;;  %v6002_v8 = vmul.f32 %v14326_v6, %v5362_v54  ;;  %v5983_v44 = vmul.f32 %v14327_v22, %v5343_v40  ;;  %v14328_v7 = vld [vmem:[#allocation114_spill] sm:$0xff] }
 0xc6a   :  { %v7750_v37 = vpop.eup %7749  ;;  %v5237_v17 = vmul.f32 %v7740_v1, %v5109_v47  ;;  %v5997_v19 = vmul.f32 %v14329_v63, %v5357_v24  ;;  %v5112_v40 = vsub.f32 2.0, %v4984_v36 }
 0xc6b   :  { %v5232_v1 = vmul.f32 %v7744_v3, %v5104_v33  ;;  %v4979_v53 = vmul.f32 %v7750_v37, %v12970_v5  ;;  %v14331_v33 = vld [vmem:[#allocation34_spill] sm:$0xff] }
 0xc6c   :  { %v6347_v52 = vpop.permute.xlu2 %6346  ;;  %v5365_v35 = vmul.f32 %v12419_v15, %v5237_v17  ;;  %v14330_v15 = vld [vmem:[#allocation80_spill] sm:$0xff]  ;;  %v5240_v60 = vmul.f32 %v7746_v59, %v5112_v40 }
 0xc6d   :  { %v6639_v41 = vsel %vm3198_vm4, %v5999_v57, %v6347_v52  ;;  %6350 = vrot.lane.b32.xlu1 %v14322_v28, %s7854_s15  ;;  %v13265_v49 = vpop.f32.mrf.mxu3  ;;  %v5360_v47 = vmul.f32 %v14330_v15, %v5232_v1 }
 0xc6e   :  { %6767 = vst.msk [vmem:[%s13682_s8 + $0x2d8] sm:$0xff] %vm2540_vm3, %v6639_v41  ;;  %v3955_v41 = vmul.f32 1.442695, %v3705_v26  ;;  %v6005_v17 = vmul.f32 %v14331_v33, %v5365_v35  ;;  %v5368_v59 = vmul.f32 %v12532_v50, %v5240_v60  ;;  %v3707_v50 = vsub.f32 %v12836_v39, %v13021_v21  ;;  %v14336_v39 = vld [vmem:[#allocation27_spill] sm:$0xff] }
 0xc6f   :  { %v6337_v9 = vpop.permute.xlu0 %6336 }
 0xc70   :  { %v6634_v10 = vsel %vm3198_vm4, %v5994_v56, %v6337_v9  ;;  %7312 = vmatmul.msk.f32.gmra.mxu3 %vm3198_vm4, %v13251_v16  ;;  %v7752_v56 = vpop.eup %7751  ;;  %7757 = vpow2.f32 %v3955_v41  ;;  %v5107_v9 = vsub.f32 2.0, %v4979_v53 }
 0xc71   :  { %6762 = vst.msk [vmem:[%s13682_s8 + $0x2b0] sm:$0xff] %vm2540_vm3, %v6634_v10  ;;  %v13285_v3 = vpop.eup %7753  ;;  %7759 = vrcp.f32 %v13190_v48  ;;  %v3706_v10 = vsub.f32 %v12941_v0, %v13237_v14  ;;  %v4987_v24 = vmul.f32 %v7752_v56, %v13105_v55  ;;  %v14333_v0 = vld [vmem:[#allocation108_spill] sm:$0xff] }
 0xc72   :  { %v7756_v26 = vpop.eup %7755  ;;  %7761 = vrcp.f32 %v13080_v31  ;;  %v5235_v22 = vmul.f32 %v7750_v37, %v5107_v9  ;;  %v6000_v55 = vmul.f32 %v14333_v0, %v5360_v47  ;;  %v3959_v47 = vmul.f32 1.442695, %v3707_v50  ;;  %v14338_v0 = vld [vmem:[#allocation147_spill] sm:$0xff] }
 0xc73   :  { %v5115_v41 = vsub.f32 2.0, %v4987_v24 }
 0xc74   :  { %v6353_v57 = vpop.permute.xlu2 %6352  ;;  %v6315_v52 = vpop.permute.xlu1 %6314 }
 0xc75   :  { %v6642_v28 = vsel %vm3198_vm4, %v6002_v8, %v6353_v57  ;;  %v6623_v42 = vsel %vm3198_vm4, %v5983_v44, %v6315_v52  ;;  %6356 = vrot.lane.b32.xlu1 %v14328_v7, %s7854_s15  ;;  %v14332_v8 = vld [vmem:[#allocation125_spill] sm:$0xff]  ;;  %v4982_v44 = vmul.f32 %v7756_v26, %v13019_v38  ;;  %v4699_v57 = vpop.f32.mrf.mxu3  ;;  %v3957_v52 = vmul.f32 1.442695, %v3706_v10 }
 0xc76   :  { %6770 = vst.msk [vmem:[%s13682_s8 + $0x2f0] sm:$0xff] %vm2540_vm3, %v6642_v28  ;;  %v13310_v14 = vpop.eup %7757  ;;  %7763 = vrcp.f32 %v4699_v57  ;;  %v5363_v38 = vmul.f32 %v12321_v20, %v5235_v22  ;;  %v5243_v53 = vmul.f32 %v7752_v56, %v5115_v41 }
 0xc77   :  { %6751 = vst.msk [vmem:[%s13682_s8 + $0x258] sm:$0xff] %vm2540_vm3, %v6623_v42  ;;  %v6343_v54 = vpop.permute.xlu0 %6342  ;;  %v7760_v42 = vpop.eup %7759  ;;  %v5110_v7 = vsub.f32 2.0, %v4982_v44  ;;  %7765 = vpow2.f32 %v3957_v52 }
 0xc78   :  { %v6637_v5 = vsel %vm3198_vm4, %v5997_v19, %v6343_v54  ;;  %7313 = vmatmul.msk.f32.gmra.mxu3 %vm3198_vm4, %v13285_v3  ;;  %v7762_v1 = vpop.eup %7761  ;;  %v4990_v63 = vmul.f32 %v7760_v42, %v13190_v48  ;;  %v14334_v19 = vld [vmem:[#allocation110_spill] sm:$0xff]  ;;  %7767 = vrcp.f32 %v13135_v29  ;;  %v6003_v21 = vmul.f32 %v14336_v39, %v5363_v38 }
 0xc79   :  { %6765 = vst.msk [vmem:[%s13682_s8 + $0x2c8] sm:$0xff] %vm2540_vm3, %v6637_v5  ;;  %v6008_v35 = vmul.f32 %v14334_v19, %v5368_v59  ;;  %v14335_v5 = vld [vmem:[#allocation139_spill] sm:$0xff]  ;;  %v5238_v20 = vmul.f32 %v7756_v26, %v5110_v7  ;;  %v4985_v15 = vmul.f32 %v7762_v1, %v13080_v31  ;;  %v5371_v56 = vmul.f32 %v12658_v43, %v5243_v53 }
 0xc7a   :  { %v5118_v9 = vsub.f32 2.0, %v4990_v63  ;;  %7769 = vpow2.f32 %v3959_v47  ;;  %v3708_v43 = vsub.f32 %v12877_v23, %v13094_v61  ;;  %v14339_v23 = vld [vmem:[#allocation40_spill] sm:$0xff] }
 0xc7b   :  { %v5366_v31 = vmul.f32 %v12432_v58, %v5238_v20  ;;  %v5113_v33 = vsub.f32 2.0, %v4985_v15  ;;  %7771 = vrcp.f32 %v13234_v34  ;;  %v14343_v20 = vld [vmem:[#allocation96_spill] sm:$0xff] }
 0xc7c   :  { %v6359_v36 = vpop.permute.xlu2 %6358  ;;  %v7764_v48 = vpop.eup %7763  ;;  %v3961_v59 = vmul.f32 1.442695, %v3708_v43  ;;  %v14346_v43 = vld [vmem:[#allocation83_spill] sm:$0xff] }
 0xc7d   :  { %v6645_v6 = vsel %vm3198_vm4, %v6005_v17, %v6359_v36  ;;  %6362 = vrot.lane.b32.xlu1 %v14332_v8, %s7854_s15  ;;  %v13336_v60 = vpop.eup %7765  ;;  %v4702_v24 = vpop.f32.mrf.mxu3  ;;  %v5246_v36 = vmul.f32 %v7760_v42, %v5118_v9  ;;  %v14337_v8 = vld [vmem:[#allocation112_spill] sm:$0xff]  ;;  %v6006_v61 = vmul.f32 %v14339_v23, %v5366_v31 }
 0xc7e   :  { %6773 = vst.msk [vmem:[%s13682_s8 + $0x308] sm:$0xff] %vm2540_vm3, %v6645_v6  ;;  %v7768_v17 = vpop.eup %7767  ;;  %v4993_v6 = vmul.f32 %v7764_v48, %v4699_v57  ;;  %v6011_v22 = vmul.f32 %v14337_v8, %v5371_v56  ;;  %7773 = vpow2.f32 %v3961_v59 }
 0xc7f   :  { %v6349_v28 = vpop.permute.xlu0 %6348  ;;  %v4988_v58 = vmul.f32 %v7768_v17, %v13135_v29  ;;  %v5374_v57 = vmul.f32 %v12789_v2, %v5246_v36  ;;  %7775 = vrcp.f32 %v4702_v24  ;;  %v14347_v36 = vld [vmem:[#allocation165_spill] sm:$0xff] }
 0xc80   :  { %v6640_v37 = vsel %vm3198_vm4, %v6000_v55, %v6349_v28  ;;  %7314 = vmatmul.msk.f32.gmra.mxu3 %vm3198_vm4, %v13310_v14  ;;  %v5241_v55 = vmul.f32 %v7762_v1, %v5113_v33  ;;  %v5121_v41 = vsub.f32 2.0, %v4993_v6  ;;  %v13360_v42 = vpop.eup %7769  ;;  %v14340_v1 = vld [vmem:[#allocation123_spill] sm:$0xff] }
 0xc81   :  { %6768 = vst.msk [vmem:[%s13682_s8 + $0x2e0] sm:$0xff] %vm2540_vm3, %v6640_v37  ;;  %v5116_v7 = vsub.f32 2.0, %v4988_v58  ;;  %v7772_v2 = vpop.eup %7771  ;;  %v6014_v53 = vmul.f32 %v14340_v1, %v5374_v57  ;;  %v14351_v1 = vld [vmem:[#allocation87_spill] sm:$0xff] }
 0xc82   :  { %v5369_v29 = vmul.f32 %v12546_v46, %v5241_v55  ;;  %v5249_v50 = vmul.f32 %v7764_v48, %v5121_v41  ;;  %v14342_v46 = vld [vmem:[#allocation115_spill] sm:$0xff] }
 0xc84   :  { %v6365_v40 = vpop.permute.xlu2 %6364  ;;  %v5377_v15 = vmul.f32 %v14343_v20, %v5249_v50  ;;  %v13383_v39 = vpop.eup %7773 }
 0xc85   :  { %v6648_v54 = vsel %vm3198_vm4, %v6008_v35, %v6365_v40  ;;  %6368 = vrot.lane.b32.xlu1 %v14335_v5, %s7854_s15  ;;  %v14341_v35 = vld [vmem:[#allocation156_spill] sm:$0xff]  ;;  %v5244_v40 = vmul.f32 %v7768_v17, %v5116_v7  ;;  %v6009_v5 = vmul.f32 %v14342_v46, %v5369_v29  ;;  %v14350_v7 = vld [vmem:[#allocation53_spill] sm:$0xff] }
 0xc86   :  { %6776 = vst.msk [vmem:[%s13682_s8 + $0x320] sm:$0xff] %vm2540_vm3, %v6648_v54  ;;  %v4991_v54 = vmul.f32 %v7772_v2, %v13234_v34  ;;  %v14344_v34 = vld [vmem:[#allocation51_spill] sm:$0xff] }
 0xc87   :  { %v6355_v10 = vpop.permute.xlu0 %6354  ;;  %v5372_v56 = vmul.f32 %v14344_v34, %v5244_v40 }
 0xc88   :  { %v6643_v26 = vsel %vm3198_vm4, %v6003_v21, %v6355_v10  ;;  %7315 = vmatmul.msk.f32.gmra.mxu3 %vm3198_vm4, %v13336_v60  ;;  %v5119_v9 = vsub.f32 2.0, %v4991_v54  ;;  %v7776_v10 = vpop.eup %7775 }
 0xc89   :  { %6771 = vst.msk [vmem:[%s13682_s8 + $0x2f8] sm:$0xff] %vm2540_vm3, %v6643_v26  ;;  %v14345_v26 = vld [vmem:[#allocation129_spill] sm:$0xff]  ;;  %v4994_v8 = vmul.f32 %v7776_v10, %v4702_v24  ;;  %v14349_v24 = vld [vmem:[#allocation47_spill] sm:$0xff] }
 0xc8a   :  { %v6017_v31 = vmul.f32 %v14345_v26, %v5377_v15  ;;  %v5247_v6 = vmul.f32 %v7772_v2, %v5119_v9  ;;  %v3710_v2 = vsub.f32 %v14350_v7, %v13158_v27  ;;  %v14354_v15 = vld [vmem:[#allocation138_spill] sm:$0xff] }
 0xc8b   :  { %v5122_v41 = vsub.f32 2.0, %v4994_v8  ;;  %v14358_v8 = vld [vmem:[#allocation135_spill] sm:$0xff] }
 0xc8c   :  { %v6371_v44 = vpop.permute.xlu2 %6370  ;;  %v5375_v57 = vmul.f32 %v14349_v24, %v5247_v6 }
 0xc8d   :  { %v6651_v52 = vsel %vm3198_vm4, %v6011_v22, %v6371_v44  ;;  %6374 = vrot.lane.b32.xlu1 %v14338_v0, %s7854_s15  ;;  %v14348_v22 = vld [vmem:[#allocation120_spill] sm:$0xff] }
 0xc8e   :  { %6779 = vst.msk [vmem:[%s13682_s8 + $0x338] sm:$0xff] %vm2540_vm3, %v6651_v52  ;;  %v6012_v44 = vmul.f32 %v14348_v22, %v5372_v56  ;;  %v14355_v56 = vld [vmem:[#allocation60_spill] sm:$0xff] }
 0xc8f   :  { %v6361_v28 = vpop.permute.xlu0 %6360 }
 0xc90   :  { %v6646_v37 = vsel %vm3198_vm4, %v6006_v61, %v6361_v28  ;;  %v13363_v38 = vpop.f32.mrf.mxu3  ;;  %7316 = vmatmul.msk.f32.gmra.mxu3 %vm3198_vm4, %v13360_v42 }
 0xc91   :  { %6774 = vst.msk [vmem:[%s13682_s8 + $0x310] sm:$0xff] %vm2540_vm3, %v6646_v37 }
 0xc94   :  { %v6377_v63 = vpop.permute.xlu2 %6376 }
 0xc95   :  { %v6654_v19 = vsel %vm3198_vm4, %v6014_v53, %v6377_v63  ;;  %6380 = vrot.lane.b32.xlu1 %v14341_v35, %s7854_s15  ;;  %v5250_v63 = vmul.f32 %v7776_v10, %v5122_v41  ;;  %v14353_v35 = vld [vmem:[#allocation124_spill] sm:$0xff]  ;;  %v14361_v41 = vld [vmem:[#allocation187_spill] sm:$0xff] }
 0xc96   :  { %6782 = vst.msk [vmem:[%s13682_s8 + $0x350] sm:$0xff] %vm2540_vm3, %v6654_v19  ;;  %v6015_v40 = vmul.f32 %v14353_v35, %v5375_v57  ;;  %v14360_v57 = vld [vmem:[#allocation66_spill] sm:$0xff] }
 0xc97   :  { %v6367_v47 = vpop.permute.xlu0 %6366  ;;  %v5378_v9 = vmul.f32 %v14355_v56, %v5250_v63 }
 0xc98   :  { %v6649_v21 = vsel %vm3198_vm4, %v6009_v5, %v6367_v47  ;;  %v4708_v48 = vpop.f32.mrf.mxu3  ;;  %7317 = vmatmul.msk.f32.gmra.mxu3 %vm3198_vm4, %v13383_v39  ;;  %v3965_v5 = vmul.f32 1.442695, %v3710_v2  ;;  %v14363_v2 = vld [vmem:[#allocation31_spill] sm:$0xff] }
 0xc99   :  { %6777 = vst.msk [vmem:[%s13682_s8 + $0x328] sm:$0xff] %vm2540_vm3, %v6649_v21  ;;  %7777 = vrcp.f32 %v4708_v48  ;;  %v6018_v22 = vmul.f32 %v14358_v8, %v5378_v9  ;;  %v14367_v9 = vld [vmem:[#allocation15_spill] sm:$0xff]  ;;  %v14369_v8 = vld [vmem:[#allocation200_spill] sm:$0xff] }
 0xc9a   :  { %7779 = vrcp.f32 %v14346_v43 }
 0xc9c   :  { %v6383_v33 = vpop.permute.xlu2 %6382 }
 0xc9d   :  { %v6657_v17 = vsel %vm3198_vm4, %v6017_v31, %v6383_v33  ;;  %6386 = vrot.lane.b32.xlu1 %v14347_v36, %s7854_s15  ;;  %v14356_v33 = vld [vmem:[#allocation59_spill] sm:$0xff] }
 0xc9e   :  { %6785 = vst.msk [vmem:[%s13682_s8 + $0x368] sm:$0xff] %vm2540_vm3, %v6657_v17 }
 0xc9f   :  { %v7778_v52 = vpop.eup %7777  ;;  %v6373_v0 = vpop.permute.xlu0 %6372 }
 0xca0   :  { %v3579_v55 = vpop.xlane.xlu1 %3578  ;;  %v4996_v58 = vmul.f32 %v7778_v52, %v4708_v48  ;;  %v6652_v59 = vsel %vm3198_vm4, %v6012_v44, %v6373_v0  ;;  %v4711_v61 = vpop.f32.mrf.mxu3 }
 0xca1   :  { %v3709_v23 = vsub.f32 %v13061_v18, %v3579_v55  ;;  %6780 = vst.msk [vmem:[%s13682_s8 + $0x340] sm:$0xff] %vm2540_vm3, %v6652_v59  ;;  %7781 = vrcp.f32 %v4711_v61  ;;  %v7780_v29 = vpop.eup %7779  ;;  %v14352_v18 = vld [vmem:[#allocation171_spill] sm:$0xff] }
 0xca2   :  { %v5124_v28 = vsub.f32 2.0, %v4996_v58  ;;  %v4962_v53 = vmul.f32 %v7780_v29, %v14346_v43  ;;  %v14357_v43 = vld [vmem:[#allocation186_spill] sm:$0xff]  ;;  %v14359_v58 = vld [vmem:[#allocation188_spill] sm:$0xff] }
 0xca3   :  { %v3963_v37 = vmul.f32 1.442695, %v3709_v23 }
 0xca4   :  { %v5252_v50 = vmul.f32 %v7778_v52, %v5124_v28  ;;  %v6389_v48 = vpop.permute.xlu2 %6388 }
 0xca5   :  { %7783 = vpow2.f32 %v3963_v37  ;;  %6392 = vrot.lane.b32.xlu1 %v14352_v18, %s7854_s15 }
 0xca6   :  { %7785 = vrcp.f32 %v14351_v1  ;;  %v5380_v19 = vmul.f32 %v13012_v51, %v5252_v50  ;;  %v5090_v51 = vsub.f32 2.0, %v4962_v53 }
 0xca7   :  { %v7782_v54 = vpop.eup %7781  ;;  %v6379_v46 = vpop.permute.xlu0 %6378  ;;  %7787 = vpow2.f32 %v3965_v5 }
 0xca8   :  { %v4997_v20 = vmul.f32 %v7782_v54, %v4711_v61  ;;  %v6020_v27 = vmul.f32 %v14354_v15, %v5380_v19  ;;  %v6655_v47 = vsel %vm3198_vm4, %v6015_v40, %v6379_v46  ;;  %v13420_v21 = vpop.f32.mrf.mxu3  ;;  %7789 = vrcp.f32 %v14356_v33  ;;  %v14364_v40 = vld [vmem:[#allocation192_spill] sm:$0xff] }
 0xca9   :  { %6783 = vst.msk [vmem:[%s13682_s8 + $0x358] sm:$0xff] %vm2540_vm3, %v6655_v47  ;;  %v5218_v17 = vmul.f32 %v7780_v29, %v5090_v51  ;;  %v14362_v29 = vld [vmem:[#allocation144_spill] sm:$0xff]  ;;  %v14366_v47 = vld [vmem:[#allocation197_spill] sm:$0xff] }
 0xcaa   :  { %v5125_v10 = vsub.f32 2.0, %v4997_v20  ;;  %v6660_v26 = vsel %vm3198_vm4, %v6020_v27, %v6389_v48  ;;  %v14365_v27 = vld [vmem:[#allocation62_spill] sm:$0xff] }
 0xcab   :  { %v13426_v34 = vpop.eup %7783  ;;  %6788 = vst.msk [vmem:[%s13682_s8 + $0x380] sm:$0xff] %vm2540_vm3, %v6660_v26  ;;  %v5346_v59 = vmul.f32 %v14359_v58, %v5218_v17 }
 0xcac   :  { %v7786_v31 = vpop.eup %7785  ;;  %7318 = vmatmul.msk.f32.gmra.mxu3 %vm3198_vm4, %v13426_v34  ;;  %v5253_v6 = vmul.f32 %v7782_v54, %v5125_v10 }
 0xcad   :  { %6398 = vrot.lane.b32.xlu1 %v14357_v43, %s7854_s15  ;;  %v4965_v36 = vmul.f32 %v7786_v31, %v14351_v1  ;;  %v13446_v55 = vpop.eup %7787  ;;  %v5986_v50 = vmul.f32 %v14363_v2, %v5346_v59  ;;  %v14370_v59 = vld [vmem:[#allocation4_spill] sm:$0xff] }
 0xcae   :  { %v5381_v61 = vmul.f32 %v13025_v12, %v5253_v6  ;;  %v7790_v24 = vpop.eup %7789  ;;  %v6395_v6 = vpop.permute.xlu2 %6394 }
 0xcaf   :  { %v6385_v44 = vpop.permute.xlu0 %6384  ;;  %v5093_v23 = vsub.f32 2.0, %v4965_v36  ;;  %v4968_v37 = vmul.f32 %v7790_v24, %v14356_v33  ;;  %v14368_v33 = vld [vmem:[#allocation146_spill] sm:$0xff] }
 0xcb0   :  { %v6658_v52 = vsel %vm3198_vm4, %v6018_v22, %v6385_v44  ;;  %v4717_v0 = vpop.f32.mrf.mxu3  ;;  %v6021_v7 = vmul.f32 %v14362_v29, %v5381_v61  ;;  %v14373_v29 = vld [vmem:[#allocation152_spill] sm:$0xff] }
 0xcb1   :  { %6786 = vst.msk [vmem:[%s13682_s8 + $0x370] sm:$0xff] %vm2540_vm3, %v6658_v52  ;;  %7791 = vrcp.f32 %v4717_v0  ;;  %v5221_v28 = vmul.f32 %v7786_v31, %v5093_v23  ;;  %v5096_v46 = vsub.f32 2.0, %v4968_v37  ;;  %v14371_v23 = vld [vmem:[#allocation203_spill] sm:$0xff] }
 0xcb2   :  { %7793 = vrcp.f32 %v14360_v57 }
 0xcb3   :  { %v5349_v54 = vmul.f32 %v14364_v40, %v5221_v28  ;;  %v5224_v48 = vmul.f32 %v7790_v24, %v5096_v46 }
 0xcb4   :  { %7319 = vmatmul.msk.f32.gmra.mxu3 %vm3198_vm4, %v13446_v55 }
 0xcb5   :  { %6404 = vrot.lane.b32.xlu1 %v14361_v41, %s7854_s15  ;;  %v5989_v10 = vmul.f32 %v14367_v9, %v5349_v54  ;;  %v5352_v22 = vmul.f32 %v14369_v8, %v5224_v48  ;;  %v14372_v41 = vld [vmem:[#allocation17_spill] sm:$0xff] }
 0xcb7   :  { %v7792_v1 = vpop.eup %7791  ;;  %v6391_v18 = vpop.permute.xlu0 %6390  ;;  %v5992_v28 = vmul.f32 %v14372_v41, %v5352_v22 }
 0xcb8   :  { %v6321_v53 = vpop.permute.xlu1 %6320  ;;  %v4999_v12 = vmul.f32 %v7792_v1, %v4717_v0  ;;  %v6661_v63 = vsel %vm3198_vm4, %v6021_v7, %v6391_v18  ;;  %v4720_v35 = vpop.f32.mrf.mxu3 }
 0xcb9   :  { %v6626_v19 = vsel %vm3198_vm4, %v5986_v50, %v6321_v53  ;;  %6789 = vst.msk [vmem:[%s13682_s8 + $0x388] sm:$0xff] %vm2540_vm3, %v6661_v63  ;;  %7795 = vrcp.f32 %v4720_v35  ;;  %v7794_v20 = vpop.eup %7793 }
 0xcba   :  { %v5127_v5 = vsub.f32 2.0, %v4999_v12  ;;  %6754 = vst.msk [vmem:[%s13682_s8 + $0x270] sm:$0xff] %vm2540_vm3, %v6626_v19  ;;  %7797 = vrcp.f32 %v14365_v27  ;;  %v4971_v51 = vmul.f32 %v7794_v20, %v14360_v57 }
 0xcbb   :  { %7799 = vrcp.f32 %v14370_v59 }
 0xcbc   :  { %v5255_v15 = vmul.f32 %v7792_v1, %v5127_v5  ;;  %v5099_v44 = vsub.f32 2.0, %v4971_v51  ;;  %v14374_v1 = vld [vmem:[#allocation45_spill] sm:$0xff]  ;;  %7801 = vrcp.f32 %v12983_v13 }
 0xcbd   :  { %6410 = vrot.lane.b32.xlu1 %v14366_v47, %s7854_s15  ;;  %v14376_v5 = vld [vmem:[#allocation73_spill] sm:$0xff]  ;;  %7803 = vrcp.f32 %v13035_v30 }
 0xcbe   :  { %v5383_v56 = vmul.f32 %v13070_v25, %v5255_v15  ;;  %v5227_v61 = vmul.f32 %v7794_v20, %v5099_v44  ;;  %v14377_v51 = vld [vmem:[#allocation57_spill] sm:$0xff]  ;;  %7805 = vrcp.f32 %v13092_v62 }
 0xcbf   :  { %v7796_v26 = vpop.eup %7795  ;;  %v6397_v50 = vpop.permute.xlu0 %6396  ;;  %7807 = vrcp.f32 %v13156_v32 }
 0xcc0   :  { %v6327_v31 = vpop.permute.xlu1 %6326  ;;  %v6023_v43 = vmul.f32 %v14368_v33, %v5383_v56  ;;  %v5000_v17 = vmul.f32 %v7796_v26, %v4720_v35  ;;  %v7798_v0 = vpop.eup %7797  ;;  %v5355_v18 = vmul.f32 %v14374_v1, %v5227_v61  ;;  %v14375_v35 = vld [vmem:[#allocation50_spill] sm:$0xff]  ;;  %v14381_v61 = vld [vmem:[#allocation63_spill] sm:$0xff] }
 0xcc1   :  { %v6629_v36 = vsel %vm3198_vm4, %v5989_v10, %v6327_v31  ;;  %v4974_v24 = vmul.f32 %v7798_v0, %v14365_v27  ;;  %v7800_v63 = vpop.eup %7799 }
 0xcc2   :  { %6757 = vst.msk [vmem:[%s13682_s8 + $0x288] sm:$0xff] %vm2540_vm3, %v6629_v36  ;;  %v6663_v25 = vsel %vm3198_vm4, %v6023_v43, %v6395_v6  ;;  %v5128_v52 = vsub.f32 2.0, %v5000_v17  ;;  %v4977_v19 = vmul.f32 %v7800_v63, %v14370_v59  ;;  %v5995_v40 = vmul.f32 %v14375_v35, %v5355_v18  ;;  %v7802_v27 = vpop.eup %7801  ;;  %v14379_v6 = vld [vmem:[#allocation30_spill] sm:$0xff] }
 0xcc3   :  { %6791 = vst.msk [vmem:[%s13682_s8 + $0x398] sm:$0xff] %vm2540_vm3, %v6663_v25  ;;  %v5102_v53 = vsub.f32 2.0, %v4974_v24  ;;  %v4980_v48 = vmul.f32 %v7802_v27, %v12983_v13  ;;  %v7804_v43 = vpop.eup %7803 }
 0xcc4   :  { %v5256_v58 = vmul.f32 %v7796_v26, %v5128_v52  ;;  %v5105_v15 = vsub.f32 2.0, %v4977_v19  ;;  %v14378_v26 = vld [vmem:[#allocation85_spill] sm:$0xff]  ;;  %v4983_v13 = vmul.f32 %v7804_v43, %v13035_v30  ;;  %v7806_v25 = vpop.eup %7805  ;;  %v14380_v52 = vld [vmem:[#allocation48_spill] sm:$0xff] }
 0xcc5   :  { %6416 = vrot.lane.b32.xlu1 %v14371_v23, %s7854_s15  ;;  %v5108_v33 = vsub.f32 2.0, %v4980_v48  ;;  %v4986_v23 = vmul.f32 %v7806_v25, %v13092_v62 }
 0xcc6   :  { %v5384_v57 = vmul.f32 %v13082_v11, %v5256_v58  ;;  %v5230_v11 = vmul.f32 %v7798_v0, %v5102_v53  ;;  %v5233_v47 = vmul.f32 %v7800_v63, %v5105_v15  ;;  %v5111_v58 = vsub.f32 2.0, %v4983_v13 }
 0xcc7   :  { %v5236_v36 = vmul.f32 %v7802_v27, %v5108_v33 }
 0xcc8   :  { %v6333_v37 = vpop.permute.xlu1 %6332  ;;  %v6024_v7 = vmul.f32 %v14373_v29, %v5384_v57  ;;  %v5358_v20 = vmul.f32 %v14376_v5, %v5230_v11  ;;  %v5361_v31 = vmul.f32 %v14378_v26, %v5233_v47  ;;  %v5239_v30 = vmul.f32 %v7804_v43, %v5111_v58  ;;  %v14382_v29 = vld [vmem:[#allocation54_spill] sm:$0xff]  ;;  %v6403_v58 = vpop.permute.xlu0 %6402 }
 0xcc9   :  { %v6632_v2 = vsel %vm3198_vm4, %v5992_v28, %v6333_v37  ;;  %v5364_v0 = vmul.f32 %v14380_v52, %v5236_v36  ;;  %v5114_v28 = vsub.f32 2.0, %v4986_v23  ;;  %v7808_v37 = vpop.eup %7807 }
 0xcca   :  { %6760 = vst.msk [vmem:[%s13682_s8 + $0x2a0] sm:$0xff] %vm2540_vm3, %v6632_v2  ;;  %v6664_v12 = vsel %vm3198_vm4, %v6024_v7, %v6397_v50  ;;  %v5998_v56 = vmul.f32 %v14377_v51, %v5358_v20  ;;  %v6001_v8 = vmul.f32 %v14379_v6, %v5361_v31  ;;  %v5367_v7 = vmul.f32 %v14382_v29, %v5239_v30  ;;  %v6401_v51 = vpop.permute.xlu2 %6400  ;;  %v14387_v6 = vld [vmem:[#allocation90_spill] sm:$0xff]  ;;  %v14389_v30 = vld [vmem:[#allocation121_spill] sm:$0xff] }
 0xccb   :  { %6792 = vst.msk [vmem:[%s13682_s8 + $0x3a0] sm:$0xff] %vm2540_vm3, %v6664_v12  ;;  %v6004_v24 = vmul.f32 %v14381_v61, %v5364_v0  ;;  %v5242_v1 = vmul.f32 %v7806_v25, %v5114_v28  ;;  %v4989_v18 = vmul.f32 %v7808_v37, %v13156_v32  ;;  %v14383_v12 = vld [vmem:[#allocation42_spill] sm:$0xff]  ;;  %v14385_v32 = vld [vmem:[#allocation155_spill] sm:$0xff] }
 0xccc   :  { %v6007_v63 = vmul.f32 %v14383_v12, %v5367_v7 }
 0xccd   :  { %v5117_v5 = vsub.f32 2.0, %v4989_v18 }
 0xcd0   :  { %v6339_v54 = vpop.permute.xlu1 %6338 }
 0xcd1   :  { %v6635_v46 = vsel %vm3198_vm4, %v5995_v40, %v6339_v54  ;;  %v14384_v40 = vld [vmem:[#allocation84_spill] sm:$0xff] }
 0xcd2   :  { %6763 = vst.msk [vmem:[%s13682_s8 + $0x2b8] sm:$0xff] %vm2540_vm3, %v6635_v46  ;;  %v5370_v54 = vmul.f32 %v14384_v40, %v5242_v1  ;;  %v14391_v1 = vld [vmem:[#allocation126_spill] sm:$0xff] }
 0xcd8   :  { %v6345_v9 = vpop.permute.xlu1 %6344 }
 0xcd9   :  { %v6638_v10 = vsel %vm3198_vm4, %v5998_v56, %v6345_v9  ;;  %v14386_v56 = vld [vmem:[#allocation117_spill] sm:$0xff] }
 0xcda   :  { %6766 = vst.msk [vmem:[%s13682_s8 + $0x2d0] sm:$0xff] %vm2540_vm3, %v6638_v10  ;;  %v6010_v9 = vmul.f32 %v14386_v56, %v5370_v54  ;;  %v5245_v10 = vmul.f32 %v7808_v37, %v5117_v5 }
 0xcdb   :  { %v13524_v17 = vpop.f32.mrf.mxu3 }
 0xce0   :  { %v6351_v22 = vpop.permute.xlu1 %6350 }
 0xce1   :  { %v6641_v44 = vsel %vm3198_vm4, %v6001_v8, %v6351_v22 }
 0xce2   :  { %6769 = vst.msk [vmem:[%s13682_s8 + $0x2e8] sm:$0xff] %vm2540_vm3, %v6641_v44  ;;  %v14388_v44 = vld [vmem:[#allocation161_spill] sm:$0xff] }
 0xce3   :  { %v4726_v59 = vpop.f32.mrf.mxu3 }
 0xce4   :  { %7809 = vrcp.f32 %v4726_v59 }
 0xce5   :  { %7811 = vrcp.f32 %v13265_v49 }
 0xce8   :  { %v6357_v57 = vpop.permute.xlu1 %6356 }
 0xce9   :  { %v6644_v41 = vsel %vm3198_vm4, %v6004_v24, %v6357_v57 }
 0xcea   :  { %6772 = vst.msk [vmem:[%s13682_s8 + $0x300] sm:$0xff] %vm2540_vm3, %v6644_v41  ;;  %v7810_v2 = vpop.eup %7809  ;;  %v14390_v41 = vld [vmem:[#allocation56_spill] sm:$0xff] }
 0xceb   :  { %v5002_v62 = vmul.f32 %v7810_v2, %v4726_v59  ;;  %v4729_v50 = vpop.f32.mrf.mxu3  ;;  %v7812_v46 = vpop.eup %7811 }
 0xcec   :  { %7813 = vrcp.f32 %v4729_v50  ;;  %v4992_v26 = vmul.f32 %v7812_v46, %v13265_v49  ;;  %v5373_v49 = vmul.f32 %v14387_v6, %v5245_v10 }
 0xced   :  { %v5130_v53 = vsub.f32 2.0, %v5002_v62  ;;  %7815 = vrcp.f32 %v13363_v38 }
 0xcee   :  { %v5120_v8 = vsub.f32 2.0, %v4992_v26  ;;  %7817 = vrcp.f32 %v13420_v21  ;;  %v6013_v61 = vmul.f32 %v14389_v30, %v5373_v49 }
 0xcef   :  { %v5258_v19 = vmul.f32 %v7810_v2, %v5130_v53 }
 0xcf0   :  { %v6363_v11 = vpop.permute.xlu1 %6362  ;;  %v5248_v59 = vmul.f32 %v7812_v46, %v5120_v8  ;;  %v6409_v8 = vpop.permute.xlu0 %6408 }
 0xcf1   :  { %v6647_v35 = vsel %vm3198_vm4, %v6007_v63, %v6363_v11  ;;  %v5386_v20 = vmul.f32 %v13186_v45, %v5258_v19  ;;  %v14392_v11 = vld [vmem:[#allocation77_spill] sm:$0xff] }
 0xcf2   :  { %6775 = vst.msk [vmem:[%s13682_s8 + $0x318] sm:$0xff] %vm2540_vm3, %v6647_v35  ;;  %v7814_v15 = vpop.eup %7813  ;;  %v5376_v28 = vmul.f32 %v14390_v41, %v5248_v59 }
 0xcf3   :  { %v6026_v27 = vmul.f32 %v14385_v32, %v5386_v20  ;;  %v5003_v47 = vmul.f32 %v7814_v15, %v4729_v50  ;;  %v13555_v48 = vpop.f32.mrf.mxu3  ;;  %v7816_v13 = vpop.eup %7815 }
 0xcf4   :  { %v4995_v0 = vmul.f32 %v7816_v13, %v13363_v38  ;;  %v7818_v38 = vpop.eup %7817  ;;  %v6016_v18 = vmul.f32 %v14391_v1, %v5376_v28  ;;  %v6407_v32 = vpop.permute.xlu2 %6406  ;;  %v14399_v28 = vld [vmem:[#allocation154_spill] sm:$0xff] }
 0xcf5   :  { %v6666_v31 = vsel %vm3198_vm4, %v6026_v27, %v6401_v51  ;;  %v5131_v33 = vsub.f32 2.0, %v5003_v47  ;;  %v4998_v62 = vmul.f32 %v7818_v38, %v13420_v21  ;;  %v14393_v21 = vld [vmem:[#allocation164_spill] sm:$0xff]  ;;  %v14394_v27 = vld [vmem:[#allocation137_spill] sm:$0xff] }
 0xcf6   :  { %6794 = vst.msk [vmem:[%s13682_s8 + $0x3b0] sm:$0xff] %vm2540_vm3, %v6666_v31  ;;  %v5123_v57 = vsub.f32 2.0, %v4995_v0 }
 0xcf7   :  { %v5259_v43 = vmul.f32 %v7814_v15, %v5131_v33  ;;  %v5126_v40 = vsub.f32 2.0, %v4998_v62  ;;  %v14395_v33 = vld [vmem:[#allocation29_spill] sm:$0xff] }
 0xcf8   :  { %v6369_v45 = vpop.permute.xlu1 %6368  ;;  %v5251_v2 = vmul.f32 %v7816_v13, %v5123_v57  ;;  %v14396_v13 = vld [vmem:[#allocation170_spill] sm:$0xff] }
 0xcf9   :  { %v6650_v36 = vsel %vm3198_vm4, %v6010_v9, %v6369_v45  ;;  %v5387_v22 = vmul.f32 %v13218_v4, %v5259_v43  ;;  %v5254_v51 = vmul.f32 %v7818_v38, %v5126_v40 }
 0xcfa   :  { %6778 = vst.msk [vmem:[%s13682_s8 + $0x330] sm:$0xff] %vm2540_vm3, %v6650_v36  ;;  %v5379_v19 = vmul.f32 %v14392_v11, %v5251_v2 }
 0xcfb   :  { %v6027_v25 = vmul.f32 %v14388_v44, %v5387_v22  ;;  %v4735_v52 = vpop.f32.mrf.mxu3  ;;  %v5382_v45 = vmul.f32 %v14395_v33, %v5254_v51 }
 0xcfc   :  { %7819 = vrcp.f32 %v4735_v52  ;;  %v6019_v47 = vmul.f32 %v14394_v27, %v5379_v19  ;;  %v6413_v11 = vpop.permute.xlu2 %6412  ;;  %v6415_v27 = vpop.permute.xlu0 %6414 }
 0xcfd   :  { %v6667_v23 = vsel %vm3198_vm4, %v6027_v25, %v6403_v58  ;;  %7821 = vrcp.f32 %v13524_v17 }
 0xcfe   :  { %6795 = vst.msk [vmem:[%s13682_s8 + $0x3b8] sm:$0xff] %vm2540_vm3, %v6667_v23  ;;  %v14398_v23 = vld [vmem:[#allocation81_spill] sm:$0xff] }
 0xd00   :  { %v6375_v4 = vpop.permute.xlu1 %6374 }
 0xd01   :  { %v6653_v24 = vsel %vm3198_vm4, %v6013_v61, %v6375_v4 }
 0xd02   :  { %6781 = vst.msk [vmem:[%s13682_s8 + $0x348] sm:$0xff] %vm2540_vm3, %v6653_v24  ;;  %v7820_v37 = vpop.eup %7819 }
 0xd03   :  { %v5005_v29 = vmul.f32 %v7820_v37, %v4735_v52  ;;  %v4738_v7 = vpop.f32.mrf.mxu3  ;;  %v7822_v35 = vpop.eup %7821  ;;  %v14397_v52 = vld [vmem:[#allocation145_spill] sm:$0xff] }
 0xd04   :  { %7823 = vrcp.f32 %v4738_v7  ;;  %v5001_v56 = vmul.f32 %v7822_v35, %v13524_v17  ;;  %v6022_v0 = vmul.f32 %v14397_v52, %v5382_v45 }
 0xd05   :  { %v5133_v50 = vsub.f32 2.0, %v5005_v29  ;;  %7825 = vrcp.f32 %v13555_v48 }
 0xd06   :  { %v5129_v17 = vsub.f32 2.0, %v5001_v56  ;;  %v14403_v56 = vld [vmem:[#allocation173_spill] sm:$0xff] }
 0xd07   :  { %v5261_v12 = vmul.f32 %v7820_v37, %v5133_v50 }
 0xd08   :  { %v6381_v53 = vpop.permute.xlu1 %6380  ;;  %v5257_v22 = vmul.f32 %v7822_v35, %v5129_v17 }
 0xd09   :  { %v6656_v63 = vsel %vm3198_vm4, %v6016_v18, %v6381_v53  ;;  %v5389_v54 = vmul.f32 %v13285_v3, %v5261_v12  ;;  %v14400_v53 = vld [vmem:[#allocation174_spill] sm:$0xff] }
 0xd0a   :  { %6784 = vst.msk [vmem:[%s13682_s8 + $0x360] sm:$0xff] %vm2540_vm3, %v6656_v63  ;;  %v7824_v46 = vpop.eup %7823 }
 0xd0b   :  { %v6029_v5 = vmul.f32 %v14393_v21, %v5389_v54  ;;  %v5006_v20 = vmul.f32 %v7824_v46, %v4738_v7  ;;  %v4741_v15 = vpop.f32.mrf.mxu3  ;;  %v7826_v36 = vpop.eup %7825  ;;  %v14401_v54 = vld [vmem:[#allocation163_spill] sm:$0xff] }
 0xd0c   :  { %7827 = vrcp.f32 %v4741_v15  ;;  %v5004_v44 = vmul.f32 %v7826_v36, %v13555_v48  ;;  %v5385_v48 = vmul.f32 %v14398_v23, %v5257_v22 }
 0xd0d   :  { %v6669_v9 = vsel %vm3198_vm4, %v6029_v5, %v6407_v32  ;;  %v5134_v10 = vsub.f32 2.0, %v5006_v20 }
 0xd0e   :  { %6797 = vst.msk [vmem:[%s13682_s8 + $0x3c8] sm:$0xff] %vm2540_vm3, %v6669_v9  ;;  %v5132_v30 = vsub.f32 2.0, %v5004_v44  ;;  %v6025_v37 = vmul.f32 %v14399_v28, %v5385_v48 }
 0xd0f   :  { %v5262_v26 = vmul.f32 %v7824_v46, %v5134_v10 }
 0xd10   :  { %v6387_v3 = vpop.permute.xlu1 %6386  ;;  %v5260_v57 = vmul.f32 %v7826_v36, %v5132_v30  ;;  %v14404_v36 = vld [vmem:[#allocation183_spill] sm:$0xff] }
 0xd11   :  { %v6659_v31 = vsel %vm3198_vm4, %v6019_v47, %v6387_v3  ;;  %v5390_v43 = vmul.f32 %v13310_v14, %v5262_v26 }
 0xd12   :  { %6787 = vst.msk [vmem:[%s13682_s8 + $0x378] sm:$0xff] %vm2540_vm3, %v6659_v31  ;;  %v7828_v59 = vpop.eup %7827  ;;  %v5388_v62 = vmul.f32 %v13251_v16, %v5260_v57 }
 0xd13   :  { %v6030_v6 = vmul.f32 %v14396_v13, %v5390_v43  ;;  %v4744_v49 = vpop.f32.mrf.mxu3  ;;  %v5007_v38 = vmul.f32 %v7828_v59, %v4741_v15  ;;  %v14402_v15 = vld [vmem:[#allocation181_spill] sm:$0xff] }
 0xd14   :  { %7829 = vrcp.f32 %v4744_v49  ;;  %v6028_v46 = vmul.f32 %v14401_v54, %v5388_v62 }
 0xd15   :  { %v6670_v25 = vsel %vm3198_vm4, %v6030_v6, %v6409_v8  ;;  %v5135_v50 = vsub.f32 2.0, %v5007_v38 }
 0xd16   :  { %6798 = vst.msk [vmem:[%s13682_s8 + $0x3d0] sm:$0xff] %vm2540_vm3, %v6670_v25  ;;  %v14405_v25 = vld [vmem:[#allocation184_spill] sm:$0xff] }
 0xd17   :  { %v5263_v19 = vmul.f32 %v7828_v59, %v5135_v50 }
 0xd18   :  { %v6393_v14 = vpop.permute.xlu1 %6392 }
 0xd19   :  { %v6662_v58 = vsel %vm3198_vm4, %v6022_v0, %v6393_v14  ;;  %v5391_v5 = vmul.f32 %v13336_v60, %v5263_v19  ;;  %v6419_v0 = vpop.permute.xlu2 %6418 }
 0xd1a   :  { %6790 = vst.msk [vmem:[%s13682_s8 + $0x390] sm:$0xff] %vm2540_vm3, %v6662_v58  ;;  %v7830_v61 = vpop.eup %7829 }
 0xd1b   :  { %v5008_v4 = vmul.f32 %v7830_v61, %v4744_v49  ;;  %v4747_v24 = vpop.f32.mrf.mxu3  ;;  %v6031_v9 = vmul.f32 %v14403_v56, %v5391_v5 }
 0xd1c   :  { %7831 = vrcp.f32 %v4747_v24 }
 0xd1d   :  { %v5136_v41 = vsub.f32 2.0, %v5008_v4 }
 0xd1f   :  { %v5264_v7 = vmul.f32 %v7830_v61, %v5136_v41 }
 0xd20   :  { %v6399_v29 = vpop.permute.xlu1 %6398 }
 0xd21   :  { %v6665_v2 = vsel %vm3198_vm4, %v6025_v37, %v6399_v29  ;;  %v5392_v1 = vmul.f32 %v13360_v42, %v5264_v7 }
 0xd22   :  { %6793 = vst.msk [vmem:[%s13682_s8 + $0x3a8] sm:$0xff] %vm2540_vm3, %v6665_v2  ;;  %v7832_v18 = vpop.eup %7831 }
 0xd23   :  { %v6032_v12 = vmul.f32 %v14400_v53, %v5392_v1  ;;  %v5009_v63 = vmul.f32 %v7832_v18, %v4747_v24 }
 0xd25   :  { %v6672_v35 = vsel %vm3198_vm4, %v6032_v12, %v6413_v11  ;;  %v5137_v40 = vsub.f32 2.0, %v5009_v63 }
 0xd26   :  { %6800 = vst.msk [vmem:[%s13682_s8 + $0x3e0] sm:$0xff] %vm2540_vm3, %v6672_v35 }
 0xd27   :  { %v5265_v21 = vmul.f32 %v7832_v18, %v5137_v40 }
 0xd28   :  { %v6405_v16 = vpop.permute.xlu1 %6404 }
 0xd29   :  { %v6668_v42 = vsel %vm3198_vm4, %v6028_v46, %v6405_v16  ;;  %v5393_v20 = vmul.f32 %v13383_v39, %v5265_v21 }
 0xd2a   :  { %6796 = vst.msk [vmem:[%s13682_s8 + $0x3c0] sm:$0xff] %vm2540_vm3, %v6668_v42 }
 0xd2b   :  { %v6033_v32 = vmul.f32 %v14402_v15, %v5393_v20 }
 0xd2d   :  { %v6673_v47 = vsel %vm3198_vm4, %v6033_v32, %v6415_v27 }
 0xd2e   :  { %6801 = vst.msk [vmem:[%s13682_s8 + $0x3e8] sm:$0xff] %vm2540_vm3, %v6673_v47 }
 0xd2f   :  { %v4750_v51 = vpop.f32.mrf.mxu3 }
 0xd30   :  { %7833 = vrcp.f32 %v4750_v51  ;;  %v6411_v10 = vpop.permute.xlu1 %6410 }
 0xd31   :  { %v6671_v3 = vsel %vm3198_vm4, %v6031_v9, %v6411_v10 }
 0xd32   :  { %6799 = vst.msk [vmem:[%s13682_s8 + $0x3d8] sm:$0xff] %vm2540_vm3, %v6671_v3 }
 0xd36   :  { %v7834_v60 = vpop.eup %7833 }
 0xd37   :  { %v5010_v39 = vmul.f32 %v7834_v60, %v4750_v51  ;;  %v4753_v26 = vpop.f32.mrf.mxu3 }
 0xd38   :  { %7835 = vrcp.f32 %v4753_v26  ;;  %v6417_v6 = vpop.permute.xlu1 %6416 }
 0xd39   :  { %v5138_v31 = vsub.f32 2.0, %v5010_v39 }
 0xd3b   :  { %v5266_v33 = vmul.f32 %v7834_v60, %v5138_v31 }
 0xd3d   :  { %v5394_v45 = vmul.f32 %v13426_v34, %v5266_v33 }
 0xd3e   :  { %v7836_v17 = vpop.eup %7835 }
 0xd3f   :  { %v5011_v43 = vmul.f32 %v7836_v17, %v4753_v26  ;;  %v6034_v13 = vmul.f32 %v14404_v36, %v5394_v45 }
 0xd41   :  { %v5139_v49 = vsub.f32 2.0, %v5011_v43  ;;  %v6674_v8 = vsel %vm3198_vm4, %v6034_v13, %v6417_v6 }
 0xd42   :  { %6802 = vst.msk [vmem:[%s13682_s8 + $0x3f0] sm:$0xff] %vm2540_vm3, %v6674_v8 }
 0xd43   :  { %v5267_v22 = vmul.f32 %v7836_v17, %v5139_v49 }
 0xd45   :  { %v5395_v44 = vmul.f32 %v13446_v55, %v5267_v22 }
 0xd47   :  { %v6035_v52 = vmul.f32 %v14405_v25, %v5395_v44 }
 0xd49   :  { %v6675_v34 = vsel %vm3198_vm4, %v6035_v52, %v6419_v0 }
 0xd4a   :  { %6803 = vst.msk [vmem:[%s13682_s8 + $0x3f8] sm:$0xff] %vm2540_vm3, %v6675_v34 }

</bundles_post_ra>
